<compile_context>
chip_gen: v5e
topology: v5e:2x2
jax: 0.10.0
libtpu: 0.0.40
codegen_flags: <defaults>
</compile_context>

<pallas_src>
import numpy as np
import jax
import jax.numpy as jnp
from jax.experimental import pallas as pl
from jax.experimental.pallas import tpu as pltpu


# ----------------------------------------------------------------------------
# VMEM budgeting helpers
# ----------------------------------------------------------------------------
def _round_up(a, b):
    return (a + b - 1) // b * b


def _vreg_padded_bytes(shape, dtype):
    """Approximate VMEM bytes of a block after (sublane, lane) tile padding."""
    item = np.dtype(dtype).itemsize
    dims = list(shape)
    dims[-1] = _round_up(dims[-1], 128)
    if len(dims) >= 2:
        dims[-2] = _round_up(dims[-2], max(8, 32 // item))
    n = 1
    for d in dims:
        n *= int(d)
    return n * item


def _vmem_limit(block_bytes):
    # 2x headroom over the estimate, never below the default scoped limit and
    # comfortably below v5e/v6e physical VMEM.  (v7x needs the tiling TODO.)
    return int(min(112 << 20, max(32 << 20, 2 * block_bytes + (2 << 20))))


# ----------------------------------------------------------------------------
# Fused conv stack: N stages of [3x3 conv, dilation (1, d), padding (1, d),
# leaky_relu(0.3)] in one kernel.  Padding fused via zero-BORDERED VMEM
# scratches (only the border strips are zeroed); stages ping-pong between two
# scratches whose time padding matches the dilations they actually feed.
# ----------------------------------------------------------------------------
def _make_conv_stack_kernel(C, H, W, dils, pads, neg_slope):
    KH = KW = 3
    ph = 1
    n_stage = len(dils)

    def kernel(x_ref, w_ref, b_ref, o_ref, *bufs):
        # Zero ONLY the border strips; interiors are always fully overwritten
        # (by the x copy for bufs[0], by each stage's dst write for the other).
        for buf, pw in zip(bufs, pads):
            buf[:, :, :pw] = jnp.zeros((C, H + 2 * ph, pw), jnp.float32)
            buf[:, :, pw + W:] = jnp.zeros((C, H + 2 * ph, pw), jnp.float32)
            buf[:, :ph, pw:pw + W] = jnp.zeros((C, ph, W), jnp.float32)
            buf[:, ph + H:, pw:pw + W] = jnp.zeros((C, ph, W), jnp.float32)
        bufs[0][:, ph:ph + H, pads[0]:pads[0] + W] = x_ref[0].astype(jnp.float32)

        w_off = 0
        b_off = 0
        for s, d in enumerate(dils):
            src, pw_src = bufs[s % 2], pads[s % 2]
            last = (s == n_stage - 1)
            if not last:
                dst, pw_dst = bufs[(s + 1) % 2], pads[(s + 1) % 2]
            # bias-initialised accumulators: one (H, W) f32 plane per out channel
            accs = [b_ref[b_off + co] + jnp.zeros((H, W), jnp.float32)
                    for co in range(C)]
            for ci in range(C):
                for kh in range(KH):
                    hs = ph + kh - 1
                    for kw in range(KW):
                        ws = pw_src + (kw - 1) * d
                        # lane-dense VMEM load of the shifted (dilated) tap
                        sl = src[ci, hs:hs + H, ws:ws + W]
                        for co in range(C):
                            wv = w_ref[w_off + ((co * C + ci) * KH + kh) * KW + kw]
                            accs[co] = accs[co] + wv * sl
            for co in range(C):
                y = accs[co]
                y = jnp.where(y > 0, y, neg_slope * y)        # leaky_relu(0.3)
                if last:
                    o_ref[0, co] = y.astype(o_ref.dtype)      # bf16 store
                else:
                    dst[co, ph:ph + H, pw_dst:pw_dst + W] = y
            w_off += C * C * KH * KW
            b_off += C

    return kernel


def conv_stack_pallas(x, w_flat, b_flat, dils):
    """x: (B, C, Freq, Time) f32.  Returns (B, C, Freq, Time) bf16."""
    B, C, H, W = x.shape
    n_stage = len(dils)
    # buffer k is only ever read by stages s with s % 2 == k -> pad accordingly
    pad_a = max(dils[0::2])
    pads = (pad_a,) if n_stage == 1 else (pad_a, max(dils[1::2]))

    kernel = _make_conv_stack_kernel(C, H, W, dils, pads, 0.3)
    scratch = [pltpu.VMEM((C, H + 2, W + 2 * p), jnp.float32) for p in pads]
    blk_bytes = (2 * _vreg_padded_bytes((1, C, H, W), x.dtype)
                 + 2 * _vreg_padded_bytes((1, C, H, W), jnp.bfloat16)
                 + sum(_vreg_padded_bytes((C, H + 2, W + 2 * p), jnp.float32)
                       for p in pads))

    return pl.pallas_call(
        kernel,
        out_shape=jax.ShapeDtypeStruct((B, C, H, W), jnp.bfloat16),
        grid=(B,),
        in_specs=[
            pl.BlockSpec((1, C, H, W), lambda b: (b, 0, 0, 0)),
            pl.BlockSpec(memory_space=pltpu.MemorySpace.SMEM),   # flat conv weights
            pl.BlockSpec(memory_space=pltpu.MemorySpace.SMEM),   # flat biases
        ],
        out_specs=pl.BlockSpec((1, C, H, W), lambda b: (b, 0, 0, 0)),
        scratch_shapes=scratch,
        compiler_params=pltpu.CompilerParams(
            dimension_semantics=("parallel",),
            vmem_limit_bytes=_vmem_limit(blk_bytes)),
    )(x, w_flat, b_flat)


# ----------------------------------------------------------------------------
# Phase-decomposed ConvTranspose2d (k=3, p=1, op=0) with the 1x1 strided skip
# ConvTranspose (or identity skip) fused in.  ALL sh*sw phases are computed in
# one grid step (scratch fill happens once per batch element); output is
# phase-blocked (B, sh, sw, Co, H, W) with dense (H, W) stores.
# ----------------------------------------------------------------------------
def _make_deconv_skip_kernel(Ci, Co, H, W, sh, sw, has_proj):
    KH = KW = 3
    ph = pw = 1
    M = 1  # k=3, p=1 => dh, dw in {-1, 0, 1}; margin of 1 suffices

    def kernel(*refs):
        if has_proj:
            x_ref, s_ref, w_ref, ws_ref, b_ref, o_ref, xs = refs
        else:
            x_ref, s_ref, w_ref, b_ref, o_ref, xs = refs

        # compact (NOT zero-inserted) input; zero only the 1-wide border strips
        xs[:, :, :M] = jnp.zeros((Ci, H + 2 * M, M), jnp.float32)
        xs[:, :, M + W:] = jnp.zeros((Ci, H + 2 * M, M), jnp.float32)
        xs[:, :M, M:M + W] = jnp.zeros((Ci, M, W), jnp.float32)
        xs[:, M + H:, M:M + W] = jnp.zeros((Ci, M, W), jnp.float32)
        xs[:, M:M + H, M:M + W] = x_ref[0].astype(jnp.float32)

        for rh in range(sh):
            for rw in range(sw):
                accs = [b_ref[co] + jnp.zeros((H, W), jnp.float32)
                        for co in range(Co)]
                # only the transposed-conv taps that land on this output phase
                for kh in range(KH):
                    if (rh + ph - kh) % sh != 0:
                        continue
                    dh = (rh + ph - kh) // sh
                    for kw in range(KW):
                        if (rw + pw - kw) % sw != 0:
                            continue
                        dw = (rw + pw - kw) // sw
                        for ci in range(Ci):
                            sl = xs[ci, M + dh:M + dh + H, M + dw:M + dw + W]
                            for co in range(Co):
                                wv = w_ref[((ci * Co + co) * KH + kh) * KW + kw]
                                accs[co] = accs[co] + wv * sl
                # fused skip path: a 1x1 stride-s ConvTranspose only touches
                # output phase (0, 0); its bias was folded into b_ref already.
                if rh == 0 and rw == 0:
                    for ci in range(Ci):
                        sk = s_ref[0, ci].astype(jnp.float32)
                        if has_proj:
                            for co in range(Co):
                                accs[co] = accs[co] + ws_ref[ci * Co + co] * sk
                        else:
                            accs[ci] = accs[ci] + sk     # identity skip (Ci == Co)
                for co in range(Co):
                    o_ref[0, rh, rw, co] = accs[co].astype(o_ref.dtype)

    return kernel


def deconv_with_skip_pallas(x_proc, skip, w_de, b_de, w_skip, b_skip, *,
                            Sfreq, Stime):
    """x_proc: (B, Ci, H, W) bf16 activations, skip: (B, Ci, H, W) f32 raw input.
    w_de: (Ci, Co, 3, 3) ConvTranspose2d layout, w_skip: (Ci, Co, 1, 1) or None."""
    B, Ci, H, W = x_proc.shape
    Co = w_de.shape[1]
    sh, sw = Sfreq, Stime
    Hout = (H - 1) * sh + 1          # k=3, p=1, output_padding=0
    Wout = (W - 1) * sw + 1
    has_proj = w_skip is not None

    w_flat = w_de.reshape(-1)
    b_tot = (b_de + b_skip) if has_proj else b_de

    kernel = _make_deconv_skip_kernel(Ci, Co, H, W, sh, sw, has_proj)
    smem = pl.BlockSpec(memory_space=pltpu.MemorySpace.SMEM)
    in_specs = [
        pl.BlockSpec((1, Ci, H, W), lambda b: (b, 0, 0, 0)),   # x_proc (bf16)
        pl.BlockSpec((1, Ci, H, W), lambda b: (b, 0, 0, 0)),   # skip (f32)
        smem,                                                   # deconv weights
    ]
    args = [x_proc, skip, w_flat]
    if has_proj:
        in_specs.append(smem)                                   # skip weights
        args.append(w_skip.reshape(-1))
    in_specs.append(smem)                                       # combined bias
    args.append(b_tot)

    out_block = (1, sh, sw, Co, H, W)
    blk_bytes = (2 * _vreg_padded_bytes((1, Ci, H, W), x_proc.dtype)
                 + 2 * _vreg_padded_bytes((1, Ci, H, W), skip.dtype)
                 + 2 * _vreg_padded_bytes(out_block, jnp.float32)
                 + _vreg_padded_bytes((Ci, H + 2, W + 2), jnp.float32))

    phase_out = pl.pallas_call(
        kernel,
        out_shape=jax.ShapeDtypeStruct((B, sh, sw, Co, H, W), jnp.float32),
        grid=(B,),
        in_specs=in_specs,
        out_specs=pl.BlockSpec(out_block, lambda b: (b, 0, 0, 0, 0, 0)),
        scratch_shapes=[pltpu.VMEM((Ci, H + 2, W + 2), jnp.float32)],
        compiler_params=pltpu.CompilerParams(
            dimension_semantics=("parallel",),
            vmem_limit_bytes=_vmem_limit(blk_bytes)),
    )(*args)

    if sh == 1 and sw == 1:
        # zero-copy: single phase, just drop the singleton phase axes
        return phase_out.reshape(B, Co, H, W)

    # TODO(synk): production consumers should read the phase-blocked layout
    # directly; this single XLA de-interleave pass only restores standard NCHW.
    y = jnp.transpose(phase_out, (0, 3, 4, 1, 5, 2)).reshape(B, Co, H * sh, W * sw)
    return y[:, :, :Hout, :Wout]


# ----------------------------------------------------------------------------
# DBlock parameters (PyTorch layouts) and forward
# ----------------------------------------------------------------------------
def init_dblock_params(key, Cin, Cout, Stime, Sfreq, Dtime):
    keys = jax.random.split(key, 10)

    def w(k, shape):
        return jax.random.normal(k, shape, jnp.float32) * 0.1

    def b(k, c):
        return jax.random.normal(k, (c,), jnp.float32) * 0.05

    p = {"w_conv1": w(keys[0], (Cin, Cin, 3, 3)), "b_conv1": b(keys[1], Cin)}
    if Dtime:
        p["w_td1"] = w(keys[2], (Cin, Cin, 3, 3)); p["b_td1"] = b(keys[3], Cin)
        p["w_td2"] = w(keys[4], (Cin, Cin, 3, 3)); p["b_td2"] = b(keys[5], Cin)
    p["w_de"] = w(keys[6], (Cin, Cout, 3, 3))    # ConvTranspose2d layout (Ci,Co,kh,kw)
    p["b_de"] = b(keys[7], Cout)
    if (Cin != Cout) or (Sfreq != 1) or (Stime != 1):
        p["w_skip"] = w(keys[8], (Cin, Cout, 1, 1))
        p["b_skip"] = b(keys[9], Cout)
    return p


def dblock_forward(params, x, *, Stime, Sfreq, Dtime):
    """x: (B, Cin, Freq, Time) f32 -> (B, Cout, Freq_out, Time_out) f32."""
    dils = (1, 3, 9) if Dtime else (1,)
    ws = [params["w_conv1"].reshape(-1)]
    bs = [params["b_conv1"]]
    if Dtime:
        ws += [params["w_td1"].reshape(-1), params["w_td2"].reshape(-1)]
        bs += [params["b_td1"], params["b_td2"]]
    w_flat = jnp.concatenate(ws)
    b_flat = jnp.concatenate(bs)

    # conv1 (+ TDBlock) + leaky_relu, fully fused (bf16 intermediate out)
    # TODO(synk): bf16 handoff is an intentional deviation from pure-f32 PyTorch;
    # confirm downstream tolerance before shipping.
    x_proc = conv_stack_pallas(x, w_flat, b_flat, dils)

    # main transposed conv with the skip ConvTranspose / identity fused in
    return deconv_with_skip_pallas(
        x_proc, x, params["w_de"], params["b_de"],
        params.get("w_skip"), params.get("b_skip"),
        Sfreq=Sfreq, Stime=Stime)


# ----------------------------------------------------------------------------
# Pure-JAX reference (XLA convs) for in-script validation
# ----------------------------------------------------------------------------
def dblock_reference(params, x, *, Stime, Sfreq, Dtime, bf16_intermediate=False):
    P = jax.lax.Precision.HIGHEST

    def conv(h, w, bias, dil):
        y = jax.lax.conv_general_dilated(
            h, w, window_strides=(1, 1),
            padding=[(1, 1), (dil, dil)], rhs_dilation=(1, dil),
            dimension_numbers=("NCHW", "OIHW", "NCHW"), precision=P)
        return y + bias.reshape(1, -1, 1, 1)

    def convT(h, w_pt, bias, stride, pad):
        kh, kw = w_pt.shape[2], w_pt.shape[3]
        w = jnp.transpose(w_pt[:, :, ::-1, ::-1], (1, 0, 2, 3))
        y = jax.lax.conv_general_dilated(
            h, w, window_strides=(1, 1),
            padding=[(kh - 1 - pad[0],) * 2, (kw - 1 - pad[1],) * 2],
            lhs_dilation=stride,
            dimension_numbers=("NCHW", "OIHW", "NCHW"), precision=P)
        return y + bias.reshape(1, -1, 1, 1)

    lrelu = lambda v: jnp.where(v > 0, v, 0.3 * v)
    skip = x
    h = lrelu(conv(x, params["w_conv1"], params["b_conv1"], 1))
    if Dtime:
        h = lrelu(conv(h, params["w_td1"], params["b_td1"], 3))
        h = lrelu(conv(h, params["w_td2"], params["b_td2"], 9))
    if bf16_intermediate:
        h = h.astype(jnp.bfloat16).astype(jnp.float32)
    y = convT(h, params["w_de"], params["b_de"], (Sfreq, Stime), (1, 1))
    if "w_skip" in params:
        y = y + convT(skip, params["w_skip"], params["b_skip"], (Sfreq, Stime), (0, 0))
    else:
        y = y + skip
    return y


if __name__ == "__main__":
    key = jax.random.PRNGKey(0)
    kx, kp, kx2, kp2 = jax.random.split(key, 4)

    # Config 1: TDBlock enabled, 2x upsampling in freq and time, channel change.
    B, Cin, H, W = 2, 4, 8, 16           # (batch, channels, freq, time)
    Cout, Stime, Sfreq, Dtime = 6, 2, 2, True
    x = jax.random.normal(kx, (B, Cin, H, W), jnp.float32)
    params = init_dblock_params(kp, Cin, Cout, Stime, Sfreq, Dtime)

    out = jax.block_until_ready(
        dblock_forward(params, x, Stime=Stime, Sfreq=Sfreq, Dtime=Dtime))
    assert out.shape == (B, Cout, (H - 1) * Sfreq + 1, (W - 1) * Stime + 1), out.shape
    assert out.dtype == jnp.float32

    # tight check vs reference with the same bf16 intermediate (kernel math)
    ref_q = dblock_reference(params, x, Stime=Stime, Sfreq=Sfreq, Dtime=Dtime,
                             bf16_intermediate=True)
    assert bool(jnp.allclose(out, ref_q, rtol=2e-3, atol=2e-3)), \
        float(jnp.max(jnp.abs(out - ref_q)))
    # loose check vs the exact f32 module reference (bf16 intermediate approx)
    ref_f = dblock_reference(params, x, Stime=Stime, Sfreq=Sfreq, Dtime=Dtime)
    assert float(jnp.max(jnp.abs(out - ref_f))) < 0.1

    # Config 2: no TDBlock, stride 1, Cin == Cout -> identity skip path.
    B2, C2, H2, W2 = 2, 4, 8, 16
    x2 = jax.random.normal(kx2, (B2, C2, H2, W2), jnp.float32)
    params2 = init_dblock_params(kp2, C2, C2, 1, 1, False)
    out2 = jax.block_until_ready(
        dblock_forward(params2, x2, Stime=1, Sfreq=1, Dtime=False))
    assert out2.shape == (B2, C2, H2, W2), out2.shape
    ref2 = dblock_reference(params2, x2, Stime=1, Sfreq=1, Dtime=False,
                            bf16_intermediate=True)
    assert bool(jnp.allclose(out2, ref2, rtol=2e-3, atol=2e-3)), \
        float(jnp.max(jnp.abs(out2 - ref2)))

    print("KERNEL_OK")
</pallas_src>

<mosaic_0001>
module attributes {stable_mosaic.version = 11 : i64} {
  func.func @kernel(%arg0: i32, %arg1: memref<1x4x8x16xf32, #tpu.memory_space<vmem>>, %arg2: memref<432xf32, #tpu.memory_space<smem>>, %arg3: memref<12xf32, #tpu.memory_space<smem>>, %arg4: memref<1x4x8x16xbf16, #tpu.memory_space<vmem>>, %arg5: memref<4x10x34xf32, #tpu.memory_space<vmem>>, %arg6: memref<4x10x22xf32, #tpu.memory_space<vmem>>) attributes {dimension_semantics = [#tpu.dimension_semantics<parallel>], iteration_bounds = array<i64: 2>, scalar_prefetch = 0 : i64, scratch_operands = 2 : i64, tpu.core_type = #tpu.core_type<tc>, window_params = [{transform_indices = @transform_0, window_bounds = array<i64: 1, 4, 8, 16>}, {transform_indices = @transform_1, window_bounds = array<i64: 432>}, {transform_indices = @transform_2, window_bounds = array<i64: 12>}, {transform_indices = @transform_3, window_bounds = array<i64: 1, 4, 8, 16>}]} {
    %cst = arith.constant 0.000000e+00 : f32
    %0 = vector.broadcast %cst : f32 to vector<4x10x9xf32>
    %c0 = arith.constant 0 : index
    %c0_0 = arith.constant 0 : index
    %c0_1 = arith.constant 0 : index
    %1 = vector.load %arg5[%c0, %c0_0, %c0_1] : memref<4x10x34xf32, #tpu.memory_space<vmem>>, vector<4x10x9xf32>
    tpu.vector_store %arg5[%c0, %c0_0, %c0_1], %0 {strides = array<i32>} : memref<4x10x34xf32, #tpu.memory_space<vmem>>, vector<4x10x9xf32>,
    %cst_2 = arith.constant 0.000000e+00 : f32
    %2 = vector.broadcast %cst_2 : f32 to vector<4x10x9xf32>
    %c0_3 = arith.constant 0 : index
    %c0_4 = arith.constant 0 : index
    %c25 = arith.constant 25 : index
    %3 = vector.load %arg5[%c0_3, %c0_4, %c25] : memref<4x10x34xf32, #tpu.memory_space<vmem>>, vector<4x10x9xf32>
    tpu.vector_store %arg5[%c0_3, %c0_4, %c25], %2 {strides = array<i32>} : memref<4x10x34xf32, #tpu.memory_space<vmem>>, vector<4x10x9xf32>,
    %cst_5 = arith.constant 0.000000e+00 : f32
    %4 = vector.broadcast %cst_5 : f32 to vector<4x1x16xf32>
    %c0_6 = arith.constant 0 : index
    %c0_7 = arith.constant 0 : index
    %c9 = arith.constant 9 : index
    %5 = vector.load %arg5[%c0_6, %c0_7, %c9] : memref<4x10x34xf32, #tpu.memory_space<vmem>>, vector<4x1x16xf32>
    tpu.vector_store %arg5[%c0_6, %c0_7, %c9], %4 {strides = array<i32>} : memref<4x10x34xf32, #tpu.memory_space<vmem>>, vector<4x1x16xf32>,
    %cst_8 = arith.constant 0.000000e+00 : f32
    %6 = vector.broadcast %cst_8 : f32 to vector<4x1x16xf32>
    %c0_9 = arith.constant 0 : index
    %c9_10 = arith.constant 9 : index
    %c9_11 = arith.constant 9 : index
    %7 = vector.load %arg5[%c0_9, %c9_10, %c9_11] : memref<4x10x34xf32, #tpu.memory_space<vmem>>, vector<4x1x16xf32>
    tpu.vector_store %arg5[%c0_9, %c9_10, %c9_11], %6 {strides = array<i32>} : memref<4x10x34xf32, #tpu.memory_space<vmem>>, vector<4x1x16xf32>,
    %cst_12 = arith.constant 0.000000e+00 : f32
    %8 = vector.broadcast %cst_12 : f32 to vector<4x10x3xf32>
    %c0_13 = arith.constant 0 : index
    %c0_14 = arith.constant 0 : index
    %c0_15 = arith.constant 0 : index
    %9 = vector.load %arg6[%c0_13, %c0_14, %c0_15] : memref<4x10x22xf32, #tpu.memory_space<vmem>>, vector<4x10x3xf32>
    tpu.vector_store %arg6[%c0_13, %c0_14, %c0_15], %8 {strides = array<i32>} : memref<4x10x22xf32, #tpu.memory_space<vmem>>, vector<4x10x3xf32>,
    %cst_16 = arith.constant 0.000000e+00 : f32
    %10 = vector.broadcast %cst_16 : f32 to vector<4x10x3xf32>
    %c0_17 = arith.constant 0 : index
    %c0_18 = arith.constant 0 : index
    %c19 = arith.constant 19 : index
    %11 = vector.load %arg6[%c0_17, %c0_18, %c19] : memref<4x10x22xf32, #tpu.memory_space<vmem>>, vector<4x10x3xf32>
    tpu.vector_store %arg6[%c0_17, %c0_18, %c19], %10 {strides = array<i32>} : memref<4x10x22xf32, #tpu.memory_space<vmem>>, vector<4x10x3xf32>,
    %cst_19 = arith.constant 0.000000e+00 : f32
    %12 = vector.broadcast %cst_19 : f32 to vector<4x1x16xf32>
    %c0_20 = arith.constant 0 : index
    %c0_21 = arith.constant 0 : index
    %c3 = arith.constant 3 : index
    %13 = vector.load %arg6[%c0_20, %c0_21, %c3] : memref<4x10x22xf32, #tpu.memory_space<vmem>>, vector<4x1x16xf32>
    tpu.vector_store %arg6[%c0_20, %c0_21, %c3], %12 {strides = array<i32>} : memref<4x10x22xf32, #tpu.memory_space<vmem>>, vector<4x1x16xf32>,
    %cst_22 = arith.constant 0.000000e+00 : f32
    %14 = vector.broadcast %cst_22 : f32 to vector<4x1x16xf32>
    %c0_23 = arith.constant 0 : index
    %c9_24 = arith.constant 9 : index
    %c3_25 = arith.constant 3 : index
    %15 = vector.load %arg6[%c0_23, %c9_24, %c3_25] : memref<4x10x22xf32, #tpu.memory_space<vmem>>, vector<4x1x16xf32>
    tpu.vector_store %arg6[%c0_23, %c9_24, %c3_25], %14 {strides = array<i32>} : memref<4x10x22xf32, #tpu.memory_space<vmem>>, vector<4x1x16xf32>,
    %c0_26 = arith.constant 0 : index
    %c0_27 = arith.constant 0 : index
    %c0_28 = arith.constant 0 : index
    %c0_29 = arith.constant 0 : index
    %16 = vector.load %arg1[%c0_26, %c0_27, %c0_28, %c0_29] : memref<1x4x8x16xf32, #tpu.memory_space<vmem>>, vector<1x4x8x16xf32>
    %17 = vector.shape_cast %16 : vector<1x4x8x16xf32> to vector<4x8x16xf32>
    %c0_30 = arith.constant 0 : index
    %c1 = arith.constant 1 : index
    %c9_31 = arith.constant 9 : index
    %18 = vector.load %arg5[%c0_30, %c1, %c9_31] : memref<4x10x34xf32, #tpu.memory_space<vmem>>, vector<4x8x16xf32>
    tpu.vector_store %arg5[%c0_30, %c1, %c9_31], %17 {strides = array<i32>} : memref<4x10x34xf32, #tpu.memory_space<vmem>>, vector<4x8x16xf32>,
    %c0_32 = arith.constant 0 : index
    %19 = memref.load %arg3[%c0_32] : memref<12xf32, #tpu.memory_space<smem>>
    %cst_33 = arith.constant 0.000000e+00 : f32
    %20 = vector.broadcast %cst_33 : f32 to vector<8x16xf32>
    %21 = vector.broadcast %19 : f32 to vector<8x16xf32>
    %22 = arith.addf %21, %20 : vector<8x16xf32>
    %c1_34 = arith.constant 1 : index
    %23 = memref.load %arg3[%c1_34] : memref<12xf32, #tpu.memory_space<smem>>
    %cst_35 = arith.constant 0.000000e+00 : f32
    %24 = vector.broadcast %cst_35 : f32 to vector<8x16xf32>
    %25 = vector.broadcast %23 : f32 to vector<8x16xf32>
    %26 = arith.addf %25, %24 : vector<8x16xf32>
    %c2 = arith.constant 2 : index
    %27 = memref.load %arg3[%c2] : memref<12xf32, #tpu.memory_space<smem>>
    %cst_36 = arith.constant 0.000000e+00 : f32
    %28 = vector.broadcast %cst_36 : f32 to vector<8x16xf32>
    %29 = vector.broadcast %27 : f32 to vector<8x16xf32>
    %30 = arith.addf %29, %28 : vector<8x16xf32>
    %c3_37 = arith.constant 3 : index
    %31 = memref.load %arg3[%c3_37] : memref<12xf32, #tpu.memory_space<smem>>
    %cst_38 = arith.constant 0.000000e+00 : f32
    %32 = vector.broadcast %cst_38 : f32 to vector<8x16xf32>
    %33 = vector.broadcast %31 : f32 to vector<8x16xf32>
    %34 = arith.addf %33, %32 : vector<8x16xf32>
    %c0_39 = arith.constant 0 : index
    %c0_40 = arith.constant 0 : index
    %c8 = arith.constant 8 : index
    %35 = vector.load %arg5[%c0_39, %c0_40, %c8] : memref<4x10x34xf32, #tpu.memory_space<vmem>>, vector<1x8x16xf32>
    %36 = vector.shape_cast %35 : vector<1x8x16xf32> to vector<8x16xf32>
    %c0_41 = arith.constant 0 : index
    %37 = memref.load %arg2[%c0_41] : memref<432xf32, #tpu.memory_space<smem>>
    %38 = vector.broadcast %37 : f32 to vector<8x16xf32>
    %39 = arith.mulf %38, %36 : vector<8x16xf32>
    %40 = arith.addf %22, %39 : vector<8x16xf32>
    %c36 = arith.constant 36 : index
    %41 = memref.load %arg2[%c36] : memref<432xf32, #tpu.memory_space<smem>>
    %42 = vector.broadcast %41 : f32 to vector<8x16xf32>
    %43 = arith.mulf %42, %36 : vector<8x16xf32>
    %44 = arith.addf %26, %43 : vector<8x16xf32>
    %c72 = arith.constant 72 : index
    %45 = memref.load %arg2[%c72] : memref<432xf32, #tpu.memory_space<smem>>
    %46 = vector.broadcast %45 : f32 to vector<8x16xf32>
    %47 = arith.mulf %46, %36 : vector<8x16xf32>
    %48 = arith.addf %30, %47 : vector<8x16xf32>
    %c108 = arith.constant 108 : index
    %49 = memref.load %arg2[%c108] : memref<432xf32, #tpu.memory_space<smem>>
    %50 = vector.broadcast %49 : f32 to vector<8x16xf32>
    %51 = arith.mulf %50, %36 : vector<8x16xf32>
    %52 = arith.addf %34, %51 : vector<8x16xf32>
    %c0_42 = arith.constant 0 : index
    %c0_43 = arith.constant 0 : index
    %c9_44 = arith.constant 9 : index
    %53 = vector.load %arg5[%c0_42, %c0_43, %c9_44] : memref<4x10x34xf32, #tpu.memory_space<vmem>>, vector<1x8x16xf32>
    %54 = vector.shape_cast %53 : vector<1x8x16xf32> to vector<8x16xf32>
    %c1_45 = arith.constant 1 : index
    %55 = memref.load %arg2[%c1_45] : memref<432xf32, #tpu.memory_space<smem>>
    %56 = vector.broadcast %55 : f32 to vector<8x16xf32>
    %57 = arith.mulf %56, %54 : vector<8x16xf32>
    %58 = arith.addf %40, %57 : vector<8x16xf32>
    %c37 = arith.constant 37 : index
    %59 = memref.load %arg2[%c37] : memref<432xf32, #tpu.memory_space<smem>>
    %60 = vector.broadcast %59 : f32 to vector<8x16xf32>
    %61 = arith.mulf %60, %54 : vector<8x16xf32>
    %62 = arith.addf %44, %61 : vector<8x16xf32>
    %c73 = arith.constant 73 : index
    %63 = memref.load %arg2[%c73] : memref<432xf32, #tpu.memory_space<smem>>
    %64 = vector.broadcast %63 : f32 to vector<8x16xf32>
    %65 = arith.mulf %64, %54 : vector<8x16xf32>
    %66 = arith.addf %48, %65 : vector<8x16xf32>
    %c109 = arith.constant 109 : index
    %67 = memref.load %arg2[%c109] : memref<432xf32, #tpu.memory_space<smem>>
    %68 = vector.broadcast %67 : f32 to vector<8x16xf32>
    %69 = arith.mulf %68, %54 : vector<8x16xf32>
    %70 = arith.addf %52, %69 : vector<8x16xf32>
    %c0_46 = arith.constant 0 : index
    %c0_47 = arith.constant 0 : index
    %c10 = arith.constant 10 : index
    %71 = vector.load %arg5[%c0_46, %c0_47, %c10] : memref<4x10x34xf32, #tpu.memory_space<vmem>>, vector<1x8x16xf32>
    %72 = vector.shape_cast %71 : vector<1x8x16xf32> to vector<8x16xf32>
    %c2_48 = arith.constant 2 : index
    %73 = memref.load %arg2[%c2_48] : memref<432xf32, #tpu.memory_space<smem>>
    %74 = vector.broadcast %73 : f32 to vector<8x16xf32>
    %75 = arith.mulf %74, %72 : vector<8x16xf32>
    %76 = arith.addf %58, %75 : vector<8x16xf32>
    %c38 = arith.constant 38 : index
    %77 = memref.load %arg2[%c38] : memref<432xf32, #tpu.memory_space<smem>>
    %78 = vector.broadcast %77 : f32 to vector<8x16xf32>
    %79 = arith.mulf %78, %72 : vector<8x16xf32>
    %80 = arith.addf %62, %79 : vector<8x16xf32>
    %c74 = arith.constant 74 : index
    %81 = memref.load %arg2[%c74] : memref<432xf32, #tpu.memory_space<smem>>
    %82 = vector.broadcast %81 : f32 to vector<8x16xf32>
    %83 = arith.mulf %82, %72 : vector<8x16xf32>
    %84 = arith.addf %66, %83 : vector<8x16xf32>
    %c110 = arith.constant 110 : index
    %85 = memref.load %arg2[%c110] : memref<432xf32, #tpu.memory_space<smem>>
    %86 = vector.broadcast %85 : f32 to vector<8x16xf32>
    %87 = arith.mulf %86, %72 : vector<8x16xf32>
    %88 = arith.addf %70, %87 : vector<8x16xf32>
    %c0_49 = arith.constant 0 : index
    %c1_50 = arith.constant 1 : index
    %c8_51 = arith.constant 8 : index
    %89 = vector.load %arg5[%c0_49, %c1_50, %c8_51] : memref<4x10x34xf32, #tpu.memory_space<vmem>>, vector<1x8x16xf32>
    %90 = vector.shape_cast %89 : vector<1x8x16xf32> to vector<8x16xf32>
    %c3_52 = arith.constant 3 : index
    %91 = memref.load %arg2[%c3_52] : memref<432xf32, #tpu.memory_space<smem>>
    %92 = vector.broadcast %91 : f32 to vector<8x16xf32>
    %93 = arith.mulf %92, %90 : vector<8x16xf32>
    %94 = arith.addf %76, %93 : vector<8x16xf32>
    %c39 = arith.constant 39 : index
    %95 = memref.load %arg2[%c39] : memref<432xf32, #tpu.memory_space<smem>>
    %96 = vector.broadcast %95 : f32 to vector<8x16xf32>
    %97 = arith.mulf %96, %90 : vector<8x16xf32>
    %98 = arith.addf %80, %97 : vector<8x16xf32>
    %c75 = arith.constant 75 : index
    %99 = memref.load %arg2[%c75] : memref<432xf32, #tpu.memory_space<smem>>
    %100 = vector.broadcast %99 : f32 to vector<8x16xf32>
    %101 = arith.mulf %100, %90 : vector<8x16xf32>
    %102 = arith.addf %84, %101 : vector<8x16xf32>
    %c111 = arith.constant 111 : index
    %103 = memref.load %arg2[%c111] : memref<432xf32, #tpu.memory_space<smem>>
    %104 = vector.broadcast %103 : f32 to vector<8x16xf32>
    %105 = arith.mulf %104, %90 : vector<8x16xf32>
    %106 = arith.addf %88, %105 : vector<8x16xf32>
    %c0_53 = arith.constant 0 : index
    %c1_54 = arith.constant 1 : index
    %c9_55 = arith.constant 9 : index
    %107 = vector.load %arg5[%c0_53, %c1_54, %c9_55] : memref<4x10x34xf32, #tpu.memory_space<vmem>>, vector<1x8x16xf32>
    %108 = vector.shape_cast %107 : vector<1x8x16xf32> to vector<8x16xf32>
    %c4 = arith.constant 4 : index
    %109 = memref.load %arg2[%c4] : memref<432xf32, #tpu.memory_space<smem>>
    %110 = vector.broadcast %109 : f32 to vector<8x16xf32>
    %111 = arith.mulf %110, %108 : vector<8x16xf32>
    %112 = arith.addf %94, %111 : vector<8x16xf32>
    %c40 = arith.constant 40 : index
    %113 = memref.load %arg2[%c40] : memref<432xf32, #tpu.memory_space<smem>>
    %114 = vector.broadcast %113 : f32 to vector<8x16xf32>
    %115 = arith.mulf %114, %108 : vector<8x16xf32>
    %116 = arith.addf %98, %115 : vector<8x16xf32>
    %c76 = arith.constant 76 : index
    %117 = memref.load %arg2[%c76] : memref<432xf32, #tpu.memory_space<smem>>
    %118 = vector.broadcast %117 : f32 to vector<8x16xf32>
    %119 = arith.mulf %118, %108 : vector<8x16xf32>
    %120 = arith.addf %102, %119 : vector<8x16xf32>
    %c112 = arith.constant 112 : index
    %121 = memref.load %arg2[%c112] : memref<432xf32, #tpu.memory_space<smem>>
    %122 = vector.broadcast %121 : f32 to vector<8x16xf32>
    %123 = arith.mulf %122, %108 : vector<8x16xf32>
    %124 = arith.addf %106, %123 : vector<8x16xf32>
    %c0_56 = arith.constant 0 : index
    %c1_57 = arith.constant 1 : index
    %c10_58 = arith.constant 10 : index
    %125 = vector.load %arg5[%c0_56, %c1_57, %c10_58] : memref<4x10x34xf32, #tpu.memory_space<vmem>>, vector<1x8x16xf32>
    %126 = vector.shape_cast %125 : vector<1x8x16xf32> to vector<8x16xf32>
    %c5 = arith.constant 5 : index
    %127 = memref.load %arg2[%c5] : memref<432xf32, #tpu.memory_space<smem>>
    %128 = vector.broadcast %127 : f32 to vector<8x16xf32>
    %129 = arith.mulf %128, %126 : vector<8x16xf32>
    %130 = arith.addf %112, %129 : vector<8x16xf32>
    %c41 = arith.constant 41 : index
    %131 = memref.load %arg2[%c41] : memref<432xf32, #tpu.memory_space<smem>>
    %132 = vector.broadcast %131 : f32 to vector<8x16xf32>
    %133 = arith.mulf %132, %126 : vector<8x16xf32>
    %134 = arith.addf %116, %133 : vector<8x16xf32>
    %c77 = arith.constant 77 : index
    %135 = memref.load %arg2[%c77] : memref<432xf32, #tpu.memory_space<smem>>
    %136 = vector.broadcast %135 : f32 to vector<8x16xf32>
    %137 = arith.mulf %136, %126 : vector<8x16xf32>
    %138 = arith.addf %120, %137 : vector<8x16xf32>
    %c113 = arith.constant 113 : index
    %139 = memref.load %arg2[%c113] : memref<432xf32, #tpu.memory_space<smem>>
    %140 = vector.broadcast %139 : f32 to vector<8x16xf32>
    %141 = arith.mulf %140, %126 : vector<8x16xf32>
    %142 = arith.addf %124, %141 : vector<8x16xf32>
    %c0_59 = arith.constant 0 : index
    %c2_60 = arith.constant 2 : index
    %c8_61 = arith.constant 8 : index
    %143 = vector.load %arg5[%c0_59, %c2_60, %c8_61] : memref<4x10x34xf32, #tpu.memory_space<vmem>>, vector<1x8x16xf32>
    %144 = vector.shape_cast %143 : vector<1x8x16xf32> to vector<8x16xf32>
    %c6 = arith.constant 6 : index
    %145 = memref.load %arg2[%c6] : memref<432xf32, #tpu.memory_space<smem>>
    %146 = vector.broadcast %145 : f32 to vector<8x16xf32>
    %147 = arith.mulf %146, %144 : vector<8x16xf32>
    %148 = arith.addf %130, %147 : vector<8x16xf32>
    %c42 = arith.constant 42 : index
    %149 = memref.load %arg2[%c42] : memref<432xf32, #tpu.memory_space<smem>>
    %150 = vector.broadcast %149 : f32 to vector<8x16xf32>
    %151 = arith.mulf %150, %144 : vector<8x16xf32>
    %152 = arith.addf %134, %151 : vector<8x16xf32>
    %c78 = arith.constant 78 : index
    %153 = memref.load %arg2[%c78] : memref<432xf32, #tpu.memory_space<smem>>
    %154 = vector.broadcast %153 : f32 to vector<8x16xf32>
    %155 = arith.mulf %154, %144 : vector<8x16xf32>
    %156 = arith.addf %138, %155 : vector<8x16xf32>
    %c114 = arith.constant 114 : index
    %157 = memref.load %arg2[%c114] : memref<432xf32, #tpu.memory_space<smem>>
    %158 = vector.broadcast %157 : f32 to vector<8x16xf32>
    %159 = arith.mulf %158, %144 : vector<8x16xf32>
    %160 = arith.addf %142, %159 : vector<8x16xf32>
    %c0_62 = arith.constant 0 : index
    %c2_63 = arith.constant 2 : index
    %c9_64 = arith.constant 9 : index
    %161 = vector.load %arg5[%c0_62, %c2_63, %c9_64] : memref<4x10x34xf32, #tpu.memory_space<vmem>>, vector<1x8x16xf32>
    %162 = vector.shape_cast %161 : vector<1x8x16xf32> to vector<8x16xf32>
    %c7 = arith.constant 7 : index
    %163 = memref.load %arg2[%c7] : memref<432xf32, #tpu.memory_space<smem>>
    %164 = vector.broadcast %163 : f32 to vector<8x16xf32>
    %165 = arith.mulf %164, %162 : vector<8x16xf32>
    %166 = arith.addf %148, %165 : vector<8x16xf32>
    %c43 = arith.constant 43 : index
    %167 = memref.load %arg2[%c43] : memref<432xf32, #tpu.memory_space<smem>>
    %168 = vector.broadcast %167 : f32 to vector<8x16xf32>
    %169 = arith.mulf %168, %162 : vector<8x16xf32>
    %170 = arith.addf %152, %169 : vector<8x16xf32>
    %c79 = arith.constant 79 : index
    %171 = memref.load %arg2[%c79] : memref<432xf32, #tpu.memory_space<smem>>
    %172 = vector.broadcast %171 : f32 to vector<8x16xf32>
    %173 = arith.mulf %172, %162 : vector<8x16xf32>
    %174 = arith.addf %156, %173 : vector<8x16xf32>
    %c115 = arith.constant 115 : index
    %175 = memref.load %arg2[%c115] : memref<432xf32, #tpu.memory_space<smem>>
    %176 = vector.broadcast %175 : f32 to vector<8x16xf32>
    %177 = arith.mulf %176, %162 : vector<8x16xf32>
    %178 = arith.addf %160, %177 : vector<8x16xf32>
    %c0_65 = arith.constant 0 : index
    %c2_66 = arith.constant 2 : index
    %c10_67 = arith.constant 10 : index
    %179 = vector.load %arg5[%c0_65, %c2_66, %c10_67] : memref<4x10x34xf32, #tpu.memory_space<vmem>>, vector<1x8x16xf32>
    %180 = vector.shape_cast %179 : vector<1x8x16xf32> to vector<8x16xf32>
    %c8_68 = arith.constant 8 : index
    %181 = memref.load %arg2[%c8_68] : memref<432xf32, #tpu.memory_space<smem>>
    %182 = vector.broadcast %181 : f32 to vector<8x16xf32>
    %183 = arith.mulf %182, %180 : vector<8x16xf32>
    %184 = arith.addf %166, %183 : vector<8x16xf32>
    %c44 = arith.constant 44 : index
    %185 = memref.load %arg2[%c44] : memref<432xf32, #tpu.memory_space<smem>>
    %186 = vector.broadcast %185 : f32 to vector<8x16xf32>
    %187 = arith.mulf %186, %180 : vector<8x16xf32>
    %188 = arith.addf %170, %187 : vector<8x16xf32>
    %c80 = arith.constant 80 : index
    %189 = memref.load %arg2[%c80] : memref<432xf32, #tpu.memory_space<smem>>
    %190 = vector.broadcast %189 : f32 to vector<8x16xf32>
    %191 = arith.mulf %190, %180 : vector<8x16xf32>
    %192 = arith.addf %174, %191 : vector<8x16xf32>
    %c116 = arith.constant 116 : index
    %193 = memref.load %arg2[%c116] : memref<432xf32, #tpu.memory_space<smem>>
    %194 = vector.broadcast %193 : f32 to vector<8x16xf32>
    %195 = arith.mulf %194, %180 : vector<8x16xf32>
    %196 = arith.addf %178, %195 : vector<8x16xf32>
    %c1_69 = arith.constant 1 : index
    %c0_70 = arith.constant 0 : index
    %c8_71 = arith.constant 8 : index
    %197 = vector.load %arg5[%c1_69, %c0_70, %c8_71] : memref<4x10x34xf32, #tpu.memory_space<vmem>>, vector<1x8x16xf32>
    %198 = vector.shape_cast %197 : vector<1x8x16xf32> to vector<8x16xf32>
    %c9_72 = arith.constant 9 : index
    %199 = memref.load %arg2[%c9_72] : memref<432xf32, #tpu.memory_space<smem>>
    %200 = vector.broadcast %199 : f32 to vector<8x16xf32>
    %201 = arith.mulf %200, %198 : vector<8x16xf32>
    %202 = arith.addf %184, %201 : vector<8x16xf32>
    %c45 = arith.constant 45 : index
    %203 = memref.load %arg2[%c45] : memref<432xf32, #tpu.memory_space<smem>>
    %204 = vector.broadcast %203 : f32 to vector<8x16xf32>
    %205 = arith.mulf %204, %198 : vector<8x16xf32>
    %206 = arith.addf %188, %205 : vector<8x16xf32>
    %c81 = arith.constant 81 : index
    %207 = memref.load %arg2[%c81] : memref<432xf32, #tpu.memory_space<smem>>
    %208 = vector.broadcast %207 : f32 to vector<8x16xf32>
    %209 = arith.mulf %208, %198 : vector<8x16xf32>
    %210 = arith.addf %192, %209 : vector<8x16xf32>
    %c117 = arith.constant 117 : index
    %211 = memref.load %arg2[%c117] : memref<432xf32, #tpu.memory_space<smem>>
    %212 = vector.broadcast %211 : f32 to vector<8x16xf32>
    %213 = arith.mulf %212, %198 : vector<8x16xf32>
    %214 = arith.addf %196, %213 : vector<8x16xf32>
    %c1_73 = arith.constant 1 : index
    %c0_74 = arith.constant 0 : index
    %c9_75 = arith.constant 9 : index
    %215 = vector.load %arg5[%c1_73, %c0_74, %c9_75] : memref<4x10x34xf32, #tpu.memory_space<vmem>>, vector<1x8x16xf32>
    %216 = vector.shape_cast %215 : vector<1x8x16xf32> to vector<8x16xf32>
    %c10_76 = arith.constant 10 : index
    %217 = memref.load %arg2[%c10_76] : memref<432xf32, #tpu.memory_space<smem>>
    %218 = vector.broadcast %217 : f32 to vector<8x16xf32>
    %219 = arith.mulf %218, %216 : vector<8x16xf32>
    %220 = arith.addf %202, %219 : vector<8x16xf32>
    %c46 = arith.constant 46 : index
    %221 = memref.load %arg2[%c46] : memref<432xf32, #tpu.memory_space<smem>>
    %222 = vector.broadcast %221 : f32 to vector<8x16xf32>
    %223 = arith.mulf %222, %216 : vector<8x16xf32>
    %224 = arith.addf %206, %223 : vector<8x16xf32>
    %c82 = arith.constant 82 : index
    %225 = memref.load %arg2[%c82] : memref<432xf32, #tpu.memory_space<smem>>
    %226 = vector.broadcast %225 : f32 to vector<8x16xf32>
    %227 = arith.mulf %226, %216 : vector<8x16xf32>
    %228 = arith.addf %210, %227 : vector<8x16xf32>
    %c118 = arith.constant 118 : index
    %229 = memref.load %arg2[%c118] : memref<432xf32, #tpu.memory_space<smem>>
    %230 = vector.broadcast %229 : f32 to vector<8x16xf32>
    %231 = arith.mulf %230, %216 : vector<8x16xf32>
    %232 = arith.addf %214, %231 : vector<8x16xf32>
    %c1_77 = arith.constant 1 : index
    %c0_78 = arith.constant 0 : index
    %c10_79 = arith.constant 10 : index
    %233 = vector.load %arg5[%c1_77, %c0_78, %c10_79] : memref<4x10x34xf32, #tpu.memory_space<vmem>>, vector<1x8x16xf32>
    %234 = vector.shape_cast %233 : vector<1x8x16xf32> to vector<8x16xf32>
    %c11 = arith.constant 11 : index
    %235 = memref.load %arg2[%c11] : memref<432xf32, #tpu.memory_space<smem>>
    %236 = vector.broadcast %235 : f32 to vector<8x16xf32>
    %237 = arith.mulf %236, %234 : vector<8x16xf32>
    %238 = arith.addf %220, %237 : vector<8x16xf32>
    %c47 = arith.constant 47 : index
    %239 = memref.load %arg2[%c47] : memref<432xf32, #tpu.memory_space<smem>>
    %240 = vector.broadcast %239 : f32 to vector<8x16xf32>
    %241 = arith.mulf %240, %234 : vector<8x16xf32>
    %242 = arith.addf %224, %241 : vector<8x16xf32>
    %c83 = arith.constant 83 : index
    %243 = memref.load %arg2[%c83] : memref<432xf32, #tpu.memory_space<smem>>
    %244 = vector.broadcast %243 : f32 to vector<8x16xf32>
    %245 = arith.mulf %244, %234 : vector<8x16xf32>
    %246 = arith.addf %228, %245 : vector<8x16xf32>
    %c119 = arith.constant 119 : index
    %247 = memref.load %arg2[%c119] : memref<432xf32, #tpu.memory_space<smem>>
    %248 = vector.broadcast %247 : f32 to vector<8x16xf32>
    %249 = arith.mulf %248, %234 : vector<8x16xf32>
    %250 = arith.addf %232, %249 : vector<8x16xf32>
    %c1_80 = arith.constant 1 : index
    %c1_81 = arith.constant 1 : index
    %c8_82 = arith.constant 8 : index
    %251 = vector.load %arg5[%c1_80, %c1_81, %c8_82] : memref<4x10x34xf32, #tpu.memory_space<vmem>>, vector<1x8x16xf32>
    %252 = vector.shape_cast %251 : vector<1x8x16xf32> to vector<8x16xf32>
    %c12 = arith.constant 12 : index
    %253 = memref.load %arg2[%c12] : memref<432xf32, #tpu.memory_space<smem>>
    %254 = vector.broadcast %253 : f32 to vector<8x16xf32>
    %255 = arith.mulf %254, %252 : vector<8x16xf32>
    %256 = arith.addf %238, %255 : vector<8x16xf32>
    %c48 = arith.constant 48 : index
    %257 = memref.load %arg2[%c48] : memref<432xf32, #tpu.memory_space<smem>>
    %258 = vector.broadcast %257 : f32 to vector<8x16xf32>
    %259 = arith.mulf %258, %252 : vector<8x16xf32>
    %260 = arith.addf %242, %259 : vector<8x16xf32>
    %c84 = arith.constant 84 : index
    %261 = memref.load %arg2[%c84] : memref<432xf32, #tpu.memory_space<smem>>
    %262 = vector.broadcast %261 : f32 to vector<8x16xf32>
    %263 = arith.mulf %262, %252 : vector<8x16xf32>
    %264 = arith.addf %246, %263 : vector<8x16xf32>
    %c120 = arith.constant 120 : index
    %265 = memref.load %arg2[%c120] : memref<432xf32, #tpu.memory_space<smem>>
    %266 = vector.broadcast %265 : f32 to vector<8x16xf32>
    %267 = arith.mulf %266, %252 : vector<8x16xf32>
    %268 = arith.addf %250, %267 : vector<8x16xf32>
    %c1_83 = arith.constant 1 : index
    %c1_84 = arith.constant 1 : index
    %c9_85 = arith.constant 9 : index
    %269 = vector.load %arg5[%c1_83, %c1_84, %c9_85] : memref<4x10x34xf32, #tpu.memory_space<vmem>>, vector<1x8x16xf32>
    %270 = vector.shape_cast %269 : vector<1x8x16xf32> to vector<8x16xf32>
    %c13 = arith.constant 13 : index
    %271 = memref.load %arg2[%c13] : memref<432xf32, #tpu.memory_space<smem>>
    %272 = vector.broadcast %271 : f32 to vector<8x16xf32>
    %273 = arith.mulf %272, %270 : vector<8x16xf32>
    %274 = arith.addf %256, %273 : vector<8x16xf32>
    %c49 = arith.constant 49 : index
    %275 = memref.load %arg2[%c49] : memref<432xf32, #tpu.memory_space<smem>>
    %276 = vector.broadcast %275 : f32 to vector<8x16xf32>
    %277 = arith.mulf %276, %270 : vector<8x16xf32>
    %278 = arith.addf %260, %277 : vector<8x16xf32>
    %c85 = arith.constant 85 : index
    %279 = memref.load %arg2[%c85] : memref<432xf32, #tpu.memory_space<smem>>
    %280 = vector.broadcast %279 : f32 to vector<8x16xf32>
    %281 = arith.mulf %280, %270 : vector<8x16xf32>
    %282 = arith.addf %264, %281 : vector<8x16xf32>
    %c121 = arith.constant 121 : index
    %283 = memref.load %arg2[%c121] : memref<432xf32, #tpu.memory_space<smem>>
    %284 = vector.broadcast %283 : f32 to vector<8x16xf32>
    %285 = arith.mulf %284, %270 : vector<8x16xf32>
    %286 = arith.addf %268, %285 : vector<8x16xf32>
    %c1_86 = arith.constant 1 : index
    %c1_87 = arith.constant 1 : index
    %c10_88 = arith.constant 10 : index
    %287 = vector.load %arg5[%c1_86, %c1_87, %c10_88] : memref<4x10x34xf32, #tpu.memory_space<vmem>>, vector<1x8x16xf32>
    %288 = vector.shape_cast %287 : vector<1x8x16xf32> to vector<8x16xf32>
    %c14 = arith.constant 14 : index
    %289 = memref.load %arg2[%c14] : memref<432xf32, #tpu.memory_space<smem>>
    %290 = vector.broadcast %289 : f32 to vector<8x16xf32>
    %291 = arith.mulf %290, %288 : vector<8x16xf32>
    %292 = arith.addf %274, %291 : vector<8x16xf32>
    %c50 = arith.constant 50 : index
    %293 = memref.load %arg2[%c50] : memref<432xf32, #tpu.memory_space<smem>>
    %294 = vector.broadcast %293 : f32 to vector<8x16xf32>
    %295 = arith.mulf %294, %288 : vector<8x16xf32>
    %296 = arith.addf %278, %295 : vector<8x16xf32>
    %c86 = arith.constant 86 : index
    %297 = memref.load %arg2[%c86] : memref<432xf32, #tpu.memory_space<smem>>
    %298 = vector.broadcast %297 : f32 to vector<8x16xf32>
    %299 = arith.mulf %298, %288 : vector<8x16xf32>
    %300 = arith.addf %282, %299 : vector<8x16xf32>
    %c122 = arith.constant 122 : index
    %301 = memref.load %arg2[%c122] : memref<432xf32, #tpu.memory_space<smem>>
    %302 = vector.broadcast %301 : f32 to vector<8x16xf32>
    %303 = arith.mulf %302, %288 : vector<8x16xf32>
    %304 = arith.addf %286, %303 : vector<8x16xf32>
    %c1_89 = arith.constant 1 : index
    %c2_90 = arith.constant 2 : index
    %c8_91 = arith.constant 8 : index
    %305 = vector.load %arg5[%c1_89, %c2_90, %c8_91] : memref<4x10x34xf32, #tpu.memory_space<vmem>>, vector<1x8x16xf32>
    %306 = vector.shape_cast %305 : vector<1x8x16xf32> to vector<8x16xf32>
    %c15 = arith.constant 15 : index
    %307 = memref.load %arg2[%c15] : memref<432xf32, #tpu.memory_space<smem>>
    %308 = vector.broadcast %307 : f32 to vector<8x16xf32>
    %309 = arith.mulf %308, %306 : vector<8x16xf32>
    %310 = arith.addf %292, %309 : vector<8x16xf32>
    %c51 = arith.constant 51 : index
    %311 = memref.load %arg2[%c51] : memref<432xf32, #tpu.memory_space<smem>>
    %312 = vector.broadcast %311 : f32 to vector<8x16xf32>
    %313 = arith.mulf %312, %306 : vector<8x16xf32>
    %314 = arith.addf %296, %313 : vector<8x16xf32>
    %c87 = arith.constant 87 : index
    %315 = memref.load %arg2[%c87] : memref<432xf32, #tpu.memory_space<smem>>
    %316 = vector.broadcast %315 : f32 to vector<8x16xf32>
    %317 = arith.mulf %316, %306 : vector<8x16xf32>
    %318 = arith.addf %300, %317 : vector<8x16xf32>
    %c123 = arith.constant 123 : index
    %319 = memref.load %arg2[%c123] : memref<432xf32, #tpu.memory_space<smem>>
    %320 = vector.broadcast %319 : f32 to vector<8x16xf32>
    %321 = arith.mulf %320, %306 : vector<8x16xf32>
    %322 = arith.addf %304, %321 : vector<8x16xf32>
    %c1_92 = arith.constant 1 : index
    %c2_93 = arith.constant 2 : index
    %c9_94 = arith.constant 9 : index
    %323 = vector.load %arg5[%c1_92, %c2_93, %c9_94] : memref<4x10x34xf32, #tpu.memory_space<vmem>>, vector<1x8x16xf32>
    %324 = vector.shape_cast %323 : vector<1x8x16xf32> to vector<8x16xf32>
    %c16 = arith.constant 16 : index
    %325 = memref.load %arg2[%c16] : memref<432xf32, #tpu.memory_space<smem>>
    %326 = vector.broadcast %325 : f32 to vector<8x16xf32>
    %327 = arith.mulf %326, %324 : vector<8x16xf32>
    %328 = arith.addf %310, %327 : vector<8x16xf32>
    %c52 = arith.constant 52 : index
    %329 = memref.load %arg2[%c52] : memref<432xf32, #tpu.memory_space<smem>>
    %330 = vector.broadcast %329 : f32 to vector<8x16xf32>
    %331 = arith.mulf %330, %324 : vector<8x16xf32>
    %332 = arith.addf %314, %331 : vector<8x16xf32>
    %c88 = arith.constant 88 : index
    %333 = memref.load %arg2[%c88] : memref<432xf32, #tpu.memory_space<smem>>
    %334 = vector.broadcast %333 : f32 to vector<8x16xf32>
    %335 = arith.mulf %334, %324 : vector<8x16xf32>
    %336 = arith.addf %318, %335 : vector<8x16xf32>
    %c124 = arith.constant 124 : index
    %337 = memref.load %arg2[%c124] : memref<432xf32, #tpu.memory_space<smem>>
    %338 = vector.broadcast %337 : f32 to vector<8x16xf32>
    %339 = arith.mulf %338, %324 : vector<8x16xf32>
    %340 = arith.addf %322, %339 : vector<8x16xf32>
    %c1_95 = arith.constant 1 : index
    %c2_96 = arith.constant 2 : index
    %c10_97 = arith.constant 10 : index
    %341 = vector.load %arg5[%c1_95, %c2_96, %c10_97] : memref<4x10x34xf32, #tpu.memory_space<vmem>>, vector<1x8x16xf32>
    %342 = vector.shape_cast %341 : vector<1x8x16xf32> to vector<8x16xf32>
    %c17 = arith.constant 17 : index
    %343 = memref.load %arg2[%c17] : memref<432xf32, #tpu.memory_space<smem>>
    %344 = vector.broadcast %343 : f32 to vector<8x16xf32>
    %345 = arith.mulf %344, %342 : vector<8x16xf32>
    %346 = arith.addf %328, %345 : vector<8x16xf32>
    %c53 = arith.constant 53 : index
    %347 = memref.load %arg2[%c53] : memref<432xf32, #tpu.memory_space<smem>>
    %348 = vector.broadcast %347 : f32 to vector<8x16xf32>
    %349 = arith.mulf %348, %342 : vector<8x16xf32>
    %350 = arith.addf %332, %349 : vector<8x16xf32>
    %c89 = arith.constant 89 : index
    %351 = memref.load %arg2[%c89] : memref<432xf32, #tpu.memory_space<smem>>
    %352 = vector.broadcast %351 : f32 to vector<8x16xf32>
    %353 = arith.mulf %352, %342 : vector<8x16xf32>
    %354 = arith.addf %336, %353 : vector<8x16xf32>
    %c125 = arith.constant 125 : index
    %355 = memref.load %arg2[%c125] : memref<432xf32, #tpu.memory_space<smem>>
    %356 = vector.broadcast %355 : f32 to vector<8x16xf32>
    %357 = arith.mulf %356, %342 : vector<8x16xf32>
    %358 = arith.addf %340, %357 : vector<8x16xf32>
    %c2_98 = arith.constant 2 : index
    %c0_99 = arith.constant 0 : index
    %c8_100 = arith.constant 8 : index
    %359 = vector.load %arg5[%c2_98, %c0_99, %c8_100] : memref<4x10x34xf32, #tpu.memory_space<vmem>>, vector<1x8x16xf32>
    %360 = vector.shape_cast %359 : vector<1x8x16xf32> to vector<8x16xf32>
    %c18 = arith.constant 18 : index
    %361 = memref.load %arg2[%c18] : memref<432xf32, #tpu.memory_space<smem>>
    %362 = vector.broadcast %361 : f32 to vector<8x16xf32>
    %363 = arith.mulf %362, %360 : vector<8x16xf32>
    %364 = arith.addf %346, %363 : vector<8x16xf32>
    %c54 = arith.constant 54 : index
    %365 = memref.load %arg2[%c54] : memref<432xf32, #tpu.memory_space<smem>>
    %366 = vector.broadcast %365 : f32 to vector<8x16xf32>
    %367 = arith.mulf %366, %360 : vector<8x16xf32>
    %368 = arith.addf %350, %367 : vector<8x16xf32>
    %c90 = arith.constant 90 : index
    %369 = memref.load %arg2[%c90] : memref<432xf32, #tpu.memory_space<smem>>
    %370 = vector.broadcast %369 : f32 to vector<8x16xf32>
    %371 = arith.mulf %370, %360 : vector<8x16xf32>
    %372 = arith.addf %354, %371 : vector<8x16xf32>
    %c126 = arith.constant 126 : index
    %373 = memref.load %arg2[%c126] : memref<432xf32, #tpu.memory_space<smem>>
    %374 = vector.broadcast %373 : f32 to vector<8x16xf32>
    %375 = arith.mulf %374, %360 : vector<8x16xf32>
    %376 = arith.addf %358, %375 : vector<8x16xf32>
    %c2_101 = arith.constant 2 : index
    %c0_102 = arith.constant 0 : index
    %c9_103 = arith.constant 9 : index
    %377 = vector.load %arg5[%c2_101, %c0_102, %c9_103] : memref<4x10x34xf32, #tpu.memory_space<vmem>>, vector<1x8x16xf32>
    %378 = vector.shape_cast %377 : vector<1x8x16xf32> to vector<8x16xf32>
    %c19_104 = arith.constant 19 : index
    %379 = memref.load %arg2[%c19_104] : memref<432xf32, #tpu.memory_space<smem>>
    %380 = vector.broadcast %379 : f32 to vector<8x16xf32>
    %381 = arith.mulf %380, %378 : vector<8x16xf32>
    %382 = arith.addf %364, %381 : vector<8x16xf32>
    %c55 = arith.constant 55 : index
    %383 = memref.load %arg2[%c55] : memref<432xf32, #tpu.memory_space<smem>>
    %384 = vector.broadcast %383 : f32 to vector<8x16xf32>
    %385 = arith.mulf %384, %378 : vector<8x16xf32>
    %386 = arith.addf %368, %385 : vector<8x16xf32>
    %c91 = arith.constant 91 : index
    %387 = memref.load %arg2[%c91] : memref<432xf32, #tpu.memory_space<smem>>
    %388 = vector.broadcast %387 : f32 to vector<8x16xf32>
    %389 = arith.mulf %388, %378 : vector<8x16xf32>
    %390 = arith.addf %372, %389 : vector<8x16xf32>
    %c127 = arith.constant 127 : index
    %391 = memref.load %arg2[%c127] : memref<432xf32, #tpu.memory_space<smem>>
    %392 = vector.broadcast %391 : f32 to vector<8x16xf32>
    %393 = arith.mulf %392, %378 : vector<8x16xf32>
    %394 = arith.addf %376, %393 : vector<8x16xf32>
    %c2_105 = arith.constant 2 : index
    %c0_106 = arith.constant 0 : index
    %c10_107 = arith.constant 10 : index
    %395 = vector.load %arg5[%c2_105, %c0_106, %c10_107] : memref<4x10x34xf32, #tpu.memory_space<vmem>>, vector<1x8x16xf32>
    %396 = vector.shape_cast %395 : vector<1x8x16xf32> to vector<8x16xf32>
    %c20 = arith.constant 20 : index
    %397 = memref.load %arg2[%c20] : memref<432xf32, #tpu.memory_space<smem>>
    %398 = vector.broadcast %397 : f32 to vector<8x16xf32>
    %399 = arith.mulf %398, %396 : vector<8x16xf32>
    %400 = arith.addf %382, %399 : vector<8x16xf32>
    %c56 = arith.constant 56 : index
    %401 = memref.load %arg2[%c56] : memref<432xf32, #tpu.memory_space<smem>>
    %402 = vector.broadcast %401 : f32 to vector<8x16xf32>
    %403 = arith.mulf %402, %396 : vector<8x16xf32>
    %404 = arith.addf %386, %403 : vector<8x16xf32>
    %c92 = arith.constant 92 : index
    %405 = memref.load %arg2[%c92] : memref<432xf32, #tpu.memory_space<smem>>
    %406 = vector.broadcast %405 : f32 to vector<8x16xf32>
    %407 = arith.mulf %406, %396 : vector<8x16xf32>
    %408 = arith.addf %390, %407 : vector<8x16xf32>
    %c128 = arith.constant 128 : index
    %409 = memref.load %arg2[%c128] : memref<432xf32, #tpu.memory_space<smem>>
    %410 = vector.broadcast %409 : f32 to vector<8x16xf32>
    %411 = arith.mulf %410, %396 : vector<8x16xf32>
    %412 = arith.addf %394, %411 : vector<8x16xf32>
    %c2_108 = arith.constant 2 : index
    %c1_109 = arith.constant 1 : index
    %c8_110 = arith.constant 8 : index
    %413 = vector.load %arg5[%c2_108, %c1_109, %c8_110] : memref<4x10x34xf32, #tpu.memory_space<vmem>>, vector<1x8x16xf32>
    %414 = vector.shape_cast %413 : vector<1x8x16xf32> to vector<8x16xf32>
    %c21 = arith.constant 21 : index
    %415 = memref.load %arg2[%c21] : memref<432xf32, #tpu.memory_space<smem>>
    %416 = vector.broadcast %415 : f32 to vector<8x16xf32>
    %417 = arith.mulf %416, %414 : vector<8x16xf32>
    %418 = arith.addf %400, %417 : vector<8x16xf32>
    %c57 = arith.constant 57 : index
    %419 = memref.load %arg2[%c57] : memref<432xf32, #tpu.memory_space<smem>>
    %420 = vector.broadcast %419 : f32 to vector<8x16xf32>
    %421 = arith.mulf %420, %414 : vector<8x16xf32>
    %422 = arith.addf %404, %421 : vector<8x16xf32>
    %c93 = arith.constant 93 : index
    %423 = memref.load %arg2[%c93] : memref<432xf32, #tpu.memory_space<smem>>
    %424 = vector.broadcast %423 : f32 to vector<8x16xf32>
    %425 = arith.mulf %424, %414 : vector<8x16xf32>
    %426 = arith.addf %408, %425 : vector<8x16xf32>
    %c129 = arith.constant 129 : index
    %427 = memref.load %arg2[%c129] : memref<432xf32, #tpu.memory_space<smem>>
    %428 = vector.broadcast %427 : f32 to vector<8x16xf32>
    %429 = arith.mulf %428, %414 : vector<8x16xf32>
    %430 = arith.addf %412, %429 : vector<8x16xf32>
    %c2_111 = arith.constant 2 : index
    %c1_112 = arith.constant 1 : index
    %c9_113 = arith.constant 9 : index
    %431 = vector.load %arg5[%c2_111, %c1_112, %c9_113] : memref<4x10x34xf32, #tpu.memory_space<vmem>>, vector<1x8x16xf32>
    %432 = vector.shape_cast %431 : vector<1x8x16xf32> to vector<8x16xf32>
    %c22 = arith.constant 22 : index
    %433 = memref.load %arg2[%c22] : memref<432xf32, #tpu.memory_space<smem>>
    %434 = vector.broadcast %433 : f32 to vector<8x16xf32>
    %435 = arith.mulf %434, %432 : vector<8x16xf32>
    %436 = arith.addf %418, %435 : vector<8x16xf32>
    %c58 = arith.constant 58 : index
    %437 = memref.load %arg2[%c58] : memref<432xf32, #tpu.memory_space<smem>>
    %438 = vector.broadcast %437 : f32 to vector<8x16xf32>
    %439 = arith.mulf %438, %432 : vector<8x16xf32>
    %440 = arith.addf %422, %439 : vector<8x16xf32>
    %c94 = arith.constant 94 : index
    %441 = memref.load %arg2[%c94] : memref<432xf32, #tpu.memory_space<smem>>
    %442 = vector.broadcast %441 : f32 to vector<8x16xf32>
    %443 = arith.mulf %442, %432 : vector<8x16xf32>
    %444 = arith.addf %426, %443 : vector<8x16xf32>
    %c130 = arith.constant 130 : index
    %445 = memref.load %arg2[%c130] : memref<432xf32, #tpu.memory_space<smem>>
    %446 = vector.broadcast %445 : f32 to vector<8x16xf32>
    %447 = arith.mulf %446, %432 : vector<8x16xf32>
    %448 = arith.addf %430, %447 : vector<8x16xf32>
    %c2_114 = arith.constant 2 : index
    %c1_115 = arith.constant 1 : index
    %c10_116 = arith.constant 10 : index
    %449 = vector.load %arg5[%c2_114, %c1_115, %c10_116] : memref<4x10x34xf32, #tpu.memory_space<vmem>>, vector<1x8x16xf32>
    %450 = vector.shape_cast %449 : vector<1x8x16xf32> to vector<8x16xf32>
    %c23 = arith.constant 23 : index
    %451 = memref.load %arg2[%c23] : memref<432xf32, #tpu.memory_space<smem>>
    %452 = vector.broadcast %451 : f32 to vector<8x16xf32>
    %453 = arith.mulf %452, %450 : vector<8x16xf32>
    %454 = arith.addf %436, %453 : vector<8x16xf32>
    %c59 = arith.constant 59 : index
    %455 = memref.load %arg2[%c59] : memref<432xf32, #tpu.memory_space<smem>>
    %456 = vector.broadcast %455 : f32 to vector<8x16xf32>
    %457 = arith.mulf %456, %450 : vector<8x16xf32>
    %458 = arith.addf %440, %457 : vector<8x16xf32>
    %c95 = arith.constant 95 : index
    %459 = memref.load %arg2[%c95] : memref<432xf32, #tpu.memory_space<smem>>
    %460 = vector.broadcast %459 : f32 to vector<8x16xf32>
    %461 = arith.mulf %460, %450 : vector<8x16xf32>
    %462 = arith.addf %444, %461 : vector<8x16xf32>
    %c131 = arith.constant 131 : index
    %463 = memref.load %arg2[%c131] : memref<432xf32, #tpu.memory_space<smem>>
    %464 = vector.broadcast %463 : f32 to vector<8x16xf32>
    %465 = arith.mulf %464, %450 : vector<8x16xf32>
    %466 = arith.addf %448, %465 : vector<8x16xf32>
    %c2_117 = arith.constant 2 : index
    %c2_118 = arith.constant 2 : index
    %c8_119 = arith.constant 8 : index
    %467 = vector.load %arg5[%c2_117, %c2_118, %c8_119] : memref<4x10x34xf32, #tpu.memory_space<vmem>>, vector<1x8x16xf32>
    %468 = vector.shape_cast %467 : vector<1x8x16xf32> to vector<8x16xf32>
    %c24 = arith.constant 24 : index
    %469 = memref.load %arg2[%c24] : memref<432xf32, #tpu.memory_space<smem>>
    %470 = vector.broadcast %469 : f32 to vector<8x16xf32>
    %471 = arith.mulf %470, %468 : vector<8x16xf32>
    %472 = arith.addf %454, %471 : vector<8x16xf32>
    %c60 = arith.constant 60 : index
    %473 = memref.load %arg2[%c60] : memref<432xf32, #tpu.memory_space<smem>>
    %474 = vector.broadcast %473 : f32 to vector<8x16xf32>
    %475 = arith.mulf %474, %468 : vector<8x16xf32>
    %476 = arith.addf %458, %475 : vector<8x16xf32>
    %c96 = arith.constant 96 : index
    %477 = memref.load %arg2[%c96] : memref<432xf32, #tpu.memory_space<smem>>
    %478 = vector.broadcast %477 : f32 to vector<8x16xf32>
    %479 = arith.mulf %478, %468 : vector<8x16xf32>
    %480 = arith.addf %462, %479 : vector<8x16xf32>
    %c132 = arith.constant 132 : index
    %481 = memref.load %arg2[%c132] : memref<432xf32, #tpu.memory_space<smem>>
    %482 = vector.broadcast %481 : f32 to vector<8x16xf32>
    %483 = arith.mulf %482, %468 : vector<8x16xf32>
    %484 = arith.addf %466, %483 : vector<8x16xf32>
    %c2_120 = arith.constant 2 : index
    %c2_121 = arith.constant 2 : index
    %c9_122 = arith.constant 9 : index
    %485 = vector.load %arg5[%c2_120, %c2_121, %c9_122] : memref<4x10x34xf32, #tpu.memory_space<vmem>>, vector<1x8x16xf32>
    %486 = vector.shape_cast %485 : vector<1x8x16xf32> to vector<8x16xf32>
    %c25_123 = arith.constant 25 : index
    %487 = memref.load %arg2[%c25_123] : memref<432xf32, #tpu.memory_space<smem>>
    %488 = vector.broadcast %487 : f32 to vector<8x16xf32>
    %489 = arith.mulf %488, %486 : vector<8x16xf32>
    %490 = arith.addf %472, %489 : vector<8x16xf32>
    %c61 = arith.constant 61 : index
    %491 = memref.load %arg2[%c61] : memref<432xf32, #tpu.memory_space<smem>>
    %492 = vector.broadcast %491 : f32 to vector<8x16xf32>
    %493 = arith.mulf %492, %486 : vector<8x16xf32>
    %494 = arith.addf %476, %493 : vector<8x16xf32>
    %c97 = arith.constant 97 : index
    %495 = memref.load %arg2[%c97] : memref<432xf32, #tpu.memory_space<smem>>
    %496 = vector.broadcast %495 : f32 to vector<8x16xf32>
    %497 = arith.mulf %496, %486 : vector<8x16xf32>
    %498 = arith.addf %480, %497 : vector<8x16xf32>
    %c133 = arith.constant 133 : index
    %499 = memref.load %arg2[%c133] : memref<432xf32, #tpu.memory_space<smem>>
    %500 = vector.broadcast %499 : f32 to vector<8x16xf32>
    %501 = arith.mulf %500, %486 : vector<8x16xf32>
    %502 = arith.addf %484, %501 : vector<8x16xf32>
    %c2_124 = arith.constant 2 : index
    %c2_125 = arith.constant 2 : index
    %c10_126 = arith.constant 10 : index
    %503 = vector.load %arg5[%c2_124, %c2_125, %c10_126] : memref<4x10x34xf32, #tpu.memory_space<vmem>>, vector<1x8x16xf32>
    %504 = vector.shape_cast %503 : vector<1x8x16xf32> to vector<8x16xf32>
    %c26 = arith.constant 26 : index
    %505 = memref.load %arg2[%c26] : memref<432xf32, #tpu.memory_space<smem>>
    %506 = vector.broadcast %505 : f32 to vector<8x16xf32>
    %507 = arith.mulf %506, %504 : vector<8x16xf32>
    %508 = arith.addf %490, %507 : vector<8x16xf32>
    %c62 = arith.constant 62 : index
    %509 = memref.load %arg2[%c62] : memref<432xf32, #tpu.memory_space<smem>>
    %510 = vector.broadcast %509 : f32 to vector<8x16xf32>
    %511 = arith.mulf %510, %504 : vector<8x16xf32>
    %512 = arith.addf %494, %511 : vector<8x16xf32>
    %c98 = arith.constant 98 : index
    %513 = memref.load %arg2[%c98] : memref<432xf32, #tpu.memory_space<smem>>
    %514 = vector.broadcast %513 : f32 to vector<8x16xf32>
    %515 = arith.mulf %514, %504 : vector<8x16xf32>
    %516 = arith.addf %498, %515 : vector<8x16xf32>
    %c134 = arith.constant 134 : index
    %517 = memref.load %arg2[%c134] : memref<432xf32, #tpu.memory_space<smem>>
    %518 = vector.broadcast %517 : f32 to vector<8x16xf32>
    %519 = arith.mulf %518, %504 : vector<8x16xf32>
    %520 = arith.addf %502, %519 : vector<8x16xf32>
    %c3_127 = arith.constant 3 : index
    %c0_128 = arith.constant 0 : index
    %c8_129 = arith.constant 8 : index
    %521 = vector.load %arg5[%c3_127, %c0_128, %c8_129] : memref<4x10x34xf32, #tpu.memory_space<vmem>>, vector<1x8x16xf32>
    %522 = vector.shape_cast %521 : vector<1x8x16xf32> to vector<8x16xf32>
    %c27 = arith.constant 27 : index
    %523 = memref.load %arg2[%c27] : memref<432xf32, #tpu.memory_space<smem>>
    %524 = vector.broadcast %523 : f32 to vector<8x16xf32>
    %525 = arith.mulf %524, %522 : vector<8x16xf32>
    %526 = arith.addf %508, %525 : vector<8x16xf32>
    %c63 = arith.constant 63 : index
    %527 = memref.load %arg2[%c63] : memref<432xf32, #tpu.memory_space<smem>>
    %528 = vector.broadcast %527 : f32 to vector<8x16xf32>
    %529 = arith.mulf %528, %522 : vector<8x16xf32>
    %530 = arith.addf %512, %529 : vector<8x16xf32>
    %c99 = arith.constant 99 : index
    %531 = memref.load %arg2[%c99] : memref<432xf32, #tpu.memory_space<smem>>
    %532 = vector.broadcast %531 : f32 to vector<8x16xf32>
    %533 = arith.mulf %532, %522 : vector<8x16xf32>
    %534 = arith.addf %516, %533 : vector<8x16xf32>
    %c135 = arith.constant 135 : index
    %535 = memref.load %arg2[%c135] : memref<432xf32, #tpu.memory_space<smem>>
    %536 = vector.broadcast %535 : f32 to vector<8x16xf32>
    %537 = arith.mulf %536, %522 : vector<8x16xf32>
    %538 = arith.addf %520, %537 : vector<8x16xf32>
    %c3_130 = arith.constant 3 : index
    %c0_131 = arith.constant 0 : index
    %c9_132 = arith.constant 9 : index
    %539 = vector.load %arg5[%c3_130, %c0_131, %c9_132] : memref<4x10x34xf32, #tpu.memory_space<vmem>>, vector<1x8x16xf32>
    %540 = vector.shape_cast %539 : vector<1x8x16xf32> to vector<8x16xf32>
    %c28 = arith.constant 28 : index
    %541 = memref.load %arg2[%c28] : memref<432xf32, #tpu.memory_space<smem>>
    %542 = vector.broadcast %541 : f32 to vector<8x16xf32>
    %543 = arith.mulf %542, %540 : vector<8x16xf32>
    %544 = arith.addf %526, %543 : vector<8x16xf32>
    %c64 = arith.constant 64 : index
    %545 = memref.load %arg2[%c64] : memref<432xf32, #tpu.memory_space<smem>>
    %546 = vector.broadcast %545 : f32 to vector<8x16xf32>
    %547 = arith.mulf %546, %540 : vector<8x16xf32>
    %548 = arith.addf %530, %547 : vector<8x16xf32>
    %c100 = arith.constant 100 : index
    %549 = memref.load %arg2[%c100] : memref<432xf32, #tpu.memory_space<smem>>
    %550 = vector.broadcast %549 : f32 to vector<8x16xf32>
    %551 = arith.mulf %550, %540 : vector<8x16xf32>
    %552 = arith.addf %534, %551 : vector<8x16xf32>
    %c136 = arith.constant 136 : index
    %553 = memref.load %arg2[%c136] : memref<432xf32, #tpu.memory_space<smem>>
    %554 = vector.broadcast %553 : f32 to vector<8x16xf32>
    %555 = arith.mulf %554, %540 : vector<8x16xf32>
    %556 = arith.addf %538, %555 : vector<8x16xf32>
    %c3_133 = arith.constant 3 : index
    %c0_134 = arith.constant 0 : index
    %c10_135 = arith.constant 10 : index
    %557 = vector.load %arg5[%c3_133, %c0_134, %c10_135] : memref<4x10x34xf32, #tpu.memory_space<vmem>>, vector<1x8x16xf32>
    %558 = vector.shape_cast %557 : vector<1x8x16xf32> to vector<8x16xf32>
    %c29 = arith.constant 29 : index
    %559 = memref.load %arg2[%c29] : memref<432xf32, #tpu.memory_space<smem>>
    %560 = vector.broadcast %559 : f32 to vector<8x16xf32>
    %561 = arith.mulf %560, %558 : vector<8x16xf32>
    %562 = arith.addf %544, %561 : vector<8x16xf32>
    %c65 = arith.constant 65 : index
    %563 = memref.load %arg2[%c65] : memref<432xf32, #tpu.memory_space<smem>>
    %564 = vector.broadcast %563 : f32 to vector<8x16xf32>
    %565 = arith.mulf %564, %558 : vector<8x16xf32>
    %566 = arith.addf %548, %565 : vector<8x16xf32>
    %c101 = arith.constant 101 : index
    %567 = memref.load %arg2[%c101] : memref<432xf32, #tpu.memory_space<smem>>
    %568 = vector.broadcast %567 : f32 to vector<8x16xf32>
    %569 = arith.mulf %568, %558 : vector<8x16xf32>
    %570 = arith.addf %552, %569 : vector<8x16xf32>
    %c137 = arith.constant 137 : index
    %571 = memref.load %arg2[%c137] : memref<432xf32, #tpu.memory_space<smem>>
    %572 = vector.broadcast %571 : f32 to vector<8x16xf32>
    %573 = arith.mulf %572, %558 : vector<8x16xf32>
    %574 = arith.addf %556, %573 : vector<8x16xf32>
    %c3_136 = arith.constant 3 : index
    %c1_137 = arith.constant 1 : index
    %c8_138 = arith.constant 8 : index
    %575 = vector.load %arg5[%c3_136, %c1_137, %c8_138] : memref<4x10x34xf32, #tpu.memory_space<vmem>>, vector<1x8x16xf32>
    %576 = vector.shape_cast %575 : vector<1x8x16xf32> to vector<8x16xf32>
    %c30 = arith.constant 30 : index
    %577 = memref.load %arg2[%c30] : memref<432xf32, #tpu.memory_space<smem>>
    %578 = vector.broadcast %577 : f32 to vector<8x16xf32>
    %579 = arith.mulf %578, %576 : vector<8x16xf32>
    %580 = arith.addf %562, %579 : vector<8x16xf32>
    %c66 = arith.constant 66 : index
    %581 = memref.load %arg2[%c66] : memref<432xf32, #tpu.memory_space<smem>>
    %582 = vector.broadcast %581 : f32 to vector<8x16xf32>
    %583 = arith.mulf %582, %576 : vector<8x16xf32>
    %584 = arith.addf %566, %583 : vector<8x16xf32>
    %c102 = arith.constant 102 : index
    %585 = memref.load %arg2[%c102] : memref<432xf32, #tpu.memory_space<smem>>
    %586 = vector.broadcast %585 : f32 to vector<8x16xf32>
    %587 = arith.mulf %586, %576 : vector<8x16xf32>
    %588 = arith.addf %570, %587 : vector<8x16xf32>
    %c138 = arith.constant 138 : index
    %589 = memref.load %arg2[%c138] : memref<432xf32, #tpu.memory_space<smem>>
    %590 = vector.broadcast %589 : f32 to vector<8x16xf32>
    %591 = arith.mulf %590, %576 : vector<8x16xf32>
    %592 = arith.addf %574, %591 : vector<8x16xf32>
    %c3_139 = arith.constant 3 : index
    %c1_140 = arith.constant 1 : index
    %c9_141 = arith.constant 9 : index
    %593 = vector.load %arg5[%c3_139, %c1_140, %c9_141] : memref<4x10x34xf32, #tpu.memory_space<vmem>>, vector<1x8x16xf32>
    %594 = vector.shape_cast %593 : vector<1x8x16xf32> to vector<8x16xf32>
    %c31 = arith.constant 31 : index
    %595 = memref.load %arg2[%c31] : memref<432xf32, #tpu.memory_space<smem>>
    %596 = vector.broadcast %595 : f32 to vector<8x16xf32>
    %597 = arith.mulf %596, %594 : vector<8x16xf32>
    %598 = arith.addf %580, %597 : vector<8x16xf32>
    %c67 = arith.constant 67 : index
    %599 = memref.load %arg2[%c67] : memref<432xf32, #tpu.memory_space<smem>>
    %600 = vector.broadcast %599 : f32 to vector<8x16xf32>
    %601 = arith.mulf %600, %594 : vector<8x16xf32>
    %602 = arith.addf %584, %601 : vector<8x16xf32>
    %c103 = arith.constant 103 : index
    %603 = memref.load %arg2[%c103] : memref<432xf32, #tpu.memory_space<smem>>
    %604 = vector.broadcast %603 : f32 to vector<8x16xf32>
    %605 = arith.mulf %604, %594 : vector<8x16xf32>
    %606 = arith.addf %588, %605 : vector<8x16xf32>
    %c139 = arith.constant 139 : index
    %607 = memref.load %arg2[%c139] : memref<432xf32, #tpu.memory_space<smem>>
    %608 = vector.broadcast %607 : f32 to vector<8x16xf32>
    %609 = arith.mulf %608, %594 : vector<8x16xf32>
    %610 = arith.addf %592, %609 : vector<8x16xf32>
    %c3_142 = arith.constant 3 : index
    %c1_143 = arith.constant 1 : index
    %c10_144 = arith.constant 10 : index
    %611 = vector.load %arg5[%c3_142, %c1_143, %c10_144] : memref<4x10x34xf32, #tpu.memory_space<vmem>>, vector<1x8x16xf32>
    %612 = vector.shape_cast %611 : vector<1x8x16xf32> to vector<8x16xf32>
    %c32 = arith.constant 32 : index
    %613 = memref.load %arg2[%c32] : memref<432xf32, #tpu.memory_space<smem>>
    %614 = vector.broadcast %613 : f32 to vector<8x16xf32>
    %615 = arith.mulf %614, %612 : vector<8x16xf32>
    %616 = arith.addf %598, %615 : vector<8x16xf32>
    %c68 = arith.constant 68 : index
    %617 = memref.load %arg2[%c68] : memref<432xf32, #tpu.memory_space<smem>>
    %618 = vector.broadcast %617 : f32 to vector<8x16xf32>
    %619 = arith.mulf %618, %612 : vector<8x16xf32>
    %620 = arith.addf %602, %619 : vector<8x16xf32>
    %c104 = arith.constant 104 : index
    %621 = memref.load %arg2[%c104] : memref<432xf32, #tpu.memory_space<smem>>
    %622 = vector.broadcast %621 : f32 to vector<8x16xf32>
    %623 = arith.mulf %622, %612 : vector<8x16xf32>
    %624 = arith.addf %606, %623 : vector<8x16xf32>
    %c140 = arith.constant 140 : index
    %625 = memref.load %arg2[%c140] : memref<432xf32, #tpu.memory_space<smem>>
    %626 = vector.broadcast %625 : f32 to vector<8x16xf32>
    %627 = arith.mulf %626, %612 : vector<8x16xf32>
    %628 = arith.addf %610, %627 : vector<8x16xf32>
    %c3_145 = arith.constant 3 : index
    %c2_146 = arith.constant 2 : index
    %c8_147 = arith.constant 8 : index
    %629 = vector.load %arg5[%c3_145, %c2_146, %c8_147] : memref<4x10x34xf32, #tpu.memory_space<vmem>>, vector<1x8x16xf32>
    %630 = vector.shape_cast %629 : vector<1x8x16xf32> to vector<8x16xf32>
    %c33 = arith.constant 33 : index
    %631 = memref.load %arg2[%c33] : memref<432xf32, #tpu.memory_space<smem>>
    %632 = vector.broadcast %631 : f32 to vector<8x16xf32>
    %633 = arith.mulf %632, %630 : vector<8x16xf32>
    %634 = arith.addf %616, %633 : vector<8x16xf32>
    %c69 = arith.constant 69 : index
    %635 = memref.load %arg2[%c69] : memref<432xf32, #tpu.memory_space<smem>>
    %636 = vector.broadcast %635 : f32 to vector<8x16xf32>
    %637 = arith.mulf %636, %630 : vector<8x16xf32>
    %638 = arith.addf %620, %637 : vector<8x16xf32>
    %c105 = arith.constant 105 : index
    %639 = memref.load %arg2[%c105] : memref<432xf32, #tpu.memory_space<smem>>
    %640 = vector.broadcast %639 : f32 to vector<8x16xf32>
    %641 = arith.mulf %640, %630 : vector<8x16xf32>
    %642 = arith.addf %624, %641 : vector<8x16xf32>
    %c141 = arith.constant 141 : index
    %643 = memref.load %arg2[%c141] : memref<432xf32, #tpu.memory_space<smem>>
    %644 = vector.broadcast %643 : f32 to vector<8x16xf32>
    %645 = arith.mulf %644, %630 : vector<8x16xf32>
    %646 = arith.addf %628, %645 : vector<8x16xf32>
    %c3_148 = arith.constant 3 : index
    %c2_149 = arith.constant 2 : index
    %c9_150 = arith.constant 9 : index
    %647 = vector.load %arg5[%c3_148, %c2_149, %c9_150] : memref<4x10x34xf32, #tpu.memory_space<vmem>>, vector<1x8x16xf32>
    %648 = vector.shape_cast %647 : vector<1x8x16xf32> to vector<8x16xf32>
    %c34 = arith.constant 34 : index
    %649 = memref.load %arg2[%c34] : memref<432xf32, #tpu.memory_space<smem>>
    %650 = vector.broadcast %649 : f32 to vector<8x16xf32>
    %651 = arith.mulf %650, %648 : vector<8x16xf32>
    %652 = arith.addf %634, %651 : vector<8x16xf32>
    %c70 = arith.constant 70 : index
    %653 = memref.load %arg2[%c70] : memref<432xf32, #tpu.memory_space<smem>>
    %654 = vector.broadcast %653 : f32 to vector<8x16xf32>
    %655 = arith.mulf %654, %648 : vector<8x16xf32>
    %656 = arith.addf %638, %655 : vector<8x16xf32>
    %c106 = arith.constant 106 : index
    %657 = memref.load %arg2[%c106] : memref<432xf32, #tpu.memory_space<smem>>
    %658 = vector.broadcast %657 : f32 to vector<8x16xf32>
    %659 = arith.mulf %658, %648 : vector<8x16xf32>
    %660 = arith.addf %642, %659 : vector<8x16xf32>
    %c142 = arith.constant 142 : index
    %661 = memref.load %arg2[%c142] : memref<432xf32, #tpu.memory_space<smem>>
    %662 = vector.broadcast %661 : f32 to vector<8x16xf32>
    %663 = arith.mulf %662, %648 : vector<8x16xf32>
    %664 = arith.addf %646, %663 : vector<8x16xf32>
    %c3_151 = arith.constant 3 : index
    %c2_152 = arith.constant 2 : index
    %c10_153 = arith.constant 10 : index
    %665 = vector.load %arg5[%c3_151, %c2_152, %c10_153] : memref<4x10x34xf32, #tpu.memory_space<vmem>>, vector<1x8x16xf32>
    %666 = vector.shape_cast %665 : vector<1x8x16xf32> to vector<8x16xf32>
    %c35 = arith.constant 35 : index
    %667 = memref.load %arg2[%c35] : memref<432xf32, #tpu.memory_space<smem>>
    %668 = vector.broadcast %667 : f32 to vector<8x16xf32>
    %669 = arith.mulf %668, %666 : vector<8x16xf32>
    %670 = arith.addf %652, %669 : vector<8x16xf32>
    %c71 = arith.constant 71 : index
    %671 = memref.load %arg2[%c71] : memref<432xf32, #tpu.memory_space<smem>>
    %672 = vector.broadcast %671 : f32 to vector<8x16xf32>
    %673 = arith.mulf %672, %666 : vector<8x16xf32>
    %674 = arith.addf %656, %673 : vector<8x16xf32>
    %c107 = arith.constant 107 : index
    %675 = memref.load %arg2[%c107] : memref<432xf32, #tpu.memory_space<smem>>
    %676 = vector.broadcast %675 : f32 to vector<8x16xf32>
    %677 = arith.mulf %676, %666 : vector<8x16xf32>
    %678 = arith.addf %660, %677 : vector<8x16xf32>
    %c143 = arith.constant 143 : index
    %679 = memref.load %arg2[%c143] : memref<432xf32, #tpu.memory_space<smem>>
    %680 = vector.broadcast %679 : f32 to vector<8x16xf32>
    %681 = arith.mulf %680, %666 : vector<8x16xf32>
    %682 = arith.addf %664, %681 : vector<8x16xf32>
    %cst_154 = arith.constant 0.000000e+00 : f32
    %683 = vector.broadcast %cst_154 : f32 to vector<8x16xf32>
    %684 = arith.cmpf ogt, %670, %683 : vector<8x16xf32>
    %cst_155 = arith.constant 3.000000e-01 : f32
    %685 = vector.broadcast %cst_155 : f32 to vector<8x16xf32>
    %686 = arith.mulf %685, %670 : vector<8x16xf32>
    %687 = arith.select %684, %670, %686 : vector<8x16xi1>, vector<8x16xf32>
    %c0_156 = arith.constant 0 : index
    %c1_157 = arith.constant 1 : index
    %c3_158 = arith.constant 3 : index
    %688 = vector.load %arg6[%c0_156, %c1_157, %c3_158] : memref<4x10x22xf32, #tpu.memory_space<vmem>>, vector<1x8x16xf32>
    %689 = vector.shape_cast %688 : vector<1x8x16xf32> to vector<8x16xf32>
    %690 = vector.shape_cast %687 : vector<8x16xf32> to vector<1x8x16xf32>
    tpu.vector_store %arg6[%c0_156, %c1_157, %c3_158], %690 {strides = array<i32>} : memref<4x10x22xf32, #tpu.memory_space<vmem>>, vector<1x8x16xf32>,
    %cst_159 = arith.constant 0.000000e+00 : f32
    %691 = vector.broadcast %cst_159 : f32 to vector<8x16xf32>
    %692 = arith.cmpf ogt, %674, %691 : vector<8x16xf32>
    %cst_160 = arith.constant 3.000000e-01 : f32
    %693 = vector.broadcast %cst_160 : f32 to vector<8x16xf32>
    %694 = arith.mulf %693, %674 : vector<8x16xf32>
    %695 = arith.select %692, %674, %694 : vector<8x16xi1>, vector<8x16xf32>
    %c1_161 = arith.constant 1 : index
    %c1_162 = arith.constant 1 : index
    %c3_163 = arith.constant 3 : index
    %696 = vector.load %arg6[%c1_161, %c1_162, %c3_163] : memref<4x10x22xf32, #tpu.memory_space<vmem>>, vector<1x8x16xf32>
    %697 = vector.shape_cast %696 : vector<1x8x16xf32> to vector<8x16xf32>
    %698 = vector.shape_cast %695 : vector<8x16xf32> to vector<1x8x16xf32>
    tpu.vector_store %arg6[%c1_161, %c1_162, %c3_163], %698 {strides = array<i32>} : memref<4x10x22xf32, #tpu.memory_space<vmem>>, vector<1x8x16xf32>,
    %cst_164 = arith.constant 0.000000e+00 : f32
    %699 = vector.broadcast %cst_164 : f32 to vector<8x16xf32>
    %700 = arith.cmpf ogt, %678, %699 : vector<8x16xf32>
    %cst_165 = arith.constant 3.000000e-01 : f32
    %701 = vector.broadcast %cst_165 : f32 to vector<8x16xf32>
    %702 = arith.mulf %701, %678 : vector<8x16xf32>
    %703 = arith.select %700, %678, %702 : vector<8x16xi1>, vector<8x16xf32>
    %c2_166 = arith.constant 2 : index
    %c1_167 = arith.constant 1 : index
    %c3_168 = arith.constant 3 : index
    %704 = vector.load %arg6[%c2_166, %c1_167, %c3_168] : memref<4x10x22xf32, #tpu.memory_space<vmem>>, vector<1x8x16xf32>
    %705 = vector.shape_cast %704 : vector<1x8x16xf32> to vector<8x16xf32>
    %706 = vector.shape_cast %703 : vector<8x16xf32> to vector<1x8x16xf32>
    tpu.vector_store %arg6[%c2_166, %c1_167, %c3_168], %706 {strides = array<i32>} : memref<4x10x22xf32, #tpu.memory_space<vmem>>, vector<1x8x16xf32>,
    %cst_169 = arith.constant 0.000000e+00 : f32
    %707 = vector.broadcast %cst_169 : f32 to vector<8x16xf32>
    %708 = arith.cmpf ogt, %682, %707 : vector<8x16xf32>
    %cst_170 = arith.constant 3.000000e-01 : f32
    %709 = vector.broadcast %cst_170 : f32 to vector<8x16xf32>
    %710 = arith.mulf %709, %682 : vector<8x16xf32>
    %711 = arith.select %708, %682, %710 : vector<8x16xi1>, vector<8x16xf32>
    %c3_171 = arith.constant 3 : index
    %c1_172 = arith.constant 1 : index
    %c3_173 = arith.constant 3 : index
    %712 = vector.load %arg6[%c3_171, %c1_172, %c3_173] : memref<4x10x22xf32, #tpu.memory_space<vmem>>, vector<1x8x16xf32>
    %713 = vector.shape_cast %712 : vector<1x8x16xf32> to vector<8x16xf32>
    %714 = vector.shape_cast %711 : vector<8x16xf32> to vector<1x8x16xf32>
    tpu.vector_store %arg6[%c3_171, %c1_172, %c3_173], %714 {strides = array<i32>} : memref<4x10x22xf32, #tpu.memory_space<vmem>>, vector<1x8x16xf32>,
    %c4_174 = arith.constant 4 : index
    %715 = memref.load %arg3[%c4_174] : memref<12xf32, #tpu.memory_space<smem>>
    %cst_175 = arith.constant 0.000000e+00 : f32
    %716 = vector.broadcast %cst_175 : f32 to vector<8x16xf32>
    %717 = vector.broadcast %715 : f32 to vector<8x16xf32>
    %718 = arith.addf %717, %716 : vector<8x16xf32>
    %c5_176 = arith.constant 5 : index
    %719 = memref.load %arg3[%c5_176] : memref<12xf32, #tpu.memory_space<smem>>
    %cst_177 = arith.constant 0.000000e+00 : f32
    %720 = vector.broadcast %cst_177 : f32 to vector<8x16xf32>
    %721 = vector.broadcast %719 : f32 to vector<8x16xf32>
    %722 = arith.addf %721, %720 : vector<8x16xf32>
    %c6_178 = arith.constant 6 : index
    %723 = memref.load %arg3[%c6_178] : memref<12xf32, #tpu.memory_space<smem>>
    %cst_179 = arith.constant 0.000000e+00 : f32
    %724 = vector.broadcast %cst_179 : f32 to vector<8x16xf32>
    %725 = vector.broadcast %723 : f32 to vector<8x16xf32>
    %726 = arith.addf %725, %724 : vector<8x16xf32>
    %c7_180 = arith.constant 7 : index
    %727 = memref.load %arg3[%c7_180] : memref<12xf32, #tpu.memory_space<smem>>
    %cst_181 = arith.constant 0.000000e+00 : f32
    %728 = vector.broadcast %cst_181 : f32 to vector<8x16xf32>
    %729 = vector.broadcast %727 : f32 to vector<8x16xf32>
    %730 = arith.addf %729, %728 : vector<8x16xf32>
    %c0_182 = arith.constant 0 : index
    %c0_183 = arith.constant 0 : index
    %c0_184 = arith.constant 0 : index
    %731 = vector.load %arg6[%c0_182, %c0_183, %c0_184] : memref<4x10x22xf32, #tpu.memory_space<vmem>>, vector<1x8x16xf32>
    %732 = vector.shape_cast %731 : vector<1x8x16xf32> to vector<8x16xf32>
    %c144 = arith.constant 144 : index
    %733 = memref.load %arg2[%c144] : memref<432xf32, #tpu.memory_space<smem>>
    %734 = vector.broadcast %733 : f32 to vector<8x16xf32>
    %735 = arith.mulf %734, %732 : vector<8x16xf32>
    %736 = arith.addf %718, %735 : vector<8x16xf32>
    %c180 = arith.constant 180 : index
    %737 = memref.load %arg2[%c180] : memref<432xf32, #tpu.memory_space<smem>>
    %738 = vector.broadcast %737 : f32 to vector<8x16xf32>
    %739 = arith.mulf %738, %732 : vector<8x16xf32>
    %740 = arith.addf %722, %739 : vector<8x16xf32>
    %c216 = arith.constant 216 : index
    %741 = memref.load %arg2[%c216] : memref<432xf32, #tpu.memory_space<smem>>
    %742 = vector.broadcast %741 : f32 to vector<8x16xf32>
    %743 = arith.mulf %742, %732 : vector<8x16xf32>
    %744 = arith.addf %726, %743 : vector<8x16xf32>
    %c252 = arith.constant 252 : index
    %745 = memref.load %arg2[%c252] : memref<432xf32, #tpu.memory_space<smem>>
    %746 = vector.broadcast %745 : f32 to vector<8x16xf32>
    %747 = arith.mulf %746, %732 : vector<8x16xf32>
    %748 = arith.addf %730, %747 : vector<8x16xf32>
    %c0_185 = arith.constant 0 : index
    %c0_186 = arith.constant 0 : index
    %c3_187 = arith.constant 3 : index
    %749 = vector.load %arg6[%c0_185, %c0_186, %c3_187] : memref<4x10x22xf32, #tpu.memory_space<vmem>>, vector<1x8x16xf32>
    %750 = vector.shape_cast %749 : vector<1x8x16xf32> to vector<8x16xf32>
    %c145 = arith.constant 145 : index
    %751 = memref.load %arg2[%c145] : memref<432xf32, #tpu.memory_space<smem>>
    %752 = vector.broadcast %751 : f32 to vector<8x16xf32>
    %753 = arith.mulf %752, %750 : vector<8x16xf32>
    %754 = arith.addf %736, %753 : vector<8x16xf32>
    %c181 = arith.constant 181 : index
    %755 = memref.load %arg2[%c181] : memref<432xf32, #tpu.memory_space<smem>>
    %756 = vector.broadcast %755 : f32 to vector<8x16xf32>
    %757 = arith.mulf %756, %750 : vector<8x16xf32>
    %758 = arith.addf %740, %757 : vector<8x16xf32>
    %c217 = arith.constant 217 : index
    %759 = memref.load %arg2[%c217] : memref<432xf32, #tpu.memory_space<smem>>
    %760 = vector.broadcast %759 : f32 to vector<8x16xf32>
    %761 = arith.mulf %760, %750 : vector<8x16xf32>
    %762 = arith.addf %744, %761 : vector<8x16xf32>
    %c253 = arith.constant 253 : index
    %763 = memref.load %arg2[%c253] : memref<432xf32, #tpu.memory_space<smem>>
    %764 = vector.broadcast %763 : f32 to vector<8x16xf32>
    %765 = arith.mulf %764, %750 : vector<8x16xf32>
    %766 = arith.addf %748, %765 : vector<8x16xf32>
    %c0_188 = arith.constant 0 : index
    %c0_189 = arith.constant 0 : index
    %c6_190 = arith.constant 6 : index
    %767 = vector.load %arg6[%c0_188, %c0_189, %c6_190] : memref<4x10x22xf32, #tpu.memory_space<vmem>>, vector<1x8x16xf32>
    %768 = vector.shape_cast %767 : vector<1x8x16xf32> to vector<8x16xf32>
    %c146 = arith.constant 146 : index
    %769 = memref.load %arg2[%c146] : memref<432xf32, #tpu.memory_space<smem>>
    %770 = vector.broadcast %769 : f32 to vector<8x16xf32>
    %771 = arith.mulf %770, %768 : vector<8x16xf32>
    %772 = arith.addf %754, %771 : vector<8x16xf32>
    %c182 = arith.constant 182 : index
    %773 = memref.load %arg2[%c182] : memref<432xf32, #tpu.memory_space<smem>>
    %774 = vector.broadcast %773 : f32 to vector<8x16xf32>
    %775 = arith.mulf %774, %768 : vector<8x16xf32>
    %776 = arith.addf %758, %775 : vector<8x16xf32>
    %c218 = arith.constant 218 : index
    %777 = memref.load %arg2[%c218] : memref<432xf32, #tpu.memory_space<smem>>
    %778 = vector.broadcast %777 : f32 to vector<8x16xf32>
    %779 = arith.mulf %778, %768 : vector<8x16xf32>
    %780 = arith.addf %762, %779 : vector<8x16xf32>
    %c254 = arith.constant 254 : index
    %781 = memref.load %arg2[%c254] : memref<432xf32, #tpu.memory_space<smem>>
    %782 = vector.broadcast %781 : f32 to vector<8x16xf32>
    %783 = arith.mulf %782, %768 : vector<8x16xf32>
    %784 = arith.addf %766, %783 : vector<8x16xf32>
    %c0_191 = arith.constant 0 : index
    %c1_192 = arith.constant 1 : index
    %c0_193 = arith.constant 0 : index
    %785 = vector.load %arg6[%c0_191, %c1_192, %c0_193] : memref<4x10x22xf32, #tpu.memory_space<vmem>>, vector<1x8x16xf32>
    %786 = vector.shape_cast %785 : vector<1x8x16xf32> to vector<8x16xf32>
    %c147 = arith.constant 147 : index
    %787 = memref.load %arg2[%c147] : memref<432xf32, #tpu.memory_space<smem>>
    %788 = vector.broadcast %787 : f32 to vector<8x16xf32>
    %789 = arith.mulf %788, %786 : vector<8x16xf32>
    %790 = arith.addf %772, %789 : vector<8x16xf32>
    %c183 = arith.constant 183 : index
    %791 = memref.load %arg2[%c183] : memref<432xf32, #tpu.memory_space<smem>>
    %792 = vector.broadcast %791 : f32 to vector<8x16xf32>
    %793 = arith.mulf %792, %786 : vector<8x16xf32>
    %794 = arith.addf %776, %793 : vector<8x16xf32>
    %c219 = arith.constant 219 : index
    %795 = memref.load %arg2[%c219] : memref<432xf32, #tpu.memory_space<smem>>
    %796 = vector.broadcast %795 : f32 to vector<8x16xf32>
    %797 = arith.mulf %796, %786 : vector<8x16xf32>
    %798 = arith.addf %780, %797 : vector<8x16xf32>
    %c255 = arith.constant 255 : index
    %799 = memref.load %arg2[%c255] : memref<432xf32, #tpu.memory_space<smem>>
    %800 = vector.broadcast %799 : f32 to vector<8x16xf32>
    %801 = arith.mulf %800, %786 : vector<8x16xf32>
    %802 = arith.addf %784, %801 : vector<8x16xf32>
    %c0_194 = arith.constant 0 : index
    %c1_195 = arith.constant 1 : index
    %c3_196 = arith.constant 3 : index
    %803 = vector.load %arg6[%c0_194, %c1_195, %c3_196] : memref<4x10x22xf32, #tpu.memory_space<vmem>>, vector<1x8x16xf32>
    %804 = vector.shape_cast %803 : vector<1x8x16xf32> to vector<8x16xf32>
    %c148 = arith.constant 148 : index
    %805 = memref.load %arg2[%c148] : memref<432xf32, #tpu.memory_space<smem>>
    %806 = vector.broadcast %805 : f32 to vector<8x16xf32>
    %807 = arith.mulf %806, %804 : vector<8x16xf32>
    %808 = arith.addf %790, %807 : vector<8x16xf32>
    %c184 = arith.constant 184 : index
    %809 = memref.load %arg2[%c184] : memref<432xf32, #tpu.memory_space<smem>>
    %810 = vector.broadcast %809 : f32 to vector<8x16xf32>
    %811 = arith.mulf %810, %804 : vector<8x16xf32>
    %812 = arith.addf %794, %811 : vector<8x16xf32>
    %c220 = arith.constant 220 : index
    %813 = memref.load %arg2[%c220] : memref<432xf32, #tpu.memory_space<smem>>
    %814 = vector.broadcast %813 : f32 to vector<8x16xf32>
    %815 = arith.mulf %814, %804 : vector<8x16xf32>
    %816 = arith.addf %798, %815 : vector<8x16xf32>
    %c256 = arith.constant 256 : index
    %817 = memref.load %arg2[%c256] : memref<432xf32, #tpu.memory_space<smem>>
    %818 = vector.broadcast %817 : f32 to vector<8x16xf32>
    %819 = arith.mulf %818, %804 : vector<8x16xf32>
    %820 = arith.addf %802, %819 : vector<8x16xf32>
    %c0_197 = arith.constant 0 : index
    %c1_198 = arith.constant 1 : index
    %c6_199 = arith.constant 6 : index
    %821 = vector.load %arg6[%c0_197, %c1_198, %c6_199] : memref<4x10x22xf32, #tpu.memory_space<vmem>>, vector<1x8x16xf32>
    %822 = vector.shape_cast %821 : vector<1x8x16xf32> to vector<8x16xf32>
    %c149 = arith.constant 149 : index
    %823 = memref.load %arg2[%c149] : memref<432xf32, #tpu.memory_space<smem>>
    %824 = vector.broadcast %823 : f32 to vector<8x16xf32>
    %825 = arith.mulf %824, %822 : vector<8x16xf32>
    %826 = arith.addf %808, %825 : vector<8x16xf32>
    %c185 = arith.constant 185 : index
    %827 = memref.load %arg2[%c185] : memref<432xf32, #tpu.memory_space<smem>>
    %828 = vector.broadcast %827 : f32 to vector<8x16xf32>
    %829 = arith.mulf %828, %822 : vector<8x16xf32>
    %830 = arith.addf %812, %829 : vector<8x16xf32>
    %c221 = arith.constant 221 : index
    %831 = memref.load %arg2[%c221] : memref<432xf32, #tpu.memory_space<smem>>
    %832 = vector.broadcast %831 : f32 to vector<8x16xf32>
    %833 = arith.mulf %832, %822 : vector<8x16xf32>
    %834 = arith.addf %816, %833 : vector<8x16xf32>
    %c257 = arith.constant 257 : index
    %835 = memref.load %arg2[%c257] : memref<432xf32, #tpu.memory_space<smem>>
    %836 = vector.broadcast %835 : f32 to vector<8x16xf32>
    %837 = arith.mulf %836, %822 : vector<8x16xf32>
    %838 = arith.addf %820, %837 : vector<8x16xf32>
    %c0_200 = arith.constant 0 : index
    %c2_201 = arith.constant 2 : index
    %c0_202 = arith.constant 0 : index
    %839 = vector.load %arg6[%c0_200, %c2_201, %c0_202] : memref<4x10x22xf32, #tpu.memory_space<vmem>>, vector<1x8x16xf32>
    %840 = vector.shape_cast %839 : vector<1x8x16xf32> to vector<8x16xf32>
    %c150 = arith.constant 150 : index
    %841 = memref.load %arg2[%c150] : memref<432xf32, #tpu.memory_space<smem>>
    %842 = vector.broadcast %841 : f32 to vector<8x16xf32>
    %843 = arith.mulf %842, %840 : vector<8x16xf32>
    %844 = arith.addf %826, %843 : vector<8x16xf32>
    %c186 = arith.constant 186 : index
    %845 = memref.load %arg2[%c186] : memref<432xf32, #tpu.memory_space<smem>>
    %846 = vector.broadcast %845 : f32 to vector<8x16xf32>
    %847 = arith.mulf %846, %840 : vector<8x16xf32>
    %848 = arith.addf %830, %847 : vector<8x16xf32>
    %c222 = arith.constant 222 : index
    %849 = memref.load %arg2[%c222] : memref<432xf32, #tpu.memory_space<smem>>
    %850 = vector.broadcast %849 : f32 to vector<8x16xf32>
    %851 = arith.mulf %850, %840 : vector<8x16xf32>
    %852 = arith.addf %834, %851 : vector<8x16xf32>
    %c258 = arith.constant 258 : index
    %853 = memref.load %arg2[%c258] : memref<432xf32, #tpu.memory_space<smem>>
    %854 = vector.broadcast %853 : f32 to vector<8x16xf32>
    %855 = arith.mulf %854, %840 : vector<8x16xf32>
    %856 = arith.addf %838, %855 : vector<8x16xf32>
    %c0_203 = arith.constant 0 : index
    %c2_204 = arith.constant 2 : index
    %c3_205 = arith.constant 3 : index
    %857 = vector.load %arg6[%c0_203, %c2_204, %c3_205] : memref<4x10x22xf32, #tpu.memory_space<vmem>>, vector<1x8x16xf32>
    %858 = vector.shape_cast %857 : vector<1x8x16xf32> to vector<8x16xf32>
    %c151 = arith.constant 151 : index
    %859 = memref.load %arg2[%c151] : memref<432xf32, #tpu.memory_space<smem>>
    %860 = vector.broadcast %859 : f32 to vector<8x16xf32>
    %861 = arith.mulf %860, %858 : vector<8x16xf32>
    %862 = arith.addf %844, %861 : vector<8x16xf32>
    %c187 = arith.constant 187 : index
    %863 = memref.load %arg2[%c187] : memref<432xf32, #tpu.memory_space<smem>>
    %864 = vector.broadcast %863 : f32 to vector<8x16xf32>
    %865 = arith.mulf %864, %858 : vector<8x16xf32>
    %866 = arith.addf %848, %865 : vector<8x16xf32>
    %c223 = arith.constant 223 : index
    %867 = memref.load %arg2[%c223] : memref<432xf32, #tpu.memory_space<smem>>
    %868 = vector.broadcast %867 : f32 to vector<8x16xf32>
    %869 = arith.mulf %868, %858 : vector<8x16xf32>
    %870 = arith.addf %852, %869 : vector<8x16xf32>
    %c259 = arith.constant 259 : index
    %871 = memref.load %arg2[%c259] : memref<432xf32, #tpu.memory_space<smem>>
    %872 = vector.broadcast %871 : f32 to vector<8x16xf32>
    %873 = arith.mulf %872, %858 : vector<8x16xf32>
    %874 = arith.addf %856, %873 : vector<8x16xf32>
    %c0_206 = arith.constant 0 : index
    %c2_207 = arith.constant 2 : index
    %c6_208 = arith.constant 6 : index
    %875 = vector.load %arg6[%c0_206, %c2_207, %c6_208] : memref<4x10x22xf32, #tpu.memory_space<vmem>>, vector<1x8x16xf32>
    %876 = vector.shape_cast %875 : vector<1x8x16xf32> to vector<8x16xf32>
    %c152 = arith.constant 152 : index
    %877 = memref.load %arg2[%c152] : memref<432xf32, #tpu.memory_space<smem>>
    %878 = vector.broadcast %877 : f32 to vector<8x16xf32>
    %879 = arith.mulf %878, %876 : vector<8x16xf32>
    %880 = arith.addf %862, %879 : vector<8x16xf32>
    %c188 = arith.constant 188 : index
    %881 = memref.load %arg2[%c188] : memref<432xf32, #tpu.memory_space<smem>>
    %882 = vector.broadcast %881 : f32 to vector<8x16xf32>
    %883 = arith.mulf %882, %876 : vector<8x16xf32>
    %884 = arith.addf %866, %883 : vector<8x16xf32>
    %c224 = arith.constant 224 : index
    %885 = memref.load %arg2[%c224] : memref<432xf32, #tpu.memory_space<smem>>
    %886 = vector.broadcast %885 : f32 to vector<8x16xf32>
    %887 = arith.mulf %886, %876 : vector<8x16xf32>
    %888 = arith.addf %870, %887 : vector<8x16xf32>
    %c260 = arith.constant 260 : index
    %889 = memref.load %arg2[%c260] : memref<432xf32, #tpu.memory_space<smem>>
    %890 = vector.broadcast %889 : f32 to vector<8x16xf32>
    %891 = arith.mulf %890, %876 : vector<8x16xf32>
    %892 = arith.addf %874, %891 : vector<8x16xf32>
    %c1_209 = arith.constant 1 : index
    %c0_210 = arith.constant 0 : index
    %c0_211 = arith.constant 0 : index
    %893 = vector.load %arg6[%c1_209, %c0_210, %c0_211] : memref<4x10x22xf32, #tpu.memory_space<vmem>>, vector<1x8x16xf32>
    %894 = vector.shape_cast %893 : vector<1x8x16xf32> to vector<8x16xf32>
    %c153 = arith.constant 153 : index
    %895 = memref.load %arg2[%c153] : memref<432xf32, #tpu.memory_space<smem>>
    %896 = vector.broadcast %895 : f32 to vector<8x16xf32>
    %897 = arith.mulf %896, %894 : vector<8x16xf32>
    %898 = arith.addf %880, %897 : vector<8x16xf32>
    %c189 = arith.constant 189 : index
    %899 = memref.load %arg2[%c189] : memref<432xf32, #tpu.memory_space<smem>>
    %900 = vector.broadcast %899 : f32 to vector<8x16xf32>
    %901 = arith.mulf %900, %894 : vector<8x16xf32>
    %902 = arith.addf %884, %901 : vector<8x16xf32>
    %c225 = arith.constant 225 : index
    %903 = memref.load %arg2[%c225] : memref<432xf32, #tpu.memory_space<smem>>
    %904 = vector.broadcast %903 : f32 to vector<8x16xf32>
    %905 = arith.mulf %904, %894 : vector<8x16xf32>
    %906 = arith.addf %888, %905 : vector<8x16xf32>
    %c261 = arith.constant 261 : index
    %907 = memref.load %arg2[%c261] : memref<432xf32, #tpu.memory_space<smem>>
    %908 = vector.broadcast %907 : f32 to vector<8x16xf32>
    %909 = arith.mulf %908, %894 : vector<8x16xf32>
    %910 = arith.addf %892, %909 : vector<8x16xf32>
    %c1_212 = arith.constant 1 : index
    %c0_213 = arith.constant 0 : index
    %c3_214 = arith.constant 3 : index
    %911 = vector.load %arg6[%c1_212, %c0_213, %c3_214] : memref<4x10x22xf32, #tpu.memory_space<vmem>>, vector<1x8x16xf32>
    %912 = vector.shape_cast %911 : vector<1x8x16xf32> to vector<8x16xf32>
    %c154 = arith.constant 154 : index
    %913 = memref.load %arg2[%c154] : memref<432xf32, #tpu.memory_space<smem>>
    %914 = vector.broadcast %913 : f32 to vector<8x16xf32>
    %915 = arith.mulf %914, %912 : vector<8x16xf32>
    %916 = arith.addf %898, %915 : vector<8x16xf32>
    %c190 = arith.constant 190 : index
    %917 = memref.load %arg2[%c190] : memref<432xf32, #tpu.memory_space<smem>>
    %918 = vector.broadcast %917 : f32 to vector<8x16xf32>
    %919 = arith.mulf %918, %912 : vector<8x16xf32>
    %920 = arith.addf %902, %919 : vector<8x16xf32>
    %c226 = arith.constant 226 : index
    %921 = memref.load %arg2[%c226] : memref<432xf32, #tpu.memory_space<smem>>
    %922 = vector.broadcast %921 : f32 to vector<8x16xf32>
    %923 = arith.mulf %922, %912 : vector<8x16xf32>
    %924 = arith.addf %906, %923 : vector<8x16xf32>
    %c262 = arith.constant 262 : index
    %925 = memref.load %arg2[%c262] : memref<432xf32, #tpu.memory_space<smem>>
    %926 = vector.broadcast %925 : f32 to vector<8x16xf32>
    %927 = arith.mulf %926, %912 : vector<8x16xf32>
    %928 = arith.addf %910, %927 : vector<8x16xf32>
    %c1_215 = arith.constant 1 : index
    %c0_216 = arith.constant 0 : index
    %c6_217 = arith.constant 6 : index
    %929 = vector.load %arg6[%c1_215, %c0_216, %c6_217] : memref<4x10x22xf32, #tpu.memory_space<vmem>>, vector<1x8x16xf32>
    %930 = vector.shape_cast %929 : vector<1x8x16xf32> to vector<8x16xf32>
    %c155 = arith.constant 155 : index
    %931 = memref.load %arg2[%c155] : memref<432xf32, #tpu.memory_space<smem>>
    %932 = vector.broadcast %931 : f32 to vector<8x16xf32>
    %933 = arith.mulf %932, %930 : vector<8x16xf32>
    %934 = arith.addf %916, %933 : vector<8x16xf32>
    %c191 = arith.constant 191 : index
    %935 = memref.load %arg2[%c191] : memref<432xf32, #tpu.memory_space<smem>>
    %936 = vector.broadcast %935 : f32 to vector<8x16xf32>
    %937 = arith.mulf %936, %930 : vector<8x16xf32>
    %938 = arith.addf %920, %937 : vector<8x16xf32>
    %c227 = arith.constant 227 : index
    %939 = memref.load %arg2[%c227] : memref<432xf32, #tpu.memory_space<smem>>
    %940 = vector.broadcast %939 : f32 to vector<8x16xf32>
    %941 = arith.mulf %940, %930 : vector<8x16xf32>
    %942 = arith.addf %924, %941 : vector<8x16xf32>
    %c263 = arith.constant 263 : index
    %943 = memref.load %arg2[%c263] : memref<432xf32, #tpu.memory_space<smem>>
    %944 = vector.broadcast %943 : f32 to vector<8x16xf32>
    %945 = arith.mulf %944, %930 : vector<8x16xf32>
    %946 = arith.addf %928, %945 : vector<8x16xf32>
    %c1_218 = arith.constant 1 : index
    %c1_219 = arith.constant 1 : index
    %c0_220 = arith.constant 0 : index
    %947 = vector.load %arg6[%c1_218, %c1_219, %c0_220] : memref<4x10x22xf32, #tpu.memory_space<vmem>>, vector<1x8x16xf32>
    %948 = vector.shape_cast %947 : vector<1x8x16xf32> to vector<8x16xf32>
    %c156 = arith.constant 156 : index
    %949 = memref.load %arg2[%c156] : memref<432xf32, #tpu.memory_space<smem>>
    %950 = vector.broadcast %949 : f32 to vector<8x16xf32>
    %951 = arith.mulf %950, %948 : vector<8x16xf32>
    %952 = arith.addf %934, %951 : vector<8x16xf32>
    %c192 = arith.constant 192 : index
    %953 = memref.load %arg2[%c192] : memref<432xf32, #tpu.memory_space<smem>>
    %954 = vector.broadcast %953 : f32 to vector<8x16xf32>
    %955 = arith.mulf %954, %948 : vector<8x16xf32>
    %956 = arith.addf %938, %955 : vector<8x16xf32>
    %c228 = arith.constant 228 : index
    %957 = memref.load %arg2[%c228] : memref<432xf32, #tpu.memory_space<smem>>
    %958 = vector.broadcast %957 : f32 to vector<8x16xf32>
    %959 = arith.mulf %958, %948 : vector<8x16xf32>
    %960 = arith.addf %942, %959 : vector<8x16xf32>
    %c264 = arith.constant 264 : index
    %961 = memref.load %arg2[%c264] : memref<432xf32, #tpu.memory_space<smem>>
    %962 = vector.broadcast %961 : f32 to vector<8x16xf32>
    %963 = arith.mulf %962, %948 : vector<8x16xf32>
    %964 = arith.addf %946, %963 : vector<8x16xf32>
    %c1_221 = arith.constant 1 : index
    %c1_222 = arith.constant 1 : index
    %c3_223 = arith.constant 3 : index
    %965 = vector.load %arg6[%c1_221, %c1_222, %c3_223] : memref<4x10x22xf32, #tpu.memory_space<vmem>>, vector<1x8x16xf32>
    %966 = vector.shape_cast %965 : vector<1x8x16xf32> to vector<8x16xf32>
    %c157 = arith.constant 157 : index
    %967 = memref.load %arg2[%c157] : memref<432xf32, #tpu.memory_space<smem>>
    %968 = vector.broadcast %967 : f32 to vector<8x16xf32>
    %969 = arith.mulf %968, %966 : vector<8x16xf32>
    %970 = arith.addf %952, %969 : vector<8x16xf32>
    %c193 = arith.constant 193 : index
    %971 = memref.load %arg2[%c193] : memref<432xf32, #tpu.memory_space<smem>>
    %972 = vector.broadcast %971 : f32 to vector<8x16xf32>
    %973 = arith.mulf %972, %966 : vector<8x16xf32>
    %974 = arith.addf %956, %973 : vector<8x16xf32>
    %c229 = arith.constant 229 : index
    %975 = memref.load %arg2[%c229] : memref<432xf32, #tpu.memory_space<smem>>
    %976 = vector.broadcast %975 : f32 to vector<8x16xf32>
    %977 = arith.mulf %976, %966 : vector<8x16xf32>
    %978 = arith.addf %960, %977 : vector<8x16xf32>
    %c265 = arith.constant 265 : index
    %979 = memref.load %arg2[%c265] : memref<432xf32, #tpu.memory_space<smem>>
    %980 = vector.broadcast %979 : f32 to vector<8x16xf32>
    %981 = arith.mulf %980, %966 : vector<8x16xf32>
    %982 = arith.addf %964, %981 : vector<8x16xf32>
    %c1_224 = arith.constant 1 : index
    %c1_225 = arith.constant 1 : index
    %c6_226 = arith.constant 6 : index
    %983 = vector.load %arg6[%c1_224, %c1_225, %c6_226] : memref<4x10x22xf32, #tpu.memory_space<vmem>>, vector<1x8x16xf32>
    %984 = vector.shape_cast %983 : vector<1x8x16xf32> to vector<8x16xf32>
    %c158 = arith.constant 158 : index
    %985 = memref.load %arg2[%c158] : memref<432xf32, #tpu.memory_space<smem>>
    %986 = vector.broadcast %985 : f32 to vector<8x16xf32>
    %987 = arith.mulf %986, %984 : vector<8x16xf32>
    %988 = arith.addf %970, %987 : vector<8x16xf32>
    %c194 = arith.constant 194 : index
    %989 = memref.load %arg2[%c194] : memref<432xf32, #tpu.memory_space<smem>>
    %990 = vector.broadcast %989 : f32 to vector<8x16xf32>
    %991 = arith.mulf %990, %984 : vector<8x16xf32>
    %992 = arith.addf %974, %991 : vector<8x16xf32>
    %c230 = arith.constant 230 : index
    %993 = memref.load %arg2[%c230] : memref<432xf32, #tpu.memory_space<smem>>
    %994 = vector.broadcast %993 : f32 to vector<8x16xf32>
    %995 = arith.mulf %994, %984 : vector<8x16xf32>
    %996 = arith.addf %978, %995 : vector<8x16xf32>
    %c266 = arith.constant 266 : index
    %997 = memref.load %arg2[%c266] : memref<432xf32, #tpu.memory_space<smem>>
    %998 = vector.broadcast %997 : f32 to vector<8x16xf32>
    %999 = arith.mulf %998, %984 : vector<8x16xf32>
    %1000 = arith.addf %982, %999 : vector<8x16xf32>
    %c1_227 = arith.constant 1 : index
    %c2_228 = arith.constant 2 : index
    %c0_229 = arith.constant 0 : index
    %1001 = vector.load %arg6[%c1_227, %c2_228, %c0_229] : memref<4x10x22xf32, #tpu.memory_space<vmem>>, vector<1x8x16xf32>
    %1002 = vector.shape_cast %1001 : vector<1x8x16xf32> to vector<8x16xf32>
    %c159 = arith.constant 159 : index
    %1003 = memref.load %arg2[%c159] : memref<432xf32, #tpu.memory_space<smem>>
    %1004 = vector.broadcast %1003 : f32 to vector<8x16xf32>
    %1005 = arith.mulf %1004, %1002 : vector<8x16xf32>
    %1006 = arith.addf %988, %1005 : vector<8x16xf32>
    %c195 = arith.constant 195 : index
    %1007 = memref.load %arg2[%c195] : memref<432xf32, #tpu.memory_space<smem>>
    %1008 = vector.broadcast %1007 : f32 to vector<8x16xf32>
    %1009 = arith.mulf %1008, %1002 : vector<8x16xf32>
    %1010 = arith.addf %992, %1009 : vector<8x16xf32>
    %c231 = arith.constant 231 : index
    %1011 = memref.load %arg2[%c231] : memref<432xf32, #tpu.memory_space<smem>>
    %1012 = vector.broadcast %1011 : f32 to vector<8x16xf32>
    %1013 = arith.mulf %1012, %1002 : vector<8x16xf32>
    %1014 = arith.addf %996, %1013 : vector<8x16xf32>
    %c267 = arith.constant 267 : index
    %1015 = memref.load %arg2[%c267] : memref<432xf32, #tpu.memory_space<smem>>
    %1016 = vector.broadcast %1015 : f32 to vector<8x16xf32>
    %1017 = arith.mulf %1016, %1002 : vector<8x16xf32>
    %1018 = arith.addf %1000, %1017 : vector<8x16xf32>
    %c1_230 = arith.constant 1 : index
    %c2_231 = arith.constant 2 : index
    %c3_232 = arith.constant 3 : index
    %1019 = vector.load %arg6[%c1_230, %c2_231, %c3_232] : memref<4x10x22xf32, #tpu.memory_space<vmem>>, vector<1x8x16xf32>
    %1020 = vector.shape_cast %1019 : vector<1x8x16xf32> to vector<8x16xf32>
    %c160 = arith.constant 160 : index
    %1021 = memref.load %arg2[%c160] : memref<432xf32, #tpu.memory_space<smem>>
    %1022 = vector.broadcast %1021 : f32 to vector<8x16xf32>
    %1023 = arith.mulf %1022, %1020 : vector<8x16xf32>
    %1024 = arith.addf %1006, %1023 : vector<8x16xf32>
    %c196 = arith.constant 196 : index
    %1025 = memref.load %arg2[%c196] : memref<432xf32, #tpu.memory_space<smem>>
    %1026 = vector.broadcast %1025 : f32 to vector<8x16xf32>
    %1027 = arith.mulf %1026, %1020 : vector<8x16xf32>
    %1028 = arith.addf %1010, %1027 : vector<8x16xf32>
    %c232 = arith.constant 232 : index
    %1029 = memref.load %arg2[%c232] : memref<432xf32, #tpu.memory_space<smem>>
    %1030 = vector.broadcast %1029 : f32 to vector<8x16xf32>
    %1031 = arith.mulf %1030, %1020 : vector<8x16xf32>
    %1032 = arith.addf %1014, %1031 : vector<8x16xf32>
    %c268 = arith.constant 268 : index
    %1033 = memref.load %arg2[%c268] : memref<432xf32, #tpu.memory_space<smem>>
    %1034 = vector.broadcast %1033 : f32 to vector<8x16xf32>
    %1035 = arith.mulf %1034, %1020 : vector<8x16xf32>
    %1036 = arith.addf %1018, %1035 : vector<8x16xf32>
    %c1_233 = arith.constant 1 : index
    %c2_234 = arith.constant 2 : index
    %c6_235 = arith.constant 6 : index
    %1037 = vector.load %arg6[%c1_233, %c2_234, %c6_235] : memref<4x10x22xf32, #tpu.memory_space<vmem>>, vector<1x8x16xf32>
    %1038 = vector.shape_cast %1037 : vector<1x8x16xf32> to vector<8x16xf32>
    %c161 = arith.constant 161 : index
    %1039 = memref.load %arg2[%c161] : memref<432xf32, #tpu.memory_space<smem>>
    %1040 = vector.broadcast %1039 : f32 to vector<8x16xf32>
    %1041 = arith.mulf %1040, %1038 : vector<8x16xf32>
    %1042 = arith.addf %1024, %1041 : vector<8x16xf32>
    %c197 = arith.constant 197 : index
    %1043 = memref.load %arg2[%c197] : memref<432xf32, #tpu.memory_space<smem>>
    %1044 = vector.broadcast %1043 : f32 to vector<8x16xf32>
    %1045 = arith.mulf %1044, %1038 : vector<8x16xf32>
    %1046 = arith.addf %1028, %1045 : vector<8x16xf32>
    %c233 = arith.constant 233 : index
    %1047 = memref.load %arg2[%c233] : memref<432xf32, #tpu.memory_space<smem>>
    %1048 = vector.broadcast %1047 : f32 to vector<8x16xf32>
    %1049 = arith.mulf %1048, %1038 : vector<8x16xf32>
    %1050 = arith.addf %1032, %1049 : vector<8x16xf32>
    %c269 = arith.constant 269 : index
    %1051 = memref.load %arg2[%c269] : memref<432xf32, #tpu.memory_space<smem>>
    %1052 = vector.broadcast %1051 : f32 to vector<8x16xf32>
    %1053 = arith.mulf %1052, %1038 : vector<8x16xf32>
    %1054 = arith.addf %1036, %1053 : vector<8x16xf32>
    %c2_236 = arith.constant 2 : index
    %c0_237 = arith.constant 0 : index
    %c0_238 = arith.constant 0 : index
    %1055 = vector.load %arg6[%c2_236, %c0_237, %c0_238] : memref<4x10x22xf32, #tpu.memory_space<vmem>>, vector<1x8x16xf32>
    %1056 = vector.shape_cast %1055 : vector<1x8x16xf32> to vector<8x16xf32>
    %c162 = arith.constant 162 : index
    %1057 = memref.load %arg2[%c162] : memref<432xf32, #tpu.memory_space<smem>>
    %1058 = vector.broadcast %1057 : f32 to vector<8x16xf32>
    %1059 = arith.mulf %1058, %1056 : vector<8x16xf32>
    %1060 = arith.addf %1042, %1059 : vector<8x16xf32>
    %c198 = arith.constant 198 : index
    %1061 = memref.load %arg2[%c198] : memref<432xf32, #tpu.memory_space<smem>>
    %1062 = vector.broadcast %1061 : f32 to vector<8x16xf32>
    %1063 = arith.mulf %1062, %1056 : vector<8x16xf32>
    %1064 = arith.addf %1046, %1063 : vector<8x16xf32>
    %c234 = arith.constant 234 : index
    %1065 = memref.load %arg2[%c234] : memref<432xf32, #tpu.memory_space<smem>>
    %1066 = vector.broadcast %1065 : f32 to vector<8x16xf32>
    %1067 = arith.mulf %1066, %1056 : vector<8x16xf32>
    %1068 = arith.addf %1050, %1067 : vector<8x16xf32>
    %c270 = arith.constant 270 : index
    %1069 = memref.load %arg2[%c270] : memref<432xf32, #tpu.memory_space<smem>>
    %1070 = vector.broadcast %1069 : f32 to vector<8x16xf32>
    %1071 = arith.mulf %1070, %1056 : vector<8x16xf32>
    %1072 = arith.addf %1054, %1071 : vector<8x16xf32>
    %c2_239 = arith.constant 2 : index
    %c0_240 = arith.constant 0 : index
    %c3_241 = arith.constant 3 : index
    %1073 = vector.load %arg6[%c2_239, %c0_240, %c3_241] : memref<4x10x22xf32, #tpu.memory_space<vmem>>, vector<1x8x16xf32>
    %1074 = vector.shape_cast %1073 : vector<1x8x16xf32> to vector<8x16xf32>
    %c163 = arith.constant 163 : index
    %1075 = memref.load %arg2[%c163] : memref<432xf32, #tpu.memory_space<smem>>
    %1076 = vector.broadcast %1075 : f32 to vector<8x16xf32>
    %1077 = arith.mulf %1076, %1074 : vector<8x16xf32>
    %1078 = arith.addf %1060, %1077 : vector<8x16xf32>
    %c199 = arith.constant 199 : index
    %1079 = memref.load %arg2[%c199] : memref<432xf32, #tpu.memory_space<smem>>
    %1080 = vector.broadcast %1079 : f32 to vector<8x16xf32>
    %1081 = arith.mulf %1080, %1074 : vector<8x16xf32>
    %1082 = arith.addf %1064, %1081 : vector<8x16xf32>
    %c235 = arith.constant 235 : index
    %1083 = memref.load %arg2[%c235] : memref<432xf32, #tpu.memory_space<smem>>
    %1084 = vector.broadcast %1083 : f32 to vector<8x16xf32>
    %1085 = arith.mulf %1084, %1074 : vector<8x16xf32>
    %1086 = arith.addf %1068, %1085 : vector<8x16xf32>
    %c271 = arith.constant 271 : index
    %1087 = memref.load %arg2[%c271] : memref<432xf32, #tpu.memory_space<smem>>
    %1088 = vector.broadcast %1087 : f32 to vector<8x16xf32>
    %1089 = arith.mulf %1088, %1074 : vector<8x16xf32>
    %1090 = arith.addf %1072, %1089 : vector<8x16xf32>
    %c2_242 = arith.constant 2 : index
    %c0_243 = arith.constant 0 : index
    %c6_244 = arith.constant 6 : index
    %1091 = vector.load %arg6[%c2_242, %c0_243, %c6_244] : memref<4x10x22xf32, #tpu.memory_space<vmem>>, vector<1x8x16xf32>
    %1092 = vector.shape_cast %1091 : vector<1x8x16xf32> to vector<8x16xf32>
    %c164 = arith.constant 164 : index
    %1093 = memref.load %arg2[%c164] : memref<432xf32, #tpu.memory_space<smem>>
    %1094 = vector.broadcast %1093 : f32 to vector<8x16xf32>
    %1095 = arith.mulf %1094, %1092 : vector<8x16xf32>
    %1096 = arith.addf %1078, %1095 : vector<8x16xf32>
    %c200 = arith.constant 200 : index
    %1097 = memref.load %arg2[%c200] : memref<432xf32, #tpu.memory_space<smem>>
    %1098 = vector.broadcast %1097 : f32 to vector<8x16xf32>
    %1099 = arith.mulf %1098, %1092 : vector<8x16xf32>
    %1100 = arith.addf %1082, %1099 : vector<8x16xf32>
    %c236 = arith.constant 236 : index
    %1101 = memref.load %arg2[%c236] : memref<432xf32, #tpu.memory_space<smem>>
    %1102 = vector.broadcast %1101 : f32 to vector<8x16xf32>
    %1103 = arith.mulf %1102, %1092 : vector<8x16xf32>
    %1104 = arith.addf %1086, %1103 : vector<8x16xf32>
    %c272 = arith.constant 272 : index
    %1105 = memref.load %arg2[%c272] : memref<432xf32, #tpu.memory_space<smem>>
    %1106 = vector.broadcast %1105 : f32 to vector<8x16xf32>
    %1107 = arith.mulf %1106, %1092 : vector<8x16xf32>
    %1108 = arith.addf %1090, %1107 : vector<8x16xf32>
    %c2_245 = arith.constant 2 : index
    %c1_246 = arith.constant 1 : index
    %c0_247 = arith.constant 0 : index
    %1109 = vector.load %arg6[%c2_245, %c1_246, %c0_247] : memref<4x10x22xf32, #tpu.memory_space<vmem>>, vector<1x8x16xf32>
    %1110 = vector.shape_cast %1109 : vector<1x8x16xf32> to vector<8x16xf32>
    %c165 = arith.constant 165 : index
    %1111 = memref.load %arg2[%c165] : memref<432xf32, #tpu.memory_space<smem>>
    %1112 = vector.broadcast %1111 : f32 to vector<8x16xf32>
    %1113 = arith.mulf %1112, %1110 : vector<8x16xf32>
    %1114 = arith.addf %1096, %1113 : vector<8x16xf32>
    %c201 = arith.constant 201 : index
    %1115 = memref.load %arg2[%c201] : memref<432xf32, #tpu.memory_space<smem>>
    %1116 = vector.broadcast %1115 : f32 to vector<8x16xf32>
    %1117 = arith.mulf %1116, %1110 : vector<8x16xf32>
    %1118 = arith.addf %1100, %1117 : vector<8x16xf32>
    %c237 = arith.constant 237 : index
    %1119 = memref.load %arg2[%c237] : memref<432xf32, #tpu.memory_space<smem>>
    %1120 = vector.broadcast %1119 : f32 to vector<8x16xf32>
    %1121 = arith.mulf %1120, %1110 : vector<8x16xf32>
    %1122 = arith.addf %1104, %1121 : vector<8x16xf32>
    %c273 = arith.constant 273 : index
    %1123 = memref.load %arg2[%c273] : memref<432xf32, #tpu.memory_space<smem>>
    %1124 = vector.broadcast %1123 : f32 to vector<8x16xf32>
    %1125 = arith.mulf %1124, %1110 : vector<8x16xf32>
    %1126 = arith.addf %1108, %1125 : vector<8x16xf32>
    %c2_248 = arith.constant 2 : index
    %c1_249 = arith.constant 1 : index
    %c3_250 = arith.constant 3 : index
    %1127 = vector.load %arg6[%c2_248, %c1_249, %c3_250] : memref<4x10x22xf32, #tpu.memory_space<vmem>>, vector<1x8x16xf32>
    %1128 = vector.shape_cast %1127 : vector<1x8x16xf32> to vector<8x16xf32>
    %c166 = arith.constant 166 : index
    %1129 = memref.load %arg2[%c166] : memref<432xf32, #tpu.memory_space<smem>>
    %1130 = vector.broadcast %1129 : f32 to vector<8x16xf32>
    %1131 = arith.mulf %1130, %1128 : vector<8x16xf32>
    %1132 = arith.addf %1114, %1131 : vector<8x16xf32>
    %c202 = arith.constant 202 : index
    %1133 = memref.load %arg2[%c202] : memref<432xf32, #tpu.memory_space<smem>>
    %1134 = vector.broadcast %1133 : f32 to vector<8x16xf32>
    %1135 = arith.mulf %1134, %1128 : vector<8x16xf32>
    %1136 = arith.addf %1118, %1135 : vector<8x16xf32>
    %c238 = arith.constant 238 : index
    %1137 = memref.load %arg2[%c238] : memref<432xf32, #tpu.memory_space<smem>>
    %1138 = vector.broadcast %1137 : f32 to vector<8x16xf32>
    %1139 = arith.mulf %1138, %1128 : vector<8x16xf32>
    %1140 = arith.addf %1122, %1139 : vector<8x16xf32>
    %c274 = arith.constant 274 : index
    %1141 = memref.load %arg2[%c274] : memref<432xf32, #tpu.memory_space<smem>>
    %1142 = vector.broadcast %1141 : f32 to vector<8x16xf32>
    %1143 = arith.mulf %1142, %1128 : vector<8x16xf32>
    %1144 = arith.addf %1126, %1143 : vector<8x16xf32>
    %c2_251 = arith.constant 2 : index
    %c1_252 = arith.constant 1 : index
    %c6_253 = arith.constant 6 : index
    %1145 = vector.load %arg6[%c2_251, %c1_252, %c6_253] : memref<4x10x22xf32, #tpu.memory_space<vmem>>, vector<1x8x16xf32>
    %1146 = vector.shape_cast %1145 : vector<1x8x16xf32> to vector<8x16xf32>
    %c167 = arith.constant 167 : index
    %1147 = memref.load %arg2[%c167] : memref<432xf32, #tpu.memory_space<smem>>
    %1148 = vector.broadcast %1147 : f32 to vector<8x16xf32>
    %1149 = arith.mulf %1148, %1146 : vector<8x16xf32>
    %1150 = arith.addf %1132, %1149 : vector<8x16xf32>
    %c203 = arith.constant 203 : index
    %1151 = memref.load %arg2[%c203] : memref<432xf32, #tpu.memory_space<smem>>
    %1152 = vector.broadcast %1151 : f32 to vector<8x16xf32>
    %1153 = arith.mulf %1152, %1146 : vector<8x16xf32>
    %1154 = arith.addf %1136, %1153 : vector<8x16xf32>
    %c239 = arith.constant 239 : index
    %1155 = memref.load %arg2[%c239] : memref<432xf32, #tpu.memory_space<smem>>
    %1156 = vector.broadcast %1155 : f32 to vector<8x16xf32>
    %1157 = arith.mulf %1156, %1146 : vector<8x16xf32>
    %1158 = arith.addf %1140, %1157 : vector<8x16xf32>
    %c275 = arith.constant 275 : index
    %1159 = memref.load %arg2[%c275] : memref<432xf32, #tpu.memory_space<smem>>
    %1160 = vector.broadcast %1159 : f32 to vector<8x16xf32>
    %1161 = arith.mulf %1160, %1146 : vector<8x16xf32>
    %1162 = arith.addf %1144, %1161 : vector<8x16xf32>
    %c2_254 = arith.constant 2 : index
    %c2_255 = arith.constant 2 : index
    %c0_256 = arith.constant 0 : index
    %1163 = vector.load %arg6[%c2_254, %c2_255, %c0_256] : memref<4x10x22xf32, #tpu.memory_space<vmem>>, vector<1x8x16xf32>
    %1164 = vector.shape_cast %1163 : vector<1x8x16xf32> to vector<8x16xf32>
    %c168 = arith.constant 168 : index
    %1165 = memref.load %arg2[%c168] : memref<432xf32, #tpu.memory_space<smem>>
    %1166 = vector.broadcast %1165 : f32 to vector<8x16xf32>
    %1167 = arith.mulf %1166, %1164 : vector<8x16xf32>
    %1168 = arith.addf %1150, %1167 : vector<8x16xf32>
    %c204 = arith.constant 204 : index
    %1169 = memref.load %arg2[%c204] : memref<432xf32, #tpu.memory_space<smem>>
    %1170 = vector.broadcast %1169 : f32 to vector<8x16xf32>
    %1171 = arith.mulf %1170, %1164 : vector<8x16xf32>
    %1172 = arith.addf %1154, %1171 : vector<8x16xf32>
    %c240 = arith.constant 240 : index
    %1173 = memref.load %arg2[%c240] : memref<432xf32, #tpu.memory_space<smem>>
    %1174 = vector.broadcast %1173 : f32 to vector<8x16xf32>
    %1175 = arith.mulf %1174, %1164 : vector<8x16xf32>
    %1176 = arith.addf %1158, %1175 : vector<8x16xf32>
    %c276 = arith.constant 276 : index
    %1177 = memref.load %arg2[%c276] : memref<432xf32, #tpu.memory_space<smem>>
    %1178 = vector.broadcast %1177 : f32 to vector<8x16xf32>
    %1179 = arith.mulf %1178, %1164 : vector<8x16xf32>
    %1180 = arith.addf %1162, %1179 : vector<8x16xf32>
    %c2_257 = arith.constant 2 : index
    %c2_258 = arith.constant 2 : index
    %c3_259 = arith.constant 3 : index
    %1181 = vector.load %arg6[%c2_257, %c2_258, %c3_259] : memref<4x10x22xf32, #tpu.memory_space<vmem>>, vector<1x8x16xf32>
    %1182 = vector.shape_cast %1181 : vector<1x8x16xf32> to vector<8x16xf32>
    %c169 = arith.constant 169 : index
    %1183 = memref.load %arg2[%c169] : memref<432xf32, #tpu.memory_space<smem>>
    %1184 = vector.broadcast %1183 : f32 to vector<8x16xf32>
    %1185 = arith.mulf %1184, %1182 : vector<8x16xf32>
    %1186 = arith.addf %1168, %1185 : vector<8x16xf32>
    %c205 = arith.constant 205 : index
    %1187 = memref.load %arg2[%c205] : memref<432xf32, #tpu.memory_space<smem>>
    %1188 = vector.broadcast %1187 : f32 to vector<8x16xf32>
    %1189 = arith.mulf %1188, %1182 : vector<8x16xf32>
    %1190 = arith.addf %1172, %1189 : vector<8x16xf32>
    %c241 = arith.constant 241 : index
    %1191 = memref.load %arg2[%c241] : memref<432xf32, #tpu.memory_space<smem>>
    %1192 = vector.broadcast %1191 : f32 to vector<8x16xf32>
    %1193 = arith.mulf %1192, %1182 : vector<8x16xf32>
    %1194 = arith.addf %1176, %1193 : vector<8x16xf32>
    %c277 = arith.constant 277 : index
    %1195 = memref.load %arg2[%c277] : memref<432xf32, #tpu.memory_space<smem>>
    %1196 = vector.broadcast %1195 : f32 to vector<8x16xf32>
    %1197 = arith.mulf %1196, %1182 : vector<8x16xf32>
    %1198 = arith.addf %1180, %1197 : vector<8x16xf32>
    %c2_260 = arith.constant 2 : index
    %c2_261 = arith.constant 2 : index
    %c6_262 = arith.constant 6 : index
    %1199 = vector.load %arg6[%c2_260, %c2_261, %c6_262] : memref<4x10x22xf32, #tpu.memory_space<vmem>>, vector<1x8x16xf32>
    %1200 = vector.shape_cast %1199 : vector<1x8x16xf32> to vector<8x16xf32>
    %c170 = arith.constant 170 : index
    %1201 = memref.load %arg2[%c170] : memref<432xf32, #tpu.memory_space<smem>>
    %1202 = vector.broadcast %1201 : f32 to vector<8x16xf32>
    %1203 = arith.mulf %1202, %1200 : vector<8x16xf32>
    %1204 = arith.addf %1186, %1203 : vector<8x16xf32>
    %c206 = arith.constant 206 : index
    %1205 = memref.load %arg2[%c206] : memref<432xf32, #tpu.memory_space<smem>>
    %1206 = vector.broadcast %1205 : f32 to vector<8x16xf32>
    %1207 = arith.mulf %1206, %1200 : vector<8x16xf32>
    %1208 = arith.addf %1190, %1207 : vector<8x16xf32>
    %c242 = arith.constant 242 : index
    %1209 = memref.load %arg2[%c242] : memref<432xf32, #tpu.memory_space<smem>>
    %1210 = vector.broadcast %1209 : f32 to vector<8x16xf32>
    %1211 = arith.mulf %1210, %1200 : vector<8x16xf32>
    %1212 = arith.addf %1194, %1211 : vector<8x16xf32>
    %c278 = arith.constant 278 : index
    %1213 = memref.load %arg2[%c278] : memref<432xf32, #tpu.memory_space<smem>>
    %1214 = vector.broadcast %1213 : f32 to vector<8x16xf32>
    %1215 = arith.mulf %1214, %1200 : vector<8x16xf32>
    %1216 = arith.addf %1198, %1215 : vector<8x16xf32>
    %c3_263 = arith.constant 3 : index
    %c0_264 = arith.constant 0 : index
    %c0_265 = arith.constant 0 : index
    %1217 = vector.load %arg6[%c3_263, %c0_264, %c0_265] : memref<4x10x22xf32, #tpu.memory_space<vmem>>, vector<1x8x16xf32>
    %1218 = vector.shape_cast %1217 : vector<1x8x16xf32> to vector<8x16xf32>
    %c171 = arith.constant 171 : index
    %1219 = memref.load %arg2[%c171] : memref<432xf32, #tpu.memory_space<smem>>
    %1220 = vector.broadcast %1219 : f32 to vector<8x16xf32>
    %1221 = arith.mulf %1220, %1218 : vector<8x16xf32>
    %1222 = arith.addf %1204, %1221 : vector<8x16xf32>
    %c207 = arith.constant 207 : index
    %1223 = memref.load %arg2[%c207] : memref<432xf32, #tpu.memory_space<smem>>
    %1224 = vector.broadcast %1223 : f32 to vector<8x16xf32>
    %1225 = arith.mulf %1224, %1218 : vector<8x16xf32>
    %1226 = arith.addf %1208, %1225 : vector<8x16xf32>
    %c243 = arith.constant 243 : index
    %1227 = memref.load %arg2[%c243] : memref<432xf32, #tpu.memory_space<smem>>
    %1228 = vector.broadcast %1227 : f32 to vector<8x16xf32>
    %1229 = arith.mulf %1228, %1218 : vector<8x16xf32>
    %1230 = arith.addf %1212, %1229 : vector<8x16xf32>
    %c279 = arith.constant 279 : index
    %1231 = memref.load %arg2[%c279] : memref<432xf32, #tpu.memory_space<smem>>
    %1232 = vector.broadcast %1231 : f32 to vector<8x16xf32>
    %1233 = arith.mulf %1232, %1218 : vector<8x16xf32>
    %1234 = arith.addf %1216, %1233 : vector<8x16xf32>
    %c3_266 = arith.constant 3 : index
    %c0_267 = arith.constant 0 : index
    %c3_268 = arith.constant 3 : index
    %1235 = vector.load %arg6[%c3_266, %c0_267, %c3_268] : memref<4x10x22xf32, #tpu.memory_space<vmem>>, vector<1x8x16xf32>
    %1236 = vector.shape_cast %1235 : vector<1x8x16xf32> to vector<8x16xf32>
    %c172 = arith.constant 172 : index
    %1237 = memref.load %arg2[%c172] : memref<432xf32, #tpu.memory_space<smem>>
    %1238 = vector.broadcast %1237 : f32 to vector<8x16xf32>
    %1239 = arith.mulf %1238, %1236 : vector<8x16xf32>
    %1240 = arith.addf %1222, %1239 : vector<8x16xf32>
    %c208 = arith.constant 208 : index
    %1241 = memref.load %arg2[%c208] : memref<432xf32, #tpu.memory_space<smem>>
    %1242 = vector.broadcast %1241 : f32 to vector<8x16xf32>
    %1243 = arith.mulf %1242, %1236 : vector<8x16xf32>
    %1244 = arith.addf %1226, %1243 : vector<8x16xf32>
    %c244 = arith.constant 244 : index
    %1245 = memref.load %arg2[%c244] : memref<432xf32, #tpu.memory_space<smem>>
    %1246 = vector.broadcast %1245 : f32 to vector<8x16xf32>
    %1247 = arith.mulf %1246, %1236 : vector<8x16xf32>
    %1248 = arith.addf %1230, %1247 : vector<8x16xf32>
    %c280 = arith.constant 280 : index
    %1249 = memref.load %arg2[%c280] : memref<432xf32, #tpu.memory_space<smem>>
    %1250 = vector.broadcast %1249 : f32 to vector<8x16xf32>
    %1251 = arith.mulf %1250, %1236 : vector<8x16xf32>
    %1252 = arith.addf %1234, %1251 : vector<8x16xf32>
    %c3_269 = arith.constant 3 : index
    %c0_270 = arith.constant 0 : index
    %c6_271 = arith.constant 6 : index
    %1253 = vector.load %arg6[%c3_269, %c0_270, %c6_271] : memref<4x10x22xf32, #tpu.memory_space<vmem>>, vector<1x8x16xf32>
    %1254 = vector.shape_cast %1253 : vector<1x8x16xf32> to vector<8x16xf32>
    %c173 = arith.constant 173 : index
    %1255 = memref.load %arg2[%c173] : memref<432xf32, #tpu.memory_space<smem>>
    %1256 = vector.broadcast %1255 : f32 to vector<8x16xf32>
    %1257 = arith.mulf %1256, %1254 : vector<8x16xf32>
    %1258 = arith.addf %1240, %1257 : vector<8x16xf32>
    %c209 = arith.constant 209 : index
    %1259 = memref.load %arg2[%c209] : memref<432xf32, #tpu.memory_space<smem>>
    %1260 = vector.broadcast %1259 : f32 to vector<8x16xf32>
    %1261 = arith.mulf %1260, %1254 : vector<8x16xf32>
    %1262 = arith.addf %1244, %1261 : vector<8x16xf32>
    %c245 = arith.constant 245 : index
    %1263 = memref.load %arg2[%c245] : memref<432xf32, #tpu.memory_space<smem>>
    %1264 = vector.broadcast %1263 : f32 to vector<8x16xf32>
    %1265 = arith.mulf %1264, %1254 : vector<8x16xf32>
    %1266 = arith.addf %1248, %1265 : vector<8x16xf32>
    %c281 = arith.constant 281 : index
    %1267 = memref.load %arg2[%c281] : memref<432xf32, #tpu.memory_space<smem>>
    %1268 = vector.broadcast %1267 : f32 to vector<8x16xf32>
    %1269 = arith.mulf %1268, %1254 : vector<8x16xf32>
    %1270 = arith.addf %1252, %1269 : vector<8x16xf32>
    %c3_272 = arith.constant 3 : index
    %c1_273 = arith.constant 1 : index
    %c0_274 = arith.constant 0 : index
    %1271 = vector.load %arg6[%c3_272, %c1_273, %c0_274] : memref<4x10x22xf32, #tpu.memory_space<vmem>>, vector<1x8x16xf32>
    %1272 = vector.shape_cast %1271 : vector<1x8x16xf32> to vector<8x16xf32>
    %c174 = arith.constant 174 : index
    %1273 = memref.load %arg2[%c174] : memref<432xf32, #tpu.memory_space<smem>>
    %1274 = vector.broadcast %1273 : f32 to vector<8x16xf32>
    %1275 = arith.mulf %1274, %1272 : vector<8x16xf32>
    %1276 = arith.addf %1258, %1275 : vector<8x16xf32>
    %c210 = arith.constant 210 : index
    %1277 = memref.load %arg2[%c210] : memref<432xf32, #tpu.memory_space<smem>>
    %1278 = vector.broadcast %1277 : f32 to vector<8x16xf32>
    %1279 = arith.mulf %1278, %1272 : vector<8x16xf32>
    %1280 = arith.addf %1262, %1279 : vector<8x16xf32>
    %c246 = arith.constant 246 : index
    %1281 = memref.load %arg2[%c246] : memref<432xf32, #tpu.memory_space<smem>>
    %1282 = vector.broadcast %1281 : f32 to vector<8x16xf32>
    %1283 = arith.mulf %1282, %1272 : vector<8x16xf32>
    %1284 = arith.addf %1266, %1283 : vector<8x16xf32>
    %c282 = arith.constant 282 : index
    %1285 = memref.load %arg2[%c282] : memref<432xf32, #tpu.memory_space<smem>>
    %1286 = vector.broadcast %1285 : f32 to vector<8x16xf32>
    %1287 = arith.mulf %1286, %1272 : vector<8x16xf32>
    %1288 = arith.addf %1270, %1287 : vector<8x16xf32>
    %c3_275 = arith.constant 3 : index
    %c1_276 = arith.constant 1 : index
    %c3_277 = arith.constant 3 : index
    %1289 = vector.load %arg6[%c3_275, %c1_276, %c3_277] : memref<4x10x22xf32, #tpu.memory_space<vmem>>, vector<1x8x16xf32>
    %1290 = vector.shape_cast %1289 : vector<1x8x16xf32> to vector<8x16xf32>
    %c175 = arith.constant 175 : index
    %1291 = memref.load %arg2[%c175] : memref<432xf32, #tpu.memory_space<smem>>
    %1292 = vector.broadcast %1291 : f32 to vector<8x16xf32>
    %1293 = arith.mulf %1292, %1290 : vector<8x16xf32>
    %1294 = arith.addf %1276, %1293 : vector<8x16xf32>
    %c211 = arith.constant 211 : index
    %1295 = memref.load %arg2[%c211] : memref<432xf32, #tpu.memory_space<smem>>
    %1296 = vector.broadcast %1295 : f32 to vector<8x16xf32>
    %1297 = arith.mulf %1296, %1290 : vector<8x16xf32>
    %1298 = arith.addf %1280, %1297 : vector<8x16xf32>
    %c247 = arith.constant 247 : index
    %1299 = memref.load %arg2[%c247] : memref<432xf32, #tpu.memory_space<smem>>
    %1300 = vector.broadcast %1299 : f32 to vector<8x16xf32>
    %1301 = arith.mulf %1300, %1290 : vector<8x16xf32>
    %1302 = arith.addf %1284, %1301 : vector<8x16xf32>
    %c283 = arith.constant 283 : index
    %1303 = memref.load %arg2[%c283] : memref<432xf32, #tpu.memory_space<smem>>
    %1304 = vector.broadcast %1303 : f32 to vector<8x16xf32>
    %1305 = arith.mulf %1304, %1290 : vector<8x16xf32>
    %1306 = arith.addf %1288, %1305 : vector<8x16xf32>
    %c3_278 = arith.constant 3 : index
    %c1_279 = arith.constant 1 : index
    %c6_280 = arith.constant 6 : index
    %1307 = vector.load %arg6[%c3_278, %c1_279, %c6_280] : memref<4x10x22xf32, #tpu.memory_space<vmem>>, vector<1x8x16xf32>
    %1308 = vector.shape_cast %1307 : vector<1x8x16xf32> to vector<8x16xf32>
    %c176 = arith.constant 176 : index
    %1309 = memref.load %arg2[%c176] : memref<432xf32, #tpu.memory_space<smem>>
    %1310 = vector.broadcast %1309 : f32 to vector<8x16xf32>
    %1311 = arith.mulf %1310, %1308 : vector<8x16xf32>
    %1312 = arith.addf %1294, %1311 : vector<8x16xf32>
    %c212 = arith.constant 212 : index
    %1313 = memref.load %arg2[%c212] : memref<432xf32, #tpu.memory_space<smem>>
    %1314 = vector.broadcast %1313 : f32 to vector<8x16xf32>
    %1315 = arith.mulf %1314, %1308 : vector<8x16xf32>
    %1316 = arith.addf %1298, %1315 : vector<8x16xf32>
    %c248 = arith.constant 248 : index
    %1317 = memref.load %arg2[%c248] : memref<432xf32, #tpu.memory_space<smem>>
    %1318 = vector.broadcast %1317 : f32 to vector<8x16xf32>
    %1319 = arith.mulf %1318, %1308 : vector<8x16xf32>
    %1320 = arith.addf %1302, %1319 : vector<8x16xf32>
    %c284 = arith.constant 284 : index
    %1321 = memref.load %arg2[%c284] : memref<432xf32, #tpu.memory_space<smem>>
    %1322 = vector.broadcast %1321 : f32 to vector<8x16xf32>
    %1323 = arith.mulf %1322, %1308 : vector<8x16xf32>
    %1324 = arith.addf %1306, %1323 : vector<8x16xf32>
    %c3_281 = arith.constant 3 : index
    %c2_282 = arith.constant 2 : index
    %c0_283 = arith.constant 0 : index
    %1325 = vector.load %arg6[%c3_281, %c2_282, %c0_283] : memref<4x10x22xf32, #tpu.memory_space<vmem>>, vector<1x8x16xf32>
    %1326 = vector.shape_cast %1325 : vector<1x8x16xf32> to vector<8x16xf32>
    %c177 = arith.constant 177 : index
    %1327 = memref.load %arg2[%c177] : memref<432xf32, #tpu.memory_space<smem>>
    %1328 = vector.broadcast %1327 : f32 to vector<8x16xf32>
    %1329 = arith.mulf %1328, %1326 : vector<8x16xf32>
    %1330 = arith.addf %1312, %1329 : vector<8x16xf32>
    %c213 = arith.constant 213 : index
    %1331 = memref.load %arg2[%c213] : memref<432xf32, #tpu.memory_space<smem>>
    %1332 = vector.broadcast %1331 : f32 to vector<8x16xf32>
    %1333 = arith.mulf %1332, %1326 : vector<8x16xf32>
    %1334 = arith.addf %1316, %1333 : vector<8x16xf32>
    %c249 = arith.constant 249 : index
    %1335 = memref.load %arg2[%c249] : memref<432xf32, #tpu.memory_space<smem>>
    %1336 = vector.broadcast %1335 : f32 to vector<8x16xf32>
    %1337 = arith.mulf %1336, %1326 : vector<8x16xf32>
    %1338 = arith.addf %1320, %1337 : vector<8x16xf32>
    %c285 = arith.constant 285 : index
    %1339 = memref.load %arg2[%c285] : memref<432xf32, #tpu.memory_space<smem>>
    %1340 = vector.broadcast %1339 : f32 to vector<8x16xf32>
    %1341 = arith.mulf %1340, %1326 : vector<8x16xf32>
    %1342 = arith.addf %1324, %1341 : vector<8x16xf32>
    %c3_284 = arith.constant 3 : index
    %c2_285 = arith.constant 2 : index
    %c3_286 = arith.constant 3 : index
    %1343 = vector.load %arg6[%c3_284, %c2_285, %c3_286] : memref<4x10x22xf32, #tpu.memory_space<vmem>>, vector<1x8x16xf32>
    %1344 = vector.shape_cast %1343 : vector<1x8x16xf32> to vector<8x16xf32>
    %c178 = arith.constant 178 : index
    %1345 = memref.load %arg2[%c178] : memref<432xf32, #tpu.memory_space<smem>>
    %1346 = vector.broadcast %1345 : f32 to vector<8x16xf32>
    %1347 = arith.mulf %1346, %1344 : vector<8x16xf32>
    %1348 = arith.addf %1330, %1347 : vector<8x16xf32>
    %c214 = arith.constant 214 : index
    %1349 = memref.load %arg2[%c214] : memref<432xf32, #tpu.memory_space<smem>>
    %1350 = vector.broadcast %1349 : f32 to vector<8x16xf32>
    %1351 = arith.mulf %1350, %1344 : vector<8x16xf32>
    %1352 = arith.addf %1334, %1351 : vector<8x16xf32>
    %c250 = arith.constant 250 : index
    %1353 = memref.load %arg2[%c250] : memref<432xf32, #tpu.memory_space<smem>>
    %1354 = vector.broadcast %1353 : f32 to vector<8x16xf32>
    %1355 = arith.mulf %1354, %1344 : vector<8x16xf32>
    %1356 = arith.addf %1338, %1355 : vector<8x16xf32>
    %c286 = arith.constant 286 : index
    %1357 = memref.load %arg2[%c286] : memref<432xf32, #tpu.memory_space<smem>>
    %1358 = vector.broadcast %1357 : f32 to vector<8x16xf32>
    %1359 = arith.mulf %1358, %1344 : vector<8x16xf32>
    %1360 = arith.addf %1342, %1359 : vector<8x16xf32>
    %c3_287 = arith.constant 3 : index
    %c2_288 = arith.constant 2 : index
    %c6_289 = arith.constant 6 : index
    %1361 = vector.load %arg6[%c3_287, %c2_288, %c6_289] : memref<4x10x22xf32, #tpu.memory_space<vmem>>, vector<1x8x16xf32>
    %1362 = vector.shape_cast %1361 : vector<1x8x16xf32> to vector<8x16xf32>
    %c179 = arith.constant 179 : index
    %1363 = memref.load %arg2[%c179] : memref<432xf32, #tpu.memory_space<smem>>
    %1364 = vector.broadcast %1363 : f32 to vector<8x16xf32>
    %1365 = arith.mulf %1364, %1362 : vector<8x16xf32>
    %1366 = arith.addf %1348, %1365 : vector<8x16xf32>
    %c215 = arith.constant 215 : index
    %1367 = memref.load %arg2[%c215] : memref<432xf32, #tpu.memory_space<smem>>
    %1368 = vector.broadcast %1367 : f32 to vector<8x16xf32>
    %1369 = arith.mulf %1368, %1362 : vector<8x16xf32>
    %1370 = arith.addf %1352, %1369 : vector<8x16xf32>
    %c251 = arith.constant 251 : index
    %1371 = memref.load %arg2[%c251] : memref<432xf32, #tpu.memory_space<smem>>
    %1372 = vector.broadcast %1371 : f32 to vector<8x16xf32>
    %1373 = arith.mulf %1372, %1362 : vector<8x16xf32>
    %1374 = arith.addf %1356, %1373 : vector<8x16xf32>
    %c287 = arith.constant 287 : index
    %1375 = memref.load %arg2[%c287] : memref<432xf32, #tpu.memory_space<smem>>
    %1376 = vector.broadcast %1375 : f32 to vector<8x16xf32>
    %1377 = arith.mulf %1376, %1362 : vector<8x16xf32>
    %1378 = arith.addf %1360, %1377 : vector<8x16xf32>
    %cst_290 = arith.constant 0.000000e+00 : f32
    %1379 = vector.broadcast %cst_290 : f32 to vector<8x16xf32>
    %1380 = arith.cmpf ogt, %1366, %1379 : vector<8x16xf32>
    %cst_291 = arith.constant 3.000000e-01 : f32
    %1381 = vector.broadcast %cst_291 : f32 to vector<8x16xf32>
    %1382 = arith.mulf %1381, %1366 : vector<8x16xf32>
    %1383 = arith.select %1380, %1366, %1382 : vector<8x16xi1>, vector<8x16xf32>
    %c0_292 = arith.constant 0 : index
    %c1_293 = arith.constant 1 : index
    %c9_294 = arith.constant 9 : index
    %1384 = vector.load %arg5[%c0_292, %c1_293, %c9_294] : memref<4x10x34xf32, #tpu.memory_space<vmem>>, vector<1x8x16xf32>
    %1385 = vector.shape_cast %1384 : vector<1x8x16xf32> to vector<8x16xf32>
    %1386 = vector.shape_cast %1383 : vector<8x16xf32> to vector<1x8x16xf32>
    tpu.vector_store %arg5[%c0_292, %c1_293, %c9_294], %1386 {strides = array<i32>} : memref<4x10x34xf32, #tpu.memory_space<vmem>>, vector<1x8x16xf32>,
    %cst_295 = arith.constant 0.000000e+00 : f32
    %1387 = vector.broadcast %cst_295 : f32 to vector<8x16xf32>
    %1388 = arith.cmpf ogt, %1370, %1387 : vector<8x16xf32>
    %cst_296 = arith.constant 3.000000e-01 : f32
    %1389 = vector.broadcast %cst_296 : f32 to vector<8x16xf32>
    %1390 = arith.mulf %1389, %1370 : vector<8x16xf32>
    %1391 = arith.select %1388, %1370, %1390 : vector<8x16xi1>, vector<8x16xf32>
    %c1_297 = arith.constant 1 : index
    %c1_298 = arith.constant 1 : index
    %c9_299 = arith.constant 9 : index
    %1392 = vector.load %arg5[%c1_297, %c1_298, %c9_299] : memref<4x10x34xf32, #tpu.memory_space<vmem>>, vector<1x8x16xf32>
    %1393 = vector.shape_cast %1392 : vector<1x8x16xf32> to vector<8x16xf32>
    %1394 = vector.shape_cast %1391 : vector<8x16xf32> to vector<1x8x16xf32>
    tpu.vector_store %arg5[%c1_297, %c1_298, %c9_299], %1394 {strides = array<i32>} : memref<4x10x34xf32, #tpu.memory_space<vmem>>, vector<1x8x16xf32>,
    %cst_300 = arith.constant 0.000000e+00 : f32
    %1395 = vector.broadcast %cst_300 : f32 to vector<8x16xf32>
    %1396 = arith.cmpf ogt, %1374, %1395 : vector<8x16xf32>
    %cst_301 = arith.constant 3.000000e-01 : f32
    %1397 = vector.broadcast %cst_301 : f32 to vector<8x16xf32>
    %1398 = arith.mulf %1397, %1374 : vector<8x16xf32>
    %1399 = arith.select %1396, %1374, %1398 : vector<8x16xi1>, vector<8x16xf32>
    %c2_302 = arith.constant 2 : index
    %c1_303 = arith.constant 1 : index
    %c9_304 = arith.constant 9 : index
    %1400 = vector.load %arg5[%c2_302, %c1_303, %c9_304] : memref<4x10x34xf32, #tpu.memory_space<vmem>>, vector<1x8x16xf32>
    %1401 = vector.shape_cast %1400 : vector<1x8x16xf32> to vector<8x16xf32>
    %1402 = vector.shape_cast %1399 : vector<8x16xf32> to vector<1x8x16xf32>
    tpu.vector_store %arg5[%c2_302, %c1_303, %c9_304], %1402 {strides = array<i32>} : memref<4x10x34xf32, #tpu.memory_space<vmem>>, vector<1x8x16xf32>,
    %cst_305 = arith.constant 0.000000e+00 : f32
    %1403 = vector.broadcast %cst_305 : f32 to vector<8x16xf32>
    %1404 = arith.cmpf ogt, %1378, %1403 : vector<8x16xf32>
    %cst_306 = arith.constant 3.000000e-01 : f32
    %1405 = vector.broadcast %cst_306 : f32 to vector<8x16xf32>
    %1406 = arith.mulf %1405, %1378 : vector<8x16xf32>
    %1407 = arith.select %1404, %1378, %1406 : vector<8x16xi1>, vector<8x16xf32>
    %c3_307 = arith.constant 3 : index
    %c1_308 = arith.constant 1 : index
    %c9_309 = arith.constant 9 : index
    %1408 = vector.load %arg5[%c3_307, %c1_308, %c9_309] : memref<4x10x34xf32, #tpu.memory_space<vmem>>, vector<1x8x16xf32>
    %1409 = vector.shape_cast %1408 : vector<1x8x16xf32> to vector<8x16xf32>
    %1410 = vector.shape_cast %1407 : vector<8x16xf32> to vector<1x8x16xf32>
    tpu.vector_store %arg5[%c3_307, %c1_308, %c9_309], %1410 {strides = array<i32>} : memref<4x10x34xf32, #tpu.memory_space<vmem>>, vector<1x8x16xf32>,
    %c8_310 = arith.constant 8 : index
    %1411 = memref.load %arg3[%c8_310] : memref<12xf32, #tpu.memory_space<smem>>
    %cst_311 = arith.constant 0.000000e+00 : f32
    %1412 = vector.broadcast %cst_311 : f32 to vector<8x16xf32>
    %1413 = vector.broadcast %1411 : f32 to vector<8x16xf32>
    %1414 = arith.addf %1413, %1412 : vector<8x16xf32>
    %c9_312 = arith.constant 9 : index
    %1415 = memref.load %arg3[%c9_312] : memref<12xf32, #tpu.memory_space<smem>>
    %cst_313 = arith.constant 0.000000e+00 : f32
    %1416 = vector.broadcast %cst_313 : f32 to vector<8x16xf32>
    %1417 = vector.broadcast %1415 : f32 to vector<8x16xf32>
    %1418 = arith.addf %1417, %1416 : vector<8x16xf32>
    %c10_314 = arith.constant 10 : index
    %1419 = memref.load %arg3[%c10_314] : memref<12xf32, #tpu.memory_space<smem>>
    %cst_315 = arith.constant 0.000000e+00 : f32
    %1420 = vector.broadcast %cst_315 : f32 to vector<8x16xf32>
    %1421 = vector.broadcast %1419 : f32 to vector<8x16xf32>
    %1422 = arith.addf %1421, %1420 : vector<8x16xf32>
    %c11_316 = arith.constant 11 : index
    %1423 = memref.load %arg3[%c11_316] : memref<12xf32, #tpu.memory_space<smem>>
    %cst_317 = arith.constant 0.000000e+00 : f32
    %1424 = vector.broadcast %cst_317 : f32 to vector<8x16xf32>
    %1425 = vector.broadcast %1423 : f32 to vector<8x16xf32>
    %1426 = arith.addf %1425, %1424 : vector<8x16xf32>
    %c0_318 = arith.constant 0 : index
    %c0_319 = arith.constant 0 : index
    %c0_320 = arith.constant 0 : index
    %1427 = vector.load %arg5[%c0_318, %c0_319, %c0_320] : memref<4x10x34xf32, #tpu.memory_space<vmem>>, vector<1x8x16xf32>
    %1428 = vector.shape_cast %1427 : vector<1x8x16xf32> to vector<8x16xf32>
    %c288 = arith.constant 288 : index
    %1429 = memref.load %arg2[%c288] : memref<432xf32, #tpu.memory_space<smem>>
    %1430 = vector.broadcast %1429 : f32 to vector<8x16xf32>
    %1431 = arith.mulf %1430, %1428 : vector<8x16xf32>
    %1432 = arith.addf %1414, %1431 : vector<8x16xf32>
    %c324 = arith.constant 324 : index
    %1433 = memref.load %arg2[%c324] : memref<432xf32, #tpu.memory_space<smem>>
    %1434 = vector.broadcast %1433 : f32 to vector<8x16xf32>
    %1435 = arith.mulf %1434, %1428 : vector<8x16xf32>
    %1436 = arith.addf %1418, %1435 : vector<8x16xf32>
    %c360 = arith.constant 360 : index
    %1437 = memref.load %arg2[%c360] : memref<432xf32, #tpu.memory_space<smem>>
    %1438 = vector.broadcast %1437 : f32 to vector<8x16xf32>
    %1439 = arith.mulf %1438, %1428 : vector<8x16xf32>
    %1440 = arith.addf %1422, %1439 : vector<8x16xf32>
    %c396 = arith.constant 396 : index
    %1441 = memref.load %arg2[%c396] : memref<432xf32, #tpu.memory_space<smem>>
    %1442 = vector.broadcast %1441 : f32 to vector<8x16xf32>
    %1443 = arith.mulf %1442, %1428 : vector<8x16xf32>
    %1444 = arith.addf %1426, %1443 : vector<8x16xf32>
    %c0_321 = arith.constant 0 : index
    %c0_322 = arith.constant 0 : index
    %c9_323 = arith.constant 9 : index
    %1445 = vector.load %arg5[%c0_321, %c0_322, %c9_323] : memref<4x10x34xf32, #tpu.memory_space<vmem>>, vector<1x8x16xf32>
    %1446 = vector.shape_cast %1445 : vector<1x8x16xf32> to vector<8x16xf32>
    %c289 = arith.constant 289 : index
    %1447 = memref.load %arg2[%c289] : memref<432xf32, #tpu.memory_space<smem>>
    %1448 = vector.broadcast %1447 : f32 to vector<8x16xf32>
    %1449 = arith.mulf %1448, %1446 : vector<8x16xf32>
    %1450 = arith.addf %1432, %1449 : vector<8x16xf32>
    %c325 = arith.constant 325 : index
    %1451 = memref.load %arg2[%c325] : memref<432xf32, #tpu.memory_space<smem>>
    %1452 = vector.broadcast %1451 : f32 to vector<8x16xf32>
    %1453 = arith.mulf %1452, %1446 : vector<8x16xf32>
    %1454 = arith.addf %1436, %1453 : vector<8x16xf32>
    %c361 = arith.constant 361 : index
    %1455 = memref.load %arg2[%c361] : memref<432xf32, #tpu.memory_space<smem>>
    %1456 = vector.broadcast %1455 : f32 to vector<8x16xf32>
    %1457 = arith.mulf %1456, %1446 : vector<8x16xf32>
    %1458 = arith.addf %1440, %1457 : vector<8x16xf32>
    %c397 = arith.constant 397 : index
    %1459 = memref.load %arg2[%c397] : memref<432xf32, #tpu.memory_space<smem>>
    %1460 = vector.broadcast %1459 : f32 to vector<8x16xf32>
    %1461 = arith.mulf %1460, %1446 : vector<8x16xf32>
    %1462 = arith.addf %1444, %1461 : vector<8x16xf32>
    %c0_324 = arith.constant 0 : index
    %c0_325 = arith.constant 0 : index
    %c18_326 = arith.constant 18 : index
    %1463 = vector.load %arg5[%c0_324, %c0_325, %c18_326] : memref<4x10x34xf32, #tpu.memory_space<vmem>>, vector<1x8x16xf32>
    %1464 = vector.shape_cast %1463 : vector<1x8x16xf32> to vector<8x16xf32>
    %c290 = arith.constant 290 : index
    %1465 = memref.load %arg2[%c290] : memref<432xf32, #tpu.memory_space<smem>>
    %1466 = vector.broadcast %1465 : f32 to vector<8x16xf32>
    %1467 = arith.mulf %1466, %1464 : vector<8x16xf32>
    %1468 = arith.addf %1450, %1467 : vector<8x16xf32>
    %c326 = arith.constant 326 : index
    %1469 = memref.load %arg2[%c326] : memref<432xf32, #tpu.memory_space<smem>>
    %1470 = vector.broadcast %1469 : f32 to vector<8x16xf32>
    %1471 = arith.mulf %1470, %1464 : vector<8x16xf32>
    %1472 = arith.addf %1454, %1471 : vector<8x16xf32>
    %c362 = arith.constant 362 : index
    %1473 = memref.load %arg2[%c362] : memref<432xf32, #tpu.memory_space<smem>>
    %1474 = vector.broadcast %1473 : f32 to vector<8x16xf32>
    %1475 = arith.mulf %1474, %1464 : vector<8x16xf32>
    %1476 = arith.addf %1458, %1475 : vector<8x16xf32>
    %c398 = arith.constant 398 : index
    %1477 = memref.load %arg2[%c398] : memref<432xf32, #tpu.memory_space<smem>>
    %1478 = vector.broadcast %1477 : f32 to vector<8x16xf32>
    %1479 = arith.mulf %1478, %1464 : vector<8x16xf32>
    %1480 = arith.addf %1462, %1479 : vector<8x16xf32>
    %c0_327 = arith.constant 0 : index
    %c1_328 = arith.constant 1 : index
    %c0_329 = arith.constant 0 : index
    %1481 = vector.load %arg5[%c0_327, %c1_328, %c0_329] : memref<4x10x34xf32, #tpu.memory_space<vmem>>, vector<1x8x16xf32>
    %1482 = vector.shape_cast %1481 : vector<1x8x16xf32> to vector<8x16xf32>
    %c291 = arith.constant 291 : index
    %1483 = memref.load %arg2[%c291] : memref<432xf32, #tpu.memory_space<smem>>
    %1484 = vector.broadcast %1483 : f32 to vector<8x16xf32>
    %1485 = arith.mulf %1484, %1482 : vector<8x16xf32>
    %1486 = arith.addf %1468, %1485 : vector<8x16xf32>
    %c327 = arith.constant 327 : index
    %1487 = memref.load %arg2[%c327] : memref<432xf32, #tpu.memory_space<smem>>
    %1488 = vector.broadcast %1487 : f32 to vector<8x16xf32>
    %1489 = arith.mulf %1488, %1482 : vector<8x16xf32>
    %1490 = arith.addf %1472, %1489 : vector<8x16xf32>
    %c363 = arith.constant 363 : index
    %1491 = memref.load %arg2[%c363] : memref<432xf32, #tpu.memory_space<smem>>
    %1492 = vector.broadcast %1491 : f32 to vector<8x16xf32>
    %1493 = arith.mulf %1492, %1482 : vector<8x16xf32>
    %1494 = arith.addf %1476, %1493 : vector<8x16xf32>
    %c399 = arith.constant 399 : index
    %1495 = memref.load %arg2[%c399] : memref<432xf32, #tpu.memory_space<smem>>
    %1496 = vector.broadcast %1495 : f32 to vector<8x16xf32>
    %1497 = arith.mulf %1496, %1482 : vector<8x16xf32>
    %1498 = arith.addf %1480, %1497 : vector<8x16xf32>
    %c0_330 = arith.constant 0 : index
    %c1_331 = arith.constant 1 : index
    %c9_332 = arith.constant 9 : index
    %1499 = vector.load %arg5[%c0_330, %c1_331, %c9_332] : memref<4x10x34xf32, #tpu.memory_space<vmem>>, vector<1x8x16xf32>
    %1500 = vector.shape_cast %1499 : vector<1x8x16xf32> to vector<8x16xf32>
    %c292 = arith.constant 292 : index
    %1501 = memref.load %arg2[%c292] : memref<432xf32, #tpu.memory_space<smem>>
    %1502 = vector.broadcast %1501 : f32 to vector<8x16xf32>
    %1503 = arith.mulf %1502, %1500 : vector<8x16xf32>
    %1504 = arith.addf %1486, %1503 : vector<8x16xf32>
    %c328 = arith.constant 328 : index
    %1505 = memref.load %arg2[%c328] : memref<432xf32, #tpu.memory_space<smem>>
    %1506 = vector.broadcast %1505 : f32 to vector<8x16xf32>
    %1507 = arith.mulf %1506, %1500 : vector<8x16xf32>
    %1508 = arith.addf %1490, %1507 : vector<8x16xf32>
    %c364 = arith.constant 364 : index
    %1509 = memref.load %arg2[%c364] : memref<432xf32, #tpu.memory_space<smem>>
    %1510 = vector.broadcast %1509 : f32 to vector<8x16xf32>
    %1511 = arith.mulf %1510, %1500 : vector<8x16xf32>
    %1512 = arith.addf %1494, %1511 : vector<8x16xf32>
    %c400 = arith.constant 400 : index
    %1513 = memref.load %arg2[%c400] : memref<432xf32, #tpu.memory_space<smem>>
    %1514 = vector.broadcast %1513 : f32 to vector<8x16xf32>
    %1515 = arith.mulf %1514, %1500 : vector<8x16xf32>
    %1516 = arith.addf %1498, %1515 : vector<8x16xf32>
    %c0_333 = arith.constant 0 : index
    %c1_334 = arith.constant 1 : index
    %c18_335 = arith.constant 18 : index
    %1517 = vector.load %arg5[%c0_333, %c1_334, %c18_335] : memref<4x10x34xf32, #tpu.memory_space<vmem>>, vector<1x8x16xf32>
    %1518 = vector.shape_cast %1517 : vector<1x8x16xf32> to vector<8x16xf32>
    %c293 = arith.constant 293 : index
    %1519 = memref.load %arg2[%c293] : memref<432xf32, #tpu.memory_space<smem>>
    %1520 = vector.broadcast %1519 : f32 to vector<8x16xf32>
    %1521 = arith.mulf %1520, %1518 : vector<8x16xf32>
    %1522 = arith.addf %1504, %1521 : vector<8x16xf32>
    %c329 = arith.constant 329 : index
    %1523 = memref.load %arg2[%c329] : memref<432xf32, #tpu.memory_space<smem>>
    %1524 = vector.broadcast %1523 : f32 to vector<8x16xf32>
    %1525 = arith.mulf %1524, %1518 : vector<8x16xf32>
    %1526 = arith.addf %1508, %1525 : vector<8x16xf32>
    %c365 = arith.constant 365 : index
    %1527 = memref.load %arg2[%c365] : memref<432xf32, #tpu.memory_space<smem>>
    %1528 = vector.broadcast %1527 : f32 to vector<8x16xf32>
    %1529 = arith.mulf %1528, %1518 : vector<8x16xf32>
    %1530 = arith.addf %1512, %1529 : vector<8x16xf32>
    %c401 = arith.constant 401 : index
    %1531 = memref.load %arg2[%c401] : memref<432xf32, #tpu.memory_space<smem>>
    %1532 = vector.broadcast %1531 : f32 to vector<8x16xf32>
    %1533 = arith.mulf %1532, %1518 : vector<8x16xf32>
    %1534 = arith.addf %1516, %1533 : vector<8x16xf32>
    %c0_336 = arith.constant 0 : index
    %c2_337 = arith.constant 2 : index
    %c0_338 = arith.constant 0 : index
    %1535 = vector.load %arg5[%c0_336, %c2_337, %c0_338] : memref<4x10x34xf32, #tpu.memory_space<vmem>>, vector<1x8x16xf32>
    %1536 = vector.shape_cast %1535 : vector<1x8x16xf32> to vector<8x16xf32>
    %c294 = arith.constant 294 : index
    %1537 = memref.load %arg2[%c294] : memref<432xf32, #tpu.memory_space<smem>>
    %1538 = vector.broadcast %1537 : f32 to vector<8x16xf32>
    %1539 = arith.mulf %1538, %1536 : vector<8x16xf32>
    %1540 = arith.addf %1522, %1539 : vector<8x16xf32>
    %c330 = arith.constant 330 : index
    %1541 = memref.load %arg2[%c330] : memref<432xf32, #tpu.memory_space<smem>>
    %1542 = vector.broadcast %1541 : f32 to vector<8x16xf32>
    %1543 = arith.mulf %1542, %1536 : vector<8x16xf32>
    %1544 = arith.addf %1526, %1543 : vector<8x16xf32>
    %c366 = arith.constant 366 : index
    %1545 = memref.load %arg2[%c366] : memref<432xf32, #tpu.memory_space<smem>>
    %1546 = vector.broadcast %1545 : f32 to vector<8x16xf32>
    %1547 = arith.mulf %1546, %1536 : vector<8x16xf32>
    %1548 = arith.addf %1530, %1547 : vector<8x16xf32>
    %c402 = arith.constant 402 : index
    %1549 = memref.load %arg2[%c402] : memref<432xf32, #tpu.memory_space<smem>>
    %1550 = vector.broadcast %1549 : f32 to vector<8x16xf32>
    %1551 = arith.mulf %1550, %1536 : vector<8x16xf32>
    %1552 = arith.addf %1534, %1551 : vector<8x16xf32>
    %c0_339 = arith.constant 0 : index
    %c2_340 = arith.constant 2 : index
    %c9_341 = arith.constant 9 : index
    %1553 = vector.load %arg5[%c0_339, %c2_340, %c9_341] : memref<4x10x34xf32, #tpu.memory_space<vmem>>, vector<1x8x16xf32>
    %1554 = vector.shape_cast %1553 : vector<1x8x16xf32> to vector<8x16xf32>
    %c295 = arith.constant 295 : index
    %1555 = memref.load %arg2[%c295] : memref<432xf32, #tpu.memory_space<smem>>
    %1556 = vector.broadcast %1555 : f32 to vector<8x16xf32>
    %1557 = arith.mulf %1556, %1554 : vector<8x16xf32>
    %1558 = arith.addf %1540, %1557 : vector<8x16xf32>
    %c331 = arith.constant 331 : index
    %1559 = memref.load %arg2[%c331] : memref<432xf32, #tpu.memory_space<smem>>
    %1560 = vector.broadcast %1559 : f32 to vector<8x16xf32>
    %1561 = arith.mulf %1560, %1554 : vector<8x16xf32>
    %1562 = arith.addf %1544, %1561 : vector<8x16xf32>
    %c367 = arith.constant 367 : index
    %1563 = memref.load %arg2[%c367] : memref<432xf32, #tpu.memory_space<smem>>
    %1564 = vector.broadcast %1563 : f32 to vector<8x16xf32>
    %1565 = arith.mulf %1564, %1554 : vector<8x16xf32>
    %1566 = arith.addf %1548, %1565 : vector<8x16xf32>
    %c403 = arith.constant 403 : index
    %1567 = memref.load %arg2[%c403] : memref<432xf32, #tpu.memory_space<smem>>
    %1568 = vector.broadcast %1567 : f32 to vector<8x16xf32>
    %1569 = arith.mulf %1568, %1554 : vector<8x16xf32>
    %1570 = arith.addf %1552, %1569 : vector<8x16xf32>
    %c0_342 = arith.constant 0 : index
    %c2_343 = arith.constant 2 : index
    %c18_344 = arith.constant 18 : index
    %1571 = vector.load %arg5[%c0_342, %c2_343, %c18_344] : memref<4x10x34xf32, #tpu.memory_space<vmem>>, vector<1x8x16xf32>
    %1572 = vector.shape_cast %1571 : vector<1x8x16xf32> to vector<8x16xf32>
    %c296 = arith.constant 296 : index
    %1573 = memref.load %arg2[%c296] : memref<432xf32, #tpu.memory_space<smem>>
    %1574 = vector.broadcast %1573 : f32 to vector<8x16xf32>
    %1575 = arith.mulf %1574, %1572 : vector<8x16xf32>
    %1576 = arith.addf %1558, %1575 : vector<8x16xf32>
    %c332 = arith.constant 332 : index
    %1577 = memref.load %arg2[%c332] : memref<432xf32, #tpu.memory_space<smem>>
    %1578 = vector.broadcast %1577 : f32 to vector<8x16xf32>
    %1579 = arith.mulf %1578, %1572 : vector<8x16xf32>
    %1580 = arith.addf %1562, %1579 : vector<8x16xf32>
    %c368 = arith.constant 368 : index
    %1581 = memref.load %arg2[%c368] : memref<432xf32, #tpu.memory_space<smem>>
    %1582 = vector.broadcast %1581 : f32 to vector<8x16xf32>
    %1583 = arith.mulf %1582, %1572 : vector<8x16xf32>
    %1584 = arith.addf %1566, %1583 : vector<8x16xf32>
    %c404 = arith.constant 404 : index
    %1585 = memref.load %arg2[%c404] : memref<432xf32, #tpu.memory_space<smem>>
    %1586 = vector.broadcast %1585 : f32 to vector<8x16xf32>
    %1587 = arith.mulf %1586, %1572 : vector<8x16xf32>
    %1588 = arith.addf %1570, %1587 : vector<8x16xf32>
    %c1_345 = arith.constant 1 : index
    %c0_346 = arith.constant 0 : index
    %c0_347 = arith.constant 0 : index
    %1589 = vector.load %arg5[%c1_345, %c0_346, %c0_347] : memref<4x10x34xf32, #tpu.memory_space<vmem>>, vector<1x8x16xf32>
    %1590 = vector.shape_cast %1589 : vector<1x8x16xf32> to vector<8x16xf32>
    %c297 = arith.constant 297 : index
    %1591 = memref.load %arg2[%c297] : memref<432xf32, #tpu.memory_space<smem>>
    %1592 = vector.broadcast %1591 : f32 to vector<8x16xf32>
    %1593 = arith.mulf %1592, %1590 : vector<8x16xf32>
    %1594 = arith.addf %1576, %1593 : vector<8x16xf32>
    %c333 = arith.constant 333 : index
    %1595 = memref.load %arg2[%c333] : memref<432xf32, #tpu.memory_space<smem>>
    %1596 = vector.broadcast %1595 : f32 to vector<8x16xf32>
    %1597 = arith.mulf %1596, %1590 : vector<8x16xf32>
    %1598 = arith.addf %1580, %1597 : vector<8x16xf32>
    %c369 = arith.constant 369 : index
    %1599 = memref.load %arg2[%c369] : memref<432xf32, #tpu.memory_space<smem>>
    %1600 = vector.broadcast %1599 : f32 to vector<8x16xf32>
    %1601 = arith.mulf %1600, %1590 : vector<8x16xf32>
    %1602 = arith.addf %1584, %1601 : vector<8x16xf32>
    %c405 = arith.constant 405 : index
    %1603 = memref.load %arg2[%c405] : memref<432xf32, #tpu.memory_space<smem>>
    %1604 = vector.broadcast %1603 : f32 to vector<8x16xf32>
    %1605 = arith.mulf %1604, %1590 : vector<8x16xf32>
    %1606 = arith.addf %1588, %1605 : vector<8x16xf32>
    %c1_348 = arith.constant 1 : index
    %c0_349 = arith.constant 0 : index
    %c9_350 = arith.constant 9 : index
    %1607 = vector.load %arg5[%c1_348, %c0_349, %c9_350] : memref<4x10x34xf32, #tpu.memory_space<vmem>>, vector<1x8x16xf32>
    %1608 = vector.shape_cast %1607 : vector<1x8x16xf32> to vector<8x16xf32>
    %c298 = arith.constant 298 : index
    %1609 = memref.load %arg2[%c298] : memref<432xf32, #tpu.memory_space<smem>>
    %1610 = vector.broadcast %1609 : f32 to vector<8x16xf32>
    %1611 = arith.mulf %1610, %1608 : vector<8x16xf32>
    %1612 = arith.addf %1594, %1611 : vector<8x16xf32>
    %c334 = arith.constant 334 : index
    %1613 = memref.load %arg2[%c334] : memref<432xf32, #tpu.memory_space<smem>>
    %1614 = vector.broadcast %1613 : f32 to vector<8x16xf32>
    %1615 = arith.mulf %1614, %1608 : vector<8x16xf32>
    %1616 = arith.addf %1598, %1615 : vector<8x16xf32>
    %c370 = arith.constant 370 : index
    %1617 = memref.load %arg2[%c370] : memref<432xf32, #tpu.memory_space<smem>>
    %1618 = vector.broadcast %1617 : f32 to vector<8x16xf32>
    %1619 = arith.mulf %1618, %1608 : vector<8x16xf32>
    %1620 = arith.addf %1602, %1619 : vector<8x16xf32>
    %c406 = arith.constant 406 : index
    %1621 = memref.load %arg2[%c406] : memref<432xf32, #tpu.memory_space<smem>>
    %1622 = vector.broadcast %1621 : f32 to vector<8x16xf32>
    %1623 = arith.mulf %1622, %1608 : vector<8x16xf32>
    %1624 = arith.addf %1606, %1623 : vector<8x16xf32>
    %c1_351 = arith.constant 1 : index
    %c0_352 = arith.constant 0 : index
    %c18_353 = arith.constant 18 : index
    %1625 = vector.load %arg5[%c1_351, %c0_352, %c18_353] : memref<4x10x34xf32, #tpu.memory_space<vmem>>, vector<1x8x16xf32>
    %1626 = vector.shape_cast %1625 : vector<1x8x16xf32> to vector<8x16xf32>
    %c299 = arith.constant 299 : index
    %1627 = memref.load %arg2[%c299] : memref<432xf32, #tpu.memory_space<smem>>
    %1628 = vector.broadcast %1627 : f32 to vector<8x16xf32>
    %1629 = arith.mulf %1628, %1626 : vector<8x16xf32>
    %1630 = arith.addf %1612, %1629 : vector<8x16xf32>
    %c335 = arith.constant 335 : index
    %1631 = memref.load %arg2[%c335] : memref<432xf32, #tpu.memory_space<smem>>
    %1632 = vector.broadcast %1631 : f32 to vector<8x16xf32>
    %1633 = arith.mulf %1632, %1626 : vector<8x16xf32>
    %1634 = arith.addf %1616, %1633 : vector<8x16xf32>
    %c371 = arith.constant 371 : index
    %1635 = memref.load %arg2[%c371] : memref<432xf32, #tpu.memory_space<smem>>
    %1636 = vector.broadcast %1635 : f32 to vector<8x16xf32>
    %1637 = arith.mulf %1636, %1626 : vector<8x16xf32>
    %1638 = arith.addf %1620, %1637 : vector<8x16xf32>
    %c407 = arith.constant 407 : index
    %1639 = memref.load %arg2[%c407] : memref<432xf32, #tpu.memory_space<smem>>
    %1640 = vector.broadcast %1639 : f32 to vector<8x16xf32>
    %1641 = arith.mulf %1640, %1626 : vector<8x16xf32>
    %1642 = arith.addf %1624, %1641 : vector<8x16xf32>
    %c1_354 = arith.constant 1 : index
    %c1_355 = arith.constant 1 : index
    %c0_356 = arith.constant 0 : index
    %1643 = vector.load %arg5[%c1_354, %c1_355, %c0_356] : memref<4x10x34xf32, #tpu.memory_space<vmem>>, vector<1x8x16xf32>
    %1644 = vector.shape_cast %1643 : vector<1x8x16xf32> to vector<8x16xf32>
    %c300 = arith.constant 300 : index
    %1645 = memref.load %arg2[%c300] : memref<432xf32, #tpu.memory_space<smem>>
    %1646 = vector.broadcast %1645 : f32 to vector<8x16xf32>
    %1647 = arith.mulf %1646, %1644 : vector<8x16xf32>
    %1648 = arith.addf %1630, %1647 : vector<8x16xf32>
    %c336 = arith.constant 336 : index
    %1649 = memref.load %arg2[%c336] : memref<432xf32, #tpu.memory_space<smem>>
    %1650 = vector.broadcast %1649 : f32 to vector<8x16xf32>
    %1651 = arith.mulf %1650, %1644 : vector<8x16xf32>
    %1652 = arith.addf %1634, %1651 : vector<8x16xf32>
    %c372 = arith.constant 372 : index
    %1653 = memref.load %arg2[%c372] : memref<432xf32, #tpu.memory_space<smem>>
    %1654 = vector.broadcast %1653 : f32 to vector<8x16xf32>
    %1655 = arith.mulf %1654, %1644 : vector<8x16xf32>
    %1656 = arith.addf %1638, %1655 : vector<8x16xf32>
    %c408 = arith.constant 408 : index
    %1657 = memref.load %arg2[%c408] : memref<432xf32, #tpu.memory_space<smem>>
    %1658 = vector.broadcast %1657 : f32 to vector<8x16xf32>
    %1659 = arith.mulf %1658, %1644 : vector<8x16xf32>
    %1660 = arith.addf %1642, %1659 : vector<8x16xf32>
    %c1_357 = arith.constant 1 : index
    %c1_358 = arith.constant 1 : index
    %c9_359 = arith.constant 9 : index
    %1661 = vector.load %arg5[%c1_357, %c1_358, %c9_359] : memref<4x10x34xf32, #tpu.memory_space<vmem>>, vector<1x8x16xf32>
    %1662 = vector.shape_cast %1661 : vector<1x8x16xf32> to vector<8x16xf32>
    %c301 = arith.constant 301 : index
    %1663 = memref.load %arg2[%c301] : memref<432xf32, #tpu.memory_space<smem>>
    %1664 = vector.broadcast %1663 : f32 to vector<8x16xf32>
    %1665 = arith.mulf %1664, %1662 : vector<8x16xf32>
    %1666 = arith.addf %1648, %1665 : vector<8x16xf32>
    %c337 = arith.constant 337 : index
    %1667 = memref.load %arg2[%c337] : memref<432xf32, #tpu.memory_space<smem>>
    %1668 = vector.broadcast %1667 : f32 to vector<8x16xf32>
    %1669 = arith.mulf %1668, %1662 : vector<8x16xf32>
    %1670 = arith.addf %1652, %1669 : vector<8x16xf32>
    %c373 = arith.constant 373 : index
    %1671 = memref.load %arg2[%c373] : memref<432xf32, #tpu.memory_space<smem>>
    %1672 = vector.broadcast %1671 : f32 to vector<8x16xf32>
    %1673 = arith.mulf %1672, %1662 : vector<8x16xf32>
    %1674 = arith.addf %1656, %1673 : vector<8x16xf32>
    %c409 = arith.constant 409 : index
    %1675 = memref.load %arg2[%c409] : memref<432xf32, #tpu.memory_space<smem>>
    %1676 = vector.broadcast %1675 : f32 to vector<8x16xf32>
    %1677 = arith.mulf %1676, %1662 : vector<8x16xf32>
    %1678 = arith.addf %1660, %1677 : vector<8x16xf32>
    %c1_360 = arith.constant 1 : index
    %c1_361 = arith.constant 1 : index
    %c18_362 = arith.constant 18 : index
    %1679 = vector.load %arg5[%c1_360, %c1_361, %c18_362] : memref<4x10x34xf32, #tpu.memory_space<vmem>>, vector<1x8x16xf32>
    %1680 = vector.shape_cast %1679 : vector<1x8x16xf32> to vector<8x16xf32>
    %c302 = arith.constant 302 : index
    %1681 = memref.load %arg2[%c302] : memref<432xf32, #tpu.memory_space<smem>>
    %1682 = vector.broadcast %1681 : f32 to vector<8x16xf32>
    %1683 = arith.mulf %1682, %1680 : vector<8x16xf32>
    %1684 = arith.addf %1666, %1683 : vector<8x16xf32>
    %c338 = arith.constant 338 : index
    %1685 = memref.load %arg2[%c338] : memref<432xf32, #tpu.memory_space<smem>>
    %1686 = vector.broadcast %1685 : f32 to vector<8x16xf32>
    %1687 = arith.mulf %1686, %1680 : vector<8x16xf32>
    %1688 = arith.addf %1670, %1687 : vector<8x16xf32>
    %c374 = arith.constant 374 : index
    %1689 = memref.load %arg2[%c374] : memref<432xf32, #tpu.memory_space<smem>>
    %1690 = vector.broadcast %1689 : f32 to vector<8x16xf32>
    %1691 = arith.mulf %1690, %1680 : vector<8x16xf32>
    %1692 = arith.addf %1674, %1691 : vector<8x16xf32>
    %c410 = arith.constant 410 : index
    %1693 = memref.load %arg2[%c410] : memref<432xf32, #tpu.memory_space<smem>>
    %1694 = vector.broadcast %1693 : f32 to vector<8x16xf32>
    %1695 = arith.mulf %1694, %1680 : vector<8x16xf32>
    %1696 = arith.addf %1678, %1695 : vector<8x16xf32>
    %c1_363 = arith.constant 1 : index
    %c2_364 = arith.constant 2 : index
    %c0_365 = arith.constant 0 : index
    %1697 = vector.load %arg5[%c1_363, %c2_364, %c0_365] : memref<4x10x34xf32, #tpu.memory_space<vmem>>, vector<1x8x16xf32>
    %1698 = vector.shape_cast %1697 : vector<1x8x16xf32> to vector<8x16xf32>
    %c303 = arith.constant 303 : index
    %1699 = memref.load %arg2[%c303] : memref<432xf32, #tpu.memory_space<smem>>
    %1700 = vector.broadcast %1699 : f32 to vector<8x16xf32>
    %1701 = arith.mulf %1700, %1698 : vector<8x16xf32>
    %1702 = arith.addf %1684, %1701 : vector<8x16xf32>
    %c339 = arith.constant 339 : index
    %1703 = memref.load %arg2[%c339] : memref<432xf32, #tpu.memory_space<smem>>
    %1704 = vector.broadcast %1703 : f32 to vector<8x16xf32>
    %1705 = arith.mulf %1704, %1698 : vector<8x16xf32>
    %1706 = arith.addf %1688, %1705 : vector<8x16xf32>
    %c375 = arith.constant 375 : index
    %1707 = memref.load %arg2[%c375] : memref<432xf32, #tpu.memory_space<smem>>
    %1708 = vector.broadcast %1707 : f32 to vector<8x16xf32>
    %1709 = arith.mulf %1708, %1698 : vector<8x16xf32>
    %1710 = arith.addf %1692, %1709 : vector<8x16xf32>
    %c411 = arith.constant 411 : index
    %1711 = memref.load %arg2[%c411] : memref<432xf32, #tpu.memory_space<smem>>
    %1712 = vector.broadcast %1711 : f32 to vector<8x16xf32>
    %1713 = arith.mulf %1712, %1698 : vector<8x16xf32>
    %1714 = arith.addf %1696, %1713 : vector<8x16xf32>
    %c1_366 = arith.constant 1 : index
    %c2_367 = arith.constant 2 : index
    %c9_368 = arith.constant 9 : index
    %1715 = vector.load %arg5[%c1_366, %c2_367, %c9_368] : memref<4x10x34xf32, #tpu.memory_space<vmem>>, vector<1x8x16xf32>
    %1716 = vector.shape_cast %1715 : vector<1x8x16xf32> to vector<8x16xf32>
    %c304 = arith.constant 304 : index
    %1717 = memref.load %arg2[%c304] : memref<432xf32, #tpu.memory_space<smem>>
    %1718 = vector.broadcast %1717 : f32 to vector<8x16xf32>
    %1719 = arith.mulf %1718, %1716 : vector<8x16xf32>
    %1720 = arith.addf %1702, %1719 : vector<8x16xf32>
    %c340 = arith.constant 340 : index
    %1721 = memref.load %arg2[%c340] : memref<432xf32, #tpu.memory_space<smem>>
    %1722 = vector.broadcast %1721 : f32 to vector<8x16xf32>
    %1723 = arith.mulf %1722, %1716 : vector<8x16xf32>
    %1724 = arith.addf %1706, %1723 : vector<8x16xf32>
    %c376 = arith.constant 376 : index
    %1725 = memref.load %arg2[%c376] : memref<432xf32, #tpu.memory_space<smem>>
    %1726 = vector.broadcast %1725 : f32 to vector<8x16xf32>
    %1727 = arith.mulf %1726, %1716 : vector<8x16xf32>
    %1728 = arith.addf %1710, %1727 : vector<8x16xf32>
    %c412 = arith.constant 412 : index
    %1729 = memref.load %arg2[%c412] : memref<432xf32, #tpu.memory_space<smem>>
    %1730 = vector.broadcast %1729 : f32 to vector<8x16xf32>
    %1731 = arith.mulf %1730, %1716 : vector<8x16xf32>
    %1732 = arith.addf %1714, %1731 : vector<8x16xf32>
    %c1_369 = arith.constant 1 : index
    %c2_370 = arith.constant 2 : index
    %c18_371 = arith.constant 18 : index
    %1733 = vector.load %arg5[%c1_369, %c2_370, %c18_371] : memref<4x10x34xf32, #tpu.memory_space<vmem>>, vector<1x8x16xf32>
    %1734 = vector.shape_cast %1733 : vector<1x8x16xf32> to vector<8x16xf32>
    %c305 = arith.constant 305 : index
    %1735 = memref.load %arg2[%c305] : memref<432xf32, #tpu.memory_space<smem>>
    %1736 = vector.broadcast %1735 : f32 to vector<8x16xf32>
    %1737 = arith.mulf %1736, %1734 : vector<8x16xf32>
    %1738 = arith.addf %1720, %1737 : vector<8x16xf32>
    %c341 = arith.constant 341 : index
    %1739 = memref.load %arg2[%c341] : memref<432xf32, #tpu.memory_space<smem>>
    %1740 = vector.broadcast %1739 : f32 to vector<8x16xf32>
    %1741 = arith.mulf %1740, %1734 : vector<8x16xf32>
    %1742 = arith.addf %1724, %1741 : vector<8x16xf32>
    %c377 = arith.constant 377 : index
    %1743 = memref.load %arg2[%c377] : memref<432xf32, #tpu.memory_space<smem>>
    %1744 = vector.broadcast %1743 : f32 to vector<8x16xf32>
    %1745 = arith.mulf %1744, %1734 : vector<8x16xf32>
    %1746 = arith.addf %1728, %1745 : vector<8x16xf32>
    %c413 = arith.constant 413 : index
    %1747 = memref.load %arg2[%c413] : memref<432xf32, #tpu.memory_space<smem>>
    %1748 = vector.broadcast %1747 : f32 to vector<8x16xf32>
    %1749 = arith.mulf %1748, %1734 : vector<8x16xf32>
    %1750 = arith.addf %1732, %1749 : vector<8x16xf32>
    %c2_372 = arith.constant 2 : index
    %c0_373 = arith.constant 0 : index
    %c0_374 = arith.constant 0 : index
    %1751 = vector.load %arg5[%c2_372, %c0_373, %c0_374] : memref<4x10x34xf32, #tpu.memory_space<vmem>>, vector<1x8x16xf32>
    %1752 = vector.shape_cast %1751 : vector<1x8x16xf32> to vector<8x16xf32>
    %c306 = arith.constant 306 : index
    %1753 = memref.load %arg2[%c306] : memref<432xf32, #tpu.memory_space<smem>>
    %1754 = vector.broadcast %1753 : f32 to vector<8x16xf32>
    %1755 = arith.mulf %1754, %1752 : vector<8x16xf32>
    %1756 = arith.addf %1738, %1755 : vector<8x16xf32>
    %c342 = arith.constant 342 : index
    %1757 = memref.load %arg2[%c342] : memref<432xf32, #tpu.memory_space<smem>>
    %1758 = vector.broadcast %1757 : f32 to vector<8x16xf32>
    %1759 = arith.mulf %1758, %1752 : vector<8x16xf32>
    %1760 = arith.addf %1742, %1759 : vector<8x16xf32>
    %c378 = arith.constant 378 : index
    %1761 = memref.load %arg2[%c378] : memref<432xf32, #tpu.memory_space<smem>>
    %1762 = vector.broadcast %1761 : f32 to vector<8x16xf32>
    %1763 = arith.mulf %1762, %1752 : vector<8x16xf32>
    %1764 = arith.addf %1746, %1763 : vector<8x16xf32>
    %c414 = arith.constant 414 : index
    %1765 = memref.load %arg2[%c414] : memref<432xf32, #tpu.memory_space<smem>>
    %1766 = vector.broadcast %1765 : f32 to vector<8x16xf32>
    %1767 = arith.mulf %1766, %1752 : vector<8x16xf32>
    %1768 = arith.addf %1750, %1767 : vector<8x16xf32>
    %c2_375 = arith.constant 2 : index
    %c0_376 = arith.constant 0 : index
    %c9_377 = arith.constant 9 : index
    %1769 = vector.load %arg5[%c2_375, %c0_376, %c9_377] : memref<4x10x34xf32, #tpu.memory_space<vmem>>, vector<1x8x16xf32>
    %1770 = vector.shape_cast %1769 : vector<1x8x16xf32> to vector<8x16xf32>
    %c307 = arith.constant 307 : index
    %1771 = memref.load %arg2[%c307] : memref<432xf32, #tpu.memory_space<smem>>
    %1772 = vector.broadcast %1771 : f32 to vector<8x16xf32>
    %1773 = arith.mulf %1772, %1770 : vector<8x16xf32>
    %1774 = arith.addf %1756, %1773 : vector<8x16xf32>
    %c343 = arith.constant 343 : index
    %1775 = memref.load %arg2[%c343] : memref<432xf32, #tpu.memory_space<smem>>
    %1776 = vector.broadcast %1775 : f32 to vector<8x16xf32>
    %1777 = arith.mulf %1776, %1770 : vector<8x16xf32>
    %1778 = arith.addf %1760, %1777 : vector<8x16xf32>
    %c379 = arith.constant 379 : index
    %1779 = memref.load %arg2[%c379] : memref<432xf32, #tpu.memory_space<smem>>
    %1780 = vector.broadcast %1779 : f32 to vector<8x16xf32>
    %1781 = arith.mulf %1780, %1770 : vector<8x16xf32>
    %1782 = arith.addf %1764, %1781 : vector<8x16xf32>
    %c415 = arith.constant 415 : index
    %1783 = memref.load %arg2[%c415] : memref<432xf32, #tpu.memory_space<smem>>
    %1784 = vector.broadcast %1783 : f32 to vector<8x16xf32>
    %1785 = arith.mulf %1784, %1770 : vector<8x16xf32>
    %1786 = arith.addf %1768, %1785 : vector<8x16xf32>
    %c2_378 = arith.constant 2 : index
    %c0_379 = arith.constant 0 : index
    %c18_380 = arith.constant 18 : index
    %1787 = vector.load %arg5[%c2_378, %c0_379, %c18_380] : memref<4x10x34xf32, #tpu.memory_space<vmem>>, vector<1x8x16xf32>
    %1788 = vector.shape_cast %1787 : vector<1x8x16xf32> to vector<8x16xf32>
    %c308 = arith.constant 308 : index
    %1789 = memref.load %arg2[%c308] : memref<432xf32, #tpu.memory_space<smem>>
    %1790 = vector.broadcast %1789 : f32 to vector<8x16xf32>
    %1791 = arith.mulf %1790, %1788 : vector<8x16xf32>
    %1792 = arith.addf %1774, %1791 : vector<8x16xf32>
    %c344 = arith.constant 344 : index
    %1793 = memref.load %arg2[%c344] : memref<432xf32, #tpu.memory_space<smem>>
    %1794 = vector.broadcast %1793 : f32 to vector<8x16xf32>
    %1795 = arith.mulf %1794, %1788 : vector<8x16xf32>
    %1796 = arith.addf %1778, %1795 : vector<8x16xf32>
    %c380 = arith.constant 380 : index
    %1797 = memref.load %arg2[%c380] : memref<432xf32, #tpu.memory_space<smem>>
    %1798 = vector.broadcast %1797 : f32 to vector<8x16xf32>
    %1799 = arith.mulf %1798, %1788 : vector<8x16xf32>
    %1800 = arith.addf %1782, %1799 : vector<8x16xf32>
    %c416 = arith.constant 416 : index
    %1801 = memref.load %arg2[%c416] : memref<432xf32, #tpu.memory_space<smem>>
    %1802 = vector.broadcast %1801 : f32 to vector<8x16xf32>
    %1803 = arith.mulf %1802, %1788 : vector<8x16xf32>
    %1804 = arith.addf %1786, %1803 : vector<8x16xf32>
    %c2_381 = arith.constant 2 : index
    %c1_382 = arith.constant 1 : index
    %c0_383 = arith.constant 0 : index
    %1805 = vector.load %arg5[%c2_381, %c1_382, %c0_383] : memref<4x10x34xf32, #tpu.memory_space<vmem>>, vector<1x8x16xf32>
    %1806 = vector.shape_cast %1805 : vector<1x8x16xf32> to vector<8x16xf32>
    %c309 = arith.constant 309 : index
    %1807 = memref.load %arg2[%c309] : memref<432xf32, #tpu.memory_space<smem>>
    %1808 = vector.broadcast %1807 : f32 to vector<8x16xf32>
    %1809 = arith.mulf %1808, %1806 : vector<8x16xf32>
    %1810 = arith.addf %1792, %1809 : vector<8x16xf32>
    %c345 = arith.constant 345 : index
    %1811 = memref.load %arg2[%c345] : memref<432xf32, #tpu.memory_space<smem>>
    %1812 = vector.broadcast %1811 : f32 to vector<8x16xf32>
    %1813 = arith.mulf %1812, %1806 : vector<8x16xf32>
    %1814 = arith.addf %1796, %1813 : vector<8x16xf32>
    %c381 = arith.constant 381 : index
    %1815 = memref.load %arg2[%c381] : memref<432xf32, #tpu.memory_space<smem>>
    %1816 = vector.broadcast %1815 : f32 to vector<8x16xf32>
    %1817 = arith.mulf %1816, %1806 : vector<8x16xf32>
    %1818 = arith.addf %1800, %1817 : vector<8x16xf32>
    %c417 = arith.constant 417 : index
    %1819 = memref.load %arg2[%c417] : memref<432xf32, #tpu.memory_space<smem>>
    %1820 = vector.broadcast %1819 : f32 to vector<8x16xf32>
    %1821 = arith.mulf %1820, %1806 : vector<8x16xf32>
    %1822 = arith.addf %1804, %1821 : vector<8x16xf32>
    %c2_384 = arith.constant 2 : index
    %c1_385 = arith.constant 1 : index
    %c9_386 = arith.constant 9 : index
    %1823 = vector.load %arg5[%c2_384, %c1_385, %c9_386] : memref<4x10x34xf32, #tpu.memory_space<vmem>>, vector<1x8x16xf32>
    %1824 = vector.shape_cast %1823 : vector<1x8x16xf32> to vector<8x16xf32>
    %c310 = arith.constant 310 : index
    %1825 = memref.load %arg2[%c310] : memref<432xf32, #tpu.memory_space<smem>>
    %1826 = vector.broadcast %1825 : f32 to vector<8x16xf32>
    %1827 = arith.mulf %1826, %1824 : vector<8x16xf32>
    %1828 = arith.addf %1810, %1827 : vector<8x16xf32>
    %c346 = arith.constant 346 : index
    %1829 = memref.load %arg2[%c346] : memref<432xf32, #tpu.memory_space<smem>>
    %1830 = vector.broadcast %1829 : f32 to vector<8x16xf32>
    %1831 = arith.mulf %1830, %1824 : vector<8x16xf32>
    %1832 = arith.addf %1814, %1831 : vector<8x16xf32>
    %c382 = arith.constant 382 : index
    %1833 = memref.load %arg2[%c382] : memref<432xf32, #tpu.memory_space<smem>>
    %1834 = vector.broadcast %1833 : f32 to vector<8x16xf32>
    %1835 = arith.mulf %1834, %1824 : vector<8x16xf32>
    %1836 = arith.addf %1818, %1835 : vector<8x16xf32>
    %c418 = arith.constant 418 : index
    %1837 = memref.load %arg2[%c418] : memref<432xf32, #tpu.memory_space<smem>>
    %1838 = vector.broadcast %1837 : f32 to vector<8x16xf32>
    %1839 = arith.mulf %1838, %1824 : vector<8x16xf32>
    %1840 = arith.addf %1822, %1839 : vector<8x16xf32>
    %c2_387 = arith.constant 2 : index
    %c1_388 = arith.constant 1 : index
    %c18_389 = arith.constant 18 : index
    %1841 = vector.load %arg5[%c2_387, %c1_388, %c18_389] : memref<4x10x34xf32, #tpu.memory_space<vmem>>, vector<1x8x16xf32>
    %1842 = vector.shape_cast %1841 : vector<1x8x16xf32> to vector<8x16xf32>
    %c311 = arith.constant 311 : index
    %1843 = memref.load %arg2[%c311] : memref<432xf32, #tpu.memory_space<smem>>
    %1844 = vector.broadcast %1843 : f32 to vector<8x16xf32>
    %1845 = arith.mulf %1844, %1842 : vector<8x16xf32>
    %1846 = arith.addf %1828, %1845 : vector<8x16xf32>
    %c347 = arith.constant 347 : index
    %1847 = memref.load %arg2[%c347] : memref<432xf32, #tpu.memory_space<smem>>
    %1848 = vector.broadcast %1847 : f32 to vector<8x16xf32>
    %1849 = arith.mulf %1848, %1842 : vector<8x16xf32>
    %1850 = arith.addf %1832, %1849 : vector<8x16xf32>
    %c383 = arith.constant 383 : index
    %1851 = memref.load %arg2[%c383] : memref<432xf32, #tpu.memory_space<smem>>
    %1852 = vector.broadcast %1851 : f32 to vector<8x16xf32>
    %1853 = arith.mulf %1852, %1842 : vector<8x16xf32>
    %1854 = arith.addf %1836, %1853 : vector<8x16xf32>
    %c419 = arith.constant 419 : index
    %1855 = memref.load %arg2[%c419] : memref<432xf32, #tpu.memory_space<smem>>
    %1856 = vector.broadcast %1855 : f32 to vector<8x16xf32>
    %1857 = arith.mulf %1856, %1842 : vector<8x16xf32>
    %1858 = arith.addf %1840, %1857 : vector<8x16xf32>
    %c2_390 = arith.constant 2 : index
    %c2_391 = arith.constant 2 : index
    %c0_392 = arith.constant 0 : index
    %1859 = vector.load %arg5[%c2_390, %c2_391, %c0_392] : memref<4x10x34xf32, #tpu.memory_space<vmem>>, vector<1x8x16xf32>
    %1860 = vector.shape_cast %1859 : vector<1x8x16xf32> to vector<8x16xf32>
    %c312 = arith.constant 312 : index
    %1861 = memref.load %arg2[%c312] : memref<432xf32, #tpu.memory_space<smem>>
    %1862 = vector.broadcast %1861 : f32 to vector<8x16xf32>
    %1863 = arith.mulf %1862, %1860 : vector<8x16xf32>
    %1864 = arith.addf %1846, %1863 : vector<8x16xf32>
    %c348 = arith.constant 348 : index
    %1865 = memref.load %arg2[%c348] : memref<432xf32, #tpu.memory_space<smem>>
    %1866 = vector.broadcast %1865 : f32 to vector<8x16xf32>
    %1867 = arith.mulf %1866, %1860 : vector<8x16xf32>
    %1868 = arith.addf %1850, %1867 : vector<8x16xf32>
    %c384 = arith.constant 384 : index
    %1869 = memref.load %arg2[%c384] : memref<432xf32, #tpu.memory_space<smem>>
    %1870 = vector.broadcast %1869 : f32 to vector<8x16xf32>
    %1871 = arith.mulf %1870, %1860 : vector<8x16xf32>
    %1872 = arith.addf %1854, %1871 : vector<8x16xf32>
    %c420 = arith.constant 420 : index
    %1873 = memref.load %arg2[%c420] : memref<432xf32, #tpu.memory_space<smem>>
    %1874 = vector.broadcast %1873 : f32 to vector<8x16xf32>
    %1875 = arith.mulf %1874, %1860 : vector<8x16xf32>
    %1876 = arith.addf %1858, %1875 : vector<8x16xf32>
    %c2_393 = arith.constant 2 : index
    %c2_394 = arith.constant 2 : index
    %c9_395 = arith.constant 9 : index
    %1877 = vector.load %arg5[%c2_393, %c2_394, %c9_395] : memref<4x10x34xf32, #tpu.memory_space<vmem>>, vector<1x8x16xf32>
    %1878 = vector.shape_cast %1877 : vector<1x8x16xf32> to vector<8x16xf32>
    %c313 = arith.constant 313 : index
    %1879 = memref.load %arg2[%c313] : memref<432xf32, #tpu.memory_space<smem>>
    %1880 = vector.broadcast %1879 : f32 to vector<8x16xf32>
    %1881 = arith.mulf %1880, %1878 : vector<8x16xf32>
    %1882 = arith.addf %1864, %1881 : vector<8x16xf32>
    %c349 = arith.constant 349 : index
    %1883 = memref.load %arg2[%c349] : memref<432xf32, #tpu.memory_space<smem>>
    %1884 = vector.broadcast %1883 : f32 to vector<8x16xf32>
    %1885 = arith.mulf %1884, %1878 : vector<8x16xf32>
    %1886 = arith.addf %1868, %1885 : vector<8x16xf32>
    %c385 = arith.constant 385 : index
    %1887 = memref.load %arg2[%c385] : memref<432xf32, #tpu.memory_space<smem>>
    %1888 = vector.broadcast %1887 : f32 to vector<8x16xf32>
    %1889 = arith.mulf %1888, %1878 : vector<8x16xf32>
    %1890 = arith.addf %1872, %1889 : vector<8x16xf32>
    %c421 = arith.constant 421 : index
    %1891 = memref.load %arg2[%c421] : memref<432xf32, #tpu.memory_space<smem>>
    %1892 = vector.broadcast %1891 : f32 to vector<8x16xf32>
    %1893 = arith.mulf %1892, %1878 : vector<8x16xf32>
    %1894 = arith.addf %1876, %1893 : vector<8x16xf32>
    %c2_396 = arith.constant 2 : index
    %c2_397 = arith.constant 2 : index
    %c18_398 = arith.constant 18 : index
    %1895 = vector.load %arg5[%c2_396, %c2_397, %c18_398] : memref<4x10x34xf32, #tpu.memory_space<vmem>>, vector<1x8x16xf32>
    %1896 = vector.shape_cast %1895 : vector<1x8x16xf32> to vector<8x16xf32>
    %c314 = arith.constant 314 : index
    %1897 = memref.load %arg2[%c314] : memref<432xf32, #tpu.memory_space<smem>>
    %1898 = vector.broadcast %1897 : f32 to vector<8x16xf32>
    %1899 = arith.mulf %1898, %1896 : vector<8x16xf32>
    %1900 = arith.addf %1882, %1899 : vector<8x16xf32>
    %c350 = arith.constant 350 : index
    %1901 = memref.load %arg2[%c350] : memref<432xf32, #tpu.memory_space<smem>>
    %1902 = vector.broadcast %1901 : f32 to vector<8x16xf32>
    %1903 = arith.mulf %1902, %1896 : vector<8x16xf32>
    %1904 = arith.addf %1886, %1903 : vector<8x16xf32>
    %c386 = arith.constant 386 : index
    %1905 = memref.load %arg2[%c386] : memref<432xf32, #tpu.memory_space<smem>>
    %1906 = vector.broadcast %1905 : f32 to vector<8x16xf32>
    %1907 = arith.mulf %1906, %1896 : vector<8x16xf32>
    %1908 = arith.addf %1890, %1907 : vector<8x16xf32>
    %c422 = arith.constant 422 : index
    %1909 = memref.load %arg2[%c422] : memref<432xf32, #tpu.memory_space<smem>>
    %1910 = vector.broadcast %1909 : f32 to vector<8x16xf32>
    %1911 = arith.mulf %1910, %1896 : vector<8x16xf32>
    %1912 = arith.addf %1894, %1911 : vector<8x16xf32>
    %c3_399 = arith.constant 3 : index
    %c0_400 = arith.constant 0 : index
    %c0_401 = arith.constant 0 : index
    %1913 = vector.load %arg5[%c3_399, %c0_400, %c0_401] : memref<4x10x34xf32, #tpu.memory_space<vmem>>, vector<1x8x16xf32>
    %1914 = vector.shape_cast %1913 : vector<1x8x16xf32> to vector<8x16xf32>
    %c315 = arith.constant 315 : index
    %1915 = memref.load %arg2[%c315] : memref<432xf32, #tpu.memory_space<smem>>
    %1916 = vector.broadcast %1915 : f32 to vector<8x16xf32>
    %1917 = arith.mulf %1916, %1914 : vector<8x16xf32>
    %1918 = arith.addf %1900, %1917 : vector<8x16xf32>
    %c351 = arith.constant 351 : index
    %1919 = memref.load %arg2[%c351] : memref<432xf32, #tpu.memory_space<smem>>
    %1920 = vector.broadcast %1919 : f32 to vector<8x16xf32>
    %1921 = arith.mulf %1920, %1914 : vector<8x16xf32>
    %1922 = arith.addf %1904, %1921 : vector<8x16xf32>
    %c387 = arith.constant 387 : index
    %1923 = memref.load %arg2[%c387] : memref<432xf32, #tpu.memory_space<smem>>
    %1924 = vector.broadcast %1923 : f32 to vector<8x16xf32>
    %1925 = arith.mulf %1924, %1914 : vector<8x16xf32>
    %1926 = arith.addf %1908, %1925 : vector<8x16xf32>
    %c423 = arith.constant 423 : index
    %1927 = memref.load %arg2[%c423] : memref<432xf32, #tpu.memory_space<smem>>
    %1928 = vector.broadcast %1927 : f32 to vector<8x16xf32>
    %1929 = arith.mulf %1928, %1914 : vector<8x16xf32>
    %1930 = arith.addf %1912, %1929 : vector<8x16xf32>
    %c3_402 = arith.constant 3 : index
    %c0_403 = arith.constant 0 : index
    %c9_404 = arith.constant 9 : index
    %1931 = vector.load %arg5[%c3_402, %c0_403, %c9_404] : memref<4x10x34xf32, #tpu.memory_space<vmem>>, vector<1x8x16xf32>
    %1932 = vector.shape_cast %1931 : vector<1x8x16xf32> to vector<8x16xf32>
    %c316 = arith.constant 316 : index
    %1933 = memref.load %arg2[%c316] : memref<432xf32, #tpu.memory_space<smem>>
    %1934 = vector.broadcast %1933 : f32 to vector<8x16xf32>
    %1935 = arith.mulf %1934, %1932 : vector<8x16xf32>
    %1936 = arith.addf %1918, %1935 : vector<8x16xf32>
    %c352 = arith.constant 352 : index
    %1937 = memref.load %arg2[%c352] : memref<432xf32, #tpu.memory_space<smem>>
    %1938 = vector.broadcast %1937 : f32 to vector<8x16xf32>
    %1939 = arith.mulf %1938, %1932 : vector<8x16xf32>
    %1940 = arith.addf %1922, %1939 : vector<8x16xf32>
    %c388 = arith.constant 388 : index
    %1941 = memref.load %arg2[%c388] : memref<432xf32, #tpu.memory_space<smem>>
    %1942 = vector.broadcast %1941 : f32 to vector<8x16xf32>
    %1943 = arith.mulf %1942, %1932 : vector<8x16xf32>
    %1944 = arith.addf %1926, %1943 : vector<8x16xf32>
    %c424 = arith.constant 424 : index
    %1945 = memref.load %arg2[%c424] : memref<432xf32, #tpu.memory_space<smem>>
    %1946 = vector.broadcast %1945 : f32 to vector<8x16xf32>
    %1947 = arith.mulf %1946, %1932 : vector<8x16xf32>
    %1948 = arith.addf %1930, %1947 : vector<8x16xf32>
    %c3_405 = arith.constant 3 : index
    %c0_406 = arith.constant 0 : index
    %c18_407 = arith.constant 18 : index
    %1949 = vector.load %arg5[%c3_405, %c0_406, %c18_407] : memref<4x10x34xf32, #tpu.memory_space<vmem>>, vector<1x8x16xf32>
    %1950 = vector.shape_cast %1949 : vector<1x8x16xf32> to vector<8x16xf32>
    %c317 = arith.constant 317 : index
    %1951 = memref.load %arg2[%c317] : memref<432xf32, #tpu.memory_space<smem>>
    %1952 = vector.broadcast %1951 : f32 to vector<8x16xf32>
    %1953 = arith.mulf %1952, %1950 : vector<8x16xf32>
    %1954 = arith.addf %1936, %1953 : vector<8x16xf32>
    %c353 = arith.constant 353 : index
    %1955 = memref.load %arg2[%c353] : memref<432xf32, #tpu.memory_space<smem>>
    %1956 = vector.broadcast %1955 : f32 to vector<8x16xf32>
    %1957 = arith.mulf %1956, %1950 : vector<8x16xf32>
    %1958 = arith.addf %1940, %1957 : vector<8x16xf32>
    %c389 = arith.constant 389 : index
    %1959 = memref.load %arg2[%c389] : memref<432xf32, #tpu.memory_space<smem>>
    %1960 = vector.broadcast %1959 : f32 to vector<8x16xf32>
    %1961 = arith.mulf %1960, %1950 : vector<8x16xf32>
    %1962 = arith.addf %1944, %1961 : vector<8x16xf32>
    %c425 = arith.constant 425 : index
    %1963 = memref.load %arg2[%c425] : memref<432xf32, #tpu.memory_space<smem>>
    %1964 = vector.broadcast %1963 : f32 to vector<8x16xf32>
    %1965 = arith.mulf %1964, %1950 : vector<8x16xf32>
    %1966 = arith.addf %1948, %1965 : vector<8x16xf32>
    %c3_408 = arith.constant 3 : index
    %c1_409 = arith.constant 1 : index
    %c0_410 = arith.constant 0 : index
    %1967 = vector.load %arg5[%c3_408, %c1_409, %c0_410] : memref<4x10x34xf32, #tpu.memory_space<vmem>>, vector<1x8x16xf32>
    %1968 = vector.shape_cast %1967 : vector<1x8x16xf32> to vector<8x16xf32>
    %c318 = arith.constant 318 : index
    %1969 = memref.load %arg2[%c318] : memref<432xf32, #tpu.memory_space<smem>>
    %1970 = vector.broadcast %1969 : f32 to vector<8x16xf32>
    %1971 = arith.mulf %1970, %1968 : vector<8x16xf32>
    %1972 = arith.addf %1954, %1971 : vector<8x16xf32>
    %c354 = arith.constant 354 : index
    %1973 = memref.load %arg2[%c354] : memref<432xf32, #tpu.memory_space<smem>>
    %1974 = vector.broadcast %1973 : f32 to vector<8x16xf32>
    %1975 = arith.mulf %1974, %1968 : vector<8x16xf32>
    %1976 = arith.addf %1958, %1975 : vector<8x16xf32>
    %c390 = arith.constant 390 : index
    %1977 = memref.load %arg2[%c390] : memref<432xf32, #tpu.memory_space<smem>>
    %1978 = vector.broadcast %1977 : f32 to vector<8x16xf32>
    %1979 = arith.mulf %1978, %1968 : vector<8x16xf32>
    %1980 = arith.addf %1962, %1979 : vector<8x16xf32>
    %c426 = arith.constant 426 : index
    %1981 = memref.load %arg2[%c426] : memref<432xf32, #tpu.memory_space<smem>>
    %1982 = vector.broadcast %1981 : f32 to vector<8x16xf32>
    %1983 = arith.mulf %1982, %1968 : vector<8x16xf32>
    %1984 = arith.addf %1966, %1983 : vector<8x16xf32>
    %c3_411 = arith.constant 3 : index
    %c1_412 = arith.constant 1 : index
    %c9_413 = arith.constant 9 : index
    %1985 = vector.load %arg5[%c3_411, %c1_412, %c9_413] : memref<4x10x34xf32, #tpu.memory_space<vmem>>, vector<1x8x16xf32>
    %1986 = vector.shape_cast %1985 : vector<1x8x16xf32> to vector<8x16xf32>
    %c319 = arith.constant 319 : index
    %1987 = memref.load %arg2[%c319] : memref<432xf32, #tpu.memory_space<smem>>
    %1988 = vector.broadcast %1987 : f32 to vector<8x16xf32>
    %1989 = arith.mulf %1988, %1986 : vector<8x16xf32>
    %1990 = arith.addf %1972, %1989 : vector<8x16xf32>
    %c355 = arith.constant 355 : index
    %1991 = memref.load %arg2[%c355] : memref<432xf32, #tpu.memory_space<smem>>
    %1992 = vector.broadcast %1991 : f32 to vector<8x16xf32>
    %1993 = arith.mulf %1992, %1986 : vector<8x16xf32>
    %1994 = arith.addf %1976, %1993 : vector<8x16xf32>
    %c391 = arith.constant 391 : index
    %1995 = memref.load %arg2[%c391] : memref<432xf32, #tpu.memory_space<smem>>
    %1996 = vector.broadcast %1995 : f32 to vector<8x16xf32>
    %1997 = arith.mulf %1996, %1986 : vector<8x16xf32>
    %1998 = arith.addf %1980, %1997 : vector<8x16xf32>
    %c427 = arith.constant 427 : index
    %1999 = memref.load %arg2[%c427] : memref<432xf32, #tpu.memory_space<smem>>
    %2000 = vector.broadcast %1999 : f32 to vector<8x16xf32>
    %2001 = arith.mulf %2000, %1986 : vector<8x16xf32>
    %2002 = arith.addf %1984, %2001 : vector<8x16xf32>
    %c3_414 = arith.constant 3 : index
    %c1_415 = arith.constant 1 : index
    %c18_416 = arith.constant 18 : index
    %2003 = vector.load %arg5[%c3_414, %c1_415, %c18_416] : memref<4x10x34xf32, #tpu.memory_space<vmem>>, vector<1x8x16xf32>
    %2004 = vector.shape_cast %2003 : vector<1x8x16xf32> to vector<8x16xf32>
    %c320 = arith.constant 320 : index
    %2005 = memref.load %arg2[%c320] : memref<432xf32, #tpu.memory_space<smem>>
    %2006 = vector.broadcast %2005 : f32 to vector<8x16xf32>
    %2007 = arith.mulf %2006, %2004 : vector<8x16xf32>
    %2008 = arith.addf %1990, %2007 : vector<8x16xf32>
    %c356 = arith.constant 356 : index
    %2009 = memref.load %arg2[%c356] : memref<432xf32, #tpu.memory_space<smem>>
    %2010 = vector.broadcast %2009 : f32 to vector<8x16xf32>
    %2011 = arith.mulf %2010, %2004 : vector<8x16xf32>
    %2012 = arith.addf %1994, %2011 : vector<8x16xf32>
    %c392 = arith.constant 392 : index
    %2013 = memref.load %arg2[%c392] : memref<432xf32, #tpu.memory_space<smem>>
    %2014 = vector.broadcast %2013 : f32 to vector<8x16xf32>
    %2015 = arith.mulf %2014, %2004 : vector<8x16xf32>
    %2016 = arith.addf %1998, %2015 : vector<8x16xf32>
    %c428 = arith.constant 428 : index
    %2017 = memref.load %arg2[%c428] : memref<432xf32, #tpu.memory_space<smem>>
    %2018 = vector.broadcast %2017 : f32 to vector<8x16xf32>
    %2019 = arith.mulf %2018, %2004 : vector<8x16xf32>
    %2020 = arith.addf %2002, %2019 : vector<8x16xf32>
    %c3_417 = arith.constant 3 : index
    %c2_418 = arith.constant 2 : index
    %c0_419 = arith.constant 0 : index
    %2021 = vector.load %arg5[%c3_417, %c2_418, %c0_419] : memref<4x10x34xf32, #tpu.memory_space<vmem>>, vector<1x8x16xf32>
    %2022 = vector.shape_cast %2021 : vector<1x8x16xf32> to vector<8x16xf32>
    %c321 = arith.constant 321 : index
    %2023 = memref.load %arg2[%c321] : memref<432xf32, #tpu.memory_space<smem>>
    %2024 = vector.broadcast %2023 : f32 to vector<8x16xf32>
    %2025 = arith.mulf %2024, %2022 : vector<8x16xf32>
    %2026 = arith.addf %2008, %2025 : vector<8x16xf32>
    %c357 = arith.constant 357 : index
    %2027 = memref.load %arg2[%c357] : memref<432xf32, #tpu.memory_space<smem>>
    %2028 = vector.broadcast %2027 : f32 to vector<8x16xf32>
    %2029 = arith.mulf %2028, %2022 : vector<8x16xf32>
    %2030 = arith.addf %2012, %2029 : vector<8x16xf32>
    %c393 = arith.constant 393 : index
    %2031 = memref.load %arg2[%c393] : memref<432xf32, #tpu.memory_space<smem>>
    %2032 = vector.broadcast %2031 : f32 to vector<8x16xf32>
    %2033 = arith.mulf %2032, %2022 : vector<8x16xf32>
    %2034 = arith.addf %2016, %2033 : vector<8x16xf32>
    %c429 = arith.constant 429 : index
    %2035 = memref.load %arg2[%c429] : memref<432xf32, #tpu.memory_space<smem>>
    %2036 = vector.broadcast %2035 : f32 to vector<8x16xf32>
    %2037 = arith.mulf %2036, %2022 : vector<8x16xf32>
    %2038 = arith.addf %2020, %2037 : vector<8x16xf32>
    %c3_420 = arith.constant 3 : index
    %c2_421 = arith.constant 2 : index
    %c9_422 = arith.constant 9 : index
    %2039 = vector.load %arg5[%c3_420, %c2_421, %c9_422] : memref<4x10x34xf32, #tpu.memory_space<vmem>>, vector<1x8x16xf32>
    %2040 = vector.shape_cast %2039 : vector<1x8x16xf32> to vector<8x16xf32>
    %c322 = arith.constant 322 : index
    %2041 = memref.load %arg2[%c322] : memref<432xf32, #tpu.memory_space<smem>>
    %2042 = vector.broadcast %2041 : f32 to vector<8x16xf32>
    %2043 = arith.mulf %2042, %2040 : vector<8x16xf32>
    %2044 = arith.addf %2026, %2043 : vector<8x16xf32>
    %c358 = arith.constant 358 : index
    %2045 = memref.load %arg2[%c358] : memref<432xf32, #tpu.memory_space<smem>>
    %2046 = vector.broadcast %2045 : f32 to vector<8x16xf32>
    %2047 = arith.mulf %2046, %2040 : vector<8x16xf32>
    %2048 = arith.addf %2030, %2047 : vector<8x16xf32>
    %c394 = arith.constant 394 : index
    %2049 = memref.load %arg2[%c394] : memref<432xf32, #tpu.memory_space<smem>>
    %2050 = vector.broadcast %2049 : f32 to vector<8x16xf32>
    %2051 = arith.mulf %2050, %2040 : vector<8x16xf32>
    %2052 = arith.addf %2034, %2051 : vector<8x16xf32>
    %c430 = arith.constant 430 : index
    %2053 = memref.load %arg2[%c430] : memref<432xf32, #tpu.memory_space<smem>>
    %2054 = vector.broadcast %2053 : f32 to vector<8x16xf32>
    %2055 = arith.mulf %2054, %2040 : vector<8x16xf32>
    %2056 = arith.addf %2038, %2055 : vector<8x16xf32>
    %c3_423 = arith.constant 3 : index
    %c2_424 = arith.constant 2 : index
    %c18_425 = arith.constant 18 : index
    %2057 = vector.load %arg5[%c3_423, %c2_424, %c18_425] : memref<4x10x34xf32, #tpu.memory_space<vmem>>, vector<1x8x16xf32>
    %2058 = vector.shape_cast %2057 : vector<1x8x16xf32> to vector<8x16xf32>
    %c323 = arith.constant 323 : index
    %2059 = memref.load %arg2[%c323] : memref<432xf32, #tpu.memory_space<smem>>
    %2060 = vector.broadcast %2059 : f32 to vector<8x16xf32>
    %2061 = arith.mulf %2060, %2058 : vector<8x16xf32>
    %2062 = arith.addf %2044, %2061 : vector<8x16xf32>
    %c359 = arith.constant 359 : index
    %2063 = memref.load %arg2[%c359] : memref<432xf32, #tpu.memory_space<smem>>
    %2064 = vector.broadcast %2063 : f32 to vector<8x16xf32>
    %2065 = arith.mulf %2064, %2058 : vector<8x16xf32>
    %2066 = arith.addf %2048, %2065 : vector<8x16xf32>
    %c395 = arith.constant 395 : index
    %2067 = memref.load %arg2[%c395] : memref<432xf32, #tpu.memory_space<smem>>
    %2068 = vector.broadcast %2067 : f32 to vector<8x16xf32>
    %2069 = arith.mulf %2068, %2058 : vector<8x16xf32>
    %2070 = arith.addf %2052, %2069 : vector<8x16xf32>
    %c431 = arith.constant 431 : index
    %2071 = memref.load %arg2[%c431] : memref<432xf32, #tpu.memory_space<smem>>
    %2072 = vector.broadcast %2071 : f32 to vector<8x16xf32>
    %2073 = arith.mulf %2072, %2058 : vector<8x16xf32>
    %2074 = arith.addf %2056, %2073 : vector<8x16xf32>
    %cst_426 = arith.constant 0.000000e+00 : f32
    %2075 = vector.broadcast %cst_426 : f32 to vector<8x16xf32>
    %2076 = arith.cmpf ogt, %2062, %2075 : vector<8x16xf32>
    %cst_427 = arith.constant 3.000000e-01 : f32
    %2077 = vector.broadcast %cst_427 : f32 to vector<8x16xf32>
    %2078 = arith.mulf %2077, %2062 : vector<8x16xf32>
    %2079 = arith.select %2076, %2062, %2078 : vector<8x16xi1>, vector<8x16xf32>
    %2080 = arith.truncf %2079 : vector<8x16xf32> to vector<8x16xbf16>
    %c0_428 = arith.constant 0 : index
    %c0_429 = arith.constant 0 : index
    %c0_430 = arith.constant 0 : index
    %c0_431 = arith.constant 0 : index
    %2081 = vector.load %arg4[%c0_428, %c0_429, %c0_430, %c0_431] : memref<1x4x8x16xbf16, #tpu.memory_space<vmem>>, vector<1x1x8x16xbf16>
    %2082 = vector.shape_cast %2081 : vector<1x1x8x16xbf16> to vector<8x16xbf16>
    %2083 = vector.shape_cast %2080 : vector<8x16xbf16> to vector<1x1x8x16xbf16>
    tpu.vector_store %arg4[%c0_428, %c0_429, %c0_430, %c0_431], %2083 {strides = array<i32>} : memref<1x4x8x16xbf16, #tpu.memory_space<vmem>>, vector<1x1x8x16xbf16>,
    %cst_432 = arith.constant 0.000000e+00 : f32
    %2084 = vector.broadcast %cst_432 : f32 to vector<8x16xf32>
    %2085 = arith.cmpf ogt, %2066, %2084 : vector<8x16xf32>
    %cst_433 = arith.constant 3.000000e-01 : f32
    %2086 = vector.broadcast %cst_433 : f32 to vector<8x16xf32>
    %2087 = arith.mulf %2086, %2066 : vector<8x16xf32>
    %2088 = arith.select %2085, %2066, %2087 : vector<8x16xi1>, vector<8x16xf32>
    %2089 = arith.truncf %2088 : vector<8x16xf32> to vector<8x16xbf16>
    %c0_434 = arith.constant 0 : index
    %c1_435 = arith.constant 1 : index
    %c0_436 = arith.constant 0 : index
    %c0_437 = arith.constant 0 : index
    %2090 = vector.load %arg4[%c0_434, %c1_435, %c0_436, %c0_437] : memref<1x4x8x16xbf16, #tpu.memory_space<vmem>>, vector<1x1x8x16xbf16>
    %2091 = vector.shape_cast %2090 : vector<1x1x8x16xbf16> to vector<8x16xbf16>
    %2092 = vector.shape_cast %2089 : vector<8x16xbf16> to vector<1x1x8x16xbf16>
    tpu.vector_store %arg4[%c0_434, %c1_435, %c0_436, %c0_437], %2092 {strides = array<i32>} : memref<1x4x8x16xbf16, #tpu.memory_space<vmem>>, vector<1x1x8x16xbf16>,
    %cst_438 = arith.constant 0.000000e+00 : f32
    %2093 = vector.broadcast %cst_438 : f32 to vector<8x16xf32>
    %2094 = arith.cmpf ogt, %2070, %2093 : vector<8x16xf32>
    %cst_439 = arith.constant 3.000000e-01 : f32
    %2095 = vector.broadcast %cst_439 : f32 to vector<8x16xf32>
    %2096 = arith.mulf %2095, %2070 : vector<8x16xf32>
    %2097 = arith.select %2094, %2070, %2096 : vector<8x16xi1>, vector<8x16xf32>
    %2098 = arith.truncf %2097 : vector<8x16xf32> to vector<8x16xbf16>
    %c0_440 = arith.constant 0 : index
    %c2_441 = arith.constant 2 : index
    %c0_442 = arith.constant 0 : index
    %c0_443 = arith.constant 0 : index
    %2099 = vector.load %arg4[%c0_440, %c2_441, %c0_442, %c0_443] : memref<1x4x8x16xbf16, #tpu.memory_space<vmem>>, vector<1x1x8x16xbf16>
    %2100 = vector.shape_cast %2099 : vector<1x1x8x16xbf16> to vector<8x16xbf16>
    %2101 = vector.shape_cast %2098 : vector<8x16xbf16> to vector<1x1x8x16xbf16>
    tpu.vector_store %arg4[%c0_440, %c2_441, %c0_442, %c0_443], %2101 {strides = array<i32>} : memref<1x4x8x16xbf16, #tpu.memory_space<vmem>>, vector<1x1x8x16xbf16>,
    %cst_444 = arith.constant 0.000000e+00 : f32
    %2102 = vector.broadcast %cst_444 : f32 to vector<8x16xf32>
    %2103 = arith.cmpf ogt, %2074, %2102 : vector<8x16xf32>
    %cst_445 = arith.constant 3.000000e-01 : f32
    %2104 = vector.broadcast %cst_445 : f32 to vector<8x16xf32>
    %2105 = arith.mulf %2104, %2074 : vector<8x16xf32>
    %2106 = arith.select %2103, %2074, %2105 : vector<8x16xi1>, vector<8x16xf32>
    %2107 = arith.truncf %2106 : vector<8x16xf32> to vector<8x16xbf16>
    %c0_446 = arith.constant 0 : index
    %c3_447 = arith.constant 3 : index
    %c0_448 = arith.constant 0 : index
    %c0_449 = arith.constant 0 : index
    %2108 = vector.load %arg4[%c0_446, %c3_447, %c0_448, %c0_449] : memref<1x4x8x16xbf16, #tpu.memory_space<vmem>>, vector<1x1x8x16xbf16>
    %2109 = vector.shape_cast %2108 : vector<1x1x8x16xbf16> to vector<8x16xbf16>
    %2110 = vector.shape_cast %2107 : vector<8x16xbf16> to vector<1x1x8x16xbf16>
    tpu.vector_store %arg4[%c0_446, %c3_447, %c0_448, %c0_449], %2110 {strides = array<i32>} : memref<1x4x8x16xbf16, #tpu.memory_space<vmem>>, vector<1x1x8x16xbf16>,
    return
  }
  func.func @transform_0(%arg0: i32) -> (i32, i32, i32, i32) {
    %c0_i32 = arith.constant 0 : i32
    %c0_i32_0 = arith.constant 0 : i32
    %c0_i32_1 = arith.constant 0 : i32
    %c0_i32_2 = arith.constant 0 : i32
    return %arg0, %c0_i32, %c0_i32_0, %c0_i32_1 : i32, i32, i32, i32
  }
  func.func @transform_1(%arg0: i32) -> i32 {
    %c0_i32 = arith.constant 0 : i32
    %c0_i32_0 = arith.constant 0 : i32
    return %c0_i32 : i32
  }
  func.func @transform_2(%arg0: i32) -> i32 {
    %c0_i32 = arith.constant 0 : i32
    %c0_i32_0 = arith.constant 0 : i32
    return %c0_i32 : i32
  }
  func.func @transform_3(%arg0: i32) -> (i32, i32, i32, i32) {
    %c0_i32 = arith.constant 0 : i32
    %c0_i32_0 = arith.constant 0 : i32
    %c0_i32_1 = arith.constant 0 : i32
    %c0_i32_2 = arith.constant 0 : i32
    return %arg0, %c0_i32, %c0_i32_0, %c0_i32_1 : i32, i32, i32, i32
  }
}

</mosaic_0001>

<bundles_post_ra>
// kernel: tpu_custom_call.1
= control target key start
LH: loop header
LB: loop body
LE: loop exit
PB: predicated region body
PF: predicated region fallthrough
CT: control target
= control target key end

     0   :  { %s6082_s0 = inlined_call_operand.hbm [shape: f32[2,4,8,16], index: 0, kind: input, shape index: {}]   ;;  %s6083_s1 = inlined_call_operand.hbm [shape: f32[432], index: 1, kind: input, shape index: {}]   ;;  %s6084_s2 = inlined_call_operand.vmem [shape: f32[12], index: 2, kind: input, shape index: {}]   ;;  %s6085_s3 = inlined_call_operand.hbm [shape: bf16[2,4,8,16], index: 3, kind: output, shape index: {}]  }
   0x1   :  { %6098 = sst [smem:[#allocation35_spill]] %s6083_s1 }
   0x2   :  { %8 = vsyncpa [#allocation5], 0 }
   0x3   :  { %10 = vsyncpa [#allocation5 + $0x1], 0 }
   0x4   :  { %11 = vsyncpa [#allocation7], 0 }
   0x5   :  { %12 = vsyncpa [#allocation8], 0 }
   0x6   :  { %13 = vsyncpa [#allocation6], 0 }
   0x7   :  { %15 = vsyncpa [#allocation6 + $0x1], 0  ;;  %s4177_s12 = smov 0   ;;  %s4179_s13 = smov 0  }
   0x8   :  { %s4181_s14 = smov 0   ;;  %s4183_s15 = smov 0  }
   0x9 LB: > { %s4198_s16 = sadd.s32 4294967295, %s4140_s15   ;;  %s3461_s17 = sadd.s32 4294967294, %s4140_s15   ;;  %s4140_s15 = sphi %s4183_s15, %s6149_s15   ;;  %s4136_s14 = sphi %s4181_s14, %s6148_s14   ;;  %s4132_s13 = sphi %s4179_s13, %s6147_s13   ;;  %s4128_s12 = sphi %s4177_s12, %s6146_s12  }
   0xa   : > { %s4202_s18 = sadd.s32 1, %s4140_s15   ;;  %s28_s19 = sadd.s32 1, %s4136_s14 }
   0xb   : > { %s25_s20 = ssub.s32 %s4140_s15, %s4202_s18  ;;  %p35_p0 = scmp.ne.s32.totalorder %s4136_s14, %s4132_s13 }
   0xc   : > { %p26_p1 = scmp.eq.s32.totalorder %s25_s20, 0  ;;  %p36_p2 = scmp.eq.s32.totalorder %s4140_s15, 0 }
   0xd   : > { %p41_p3 = scmp.ne.s32.totalorder %s4132_s13, %s4128_s12  ;;  %p42_p4 = scmp.eq.s32.totalorder %s4198_s16, 0 }
   0xe   : > { %s4214_s21 = scalar_select %p26_p1, %s4136_s14, %s28_s19  }
   0xf   : > { %p4216_p5 = por %p36_p2, %p35_p0  ;;  %p4222_p6 = por %p42_p4, %p41_p3 }
  0x10   : > { %p107_p7 = scmp.eq.s32.totalorder %s4198_s16, 1  ;;  %p113_p8 = scmp.eq.s32.totalorder %s3461_s17, 1 }
  0x11   : > { %p3462_p9 = scmp.ge.s32.totalorder %s4140_s15, 1  ;;  %p120_p10 = scmp.lt.s32.totalorder %s4140_s15, 3 }
  0x12   : > { %p4229_p11 = por %p107_p7, %p35_p0  ;;  %p4233_p12 = por %p113_p8, %p41_p3 }
  0x13   : > { %p4237_p13 = pnand %p3462_p9, %p120_p10  ;;  %s6104_s1 = sld [smem:[#allocation35_spill]] }
  0x14   : > { %p3955_p2 = scmp.lt.s32.totalorder %s4140_s15, 2  ;;  %s142_s5 = sshll.u32 %s6084_s2, 4  ;;  %s143_s5 = int_to_ptr.vmem [resolvable:$true] %s142_s5 }
  0x15   : > { %p3938_p1 = pneg %p4237_p13  ;;  %s4142_s7 = smov [#allocation9]  }
  0x16   : > { %p4255_p7 = pnand %p3955_p2, %p4216_p5  ;;  %s153_s8 = sand.u32 1, %s4136_s14  }
  0x17   : > { %p3939_p3 = pnand %p3938_p1, %p42_p4  ;;  %s4143_s9 = smov [#allocation10]  }
  0x18   : > { %s3466_s10 = sshll.u32 %s153_s8, 5  ;;  %s3924_s11 = sshll.u32 %s4140_s15, 5 }
  0x19   : > { %s132_s29 = sshll.u32 %s6104_s1, 4  ;;  %s162_s20 = scalar_lea.hbm %s6082_s0, %s3924_s11  ;;  %s133_s29 = int_to_ptr.hbm [resolvable:$true] %s132_s29 }
  0x1a   : > { %3941 = dma.hbm_to_smem (!%p3939_p3), %s133_s29, 64, %s4142_s7, [#allocation7]  }
  0x1b   : > { %3944 = dma.vmem_to_smem (!%p3939_p3), %s143_s5, 16, %s4143_s9, [#allocation8]  }
  0x1c   : > { %s157_s27 = scalar_lea.vmem [#allocation4], %s3466_s10  ;;  %s163_s22 = sshll.u32 %s162_s20, 4  ;;  %s164_s22 = int_to_ptr.hbm [resolvable:$true] %s163_s22 }
  0x1d   : > { %s165_s28 = sshll.u32 %s157_s27, 4  ;;  %s154_s30 = scalar_lea.sflag [#allocation5], %s153_s8  ;;  %s166_s28 = int_to_ptr.vmem [resolvable:$true] %s165_s28 }
  0x1e   : > { %s4036_s4 = sshra.s32 %s164_s22, 4  ;;  %p4040_p8 = pneg %p4255_p7  ;;  %s4037_s4 = int_to_ptr.hbm [resolvable:$true] %s4036_s4 }
  0x1f   : > { %s4038_s1 = scalar_lea.hbm %s4037_s4, 32  ;;  %s4043_s7 = scalar_lea.hbm %s6082_s0, 64 }
  0x20   : > { %p4039_p5 = scmp.ne.s32.totalorder %s4037_s4, %s4038_s1  ;;  %p4044_p1 = scmp.lt.s32.totalorder %s4037_s4, %s6082_s0 }
  0x21   : > { %p4045_p2 = scmp.lt.s32.totalorder %s4043_s7, %s4038_s1 }
  0x22   : > { %p4041_p9 = pnand %p4040_p8, %p4039_p5 }
  0x23   : > { %p4046_p3 = por %p4045_p2, %p4044_p1 }
  0x24   : > { %p4042_p10 = pneg %p4041_p9 }
  0x26   : > { %p4047_p0 = pnand %p4046_p3, %p4042_p10 }
  0x28   : > { %4050 = shalt.err (!%p4047_p0)
}
  0x29   : > { %s4144_s8 = smov 128   ;;  %s4145_s10 = smov 8  }
  0x2a   : > { %3948 = dma.hbm_to_vmem [thread:$0]  (!%p4255_p7), %s164_s22, 512, %s166_s28, %s154_s30, %s4144_s8, %s4144_s8, %s4145_s10  }
  0x2b   : > { %177 = sbr.rel (%p4237_p13) target bundleno = 1505 (0x5e1), region = 32 }
  0x30   : > { %s4277_s17 = sand.u32 1, %s4132_s13  }
  0x31   : > { %s3470_s19 = sshll.u32 %s4277_s17, 5  ;;  %s180_s20 = scalar_lea.sflag [#allocation5], %s4277_s17 }
  0x32   : > { %s183_s1 = scalar_lea.vmem [#allocation4], %s3470_s19 }
  0x33   : > { %4111 = dma.done.wait (%p4222_p6), %s180_s20, 512  }
  0x34   : > { %4113 = vsyncadd (%p4222_p6), %s180_s20, 4294966784 }
  0x35   : > { %4115 = dma.done.wait (%p42_p4), [#allocation7], 64  }
  0x36   : > { %4117 = vsyncadd (%p42_p4), [#allocation7], 4294967232 }
  0x37   : > { %4119 = dma.done.wait (%p42_p4), [#allocation8], 16  }
  0x38   : > { %4121 = vsyncadd (%p42_p4), [#allocation8], 4294967280 }
  0x39   : > { %199 = sfence }
  0x3a   : > { %v276_v0 = vld [vmem:[%s183_s1] sm:$0xff]  ;;  %v278_v1 = vld [vmem:[%s183_s1 + $0x10] sm:$0xff]  ;;  %s4146_s26 = smov 9   ;;  %v277_v2 = vld [vmem:[%s183_s1 + $0x8] sm:$0xff]  ;;  %vm218_vm0 = vcmask 72704   ;;  %vm220_vm1 = vcmask 66560  }
  0x3b   : > { %284 = vrot.lane.b32.xlu0 %v276_v0, %s4146_s26  ;;  %288 = vrot.lane.b32.xlu1 %v278_v1, %s4146_s26  ;;  %v6086_v3 = vmov 0.0   ;;  %vm228_vm2 = vcmask 277704   ;;  %vm230_vm3 = vcmask 271560   ;;  %vm238_vm4 = vcmask 196680   ;;  %v279_v4 = vld [vmem:[%s183_s1 + $0x18] sm:$0xff]  ;;  %s3483_s23 = sld [smem:[#allocation9 + $0x6d]] }
  0x3c   : > { %219 = vst.msk [vmem:[#allocation2] sm:$0xff] %vm218_vm0, %v6086_v3  ;;  %s3482_s6 = sld [smem:[#allocation9 + $0x49]]  ;;  %vm296_vm5 = vcmask 203848   ;;  %s4148_s4 = smov 127   ;;  %vm247_vm6 = vcmask 23552   ;;  %vm249_vm7 = vcmask 17408  }
  0x3d   : > { %221 = vst.msk [vmem:[#allocation2 + $0x8] sm:$0x3] %vm220_vm1, %v6086_v3  ;;  %s3480_s27 = sld [smem:[#allocation9 + $0x1]]  ;;  %s4149_s9 = smov 126   ;;  %vm257_vm8 = vcmask 179352   ;;  %vm259_vm9 = vcmask 173208  }
  0x3e   : > { %229 = vst.msk [vmem:[#allocation2] sm:$0xff] %vm228_vm2, %v6086_v3  ;;  %s3486_s28 = sld [smem:[#allocation9 + $0x4a]]  ;;  %vm267_vm10 = vcmask 147480   ;;  %vm1295_vm15 = vcmask 154648  }
  0x3f   : > { %231 = vst.msk [vmem:[#allocation2 + $0x8] sm:$0x3] %vm230_vm3, %v6086_v3  ;;  %s3485_s22 = sld [smem:[#allocation9 + $0x26]] }
  0x40   : > { %239 = vst.msk [vmem:[#allocation2] sm:$0x1] %vm238_vm4, %v6086_v3  ;;  %s3481_s30 = sld [smem:[#allocation9 + $0x25]] }
  0x41   : > { %243 = vst.msk [vmem:[#allocation2 + $0x9] sm:$0x1] %vm238_vm4, %v6086_v3  ;;  %v355_v6 = vstv %s3483_s23  ;;  %s3493_s29 = sld [smem:[#allocation9 + $0x28]] }
  0x42   : > { %222 = vst.msk [vmem:[#allocation2 + $0x10] sm:$0xff] %vm218_vm0, %v6086_v3  ;;  %v347_v7 = vstv %s3482_s6  ;;  %s3492_s5 = sld [smem:[#allocation9 + $0x4]] }
  0x43   : > { %286 = vrot.lane.b32.xlu0 %v277_v2, %s4146_s26  ;;  %290 = vrot.lane.b32.xlu1 %v279_v4, %s4146_s26  ;;  %223 = vst.msk [vmem:[#allocation2 + $0x18] sm:$0x3] %vm220_vm1, %v6086_v3  ;;  %v331_v8 = vstv %s3480_s27  ;;  %s3484_s7 = sld [smem:[#allocation9 + $0x2]] }
  0x44   : > { %224 = vst.msk [vmem:[#allocation2 + $0x20] sm:$0xff] %vm218_vm0, %v6086_v3  ;;  %v379_v13 = vstv %s3486_s28  ;;  %s3496_s11 = sld [smem:[#allocation9 + $0x5]] }
  0x45   : > { %225 = vst.msk [vmem:[#allocation2 + $0x28] sm:$0x3] %vm220_vm1, %v6086_v3  ;;  %v371_v14 = vstv %s3485_s22  ;;  %s3495_s8 = sld [smem:[#allocation9 + $0x70]] }
  0x46   : > { %226 = vst.msk [vmem:[#allocation2 + $0x30] sm:$0xff] %vm218_vm0, %v6086_v3  ;;  %v339_v15 = vstv %s3481_s30  ;;  %s3487_s10 = sld [smem:[#allocation9 + $0x6e]] }
  0x47   : > { %227 = vst.msk [vmem:[#allocation2 + $0x38] sm:$0x3] %vm220_vm1, %v6086_v3  ;;  %v420_v21 = vstv %s3493_s29  ;;  %s3499_s19 = sld [smem:[#allocation9 + $0x71]] }
  0x48   : > { %232 = vst.msk [vmem:[#allocation2 + $0x10] sm:$0xff] %vm228_vm2, %v6086_v3  ;;  %v412_v22 = vstv %s3492_s5  ;;  %s3498_s20 = sld [smem:[#allocation9 + $0x4d]] }
  0x49   : > { %233 = vst.msk [vmem:[#allocation2 + $0x18] sm:$0x3] %vm230_vm3, %v6086_v3  ;;  %v363_v23 = vstv %s3484_s7  ;;  %s3494_s1 = sld [smem:[#allocation9 + $0x4c]] }
  0x4a   : > { %234 = vst.msk [vmem:[#allocation2 + $0x20] sm:$0xff] %vm228_vm2, %v6086_v3  ;;  %v444_v27 = vstv %s3496_s11  ;;  %s3506_s23 = sld [smem:[#allocation9 + $0x4f]] }
  0x4b   : > { %235 = vst.msk [vmem:[#allocation2 + $0x28] sm:$0x3] %vm230_vm3, %v6086_v3  ;;  %v436_v28 = vstv %s3495_s8  ;;  %s3505_s6 = sld [smem:[#allocation9 + $0x2b]] }
  0x4c   : > { %236 = vst.msk [vmem:[#allocation2 + $0x30] sm:$0xff] %vm228_vm2, %v6086_v3  ;;  %v387_v29 = vstv %s3487_s10  ;;  %s3497_s27 = sld [smem:[#allocation9 + $0x29]] }
  0x4d   : > { %237 = vst.msk [vmem:[#allocation2 + $0x38] sm:$0x3] %vm230_vm3, %v6086_v3  ;;  %v468_v33 = vstv %s3499_s19  ;;  %s3509_s28 = sld [smem:[#allocation9 + $0x2c]] }
  0x4e   : > { %240 = vst.msk [vmem:[#allocation2 + $0x10] sm:$0x1] %vm238_vm4, %v6086_v3  ;;  %v460_v34 = vstv %s3498_s20  ;;  %s3508_s22 = sld [smem:[#allocation9 + $0x8]] }
  0x4f   : > { %241 = vst.msk [vmem:[#allocation2 + $0x20] sm:$0x1] %vm238_vm4, %v6086_v3  ;;  %v428_v35 = vstv %s3494_s1  ;;  %s3504_s30 = sld [smem:[#allocation9 + $0x7]] }
  0x50   : > { %242 = vst.msk [vmem:[#allocation2 + $0x30] sm:$0x1] %vm238_vm4, %v6086_v3  ;;  %v509_v40 = vstv %s3506_s23  ;;  %s3516_s29 = sld [smem:[#allocation9 + $0xa]] }
  0x51   : > { %244 = vst.msk [vmem:[#allocation2 + $0x19] sm:$0x1] %vm238_vm4, %v6086_v3  ;;  %v501_v41 = vstv %s3505_s6  ;;  %s3511_s5 = sld [smem:[#allocation9 + $0x74]] }
  0x52   : > { %245 = vst.msk [vmem:[#allocation2 + $0x29] sm:$0x1] %vm238_vm4, %v6086_v3  ;;  %v452_v42 = vstv %s3497_s27  ;;  %s3507_s7 = sld [smem:[#allocation9 + $0x73]] }
  0x53   : > { %246 = vst.msk [vmem:[#allocation2 + $0x39] sm:$0x1] %vm238_vm4, %v6086_v3  ;;  %v533_v46 = vstv %s3509_s28  ;;  %s3519_s11 = sld [smem:[#allocation9 + $0x76]] }
  0x54   : > { %v525_v47 = vstv %s3508_s22  ;;  %s3518_s8 = sld [smem:[#allocation9 + $0x52]] }
  0x55   : > { %v493_v48 = vstv %s3504_s30  ;;  %s3510_s10 = sld [smem:[#allocation9 + $0x50]] }
  0x56   : > { %v575_v53 = vstv %s3516_s29  ;;  %s3522_s19 = sld [smem:[#allocation9 + $0x53]] }
  0x57   : > { %v549_v54 = vstv %s3511_s5  ;;  %s3521_s20 = sld [smem:[#allocation9 + $0x2f]] }
  0x58   : > { %v517_v56 = vstv %s3507_s7  ;;  %s3517_s1 = sld [smem:[#allocation9 + $0x2e]] }
  0x59   : > { %v599_v59 = vstv %s3519_s11  ;;  %s3529_s23 = sld [smem:[#allocation9 + $0x31]] }
  0x5a   : > { %v591_v60 = vstv %s3518_s8  ;;  %s3528_s6 = sld [smem:[#allocation9 + $0xd]] }
  0x5b   : > { %v541_v63 = vstv %s3510_s10  ;;  %s3520_s27 = sld [smem:[#allocation9 + $0xb]] }
  0x5c   : > { %v623_v2 = vstv %s3522_s19  ;;  %s3532_s28 = sld [smem:[#allocation9 + $0xe]] }
  0x5d   : > { %v615_v4 = vstv %s3521_s20  ;;  %s3531_s22 = sld [smem:[#allocation9 + $0x79]] }
  0x5e   : > { %s3523_s30 = sld [smem:[#allocation9 + $0x77]] }
  0x5f   : > { %s3535_s29 = sld [smem:[#allocation9 + $0x7a]] }
  0x60   : > { %s3534_s5 = sld [smem:[#allocation9 + $0x56]] }
  0x61   : > { %s3530_s7 = sld [smem:[#allocation9 + $0x55]] }
  0x62   : > { %s3542_s11 = sld [smem:[#allocation9 + $0x58]] }
  0x63   : > { %s3541_s8 = sld [smem:[#allocation9 + $0x34]] }
  0x64   : > { %s3533_s10 = sld [smem:[#allocation9 + $0x32]] }
  0x65   : > { %s3545_s19 = sld [smem:[#allocation9 + $0x35]] }
  0x66   : > { %s3544_s20 = sld [smem:[#allocation9 + $0x11]] }
  0xad   : > { %v285_v5 = vpop.permute.xlu0 %284  ;;  %v289_v1 = vpop.permute.xlu1 %288 }
  0xae   : > { %297 = vst.msk [vmem:[#allocation2 + $0x1] sm:$0xff] %vm296_vm5, %v285_v5  ;;  %v583_v5 = vstv %s3517_s1  ;;  %s3540_s1 = sld [smem:[#allocation9 + $0x10]] }
  0xaf   : > { %299 = vst.msk [vmem:[#allocation2 + $0x21] sm:$0xff] %vm296_vm5, %v289_v1 }
  0xb5   : > { %v4346_v9 = vld [vmem:[#allocation2] sm:$0xff]  ;;  %v287_v19 = vpop.permute.xlu0 %286 }
  0xb6   : > { %v356_v10 = vmul.f32 %v355_v6, %v4346_v9  ;;  %v348_v11 = vmul.f32 %v347_v7, %v4346_v9  ;;  %v332_v12 = vmul.f32 %v331_v8, %v4346_v9  ;;  %v380_v16 = vmul.f32 %v379_v13, %v4346_v9  ;;  %298 = vst.msk [vmem:[#allocation2 + $0x11] sm:$0xff] %vm296_vm5, %v287_v19  ;;  %v4361_v20 = vld [vmem:[#allocation2 + $0x1] sm:$0xff] }
  0xb7   : > { %v372_v17 = vmul.f32 %v371_v14, %v4346_v9  ;;  %v340_v18 = vmul.f32 %v339_v15, %v4346_v9  ;;  %v421_v24 = vmul.f32 %v420_v21, %v4361_v20  ;;  %v413_v25 = vmul.f32 %v412_v22, %v4361_v20  ;;  %v4381_v39 = vld [vmem:[#allocation2 + $0x2] sm:$0xff] }
  0xb8   : > { %358 = vrot.lane.b32.xlu1 %v356_v10, %s4148_s4  ;;  %350 = vrot.lane.b32.xlu0 %v348_v11, %s4148_s4  ;;  %v364_v26 = vmul.f32 %v363_v23, %v4346_v9  ;;  %v445_v30 = vmul.f32 %v444_v27, %v4361_v20  ;;  %v437_v31 = vmul.f32 %v436_v28, %v4361_v20  ;;  %v291_v10 = vpop.permute.xlu1 %290  ;;  %v656_v13 = vstv %s3528_s6  ;;  %s3547_s6 = sld [smem:[#allocation9 + $0x7d]] }
  0xb9   : > { %334 = vrot.lane.b32.xlu2 %v332_v12, %s4148_s4  ;;  %v388_v32 = vmul.f32 %v387_v29, %v4346_v9  ;;  %v469_v36 = vmul.f32 %v468_v33, %v4361_v20  ;;  %v461_v37 = vmul.f32 %v460_v34, %v4361_v20  ;;  %v429_v38 = vmul.f32 %v428_v35, %v4361_v20 }
  0xba   : > { %v510_v43 = vmul.f32 %v509_v40, %v4381_v39  ;;  %v502_v44 = vmul.f32 %v501_v41, %v4381_v39  ;;  %v453_v45 = vmul.f32 %v452_v42, %v4361_v20  ;;  %v534_v49 = vmul.f32 %v533_v46, %v4381_v39  ;;  %300 = vst.msk [vmem:[#allocation2 + $0x31] sm:$0xff] %vm296_vm5, %v291_v10 }
  0xbb   : > { %v526_v50 = vmul.f32 %v525_v47, %v4381_v39  ;;  %v494_v51 = vmul.f32 %v493_v48, %v4381_v39  ;;  %v550_v57 = vmul.f32 %v549_v54, %v4381_v39  ;;  %v518_v58 = vmul.f32 %v517_v56, %v4381_v39  ;;  %v4456_v48 = vld [vmem:[#allocation2 + $0x20] sm:$0xff] }
  0xbc   : > { %v542_v0 = vmul.f32 %v541_v63, %v4381_v39  ;;  %v664_v12 = vstv %s3529_s23  ;;  %v607_v14 = vstv %s3520_s27  ;;  %v680_v19 = vstv %s3531_s22  ;;  %s3552_s23 = sld [smem:[#allocation9 + $0x13]]  ;;  %6106 = vst [vmem:[#allocation16_spill] sm:$0xff] %v4456_v48 }
  0xbd   : > { %v4394_v52 = vld [vmem:[#allocation2 + $0x10] sm:$0xff]  ;;  %v631_v21 = vstv %s3523_s30  ;;  %v704_v27 = vstv %s3534_s5  ;;  %v672_v28 = vstv %s3530_s7  ;;  %v753_v34 = vstv %s3542_s11  ;;  %s3543_s27 = sld [smem:[#allocation9 + $0x7c]] }
  0xbe   : > { %v576_v55 = vmul.f32 %v575_v53, %v4394_v52  ;;  %v600_v61 = vmul.f32 %v599_v59, %v4394_v52  ;;  %v592_v62 = vmul.f32 %v591_v60, %v4394_v52  ;;  %v624_v6 = vmul.f32 %v623_v2, %v4394_v52  ;;  %v4416_v11 = vld [vmem:[#allocation2 + $0x11] sm:$0xff]  ;;  %s3554_s22 = sld [smem:[#allocation9 + $0x5b]] }
  0xbf   : > { %v616_v7 = vmul.f32 %v615_v4, %v4394_v52  ;;  %v584_v8 = vmul.f32 %v583_v5, %v4394_v52  ;;  %v665_v15 = vmul.f32 %v664_v12, %v4416_v11  ;;  %v681_v23 = vmul.f32 %v680_v19, %v4416_v11  ;;  %s3546_s30 = sld [smem:[#allocation9 + $0x59]] }
  0xc0   : > { %382 = vrot.lane.b32.xlu1 %v380_v16, %s4149_s9  ;;  %374 = vrot.lane.b32.xlu0 %v372_v17, %s4149_s9  ;;  %v657_v16 = vmul.f32 %v656_v13, %v4416_v11  ;;  %v608_v17 = vmul.f32 %v607_v14, %v4394_v52  ;;  %v745_v35 = vstv %s3541_s8  ;;  %v777_v42 = vstv %s3545_s19  ;;  %s3557_s5 = sld [smem:[#allocation9 + $0x38]] }
  0xc1   : > { %342 = vrot.lane.b32.xlu2 %v340_v18, %s4148_s4  ;;  %v688_v18 = vstv %s3532_s28  ;;  %s3555_s28 = sld [smem:[#allocation9 + $0x7f]]  ;;  %v793_v54 = vstv %s3547_s6 }
  0xc2   : > { %v689_v22 = vmul.f32 %v688_v18, %v4416_v11  ;;  %s3553_s7 = sld [smem:[#allocation9 + $0x37]]  ;;  %v4499_v18 = vld [vmem:[#allocation2 + $0x21] sm:$0xff] }
  0xc3   : > { %v761_v56 = vstv %s3543_s27  ;;  %s3565_s11 = sld [smem:[#allocation9 + $0x3a]]  ;;  %6107 = vst [vmem:[#allocation17_spill] sm:$0xff] %v4499_v18 }
  0xc4   : > { %v835_v60 = vstv %s3554_s22  ;;  %s3564_s8 = sld [smem:[#allocation9 + $0x16]] }
  0xc5   : > { %v836_v1 = vmul.f32 %v835_v60, %v4456_v48  ;;  %v785_v2 = vstv %s3546_s30  ;;  %s3568_s19 = sld [smem:[#allocation9 + $0x17]] }
  0xc6   : > { %v859_v10 = vstv %s3557_s5  ;;  %s3570_s6 = sld [smem:[#allocation9 + $0x5f]] }
  0xc7   : > { %v843_v59 = vstv %s3555_s28  ;;  %v860_v14 = vmul.f32 %v859_v10, %v4456_v48  ;;  %s3566_s27 = sld [smem:[#allocation9 + $0x5e]] }
  0xc8   : > { %423 = vrot.lane.b32.xlu1 %v421_v24, %s4148_s4  ;;  %415 = vrot.lane.b32.xlu0 %v413_v25, %s4148_s4  ;;  %v632_v24 = vmul.f32 %v631_v21, %v4394_v52  ;;  %v827_v12 = vstv %s3553_s7  ;;  %s3578_s28 = sld [smem:[#allocation9 + $0x61]] }
  0xc9   : > { %366 = vrot.lane.b32.xlu2 %v364_v26, %s4149_s9  ;;  %v712_v26 = vstv %s3535_s29  ;;  %s3558_s29 = sld [smem:[#allocation9 + $0x5c]]  ;;  %v908_v21 = vstv %s3565_s11 }
  0xca   : > { %v713_v29 = vmul.f32 %v712_v26, %v4416_v11  ;;  %s3577_s22 = sld [smem:[#allocation9 + $0x3d]] }
  0xcb   : > { %s3569_s30 = sld [smem:[#allocation9 + $0x3b]] }
  0xcc   : > { %s3580_s5 = sld [smem:[#allocation9 + $0x1a]] }
  0xcd   : > { %s3576_s7 = sld [smem:[#allocation9 + $0x19]] }
  0xce   : > { %s3588_s11 = sld [smem:[#allocation9 + $0x1c]] }
  0xd0   : > { %447 = vrot.lane.b32.xlu1 %v445_v30, %s4149_s9  ;;  %439 = vrot.lane.b32.xlu0 %v437_v31, %s4148_s4  ;;  %v705_v30 = vmul.f32 %v704_v27, %v4416_v11  ;;  %v673_v31 = vmul.f32 %v672_v28, %v4416_v11  ;;  %v989_v60 = vstv %s3577_s22  ;;  %s3600_s22 = sld [smem:[#allocation9 + $0x1f]] }
  0xd1   : > { %390 = vrot.lane.b32.xlu2 %v388_v32, %s4149_s9  ;;  %v4439_v32 = vld [vmem:[#allocation2 + $0x12] sm:$0xff] }
  0xd2   : > { %v786_v4 = vmul.f32 %v785_v2, %v4439_v32 }
  0xd8   : > { %471 = vrot.lane.b32.xlu1 %v469_v36, %s4149_s9  ;;  %463 = vrot.lane.b32.xlu0 %v461_v37, %s4149_s9  ;;  %v696_v36 = vstv %s3533_s10  ;;  %v754_v37 = vmul.f32 %v753_v34, %v4439_v32  ;;  %s3556_s10 = sld [smem:[#allocation9 + $0x14]] }
  0xd9   : > { %431 = vrot.lane.b32.xlu2 %v429_v38, %s4148_s4  ;;  %v746_v38 = vmul.f32 %v745_v35, %v4439_v32  ;;  %v697_v40 = vmul.f32 %v696_v36, %v4416_v11 }
  0xe0   : > { %512 = vrot.lane.b32.xlu1 %v510_v43, %s4148_s4  ;;  %504 = vrot.lane.b32.xlu0 %v502_v44, %s4148_s4  ;;  %v769_v43 = vstv %s3544_s20  ;;  %v737_v44 = vstv %s3540_s1  ;;  %s3567_s20 = sld [smem:[#allocation9 + $0x82]] }
  0xe1   : > { %455 = vrot.lane.b32.xlu2 %v453_v45, %s4149_s9  ;;  %v778_v45 = vmul.f32 %v777_v42, %v4439_v32  ;;  %v770_v46 = vmul.f32 %v769_v43, %v4439_v32  ;;  %v738_v47 = vmul.f32 %v737_v44, %v4439_v32  ;;  %s3559_s1 = sld [smem:[#allocation9 + $0x80]] }
  0xe6   : > { %v924_v34 = vstv %s3567_s20  ;;  %s3590_s20 = sld [smem:[#allocation9 + $0x64]] }
  0xe7   : > { %v875_v35 = vstv %s3559_s1  ;;  %s3582_s1 = sld [smem:[#allocation9 + $0x62]] }
  0xe8   : > { %536 = vrot.lane.b32.xlu1 %v534_v49, %s4149_s9  ;;  %528 = vrot.lane.b32.xlu0 %v526_v50, %s4149_s9  ;;  %v819_v49 = vstv %s3552_s23  ;;  %s3571_s23 = sld [smem:[#allocation9 + $0x83]] }
  0xe9   : > { %496 = vrot.lane.b32.xlu2 %v494_v51, %s4148_s4 }
  0xee   : > { %v956_v44 = vstv %s3571_s23  ;;  %s3594_s23 = sld [smem:[#allocation9 + $0x65]] }
  0xf0   : > { %578 = vrot.lane.b32.xlu1 %v576_v55, %s4148_s4  ;;  %552 = vrot.lane.b32.xlu0 %v550_v57, %s4149_s9  ;;  %v820_v55 = vmul.f32 %v819_v49, %v4456_v48  ;;  %v794_v57 = vmul.f32 %v793_v54, %v4439_v32 }
  0xf1   : > { %520 = vrot.lane.b32.xlu2 %v518_v58, %s4148_s4  ;;  %v762_v58 = vmul.f32 %v761_v56, %v4439_v32 }
  0xf8   : > { %602 = vrot.lane.b32.xlu1 %v600_v61, %s4148_s4  ;;  %594 = vrot.lane.b32.xlu0 %v592_v62, %s4148_s4 }
  0xf9   : > { %544 = vrot.lane.b32.xlu2 %v542_v0, %s4149_s9  ;;  %v844_v0 = vmul.f32 %v843_v59, %v4456_v48  ;;  %v997_v59 = vstv %s3578_s28  ;;  %s3601_s28 = sld [smem:[#allocation9 + $0x43]] }
 0x100   : > { %626 = vrot.lane.b32.xlu1 %v624_v6, %s4149_s9  ;;  %618 = vrot.lane.b32.xlu0 %v616_v7, %s4149_s9 }
 0x101   : > { %586 = vrot.lane.b32.xlu2 %v584_v8, %s4148_s4  ;;  %v867_v8 = vstv %s3558_s29  ;;  %s3581_s29 = sld [smem:[#allocation9 + $0x3e]] }
 0x102   : > { %v868_v13 = vmul.f32 %v867_v8, %v4456_v48 }
 0x108   : > { %667 = vrot.lane.b32.xlu1 %v665_v15, %s4148_s4  ;;  %659 = vrot.lane.b32.xlu0 %v657_v16, %s4148_s4  ;;  %v828_v15 = vmul.f32 %v827_v12, %v4456_v48 }
 0x109   : > { %610 = vrot.lane.b32.xlu2 %v608_v17, %s4149_s9 }
 0x110   : > { %691 = vrot.lane.b32.xlu1 %v689_v22, %s4149_s9  ;;  %683 = vrot.lane.b32.xlu0 %v681_v23, %s4148_s4  ;;  %v900_v22 = vstv %s3564_s8  ;;  %v851_v23 = vstv %s3556_s10  ;;  %s3583_s8 = sld [smem:[#allocation9 + $0x86]] }
 0x111   : > { %634 = vrot.lane.b32.xlu2 %v632_v24, %s4149_s9  ;;  %v909_v24 = vmul.f32 %v908_v21, %v4499_v18  ;;  %v901_v26 = vmul.f32 %v900_v22, %v4499_v18  ;;  %v852_v27 = vmul.f32 %v851_v23, %v4456_v48  ;;  %s3579_s10 = sld [smem:[#allocation9 + $0x85]] }
 0x113   : > { %v4431_v25 = vpop.permute.xlu2 %334 }
 0x118   : > { %715 = vrot.lane.b32.xlu1 %v713_v29, %s4149_s9  ;;  %707 = vrot.lane.b32.xlu0 %v705_v30, %s4149_s9 }
 0x119   : > { %675 = vrot.lane.b32.xlu2 %v673_v31, %s4148_s4  ;;  %v932_v31 = vstv %s3568_s19  ;;  %s3591_s19 = sld [smem:[#allocation9 + $0x88]] }
 0x11a   : > { %v933_v36 = vmul.f32 %v932_v31, %v4499_v18 }
 0x11b   : > { %v4441_v33 = vpop.permute.xlu2 %342 }
 0x120   : > { %756 = vrot.lane.b32.xlu1 %v754_v37, %s4148_s4  ;;  %748 = vrot.lane.b32.xlu0 %v746_v38, %s4148_s4  ;;  %v925_v37 = vmul.f32 %v924_v34, %v4499_v18  ;;  %v876_v38 = vmul.f32 %v875_v35, %v4456_v48  ;;  %v1063_v34 = vstv %s3588_s11  ;;  %v1037_v35 = vstv %s3583_s8  ;;  %s3607_s11 = sld [smem:[#allocation9 + $0x8c]] }
 0x121   : > { %699 = vrot.lane.b32.xlu2 %v697_v40, %s4149_s9  ;;  %s3606_s8 = sld [smem:[#allocation9 + $0x68]] }
 0x123   : > { %v4449_v41 = vpop.permute.xlu2 %366 }
 0x127   : > { %v1192_v3 = vstv %s3606_s8  ;;  %s4670_s8 = sld [smem:[#allocation10 + $0x1]] }
 0x128   : > { %780 = vrot.lane.b32.xlu1 %v778_v45, %s4149_s9  ;;  %772 = vrot.lane.b32.xlu0 %v770_v46, %s4149_s9  ;;  %v948_v45 = vstv %s3570_s6  ;;  %v916_v46 = vstv %s3566_s27  ;;  %s3593_s6 = sld [smem:[#allocation9 + $0x41]] }
 0x129   : > { %740 = vrot.lane.b32.xlu2 %v738_v47, %s4148_s4  ;;  %v957_v47 = vmul.f32 %v956_v44, %v4499_v18  ;;  %v949_v49 = vmul.f32 %v948_v45, %v4499_v18  ;;  %v917_v54 = vmul.f32 %v916_v46, %v4499_v18  ;;  %s3589_s27 = sld [smem:[#allocation9 + $0x40]] }
 0x12a   : > { %v4459_v50 = vpop.permute.xlu1 %358  ;;  %v4461_v51 = vpop.permute.xlu0 %350 }
 0x12b   : > { %v4463_v53 = vpop.permute.xlu2 %390 }
 0x130   : > { %822 = vrot.lane.b32.xlu1 %v820_v55, %s4148_s4  ;;  %796 = vrot.lane.b32.xlu0 %v794_v57, %s4149_s9  ;;  %v4537_v57 = vld [vmem:[#allocation2 + $0x22] sm:$0xff] }
 0x131   : > { %764 = vrot.lane.b32.xlu2 %v762_v58, %s4148_s4  ;;  %6108 = vst [vmem:[#allocation18_spill] sm:$0xff] %v4537_v57  ;;  %v990_v2 = vmul.f32 %v989_v60, %v4537_v57 }
 0x132   : > { %v4471_v61 = vpop.permute.xlu1 %382  ;;  %v4473_v62 = vpop.permute.xlu0 %374 }
 0x133   : > { %v4475_v63 = vpop.permute.xlu2 %431 }
 0x138   : > { %846 = vrot.lane.b32.xlu1 %v844_v0, %s4148_s4  ;;  %838 = vrot.lane.b32.xlu0 %v836_v1, %s4148_s4  ;;  %v940_v0 = vstv %s3569_s30  ;;  %v998_v1 = vmul.f32 %v997_v59, %v4537_v57  ;;  %v1029_v59 = vstv %s3582_s1  ;;  %s3592_s30 = sld [smem:[#allocation9 + $0x1d]] }
 0x139   : > { %788 = vrot.lane.b32.xlu2 %v786_v4, %s4149_s9  ;;  %v941_v4 = vmul.f32 %v940_v0, %v4499_v18  ;;  %s3605_s1 = sld [smem:[#allocation9 + $0x44]] }
 0x13a   : > { %v4483_v5 = vpop.permute.xlu1 %423  ;;  %v4485_v6 = vpop.permute.xlu0 %415 }
 0x13b   : > { %v4487_v7 = vpop.permute.xlu2 %455 }
 0x140   : > { %870 = vrot.lane.b32.xlu1 %v868_v13, %s4149_s9  ;;  %862 = vrot.lane.b32.xlu0 %v860_v14, %s4149_s9  ;;  %v1021_v13 = vstv %s3581_s29  ;;  %v1013_v14 = vstv %s3580_s5  ;;  %s3604_s29 = sld [smem:[#allocation9 + $0x20]] }
 0x141   : > { %830 = vrot.lane.b32.xlu2 %v828_v15, %s4148_s4  ;;  %v981_v15 = vstv %s3576_s7  ;;  %v1022_v21 = vmul.f32 %v1021_v13, %v4537_v57  ;;  %v1014_v22 = vmul.f32 %v1013_v14, %v4537_v57  ;;  %v1111_v14 = vstv %s3594_s23  ;;  %s3603_s5 = sld [smem:[#allocation9 + $0x8b]] }
 0x142   : > { %v4495_v16 = vpop.permute.xlu1 %447  ;;  %v4497_v17 = vpop.permute.xlu0 %439  ;;  %v982_v23 = vmul.f32 %v981_v15, %v4537_v57  ;;  %v1103_v15 = vstv %s3593_s6  ;;  %s3595_s7 = sld [smem:[#allocation9 + $0x89]] }
 0x143   : > { %v4501_v19 = vpop.permute.xlu2 %496  ;;  %s4634_s23 = sld [smem:[#allocation9 + $0x48]] }
 0x144   : > { %s3617_s6 = sld [smem:[#allocation9 + $0x47]] }
 0x148   : > { %911 = vrot.lane.b32.xlu1 %v909_v24, %s4148_s4  ;;  %903 = vrot.lane.b32.xlu0 %v901_v26, %s4148_s4 }
 0x149   : > { %854 = vrot.lane.b32.xlu2 %v852_v27, %s4149_s9  ;;  %v4563_v27 = vld [vmem:[#allocation2 + $0x30] sm:$0xff] }
 0x14a   : > { %v4509_v28 = vpop.permute.xlu1 %471  ;;  %v4511_v29 = vpop.permute.xlu0 %463  ;;  %6109 = vst [vmem:[#allocation19_spill] sm:$0xff] %v4563_v27 }
 0x14b   : > { %v4513_v30 = vpop.permute.xlu2 %520 }
 0x150   : > { %935 = vrot.lane.b32.xlu1 %v933_v36, %s4149_s9  ;;  %927 = vrot.lane.b32.xlu0 %v925_v37, %s4148_s4  ;;  %v1005_v36 = vstv %s3579_s10  ;;  %v1064_v37 = vmul.f32 %v1063_v34, %v4563_v27  ;;  %s3602_s10 = sld [smem:[#allocation9 + $0x67]] }
 0x151   : > { %878 = vrot.lane.b32.xlu2 %v876_v38, %s4149_s9  ;;  %v1038_v38 = vmul.f32 %v1037_v35, %v4537_v57  ;;  %v1006_v44 = vmul.f32 %v1005_v36, %v4537_v57 }
 0x152   : > { %v4521_v40 = vpop.permute.xlu1 %512  ;;  %v4523_v42 = vpop.permute.xlu0 %504 }
 0x153   : > { %v4525_v43 = vpop.permute.xlu2 %544 }
 0x158   : > { %959 = vrot.lane.b32.xlu1 %v957_v47, %s4149_s9  ;;  %951 = vrot.lane.b32.xlu0 %v949_v49, %s4149_s9  ;;  %v1087_v49 = vstv %s3591_s19  ;;  %s3614_s19 = sld [smem:[#allocation9 + $0x6a]] }
 0x159   : > { %919 = vrot.lane.b32.xlu2 %v917_v54, %s4148_s4  ;;  %v1079_v54 = vstv %s3590_s20  ;;  %v1088_v60 = vmul.f32 %v1087_v49, %v4563_v27  ;;  %v1144_v49 = vstv %s3600_s22  ;;  %s3613_s20 = sld [smem:[#allocation9 + $0x46]] }
 0x15a   : > { %v4533_v55 = vpop.permute.xlu1 %536  ;;  %v4535_v56 = vpop.permute.xlu0 %528  ;;  %v1080_v0 = vmul.f32 %v1079_v54, %v4563_v27  ;;  %v1095_v54 = vstv %s3592_s30  ;;  %s4647_s22 = sld [smem:[#allocation10]] }
 0x15b   : > { %v4539_v58 = vpop.permute.xlu2 %586  ;;  %s4650_s30 = sld [smem:[#allocation10 + $0x2]] }
 0x160   : > { %1000 = vrot.lane.b32.xlu1 %v998_v1, %s4148_s4  ;;  %992 = vrot.lane.b32.xlu0 %v990_v2, %s4148_s4  ;;  %v1030_v1 = vmul.f32 %v1029_v59, %v4537_v57  ;;  %v1233_v57 = vstv %s3613_s20  ;;  %s4683_s20 = sld [smem:[#allocation10 + $0x3]] }
 0x161   : > { %943 = vrot.lane.b32.xlu2 %v941_v4, %s4149_s9 }
 0x162   : > { %v4547_v8 = vpop.permute.xlu1 %578  ;;  %v4549_v10 = vpop.permute.xlu0 %552 }
 0x163   : > { %v4551_v12 = vpop.permute.xlu2 %610 }
 0x168   : > { %1024 = vrot.lane.b32.xlu1 %v1022_v21, %s4149_s9  ;;  %1016 = vrot.lane.b32.xlu0 %v1014_v22, %s4149_s9  ;;  %v1071_v21 = vstv %s3589_s27  ;;  %v1112_v22 = vmul.f32 %v1111_v14, %v4563_v27  ;;  %s3616_s27 = sld [smem:[#allocation9 + $0x23]] }
 0x169   : > { %984 = vrot.lane.b32.xlu2 %v982_v23, %s4148_s4  ;;  %v1104_v23 = vmul.f32 %v1103_v15, %v4563_v27  ;;  %v1072_v34 = vmul.f32 %v1071_v21, %v4563_v27  ;;  %v1176_v21 = vstv %s3604_s29  ;;  %s4654_s29 = sld [smem:[#allocation9]] }
 0x16a   : > { %v4559_v24 = vpop.permute.xlu1 %602  ;;  %v4561_v26 = vpop.permute.xlu0 %594 }
 0x16b   : > { %v4565_v31 = vpop.permute.xlu2 %634 }
 0x170   : > { %1066 = vrot.lane.b32.xlu1 %v1064_v37, %s4148_s4  ;;  %1040 = vrot.lane.b32.xlu0 %v1038_v38, %s4149_s9  ;;  %v4601_v37 = vld [vmem:[#allocation2 + $0x31] sm:$0xff] }
 0x171   : > { %1008 = vrot.lane.b32.xlu2 %v1006_v44, %s4148_s4  ;;  %6110 = vst [vmem:[#allocation20_spill] sm:$0xff] %v4601_v37  ;;  %v1152_v44 = vstv %s3601_s28  ;;  %s3612_s28 = sld [smem:[#allocation9 + $0x22]] }
 0x172   : > { %v4573_v45 = vpop.permute.xlu1 %626  ;;  %v4575_v46 = vpop.permute.xlu0 %618  ;;  %v1153_v59 = vmul.f32 %v1152_v44, %v4601_v37 }
 0x173   : > { %v4577_v47 = vpop.permute.xlu2 %675 }
 0x178   : > { %1090 = vrot.lane.b32.xlu1 %v1088_v60, %s4148_s4  ;;  %1082 = vrot.lane.b32.xlu0 %v1080_v0, %s4148_s4  ;;  %v1145_v60 = vmul.f32 %v1144_v49, %v4601_v37  ;;  %v1096_v0 = vmul.f32 %v1095_v54, %v4563_v27 }
 0x179   : > { %1032 = vrot.lane.b32.xlu2 %v1030_v1, %s4149_s9 }
 0x17a   : > { %v4585_v2 = vpop.permute.xlu1 %667  ;;  %v4587_v4 = vpop.permute.xlu0 %659 }
 0x17b   : > { %v4589_v13 = vpop.permute.xlu2 %699 }
 0x180   : > { %1114 = vrot.lane.b32.xlu1 %v1112_v22, %s4149_s9  ;;  %1106 = vrot.lane.b32.xlu0 %v1104_v23, %s4149_s9  ;;  %v1168_v22 = vstv %s3603_s5  ;;  %v1119_v23 = vstv %s3595_s7  ;;  %s4657_s5 = sld [smem:[#allocation9 + $0x24]] }
 0x181   : > { %1074 = vrot.lane.b32.xlu2 %v1072_v34, %s4148_s4  ;;  %v1177_v34 = vmul.f32 %v1176_v21, %v4601_v37  ;;  %v1169_v44 = vmul.f32 %v1168_v22, %v4601_v37  ;;  %v1120_v49 = vmul.f32 %v1119_v23, %v4563_v27  ;;  %v1160_v21 = vstv %s3602_s10  ;;  %v4641_v27 = vld [vmem:[#allocation2 + $0x32] sm:$0xff]  ;;  %s4665_s7 = sld [smem:[#allocation9 + $0x8f]] }
 0x182   : > { %v4597_v35 = vpop.permute.xlu1 %691  ;;  %v4599_v36 = vpop.permute.xlu0 %683  ;;  %v1193_v23 = vmul.f32 %v1192_v3, %v4601_v37  ;;  %v1241_v3 = vstv %s3614_s19  ;;  %s4672_s10 = sld [smem:[#allocation9 + $0x4b]] }
 0x183   : > { %v4603_v38 = vpop.permute.xlu2 %740  ;;  %s4676_s19 = sld [smem:[#allocation9 + $0x6c]] }
 0x184   : > { %6111 = vst [vmem:[#allocation21_spill] sm:$0xff] %v4603_v38  ;;  %v305_v38 = vstv %s4670_s8  ;;  %s4794_s8 = sld [smem:[#allocation9 + $0x30]] }
 0x188   : > { %1155 = vrot.lane.b32.xlu1 %v1153_v59, %s4148_s4  ;;  %1147 = vrot.lane.b32.xlu0 %v1145_v60, %s4148_s4 }
 0x189   : > { %1098 = vrot.lane.b32.xlu2 %v1096_v0, %s4149_s9  ;;  %v1200_v0 = vstv %s3607_s11  ;;  %s4668_s11 = sld [smem:[#allocation9 + $0x8e]] }
 0x18a   : > { %v4611_v1 = vpop.permute.xlu1 %715  ;;  %v4613_v14 = vpop.permute.xlu0 %707  ;;  %v1201_v22 = vmul.f32 %v1200_v0, %v4601_v37 }
 0x18b   : > { %6112 = vst [vmem:[#allocation22_spill] sm:$0xff] %v4611_v1  ;;  %v4615_v15 = vpop.permute.xlu2 %764  ;;  %v311_v1 = vstv %s4683_s20  ;;  %s4816_s20 = sld [smem:[#allocation9 + $0x78]] }
 0x18c   : > { %6113 = vst [vmem:[#allocation23_spill] sm:$0xff] %v4615_v15 }
 0x190   : > { %1179 = vrot.lane.b32.xlu1 %v1177_v34, %s4149_s9  ;;  %1171 = vrot.lane.b32.xlu0 %v1169_v44, %s4148_s4  ;;  %v1161_v34 = vmul.f32 %v1160_v21, %v4601_v37  ;;  %v1184_v21 = vstv %s3605_s1  ;;  %s4688_s1 = sld [smem:[#allocation9 + $0x27]] }
 0x191   : > { %1122 = vrot.lane.b32.xlu2 %v1120_v49, %s4149_s9 }
 0x192   : > { %v4623_v54 = vpop.permute.xlu1 %756  ;;  %v4625_v59 = vpop.permute.xlu0 %748 }
 0x193   : > { %6114 = vst [vmem:[#allocation24_spill] sm:$0xff] %v4625_v59  ;;  %v4627_v60 = vpop.permute.xlu2 %788  ;;  %v302_v59 = vstv %s4647_s22  ;;  %s4736_s22 = sld [smem:[#allocation9 + $0x2a]] }
 0x194   : > { %6115 = vst [vmem:[#allocation25_spill] sm:$0xff] %v4627_v60 }
 0x198   : > { %1203 = vrot.lane.b32.xlu1 %v1201_v22, %s4149_s9  ;;  %1195 = vrot.lane.b32.xlu0 %v1193_v23, %s4149_s9  ;;  %v1242_v22 = vmul.f32 %v1241_v3, %v4641_v27  ;;  %v1234_v23 = vmul.f32 %v1233_v57, %v4641_v27 }
 0x199   : > { %1163 = vrot.lane.b32.xlu2 %v1161_v34, %s4148_s4  ;;  %v1185_v34 = vmul.f32 %v1184_v21, %v4601_v37  ;;  %v1265_v21 = vstv %s3617_s6  ;;  %v1257_v37 = vstv %s3616_s27  ;;  %s4700_s6 = sld [smem:[#allocation9 + $0x6b]] }
 0x19a   : > { %v4637_v44 = vpop.permute.xlu1 %780  ;;  %v4639_v49 = vpop.permute.xlu0 %772  ;;  %s4712_s27 = sld [smem:[#allocation9 + $0x4e]] }
 0x19b   : > { %6116 = vst [vmem:[#allocation26_spill] sm:$0xff] %v4637_v44  ;;  %v4643_v0 = vpop.permute.xlu2 %830 }
 0x19c   : > { %6117 = vst [vmem:[#allocation27_spill] sm:$0xff] %v4639_v49  ;;  %v1249_v49 = vstv %s4668_s11  ;;  %s3515_s11 = sld [smem:[#allocation9 + $0x75]] }
 0x19d   : > { %6118 = vst [vmem:[#allocation28_spill] sm:$0xff] %v4643_v0 }
 0x1a0   : > { %1244 = vrot.lane.b32.xlu1 %v1242_v22, %s4148_s4  ;;  %1236 = vrot.lane.b32.xlu0 %v1234_v23, %s4148_s4  ;;  %v323_v22 = vstv %s4634_s23  ;;  %v1225_v23 = vstv %s3612_s28  ;;  %s4694_s23 = sld [smem:[#allocation9 + $0x3]] }
 0x1a1   : > { %1187 = vrot.lane.b32.xlu2 %v1185_v34, %s4149_s9  ;;  %v1266_v34 = vmul.f32 %v1265_v21, %v4641_v27  ;;  %v1226_v18 = vmul.f32 %v1225_v23, %v4641_v27  ;;  %v319_v21 = vstv %s4657_s5  ;;  %s4725_s28 = sld [smem:[#allocation9 + $0x6f]] }
 0x1a2   : > { %v4659_v3 = vpop.permute.xlu1 %822  ;;  %v4661_v57 = vpop.permute.xlu0 %796  ;;  %v320_v44 = vmul.f32 %v319_v21, %v4346_v9  ;;  %s4767_s5 = sld [smem:[#allocation9 + $0x9]] }
 0x1a3   : > { %6119 = vst [vmem:[#allocation29_spill] sm:$0xff] %v4659_v3  ;;  %v4663_v0 = vpop.permute.xlu2 %854  ;;  %v308_v3 = vstv %s4650_s30  ;;  %s4746_s30 = sld [smem:[#allocation9 + $0x51]] }
 0x1a4   : > { %6120 = vst [vmem:[#allocation30_spill] sm:$0xff] %v4661_v57  ;;  %v1258_v57 = vmul.f32 %v1257_v37, %v4641_v27  ;;  %v315_v37 = vstv %s4654_s29  ;;  %s4755_s29 = sld [smem:[#allocation9 + $0x72]] }
 0x1a5   : > { %6121 = vst [vmem:[#allocation31_spill] sm:$0xff] %v4663_v0  ;;  %v324_v0 = vmul.f32 %v323_v22, %v4346_v9 }
 0x1a7   : > { %v325_v15 = vadd.f32 %v324_v0, %v308_v3  ;;  %v327_v3 = vstv %s4676_s19  ;;  %s4810_s19 = sld [smem:[#allocation9 + $0x57]] }
 0x1a8   : > { %1268 = vrot.lane.b32.xlu1 %v1266_v34, %s4149_s9  ;;  %1260 = vrot.lane.b32.xlu0 %v1258_v57, %s4149_s9  ;;  %v1281_v34 = vstv %s4665_s7  ;;  %v328_v21 = vmul.f32 %v327_v3, %v4346_v9  ;;  %s4775_s7 = sld [smem:[#allocation9 + $0x54]] }
 0x1a9   : > { %1228 = vrot.lane.b32.xlu2 %v1226_v18, %s4148_s4  ;;  %v316_v18 = vmul.f32 %v315_v37, %v4346_v9  ;;  %v353_v48 = vadd.f32 %v4461_v51, %v325_v15  ;;  %v1282_v0 = vmul.f32 %v1281_v34, %v4641_v27  ;;  %v321_v51 = vadd.f32 %v320_v44, %v305_v38 }
 0x1aa   : > { %v4690_v22 = vpop.permute.xlu1 %846  ;;  %v4692_v23 = vpop.permute.xlu0 %838  ;;  %v396_v44 = vstv %s4694_s23  ;;  %v1273_v9 = vstv %s4700_s6  ;;  %s4825_s23 = sld [smem:[#allocation9 + $0x33]] }
 0x1ab   : > { %6122 = vst [vmem:[#allocation32_spill] sm:$0xff] %v4690_v22  ;;  %v4696_v57 = vpop.permute.xlu2 %878  ;;  %v404_v22 = vstv %s4672_s10  ;;  %v317_v37 = vadd.f32 %v316_v18, %v302_v59  ;;  %v400_v59 = vstv %s4688_s1  ;;  %v329_v18 = vadd.f32 %v328_v21, %v311_v1  ;;  %s4796_s10 = sld [smem:[#allocation9 + $0xc]] }
 0x1ac   : > { %6123 = vst [vmem:[#allocation33_spill] sm:$0xff] %v4692_v23  ;;  %v385_v23 = vadd.f32 %v4471_v61, %v353_v48  ;;  %v405_v15 = vmul.f32 %v404_v22, %v4361_v20  ;;  %s4821_s1 = sld [smem:[#allocation9 + $0xf]] }
 0x1ad   : > { %6124 = vst [vmem:[#allocation34_spill] sm:$0xff] %v4696_v57  ;;  %v1250_v57 = vmul.f32 %v1249_v49, %v4641_v27  ;;  %v337_v61 = vadd.f32 %v4431_v25, %v317_v37  ;;  %v345_v49 = vadd.f32 %v4441_v33, %v321_v51  ;;  %v401_v33 = vmul.f32 %v400_v59, %v4361_v20  ;;  %s4839_s6 = sld [smem:[#allocation9 + $0x5a]] }
 0x1ae   : > { %v406_v60 = vadd.f32 %v405_v15, %v385_v23  ;;  %v397_v23 = vmul.f32 %v396_v44, %v4361_v20  ;;  %v361_v3 = vadd.f32 %v4459_v50, %v329_v18  ;;  %v485_v37 = vstv %s4712_s27  ;;  %s3539_s27 = sld [smem:[#allocation9 + $0x7b]] }
 0x1af   : > { %v369_v22 = vadd.f32 %v4449_v41, %v337_v61  ;;  %v408_v50 = vstv %s4725_s28  ;;  %v486_v21 = vmul.f32 %v485_v37, %v4381_v39  ;;  %s4848_s28 = sld [smem:[#allocation9 + $0x36]] }
 0x1b0   : > { %1284 = vrot.lane.b32.xlu0 %v1282_v0, %s4149_s9  ;;  %v434_v25 = vadd.f32 %v4475_v63, %v406_v60  ;;  %v1274_v0 = vmul.f32 %v1273_v9, %v4641_v27 }
 0x1b1   : > { %1252 = vrot.lane.b32.xlu2 %v1250_v57, %s4148_s4  ;;  %s4731_s4 = sld [smem:[#allocation9 + $0x6]]  ;;  %v377_v57 = vadd.f32 %v4473_v62, %v345_v49  ;;  %v398_v41 = vadd.f32 %v397_v23, %v369_v22 }
 0x1b2   : > { %v4718_v34 = vpop.permute.xlu1 %870  ;;  %v4720_v48 = vpop.permute.xlu0 %862  ;;  %v466_v62 = vadd.f32 %v4511_v29, %v434_v25  ;;  %v393_v29 = vadd.f32 %v4463_v53, %v361_v3 }
 0x1b3   : > { %v4727_v38 = vpop.permute.xlu2 %919  ;;  %v402_v51 = vadd.f32 %v401_v33, %v377_v57  ;;  %v418_v15 = vadd.f32 %v4485_v6, %v398_v41  ;;  %v481_v6 = vstv %s4736_s22  ;;  %v567_v33 = vstv %s4746_s30  ;;  %s4866_s22 = sld [smem:[#allocation9 + $0x5d]] }
 0x1b4   : > { %v487_v44 = vadd.f32 %v486_v21, %v466_v62  ;;  %v482_v25 = vmul.f32 %v481_v6, %v4381_v39  ;;  %v568_v41 = vmul.f32 %v567_v33, %v4394_v52  ;;  %s4872_s30 = sld [smem:[#allocation9 + $0x7e]] }
 0x1b5   : > { %v426_v60 = vadd.f32 %v4483_v5, %v402_v51  ;;  %v450_v59 = vadd.f32 %v4495_v16, %v418_v15  ;;  %v409_v5 = vmul.f32 %v408_v50, %v4361_v20  ;;  %v559_v15 = vstv %s4767_s5  ;;  %s4894_s5 = sld [smem:[#allocation9 + $0x60]] }
 0x1b6   : > { %v515_v57 = vadd.f32 %v4521_v40, %v487_v44 }
 0x1b7   : > { %v477_v49 = vstv %s4731_s4  ;;  %v458_v9 = vadd.f32 %v4487_v7, %v426_v60  ;;  %v410_v18 = vadd.f32 %v409_v5, %v393_v29  ;;  %v489_v7 = vstv %s4755_s29  ;;  %s4852_s4 = sld [smem:[#allocation9 + $0x12]] }
 0x1b8   : > { %v478_v22 = vmul.f32 %v477_v49, %v4381_v39  ;;  %v547_v3 = vadd.f32 %v4525_v43, %v515_v57  ;;  %v490_v62 = vmul.f32 %v489_v7, %v4381_v39  ;;  %v648_v49 = vstv %s4775_s7  ;;  %s4884_s29 = sld [smem:[#allocation9 + $0x39]] }
 0x1b9   : > { %1276 = vrot.lane.b32.xlu2 %v1274_v0, %s4149_s9  ;;  %s4763_s9 = sld [smem:[#allocation9 + $0x2d]]  ;;  %v442_v16 = vadd.f32 %v4497_v17, %v410_v18  ;;  %v483_v0 = vadd.f32 %v482_v25, %v458_v9  ;;  %v644_v25 = vstv %s4794_s8 }
 0x1ba   : > { %v4748_v63 = vpop.permute.xlu1 %911  ;;  %v4750_v1 = vpop.permute.xlu0 %903  ;;  %v479_v53 = vadd.f32 %v478_v22, %v450_v59  ;;  %v569_v21 = vadd.f32 %v568_v41, %v547_v3  ;;  %v649_v22 = vmul.f32 %v648_v49, %v4416_v11  ;;  %s4905_s7 = sld [smem:[#allocation9 + $0x81]] }
 0x1bb   : > { %v4758_v61 = vpop.permute.xlu2 %943  ;;  %v474_v37 = vadd.f32 %v4509_v28, %v442_v16  ;;  %v507_v17 = vadd.f32 %v4523_v42, %v483_v0  ;;  %v560_v42 = vmul.f32 %v559_v15, %v4394_v52  ;;  %v640_v16 = vstv %s4796_s10  ;;  %s4915_s8 = sld [smem:[#allocation9 + $0x3c]] }
 0x1bc   : > { %v499_v51 = vadd.f32 %v4501_v19, %v479_v53  ;;  %v597_v29 = vadd.f32 %v4561_v26, %v569_v21  ;;  %v571_v26 = vstv %s3515_s11  ;;  %v641_v0 = vmul.f32 %v640_v16, %v4416_v11  ;;  %s4911_s11 = sld [smem:[#allocation9 + $0x18]] }
 0x1bd   : > { %v539_v50 = vadd.f32 %v4533_v55, %v507_v17  ;;  %v491_v28 = vadd.f32 %v490_v62, %v474_v37  ;;  %v652_v62 = vstv %s4816_s20  ;;  %v725_v21 = vstv %s4825_s23  ;;  %s4923_s10 = sld [smem:[#allocation9 + $0x63]] }
 0x1be   : > { %v531_v43 = vadd.f32 %v4535_v56, %v499_v51  ;;  %v629_v44 = vadd.f32 %v4573_v45, %v597_v29  ;;  %v572_v45 = vmul.f32 %v571_v26, %v4394_v52  ;;  %v803_v16 = vstv %s4852_s4  ;;  %s4938_s20 = sld [smem:[#allocation9 + $0x3f]] }
 0x1bf   : > { %v563_v60 = vstv %s4763_s9  ;;  %v523_v6 = vadd.f32 %v4513_v30, %v491_v28  ;;  %s3560_s9 = sld [smem:[#allocation9 + $0x15]] }
 0x1c0   : > { %v564_v19 = vmul.f32 %v563_v60, %v4394_v52  ;;  %v561_v56 = vadd.f32 %v560_v42, %v531_v43  ;;  %v650_v53 = vadd.f32 %v649_v22, %v629_v44  ;;  %v645_v52 = vmul.f32 %v644_v25, %v4416_v11  ;;  %s4950_s23 = sld [smem:[#allocation9 + $0x66]] }
 0x1c1   : > { %v555_v57 = vadd.f32 %v4549_v10, %v523_v6  ;;  %v807_v25 = vstv %s4848_s28  ;;  %s4971_s28 = sld [smem:[#allocation9 + $0x1e]] }
 0x1c2   : > { %v4777_v20 = vpop.permute.xlu1 %935  ;;  %v4779_v23 = vpop.permute.xlu0 %927  ;;  %v565_v55 = vadd.f32 %v564_v19, %v539_v50  ;;  %v581_v9 = vadd.f32 %v4547_v8, %v561_v56  ;;  %v678_v7 = vadd.f32 %v4577_v47, %v650_v53  ;;  %v721_v50 = vstv %s4821_s1  ;;  %v6129_v53 = vld [vmem:[#allocation16_spill] sm:$0xff]  ;;  %s4942_s1 = sld [smem:[#allocation9 + $0x1b]] }
 0x1c3   : > { %v4783_v40 = vpop.permute.xlu2 %984  ;;  %v573_v33 = vadd.f32 %v572_v45, %v555_v57  ;;  %v733_v56 = vstv %s3539_s27  ;;  %v6128_v57 = vld [vmem:[#allocation24_spill] sm:$0xff]  ;;  %s4969_s27 = sld [smem:[#allocation9 + $0x42]] }
 0x1c4   : > { %v589_v18 = vadd.f32 %v4539_v58, %v565_v55  ;;  %v613_v30 = vadd.f32 %v4551_v12, %v581_v9  ;;  %v710_v17 = vadd.f32 %v4613_v14, %v678_v7  ;;  %v653_v14 = vmul.f32 %v652_v62, %v4416_v11  ;;  %v6126_v9 = vld [vmem:[#allocation22_spill] sm:$0xff]  ;;  %s4982_s4 = sld [smem:[#allocation9 + $0x69]] }
 0x1c5   : > { %v605_v12 = vadd.f32 %v4559_v24, %v573_v33  ;;  %v726_v11 = vmul.f32 %v725_v21, %v4439_v32  ;;  %v811_v55 = vstv %s4839_s6  ;;  %v6130_v33 = vld [vmem:[#allocation26_spill] sm:$0xff]  ;;  %v815_v21 = vstv %s4872_s30  ;;  %s3587_s6 = sld [smem:[#allocation9 + $0x87]] }
 0x1c6   : > { %v621_v8 = vadd.f32 %v4575_v46, %v589_v18  ;;  %v729_v46 = vstv %s4810_s19  ;;  %v642_v51 = vadd.f32 %v641_v0, %v613_v30  ;;  %v812_v45 = vmul.f32 %v811_v55, %v6129_v53  ;;  %s4930_s19 = sld [smem:[#allocation9 + $0x84]] }
 0x1c7   : > { %v730_v60 = vmul.f32 %v729_v46, %v4439_v32  ;;  %v637_v15 = vadd.f32 %v4565_v31, %v605_v12  ;;  %v722_v31 = vmul.f32 %v721_v50, %v4439_v32  ;;  %v6133_v50 = vld [vmem:[#allocation23_spill] sm:$0xff]  ;;  %s4993_s30 = sld [smem:[#allocation9 + $0x21]] }
 0x1c8   : > { %v646_v37 = vadd.f32 %v645_v52, %v621_v8  ;;  %v662_v47 = vadd.f32 %v4587_v4, %v642_v51  ;;  %v6131_v52 = vld [vmem:[#allocation27_spill] sm:$0xff]  ;;  %v804_v51 = vmul.f32 %v803_v16, %v6129_v53 }
 0x1c9   : > { %v731_v43 = vadd.f32 %v730_v60, %v710_v17  ;;  %v654_v42 = vadd.f32 %v653_v14, %v637_v15  ;;  %v6132_v17 = vld [vmem:[#allocation33_spill] sm:$0xff] }
 0x1ca   : > { %v4802_v39 = vpop.permute.xlu1 %959  ;;  %v4804_v59 = vpop.permute.xlu0 %951  ;;  %v670_v41 = vadd.f32 %v4585_v2, %v646_v37  ;;  %v694_v24 = vadd.f32 %v4597_v35, %v662_v47  ;;  %v892_v47 = vstv %s4866_s22  ;;  %s4990_s22 = sld [smem:[#allocation9 + $0x8a]] }
 0x1cb   : > { %v4807_v5 = vpop.permute.xlu2 %1008  ;;  %v759_v19 = vadd.f32 %v4623_v54, %v731_v43  ;;  %v686_v49 = vadd.f32 %v4599_v36, %v654_v42  ;;  %v6127_v54 = vld [vmem:[#allocation21_spill] sm:$0xff]  ;;  %v734_v36 = vmul.f32 %v733_v56, %v4439_v32  ;;  %v808_v32 = vmul.f32 %v807_v25, %v6129_v53 }
 0x1cc   : > { %v702_v28 = vadd.f32 %v4589_v13, %v670_v41  ;;  %v723_v29 = vadd.f32 %v722_v31, %v694_v24  ;;  %v6125_v13 = vld [vmem:[#allocation25_spill] sm:$0xff]  ;;  %v973_v25 = vstv %s4894_s5  ;;  %s4150_s5 = smov 123  }
 0x1cd   : > { %v791_v6 = vadd.f32 %v6125_v13, %v759_v19  ;;  %v718_v26 = vadd.f32 %v6126_v9, %v686_v49  ;;  %v6134_v43 = vld [vmem:[#allocation29_spill] sm:$0xff]  ;;  %v6136_v19 = vld [vmem:[#allocation30_spill] sm:$0xff]  ;;  %v6137_v49 = vld [vmem:[#allocation28_spill] sm:$0xff]  ;;  %v888_v13 = vstv %s4884_s29  ;;  %s4999_s29 = sld [smem:[#allocation9 + $0x45]] }
 0x1ce   : > { %v727_v44 = vadd.f32 %v726_v11, %v702_v28  ;;  %v743_v22 = vadd.f32 %v6127_v54, %v723_v29  ;;  %v6135_v28 = vld [vmem:[#allocation17_spill] sm:$0xff]  ;;  %v6138_v9 = vld [vmem:[#allocation31_spill] sm:$0xff] }
 0x1cf   : > { %v813_v12 = vadd.f32 %v812_v45, %v791_v6  ;;  %v735_v37 = vadd.f32 %v734_v36, %v718_v26  ;;  %v893_v31 = vmul.f32 %v892_v47, %v6135_v28  ;;  %v884_v6 = vstv %s3560_s9  ;;  %v6139_v36 = vld [vmem:[#allocation32_spill] sm:$0xff]  ;;  %s5021_s9 = sld [smem:[#allocation9 + $0x8d]] }
 0x1d0   : > { %v751_v18 = vadd.f32 %v6128_v57, %v727_v44  ;;  %v775_v0 = vadd.f32 %v6131_v52, %v743_v22  ;;  %v816_v44 = vmul.f32 %v815_v21, %v6129_v53  ;;  %v885_v45 = vmul.f32 %v884_v6, %v6135_v28 }
 0x1d1   : > { %v841_v41 = vadd.f32 %v6132_v17, %v813_v12  ;;  %v767_v24 = vadd.f32 %v6133_v50, %v735_v37  ;;  %v896_v12 = vstv %s4905_s7  ;;  %v6140_v37 = vld [vmem:[#allocation18_spill] sm:$0xff]  ;;  %v1055_v21 = vstv %s4923_s10  ;;  %s3630_s7 = sld [smem:[#allocation9 + $0xd9]] }
 0x1d2   : > { %v4827_v10 = vpop.permute.xlu1 %1000  ;;  %v4829_v58 = vpop.permute.xlu0 %992  ;;  %v783_v7 = vadd.f32 %v6130_v33, %v751_v18  ;;  %v805_v60 = vadd.f32 %v804_v51, %v775_v0  ;;  %v889_v18 = vmul.f32 %v888_v13, %v6135_v28  ;;  %v6141_v17 = vld [vmem:[#allocation34_spill] sm:$0xff]  ;;  %v1051_v6 = vstv %s4938_s20  ;;  %s3633_s10 = sld [smem:[#allocation9 + $0xb6]] }
 0x1d3   : > { %v4834_v3 = vpop.permute.xlu2 %1032  ;;  %v873_v15 = vadd.f32 %v4718_v34, %v841_v41  ;;  %v799_v42 = vadd.f32 %v6136_v19, %v767_v24  ;;  %v965_v41 = vstv %s4911_s11  ;;  %s3629_s11 = sld [smem:[#allocation9 + $0xb5]] }
 0x1d4   : > { %v809_v62 = vadd.f32 %v808_v32, %v783_v7  ;;  %v825_v14 = vadd.f32 %v6134_v43, %v805_v60  ;;  %v974_v32 = vmul.f32 %v973_v25, %v6140_v37  ;;  %s3631_s20 = sld [smem:[#allocation9 + $0xfd]] }
 0x1d5   : > { %v894_v56 = vadd.f32 %v893_v31, %v873_v15  ;;  %v817_v22 = vadd.f32 %v816_v44, %v799_v42  ;;  %v966_v15 = vmul.f32 %v965_v41, %v6140_v37 }
 0x1d6   : > { %v833_v55 = vadd.f32 %v6137_v49, %v809_v62  ;;  %v857_v26 = vadd.f32 %v6138_v9, %v825_v14  ;;  %v1047_v9 = vstv %s4942_s1  ;;  %s4151_s1 = smov 125  }
 0x1d7   : > { %v922_v57 = vadd.f32 %v4727_v38, %v894_v56  ;;  %v849_v53 = vadd.f32 %v6139_v36, %v817_v22  ;;  %v6142_v56 = vld [vmem:[#allocation19_spill] sm:$0xff] }
 0x1d8   : > { %v865_v54 = vadd.f32 %v4720_v48, %v833_v55  ;;  %v886_v33 = vadd.f32 %v885_v45, %v857_v26  ;;  %v1056_v44 = vmul.f32 %v1055_v21, %v6142_v56 }
 0x1d9   : > { %v954_v7 = vadd.f32 %v4804_v59, %v922_v57  ;;  %v881_v59 = vadd.f32 %v6141_v17, %v849_v53  ;;  %v1136_v57 = vstv %s4950_s23  ;;  %s3640_s23 = sld [smem:[#allocation9 + $0x94]] }
 0x1da   : > { %v4854_v2 = vpop.permute.xlu1 %1024  ;;  %v4856_v4 = vpop.permute.xlu0 %1016  ;;  %v890_v16 = vadd.f32 %v889_v18, %v865_v54  ;;  %v906_v0 = vadd.f32 %v4750_v1, %v886_v33  ;;  %v969_v1 = vstv %s4915_s8  ;;  %s3628_s8 = sld [smem:[#allocation9 + $0x91]] }
 0x1db   : > { %v4861_v35 = vpop.permute.xlu2 %1074  ;;  %v975_v62 = vadd.f32 %v974_v32, %v954_v7  ;;  %v970_v14 = vmul.f32 %v969_v1, %v6140_v37  ;;  %v6143_v7 = vld [vmem:[#allocation20_spill] sm:$0xff]  ;;  %v1132_v32 = vstv %s4969_s27  ;;  %s3634_s27 = sld [smem:[#allocation9 + $0xda]] }
 0x1dc   : > { %v914_v38 = vadd.f32 %v4748_v63, %v890_v16  ;;  %v938_v47 = vadd.f32 %v4777_v20, %v906_v0  ;;  %v897_v63 = vmul.f32 %v896_v12, %v6135_v28  ;;  %v1059_v16 = vstv %s3587_s6  ;;  %s3635_s6 = sld [smem:[#allocation9 + $0xfe]] }
 0x1dd   : > { %v1003_v50 = vadd.f32 %v4827_v10, %v975_v62  ;;  %v1060_v12 = vmul.f32 %v1059_v16, %v6142_v56 }
 0x1de   : > { %v946_v60 = vadd.f32 %v4758_v61, %v914_v38  ;;  %v898_v24 = vadd.f32 %v897_v63, %v881_v59  ;;  %v967_v43 = vadd.f32 %v966_v15, %v938_v47  ;;  %v977_v61 = vstv %s4930_s19  ;;  %s3632_s19 = sld [smem:[#allocation9 + $0x92]] }
 0x1df   : > { %v1035_v42 = vadd.f32 %v4834_v3, %v1003_v50  ;;  %v978_v13 = vmul.f32 %v977_v61, %v6140_v37  ;;  %v1217_v63 = vstv %s4982_s4  ;;  %v1213_v61 = vstv %s4999_s29  ;;  %s3643_s4 = sld [smem:[#allocation9 + $0x100]] }
 0x1e0   : > { %v930_v20 = vadd.f32 %v4779_v23, %v898_v24  ;;  %v971_v19 = vadd.f32 %v970_v14, %v946_v60  ;;  %v987_v23 = vadd.f32 %v4783_v40, %v967_v43  ;;  %v1052_v40 = vmul.f32 %v1051_v6, %v6142_v56  ;;  %s3646_s29 = sld [smem:[#allocation9 + $0xdd]] }
 0x1e1   : > { %v1057_v54 = vadd.f32 %v1056_v44, %v1035_v42  ;;  %v1140_v24 = vstv %s4990_s22  ;;  %v1209_v14 = vstv %s4993_s30  ;;  %v1214_v44 = vmul.f32 %v1213_v61, %v4641_v27  ;;  %s3642_s22 = sld [smem:[#allocation9 + $0xdc]] }
 0x1e2   : > { %v4878_v30 = vpop.permute.xlu1 %1066  ;;  %v4880_v8 = vpop.permute.xlu0 %1040  ;;  %v962_v49 = vadd.f32 %v4802_v39, %v930_v20  ;;  %v995_v55 = vadd.f32 %v4829_v58, %v971_v19  ;;  %v1019_v3 = vadd.f32 %v4856_v4, %v987_v23  ;;  %v1048_v58 = vmul.f32 %v1047_v9, %v6142_v56  ;;  %s3641_s30 = sld [smem:[#allocation9 + $0xb8]] }
 0x1e3   : > { %v4886_v46 = vpop.permute.xlu2 %1098  ;;  %v1210_v42 = vmul.f32 %v1209_v14, %v4641_v27  ;;  %v1221_v6 = vstv %s5021_s9  ;;  %s3645_s9 = sld [smem:[#allocation9 + $0xb9]] }
 0x1e4   : > { %v1027_v26 = vadd.f32 %v4854_v2, %v995_v55  ;;  %v979_v39 = vadd.f32 %v978_v13, %v962_v49  ;;  %v1049_v4 = vadd.f32 %v1048_v58, %v1019_v3  ;;  %v1222_v58 = vmul.f32 %v1221_v6, %v4641_v27 }
 0x1e6   : > { %v1053_v2 = vadd.f32 %v1052_v40, %v1027_v26  ;;  %v1011_v25 = vadd.f32 %v4807_v5, %v979_v39  ;;  %v1069_v33 = vadd.f32 %v4878_v30, %v1049_v4 }
 0x1e8   : > { %v1043_v38 = vadd.f32 %v4880_v8, %v1011_v25  ;;  %v1077_v0 = vadd.f32 %v4861_v35, %v1053_v2  ;;  %v1101_v5 = vadd.f32 %v4886_v46, %v1069_v33  ;;  %v6144_v8 = vmov 0.0  }
 0x1e9   : > { %251 = vst.msk [vmem:[#allocation3 + $0x10] sm:$0xff] %vm247_vm6, %v6144_v8  ;;  %v1133_v46 = vmul.f32 %v1132_v32, %v6143_v7  ;;  %v1362_v32 = vstv %s3629_s11  ;;  %v1443_v14 = vstv %s3641_s30  ;;  %v1475_v61 = vstv %s3645_s9  ;;  %s3652_s11 = sld [smem:[#allocation9 + $0x97]] }
 0x1ea   : > { %v4900_v29 = vpop.permute.xlu1 %1090  ;;  %v4902_v11 = vpop.permute.xlu0 %1082  ;;  %v1061_v35 = vadd.f32 %v1060_v12, %v1043_v38  ;;  %252 = vst.msk [vmem:[#allocation3 + $0x18] sm:$0x3] %vm249_vm7, %v6144_v8  ;;  %s3664_s30 = sld [smem:[#allocation9 + $0x9a]] }
 0x1eb   : > { %v4907_v34 = vpop.permute.xlu2 %1122  ;;  %v1085_v22 = vadd.f32 %v4902_v11, %v1057_v54  ;;  %v1137_v11 = vmul.f32 %v1136_v57, %v6143_v7  ;;  %261 = vst.msk [vmem:[#allocation3 + $0x10] sm:$0xff] %vm257_vm8, %v6144_v8  ;;  %s3668_s9 = sld [smem:[#allocation9 + $0x9b]] }
 0x1ec   : > { %v1093_v62 = vadd.f32 %v4900_v29, %v1061_v35  ;;  %262 = vst.msk [vmem:[#allocation3 + $0x18] sm:$0x3] %vm259_vm9, %v6144_v8  ;;  %v1218_v29 = vmul.f32 %v1217_v63, %v4641_v27 }
 0x1ed   : > { %269 = vst.msk [vmem:[#allocation3 + $0x10] sm:$0x1] %vm267_vm10, %v6144_v8 }
 0x1ee   : > { %273 = vst.msk [vmem:[#allocation3 + $0x19] sm:$0x1] %vm267_vm10, %v6144_v8  ;;  %v1125_v43 = vadd.f32 %v4907_v34, %v1093_v62 }
 0x1ef   : > { %248 = vst.msk [vmem:[#allocation3] sm:$0xff] %vm247_vm6, %v6144_v8 }
 0x1f0   : > { %250 = vst.msk [vmem:[#allocation3 + $0x8] sm:$0x3] %vm249_vm7, %v6144_v8 }
 0x1f1   : > { %253 = vst.msk [vmem:[#allocation3 + $0x20] sm:$0xff] %vm247_vm6, %v6144_v8 }
 0x1f2   : > { %v1115_v48 = vpop.permute.xlu1 %1114  ;;  %v4925_v52 = vpop.permute.xlu0 %1106  ;;  %254 = vst.msk [vmem:[#allocation3 + $0x28] sm:$0x3] %vm249_vm7, %v6144_v8 }
 0x1f3   : > { %v4933_v51 = vpop.permute.xlu2 %1163  ;;  %v1117_v36 = vadd.f32 %v1115_v48, %v1085_v22  ;;  %v1128_v48 = vstv %s4971_s28  ;;  %v1109_v30 = vadd.f32 %v4925_v52, %v1077_v0  ;;  %255 = vst.msk [vmem:[#allocation3 + $0x30] sm:$0xff] %vm247_vm6, %v6144_v8  ;;  %s4152_s28 = smov 122  }
 0x1f4   : > { %v1129_v52 = vmul.f32 %v1128_v48, %v6143_v7  ;;  %256 = vst.msk [vmem:[#allocation3 + $0x38] sm:$0x3] %vm249_vm7, %v6144_v8  ;;  %v1354_v48 = vstv %s3628_s8  ;;  %s3647_s8 = sld [smem:[#allocation9 + $0x101]] }
 0x1f5   : > { %v1138_v37 = vadd.f32 %v1137_v11, %v1117_v36  ;;  %v1134_v1 = vadd.f32 %v1133_v46, %v1109_v30  ;;  %263 = vst.msk [vmem:[#allocation3 + $0x20] sm:$0xff] %vm257_vm8, %v6144_v8  ;;  %v1378_v46 = vstv %s3631_s20  ;;  %s3654_s20 = sld [smem:[#allocation9 + $0xdf]] }
 0x1f6   : > { %v1130_v60 = vadd.f32 %v1129_v52, %v1101_v5  ;;  %264 = vst.msk [vmem:[#allocation3 + $0x28] sm:$0x3] %vm259_vm9, %v6144_v8 }
 0x1f7   : > { %v1166_v41 = vadd.f32 %v4933_v51, %v1138_v37  ;;  %270 = vst.msk [vmem:[#allocation3 + $0x20] sm:$0x1] %vm267_vm10, %v6144_v8  ;;  %v1370_v37 = vstv %s3630_s7  ;;  %s3653_s7 = sld [smem:[#allocation9 + $0xbb]] }
 0x1f8   : > { %274 = vst.msk [vmem:[#allocation3 + $0x29] sm:$0x1] %vm267_vm10, %v6144_v8 }
 0x1f9   : > { %258 = vst.msk [vmem:[#allocation3] sm:$0xff] %vm257_vm8, %v6144_v8 }
 0x1fa   : > { %v4952_v28 = vpop.permute.xlu1 %1155  ;;  %v4954_v31 = vpop.permute.xlu0 %1147  ;;  %260 = vst.msk [vmem:[#allocation3 + $0x8] sm:$0x3] %vm259_vm9, %v6144_v8 }
 0x1fb   : > { %v4958_v10 = vpop.permute.xlu2 %1187  ;;  %v1158_v51 = vadd.f32 %v4952_v28, %v1134_v1  ;;  %v1150_v50 = vadd.f32 %v4954_v31, %v1130_v60  ;;  %v1141_v28 = vmul.f32 %v1140_v24, %v6143_v7  ;;  %265 = vst.msk [vmem:[#allocation3 + $0x30] sm:$0xff] %vm257_vm8, %v6144_v8  ;;  %v1435_v1 = vstv %s3640_s23  ;;  %s3659_s23 = sld [smem:[#allocation9 + $0x104]] }
 0x1fc   : > { %266 = vst.msk [vmem:[#allocation3 + $0x38] sm:$0x3] %vm259_vm9, %v6144_v8  ;;  %v1410_v60 = vstv %s3635_s6  ;;  %s3658_s6 = sld [smem:[#allocation9 + $0xe0]] }
 0x1fd   : > { %v1190_v34 = vadd.f32 %v4958_v10, %v1158_v51  ;;  %v1142_v23 = vadd.f32 %v1141_v28, %v1125_v43  ;;  %268 = vst.msk [vmem:[#allocation3] sm:$0x1] %vm267_vm10, %v6144_v8  ;;  %v1451_v43 = vstv %s3642_s22  ;;  %s3665_s22 = sld [smem:[#allocation9 + $0xbe]] }
 0x1fe   : > { %272 = vst.msk [vmem:[#allocation3 + $0x9] sm:$0x1] %vm267_vm10, %v6144_v8 }
 0x1ff   : > { %v1215_v9 = vadd.f32 %v1214_v44, %v1190_v34  ;;  %271 = vst.msk [vmem:[#allocation3 + $0x30] sm:$0x1] %vm267_vm10, %v6144_v8  ;;  %v1491_v44 = vstv %s3647_s8  ;;  %s3670_s8 = sld [smem:[#allocation9 + $0xe3]] }
 0x200   : > { %275 = vst.msk [vmem:[#allocation3 + $0x39] sm:$0x1] %vm267_vm10, %v6144_v8 }
 0x202   : > { %v1180_v18 = vpop.permute.xlu1 %1179  ;;  %v4977_v45 = vpop.permute.xlu0 %1171 }
 0x203   : > { %v4979_v53 = vpop.permute.xlu2 %1228  ;;  %v1182_v20 = vadd.f32 %v1180_v18, %v1150_v50  ;;  %v1174_v10 = vadd.f32 %v4977_v45, %v1142_v23 }
 0x205   : > { %v1211_v56 = vadd.f32 %v1210_v42, %v1182_v20 }
 0x207   : > { %v1231_v54 = vadd.f32 %v4979_v53, %v1211_v56  ;;  %v1516_v56 = vstv %s3652_s11  ;;  %s3671_s11 = sld [smem:[#allocation9 + $0x107]] }
 0x20a   : > { %v1204_v17 = vpop.permute.xlu1 %1203  ;;  %v1196_v59 = vpop.permute.xlu0 %1195 }
 0x20b   : > { %v5006_v47 = vpop.permute.xlu2 %1252  ;;  %v1198_v15 = vadd.f32 %v1196_v59, %v1166_v41  ;;  %v1206_v3 = vadd.f32 %v1204_v17, %v1174_v10  ;;  %v1394_v59 = vstv %s3633_s10  ;;  %v1386_v41 = vstv %s3632_s19  ;;  %s3656_s10 = sld [smem:[#allocation9 + $0x98]] }
 0x20c   : > { %s3655_s19 = sld [smem:[#allocation9 + $0x103]] }
 0x20d   : > { %v1219_v21 = vadd.f32 %v1218_v29, %v1198_v15  ;;  %v1223_v2 = vadd.f32 %v1222_v58, %v1206_v3  ;;  %v1402_v15 = vstv %s3634_s27  ;;  %v1459_v29 = vstv %s3643_s4  ;;  %s3657_s27 = sld [smem:[#allocation9 + $0xbc]] }
 0x20e   : > { %v1532_v3 = vstv %s3654_s20  ;;  %s3666_s4 = sld [smem:[#allocation9 + $0xe2]]  ;;  %v1572_v58 = vstv %s3659_s23 }
 0x20f   : > { %v1255_v25 = vadd.f32 %v5006_v47, %v1223_v2  ;;  %s3677_s20 = sld [smem:[#allocation9 + $0xc1]] }
 0x210   : > { %s3682_s23 = sld [smem:[#allocation9 + $0xe6]] }
 0x212   : > { %v1245_v31 = vpop.permute.xlu1 %1244  ;;  %v1237_v19 = vpop.permute.xlu0 %1236 }
 0x213   : > { %v1247_v49 = vadd.f32 %v1245_v31, %v1219_v21  ;;  %v1277_v55 = vpop.permute.xlu2 %1276  ;;  %v1239_v39 = vadd.f32 %v1237_v19, %v1215_v9  ;;  %v1483_v31 = vstv %s3646_s29  ;;  %v1548_v9 = vstv %s3656_s10  ;;  %s3669_s29 = sld [smem:[#allocation9 + $0xbf]] }
 0x214   : > { %s3679_s10 = sld [smem:[#allocation9 + $0x109]] }
 0x215   : > { %v1279_v13 = vadd.f32 %v1277_v55, %v1247_v49  ;;  %v1524_v55 = vstv %s3653_s7  ;;  %s3676_s7 = sld [smem:[#allocation9 + $0x9d]] }
 0x217   : > { %vm1306_vm11 = vcmp.gt.f32.partialorder %v1279_v13, 0.0  ;;  %v1307_v26 = vmul.f32 0.3, %v1279_v13 }
 0x219   : > { %v1308_v40 = vsel %vm1306_vm11, %v1279_v13, %v1307_v26  ;;  %v1540_v26 = vstv %s3655_s19  ;;  %s3678_s19 = sld [smem:[#allocation9 + $0xe5]] }
 0x21a   : > { %v1269_v22 = vpop.permute.xlu1 %1268  ;;  %v1261_v57 = vpop.permute.xlu0 %1260  ;;  %1310 = vrot.lane.b32.xlu0 %v1308_v40, %s4150_s5 }
 0x21b   : > { %v1271_v18 = vadd.f32 %v1269_v22, %v1239_v39  ;;  %v1263_v45 = vadd.f32 %v1261_v57, %v1231_v54  ;;  %v1564_v22 = vstv %s3658_s6  ;;  %v1556_v57 = vstv %s3657_s27  ;;  %s3681_s6 = sld [smem:[#allocation9 + $0xc2]] }
 0x21c   : > { %s3680_s27 = sld [smem:[#allocation9 + $0x9e]] }
 0x21d   : > { %vm1297_vm12 = vcmp.gt.f32.partialorder %v1271_v18, 0.0  ;;  %v1298_v4 = vmul.f32 0.3, %v1271_v18  ;;  %vm1288_vm13 = vcmp.gt.f32.partialorder %v1263_v45, 0.0  ;;  %v1289_v27 = vmul.f32 0.3, %v1263_v45 }
 0x21f   : > { %v1299_v36 = vsel %vm1297_vm12, %v1271_v18, %v1298_v4  ;;  %v1290_v53 = vsel %vm1288_vm13, %v1263_v45, %v1289_v27  ;;  %v1613_v27 = vstv %s3666_s4  ;;  %s3689_s4 = sld [smem:[#allocation9 + $0xc4]] }
 0x220   : > { %1301 = vrot.lane.b32.xlu2 %v1299_v36, %s4150_s5  ;;  %1292 = vrot.lane.b32.xlu1 %v1290_v53, %s4150_s5  ;;  %v1605_v36 = vstv %s3665_s22  ;;  %v1597_v53 = vstv %s3664_s30  ;;  %s3688_s22 = sld [smem:[#allocation9 + $0xa0]] }
 0x221   : > { %s3683_s30 = sld [smem:[#allocation9 + $0x10a]] }
 0x222   : > { %v1285_v16 = vpop.permute.xlu0 %1284 }
 0x223   : > { %v1287_v33 = vadd.f32 %v1285_v16, %v1255_v25 }
 0x225   : > { %vm1315_vm14 = vcmp.gt.f32.partialorder %v1287_v33, 0.0  ;;  %v1316_v7 = vmul.f32 0.3, %v1287_v33 }
 0x227   : > { %v1317_v11 = vsel %vm1315_vm14, %v1287_v33, %v1316_v7  ;;  %v1637_v7 = vstv %s3669_s29  ;;  %s5165_s29 = sld [smem:[#allocation9 + $0xa1]] }
 0x228   : > { %1319 = vrot.lane.b32.xlu1 %v1317_v11, %s4150_s5  ;;  %s3644_s5 = sld [smem:[#allocation9 + $0x95]]  ;;  %v1629_v11 = vstv %s3668_s9 }
 0x229   : > { %s5168_s9 = sld [smem:[#allocation9 + $0x10c]] }
 0x22e   : > { %v1467_v19 = vstv %s3644_s5  ;;  %s3667_s5 = sld [smem:[#allocation9 + $0x106]] }
 0x27a   : > { %v1302_v38 = vpop.permute.xlu2 %1301 }
 0x27b   : > { %1305 = vst.msk [vmem:[#allocation3 + $0x11] sm:$0xff] %vm1295_vm15, %v1302_v38  ;;  %v1621_v38 = vstv %s3667_s5  ;;  %s3626_s5 = sld [smem:[#allocation9 + $0xd8]] }
 0x282   : > { %v5130_v4 = vld [vmem:[#allocation3 + $0x10] sm:$0xff] }
 0x283   : > { %v1614_v25 = vmul.f32 %v1613_v27, %v5130_v4  ;;  %v1606_v16 = vmul.f32 %v1605_v36, %v5130_v4  ;;  %v1598_v33 = vmul.f32 %v1597_v53, %v5130_v4 }
 0x28c   : > { %v1311_v0 = vpop.permute.xlu0 %1310 }
 0x28d   : > { %1314 = vst.msk [vmem:[#allocation3 + $0x21] sm:$0xff] %vm1295_vm15, %v1311_v0  ;;  %v1638_v0 = vmul.f32 %v1637_v7, %v5130_v4 }
 0x292   : > { %v1293_v12 = vpop.permute.xlu1 %1292 }
 0x293   : > { %1296 = vst.msk [vmem:[#allocation3 + $0x1] sm:$0xff] %vm1295_vm15, %v1293_v12  ;;  %v1630_v12 = vmul.f32 %v1629_v11, %v5130_v4 }
 0x29a   : > { %v5075_v5 = vld [vmem:[#allocation3] sm:$0xff]  ;;  %v1320_v30 = vpop.permute.xlu1 %1319 }
 0x29b   : > { %1323 = vst.msk [vmem:[#allocation3 + $0x31] sm:$0xff] %vm1295_vm15, %v1320_v30  ;;  %v1371_v8 = vmul.f32 %v1370_v37, %v5075_v5  ;;  %v1363_v35 = vmul.f32 %v1362_v32, %v5075_v5  ;;  %v1355_v17 = vmul.f32 %v1354_v48, %v5075_v5  ;;  %v1395_v52 = vmul.f32 %v1394_v59, %v5075_v5  ;;  %v5090_v63 = vld [vmem:[#allocation3 + $0x1] sm:$0xff]  ;;  %v5144_v32 = vld [vmem:[#allocation3 + $0x11] sm:$0xff] }
 0x29c   : > { %v1387_v47 = vmul.f32 %v1386_v41, %v5075_v5  ;;  %v1379_v62 = vmul.f32 %v1378_v46, %v5075_v5  ;;  %v1436_v51 = vmul.f32 %v1435_v1, %v5090_v63  ;;  %v1411_v50 = vmul.f32 %v1410_v60, %v5075_v5  ;;  %v5110_v23 = vld [vmem:[#allocation3 + $0x2] sm:$0xff] }
 0x29d   : > { %1373 = vrot.lane.b32.xlu1 %v1371_v8, %s4151_s1  ;;  %1365 = vrot.lane.b32.xlu0 %v1363_v35, %s4151_s1  ;;  %v1403_v24 = vmul.f32 %v1402_v15, %v5075_v5  ;;  %v1460_v20 = vmul.f32 %v1459_v29, %v5090_v63  ;;  %v1452_v21 = vmul.f32 %v1451_v43, %v5090_v63  ;;  %v1678_v48 = vstv %s3676_s7  ;;  %s3690_s7 = sld [smem:[#allocation9 + $0xe8]] }
 0x29e   : > { %1357 = vrot.lane.b32.xlu2 %v1355_v17, %s4151_s1  ;;  %v1444_v28 = vmul.f32 %v1443_v14, %v5090_v63  ;;  %v1484_v34 = vmul.f32 %v1483_v31, %v5090_v63  ;;  %v1476_v42 = vmul.f32 %v1475_v61, %v5090_v63  ;;  %v1468_v49 = vmul.f32 %v1467_v19, %v5090_v63  ;;  %v5170_v14 = vld [vmem:[#allocation3 + $0x12] sm:$0xff] }
 0x29f   : > { %v1525_v13 = vmul.f32 %v1524_v55, %v5110_v23  ;;  %v1517_v10 = vmul.f32 %v1516_v56, %v5110_v23  ;;  %v1492_v6 = vmul.f32 %v1491_v44, %v5090_v63  ;;  %v1549_v54 = vmul.f32 %v1548_v9, %v5110_v23 }
 0x2a0   : > { %v1541_v39 = vmul.f32 %v1540_v26, %v5110_v23  ;;  %v1533_v40 = vmul.f32 %v1532_v3, %v5110_v23  ;;  %v1573_v18 = vmul.f32 %v1572_v58, %v5110_v23  ;;  %v1565_v45 = vmul.f32 %v1564_v22, %v5110_v23 }
 0x2a1   : > { %v1557_v2 = vmul.f32 %v1556_v57, %v5110_v23  ;;  %v1622_v37 = vmul.f32 %v1621_v38, %v5130_v4  ;;  %v1653_v30 = vstv %s3671_s11  ;;  %v1645_v8 = vstv %s3670_s8  ;;  %s5174_s11 = sld [smem:[#allocation9 + $0x10d]] }
 0x2a2   : > { %v1679_v35 = vmul.f32 %v1678_v48, %v5144_v32  ;;  %v1654_v17 = vmul.f32 %v1653_v30, %v5130_v4  ;;  %v1646_v59 = vmul.f32 %v1645_v8, %v5130_v4  ;;  %v1702_v41 = vstv %s3679_s10  ;;  %s5176_s8 = sld [smem:[#allocation10 + $0x4]] }
 0x2a3   : > { %v1694_v46 = vstv %s3678_s19  ;;  %v1726_v15 = vstv %s3682_s23  ;;  %v1734_v31 = vstv %s3683_s30  ;;  %s3622_s10 = sld [smem:[#allocation10 + $0x6]]  ;;  %v1791_v55 = vstv %s5165_s29 }
 0x2a4   : > { %s5180_s19 = sld [smem:[#allocation9 + $0x90]]  ;;  %v1783_v56 = vstv %s5168_s9  ;;  %v1775_v44 = vstv %s3690_s7 }
 0x2a5   : > { %1397 = vrot.lane.b32.xlu1 %v1395_v52, %s4152_s28  ;;  %1389 = vrot.lane.b32.xlu0 %v1387_v47, %s4152_s28  ;;  %v1686_v52 = vstv %s3677_s20  ;;  %v1703_v47 = vmul.f32 %v1702_v41, %v5144_v32  ;;  %s5185_s20 = sld [smem:[#allocation9 + $0xb4]]  ;;  %v1776_v26 = vmul.f32 %v1775_v44, %v5170_v14 }
 0x2a6   : > { %1381 = vrot.lane.b32.xlu2 %v1379_v62, %s4151_s1  ;;  %v1695_v62 = vmul.f32 %v1694_v46, %v5144_v32  ;;  %v1687_v1 = vmul.f32 %v1686_v52, %v5144_v32  ;;  %s5188_s23 = sld [smem:[#allocation10 + $0x5]] }
 0x2a7   : > { %s5204_s30 = sld [smem:[#allocation9 + $0xb7]]  ;;  %v1815_v22 = vstv %s5174_s11 }
 0x2a8   : > { %s5210_s29 = sld [smem:[#allocation9 + $0x93]]  ;;  %v1325_v53 = vstv %s5176_s8  ;;  %v1816_v38 = vmul.f32 %v1815_v22, %v5170_v14 }
 0x2a9   : > { %v1331_v9 = vstv %s3622_s10  ;;  %s5213_s9 = sld [smem:[#allocation9 + $0xeb]] }
 0x2aa   : > { %v1338_v3 = vstv %s5180_s19  ;;  %s5220_s7 = sld [smem:[#allocation10 + $0x7]] }
 0x2ab   : > { %s5229_s10 = sld [smem:[#allocation9 + $0xa3]] }
 0x2ac   : > { %s5242_s11 = sld [smem:[#allocation9 + $0xff]] }
 0x2ad   : > { %1438 = vrot.lane.b32.xlu1 %v1436_v51, %s4151_s1  ;;  %1413 = vrot.lane.b32.xlu0 %v1411_v50, %s4152_s28  ;;  %v1718_v51 = vstv %s3681_s6  ;;  %v1710_v50 = vstv %s3680_s27  ;;  %s5190_s6 = sld [smem:[#allocation9 + $0xdb]] }
 0x2ae   : > { %1405 = vrot.lane.b32.xlu2 %v1403_v24, %s4152_s28  ;;  %v1727_v24 = vmul.f32 %v1726_v15, %v5144_v32  ;;  %v1719_v29 = vmul.f32 %v1718_v51, %v5144_v32  ;;  %v1711_v43 = vmul.f32 %v1710_v50, %v5144_v32  ;;  %s5194_s27 = sld [smem:[#allocation9 + $0xe9]]  ;;  %v1423_v8 = vstv %s5204_s30 }
 0x2af   : > { %s5246_s8 = sld [smem:[#allocation9 + $0xc8]] }
 0x2b0   : > { %s5251_s19 = sld [smem:[#allocation9 + $0x96]] }
 0x2b1   : > { %s5284_s30 = sld [smem:[#allocation9 + $0xde]] }
 0x2b3   : > { %v1427_v57 = vstv %s5190_s6  ;;  %s5271_s6 = sld [smem:[#allocation9 + $0xa6]] }
 0x2b4   : > { %v1807_v36 = vstv %s5194_s27  ;;  %v1428_v7 = vmul.f32 %v1427_v57, %v5090_v63  ;;  %s5275_s27 = sld [smem:[#allocation9 + $0x102]] }
 0x2b5   : > { %1462 = vrot.lane.b32.xlu1 %v1460_v20, %s4151_s1  ;;  %1454 = vrot.lane.b32.xlu0 %v1452_v21, %s4151_s1  ;;  %v1767_v21 = vstv %s3689_s4  ;;  %s5196_s4 = sld [smem:[#allocation9 + $0xc5]] }
 0x2b6   : > { %1446 = vrot.lane.b32.xlu2 %v1444_v28, %s4151_s1  ;;  %v1759_v28 = vstv %s3688_s22  ;;  %v1768_v61 = vmul.f32 %v1767_v21, %v5170_v14  ;;  %s5199_s22 = sld [smem:[#allocation9 + $0xfc]]  ;;  %v1500_v44 = vstv %s5251_s19 }
 0x2b7   : > { %v1760_v19 = vmul.f32 %v1759_v28, %v5170_v14  ;;  %s3716_s19 = sld [smem:[#allocation9 + $0xa7]] }
 0x2bc   : > { %v1350_v11 = vstv %s5199_s22  ;;  %s3706_s22 = sld [smem:[#allocation9 + $0xec]] }
 0x2bd   : > { %1486 = vrot.lane.b32.xlu1 %v1484_v34, %s4152_s28  ;;  %1478 = vrot.lane.b32.xlu0 %v1476_v42, %s4152_s28  ;;  %v1735_v34 = vmul.f32 %v1734_v31, %v5144_v32  ;;  %v1346_v42 = vstv %s3626_s5  ;;  %s5216_s5 = sld [smem:[#allocation9 + $0xc7]]  ;;  %v1351_v41 = vmul.f32 %v1350_v11, %v5075_v5 }
 0x2be   : > { %1470 = vrot.lane.b32.xlu2 %v1468_v49, %s4152_s28 }
 0x2c5   : > { %1527 = vrot.lane.b32.xlu1 %v1525_v13, %s4151_s1  ;;  %1519 = vrot.lane.b32.xlu0 %v1517_v10, %s4151_s1  ;;  %v1347_v13 = vmul.f32 %v1346_v42, %v5075_v5  ;;  %v1792_v10 = vmul.f32 %v1791_v55, %v5170_v14 }
 0x2c6   : > { %1494 = vrot.lane.b32.xlu2 %v1492_v6, %s4152_s28  ;;  %v1784_v6 = vmul.f32 %v1783_v56, %v5170_v14  ;;  %v1880_v56 = vstv %s5246_s8  ;;  %s3717_s8 = sld [smem:[#allocation9 + $0xcb]] }
 0x2cd   : > { %1551 = vrot.lane.b32.xlu1 %v1549_v54, %s4152_s28  ;;  %1543 = vrot.lane.b32.xlu0 %v1541_v39, %s4151_s1  ;;  %v1342_v54 = vstv %s5185_s20  ;;  %v1348_v39 = vadd.f32 %v1347_v13, %v1331_v9  ;;  %s5257_s20 = sld [smem:[#allocation9 + $0xa4]] }
 0x2ce   : > { %1535 = vrot.lane.b32.xlu2 %v1533_v40, %s4151_s1 }
 0x2d3   : > { %v1872_v9 = vstv %s5257_s20  ;;  %s5330_s20 = sld [smem:[#allocation9 + $0x99]] }
 0x2d5   : > { %1575 = vrot.lane.b32.xlu1 %v1573_v18, %s4152_s28  ;;  %1567 = vrot.lane.b32.xlu0 %v1565_v45, %s4152_s28  ;;  %v1339_v18 = vmul.f32 %v1338_v3, %v5075_v5  ;;  %v1343_v45 = vmul.f32 %v1342_v54, %v5075_v5  ;;  %v1840_v5 = vstv %s5229_s10  ;;  %s5318_s10 = sld [smem:[#allocation9 + $0xef]] }
 0x2d6   : > { %1559 = vrot.lane.b32.xlu2 %v1557_v2, %s4152_s28 }
 0x2dd   : > { %1616 = vrot.lane.b32.xlu1 %v1614_v25, %s4151_s1  ;;  %1608 = vrot.lane.b32.xlu0 %v1606_v16, %s4151_s1  ;;  %v1328_v25 = vstv %s5188_s23  ;;  %v1799_v16 = vstv %s5196_s4  ;;  %s5261_s23 = sld [smem:[#allocation9 + $0x10f]] }
 0x2de   : > { %1600 = vrot.lane.b32.xlu2 %v1598_v33, %s4151_s1  ;;  %v1800_v48 = vmul.f32 %v1799_v16, %v5170_v14  ;;  %s3707_s4 = sld [smem:[#allocation9 + $0x110]] }
 0x2e3   : > { %v1864_v3 = vstv %s5261_s23  ;;  %s5333_s23 = sld [smem:[#allocation9 + $0xcd]] }
 0x2e4   : > { %v1896_v16 = vstv %s3707_s4  ;;  %s5342_s4 = sld [smem:[#allocation9 + $0x105]] }
 0x2e5   : > { %1640 = vrot.lane.b32.xlu1 %v1638_v0, %s4152_s28  ;;  %1632 = vrot.lane.b32.xlu0 %v1630_v12, %s4152_s28  ;;  %v1808_v0 = vmul.f32 %v1807_v36, %v5170_v14  ;;  %v1340_v12 = vadd.f32 %v1339_v18, %v1325_v53 }
 0x2e6   : > { %1624 = vrot.lane.b32.xlu2 %v1622_v37, %s4151_s1  ;;  %v1344_v37 = vadd.f32 %v1343_v45, %v1328_v25  ;;  %v1512_v45 = vstv %s5275_s27  ;;  %v1921_v25 = vstv %s5271_s6  ;;  %s3724_s6 = sld [smem:[#allocation9 + $0xa9]] }
 0x2e7   : > { %v1513_v11 = vmul.f32 %v1512_v45, %v5110_v23  ;;  %s3719_s27 = sld [smem:[#allocation9 + $0x113]] }
 0x2ed   : > { %1681 = vrot.lane.b32.xlu1 %v1679_v35, %s4151_s1  ;;  %1656 = vrot.lane.b32.xlu0 %v1654_v17, %s4152_s28  ;;  %v1419_v35 = vstv %s5210_s29  ;;  %s5290_s29 = sld [smem:[#allocation9 + $0xba]] }
 0x2ee   : > { %1648 = vrot.lane.b32.xlu2 %v1646_v59, %s4152_s28 }
 0x2f5   : > { %1705 = vrot.lane.b32.xlu1 %v1703_v47, %s4151_s1  ;;  %1697 = vrot.lane.b32.xlu0 %v1695_v62, %s4151_s1  ;;  %v1856_v47 = vstv %s5213_s9  ;;  %v1848_v62 = vstv %s5216_s5  ;;  %s5293_s9 = sld [smem:[#allocation9 + $0x112]] }
 0x2f6   : > { %1689 = vrot.lane.b32.xlu2 %v1687_v1, %s4151_s1  ;;  %v5253_v1 = vld [vmem:[#allocation3 + $0x20] sm:$0xff]  ;;  %s5295_s5 = sld [smem:[#allocation9 + $0xee]] }
 0x2f7   : > { %v1857_v28 = vmul.f32 %v1856_v47, %v5253_v1  ;;  %v1849_v31 = vmul.f32 %v1848_v62, %v5253_v1  ;;  %v1865_v22 = vmul.f32 %v1864_v3, %v5253_v1  ;;  %v5355_v3 = vld [vmem:[#allocation3 + $0x22] sm:$0xff] }
 0x2f8   : > { %v5158_v60 = vpop.permute.xlu2 %1357 }
 0x2f9   : > { %v1360_v17 = vadd.f32 %v5158_v60, %v1340_v12  ;;  %v1424_v60 = vmul.f32 %v1423_v8, %v5090_v63  ;;  %v1504_v8 = vstv %s5290_s29  ;;  %s5361_s29 = sld [smem:[#allocation9 + $0x115]] }
 0x2fd   : > { %1729 = vrot.lane.b32.xlu1 %v1727_v24, %s4152_s28  ;;  %1721 = vrot.lane.b32.xlu0 %v1719_v29, %s4152_s28  ;;  %v1420_v24 = vmul.f32 %v1419_v35, %v5090_v63  ;;  %v1334_v29 = vstv %s5220_s7  ;;  %s5303_s7 = sld [smem:[#allocation9 + $0xca]] }
 0x2fe   : > { %1713 = vrot.lane.b32.xlu2 %v1711_v43, %s4152_s28 }
 0x300   : > { %v5172_v20 = vpop.permute.xlu2 %1381 }
 0x305   : > { %1770 = vrot.lane.b32.xlu1 %v1768_v61, %s4151_s1  ;;  %1762 = vrot.lane.b32.xlu0 %v1760_v19, %s4151_s1  ;;  %v1352_v61 = vadd.f32 %v1351_v41, %v1334_v29  ;;  %v1841_v19 = vmul.f32 %v1840_v5, %v5253_v1 }
 0x306   : > { %1737 = vrot.lane.b32.xlu2 %v1735_v34, %s4152_s28  ;;  %v1431_v34 = vstv %s5242_s11  ;;  %s3661_s11 = sld [smem:[#allocation9 + $0xbd]] }
 0x307   : > { %v1384_v42 = vadd.f32 %v5172_v20, %v1352_v61  ;;  %v1969_v61 = vstv %s5318_s10  ;;  %s3730_s10 = sld [smem:[#allocation9 + $0xf2]] }
 0x308   : > { %v1406_v49 = vpop.permute.xlu2 %1405 }
 0x30d   : > { %1794 = vrot.lane.b32.xlu1 %v1792_v10, %s4152_s28  ;;  %1786 = vrot.lane.b32.xlu0 %v1784_v6, %s4151_s1 }
 0x30e   : > { %1778 = vrot.lane.b32.xlu2 %v1776_v26, %s4151_s1  ;;  %v1432_v26 = vmul.f32 %v1431_v34, %v5090_v63  ;;  %v1953_v34 = vstv %s3716_s19  ;;  %s5388_s19 = sld [smem:[#allocation9 + $0x9c]] }
 0x30f   : > { %v1366_v40 = vpop.permute.xlu0 %1365  ;;  %v1374_v58 = vpop.permute.xlu1 %1373 }
 0x310   : > { %v5223_v2 = vpop.permute.xlu2 %1446  ;;  %v1376_v27 = vadd.f32 %v1374_v58, %v1348_v39  ;;  %v1368_v59 = vadd.f32 %v1366_v40, %v1344_v37  ;;  %v1501_v39 = vmul.f32 %v1500_v44, %v5110_v23  ;;  %v1881_v40 = vmul.f32 %v1880_v56, %v5253_v1 }
 0x311   : > { %v1873_v58 = vmul.f32 %v1872_v9, %v5253_v1 }
 0x312   : > { %v1408_v33 = vadd.f32 %v1406_v49, %v1376_v27  ;;  %v5298_v27 = vld [vmem:[#allocation3 + $0x21] sm:$0xff] }
 0x313   : > { %v1954_v44 = vmul.f32 %v1953_v34, %v5298_v27 }
 0x314   : > { %v5236_v30 = vadd.f32 %v1428_v7, %v1408_v33  ;;  %v1888_v33 = vstv %s3706_s22  ;;  %s5349_s22 = sld [smem:[#allocation9 + $0xe1]] }
 0x315   : > { %1818 = vrot.lane.b32.xlu1 %v1816_v38, %s4152_s28  ;;  %1810 = vrot.lane.b32.xlu0 %v1808_v0, %s4152_s28  ;;  %v1922_v38 = vmul.f32 %v1921_v25, %v5298_v27  ;;  %v1897_v0 = vmul.f32 %v1896_v16, %v5253_v1  ;;  %v1889_v12 = vmul.f32 %v1888_v33, %v5253_v1 }
 0x316   : > { %1802 = vrot.lane.b32.xlu2 %v1800_v48, %s4152_s28  ;;  %v1508_v48 = vstv %s5284_s30  ;;  %s5353_s30 = sld [smem:[#allocation9 + $0xaa]] }
 0x317   : > { %v1390_v46 = vpop.permute.xlu0 %1389  ;;  %v1398_v52 = vpop.permute.xlu1 %1397 }
 0x318   : > { %v1392_v15 = vadd.f32 %v1390_v46, %v1360_v17  ;;  %v1471_v51 = vpop.permute.xlu2 %1470  ;;  %v1400_v50 = vadd.f32 %v1398_v52, %v1368_v59  ;;  %v1945_v46 = vstv %s5293_s9  ;;  %v1937_v52 = vstv %s5295_s5  ;;  %s3726_s9 = sld [smem:[#allocation9 + $0xf1]] }
 0x319   : > { %v1938_v29 = vmul.f32 %v1937_v52, %v5298_v27  ;;  %s5373_s5 = sld [smem:[#allocation9 + $0x116]] }
 0x31a   : > { %v1425_v43 = vadd.f32 %v1424_v60, %v1400_v50  ;;  %v1421_v21 = vadd.f32 %v1420_v24, %v1392_v15  ;;  %v1509_v15 = vmul.f32 %v1508_v48, %v5110_v23  ;;  %v1505_v60 = vmul.f32 %v1504_v8, %v5110_v23 }
 0x31b   : > { %v1946_v24 = vmul.f32 %v1945_v46, %v5298_v27  ;;  %v1589_v25 = vstv %s5349_s22  ;;  %s5420_s22 = sld [smem:[#allocation9 + $0x9f]] }
 0x31c   : > { %v1449_v17 = vadd.f32 %v5223_v2, %v1425_v43 }
 0x31d   : > { %1859 = vrot.lane.b32.xlu1 %v1857_v28, %s4151_s1  ;;  %1851 = vrot.lane.b32.xlu0 %v1849_v31, %s4151_s1 }
 0x31e   : > { %1843 = vrot.lane.b32.xlu2 %v1841_v19, %s4151_s1  ;;  %v1961_v19 = vstv %s3717_s8  ;;  %s5384_s8 = sld [smem:[#allocation9 + $0xc0]] }
 0x31f   : > { %v1414_v49 = vpop.permute.xlu0 %1413  ;;  %v1439_v55 = vpop.permute.xlu1 %1438  ;;  %v1962_v56 = vmul.f32 %v1961_v19, %v5298_v27 }
 0x320   : > { %v1416_v13 = vadd.f32 %v1414_v49, %v1384_v42  ;;  %v1495_v10 = vpop.permute.xlu2 %1494  ;;  %v1441_v6 = vadd.f32 %v1439_v55, %v1421_v21  ;;  %v1585_v21 = vstv %s3661_s11  ;;  %v1970_v55 = vmul.f32 %v1969_v61, %v5298_v27  ;;  %s3729_s11 = sld [smem:[#allocation9 + $0xce]] }
 0x321   : > { %v1586_v49 = vmul.f32 %v1585_v21, %v5130_v4 }
 0x322   : > { %v1473_v20 = vadd.f32 %v1471_v51, %v1441_v6  ;;  %v1433_v54 = vadd.f32 %v1432_v26, %v1416_v13 }
 0x324   : > { %v5286_v57 = vadd.f32 %v1501_v39, %v1473_v20 }
 0x325   : > { %1883 = vrot.lane.b32.xlu1 %v1881_v40, %s4152_s28  ;;  %1875 = vrot.lane.b32.xlu0 %v1873_v58, %s4152_s28  ;;  %v2010_v40 = vstv %s5333_s23  ;;  %v2002_v58 = vstv %s3724_s6  ;;  %s5397_s23 = sld [smem:[#allocation9 + $0xd0]] }
 0x326   : > { %1867 = vrot.lane.b32.xlu2 %v1865_v22, %s4151_s1  ;;  %v1977_v22 = vstv %s3719_s27  ;;  %s5399_s6 = sld [smem:[#allocation9 + $0xac]] }
 0x327   : > { %v1455_v63 = vpop.permute.xlu0 %1454  ;;  %v1463_v18 = vpop.permute.xlu1 %1462  ;;  %v1978_v45 = vmul.f32 %v1977_v22, %v5298_v27  ;;  %s5411_s27 = sld [smem:[#allocation9 + $0x108]] }
 0x328   : > { %v5300_v36 = vpop.permute.xlu2 %1535  ;;  %v1465_v53 = vadd.f32 %v1463_v18, %v1433_v54  ;;  %v1457_v35 = vadd.f32 %v1455_v63, %v5236_v30  ;;  %v1929_v30 = vstv %s5303_s7  ;;  %v2011_v63 = vmul.f32 %v2010_v40, %v5355_v3  ;;  %s5377_s7 = sld [smem:[#allocation9 + $0xe4]] }
 0x329   : > { %v1930_v5 = vmul.f32 %v1929_v30, %v5298_v27  ;;  %v2003_v18 = vmul.f32 %v2002_v58, %v5355_v3  ;;  %v2050_v30 = vstv %s3730_s10  ;;  %s3742_s10 = sld [smem:[#allocation9 + $0xf5]] }
 0x32a   : > { %v1497_v7 = vadd.f32 %v1495_v10, %v1465_v53  ;;  %v1581_v10 = vstv %s5330_s20  ;;  %v1593_v53 = vstv %s5342_s4  ;;  %s5391_s20 = sld [smem:[#allocation9 + $0xf4]] }
 0x32b   : > { %v1582_v54 = vmul.f32 %v1581_v10, %v5130_v4  ;;  %s5416_s4 = sld [smem:[#allocation9 + $0xd1]] }
 0x32c   : > { %v5309_v37 = vadd.f32 %v1513_v11, %v1497_v7  ;;  %v1594_v11 = vmul.f32 %v1593_v53, %v5130_v4  ;;  %v1743_v53 = vstv %s5420_s22  ;;  %s3752_s22 = sld [smem:[#allocation9 + $0xb0]] }
 0x32d   : > { %1924 = vrot.lane.b32.xlu1 %v1922_v38, %s4151_s1  ;;  %1899 = vrot.lane.b32.xlu0 %v1897_v0, %s4152_s28  ;;  %v2034_v0 = vstv %s5353_s30  ;;  %s5426_s30 = sld [smem:[#allocation9 + $0xad]]  ;;  %v1674_v22 = vstv %s5411_s27 }
 0x32e   : > { %1891 = vrot.lane.b32.xlu2 %v1889_v12, %s4152_s28  ;;  %s3697_s27 = sld [smem:[#allocation9 + $0xc6]] }
 0x32f   : > { %v1479_v59 = vpop.permute.xlu0 %1478  ;;  %v1487_v41 = vpop.permute.xlu1 %1486 }
 0x330   : > { %v1481_v47 = vadd.f32 %v1479_v59, %v1449_v17  ;;  %v1560_v62 = vpop.permute.xlu2 %1559  ;;  %v1489_v51 = vadd.f32 %v1487_v41, %v1457_v35  ;;  %v2026_v35 = vstv %s5361_s29  ;;  %v1590_v17 = vmul.f32 %v1589_v25, %v5130_v4  ;;  %s3739_s29 = sld [smem:[#allocation9 + $0x118]] }
 0x331   : > { %v2035_v41 = vmul.f32 %v2034_v0, %v5355_v3  ;;  %v2027_v46 = vmul.f32 %v2026_v35, %v5355_v3 }
 0x332   : > { %v1510_v50 = vadd.f32 %v1509_v15, %v1489_v51  ;;  %v1506_v2 = vadd.f32 %v1505_v60, %v1481_v47  ;;  %v2058_v60 = vstv %s5373_s5  ;;  %s5441_s5 = sld [smem:[#allocation9 + $0x10b]] }
 0x334   : > { %v1538_v33 = vadd.f32 %v5300_v36, %v1510_v50  ;;  %v2042_v50 = vstv %s3729_s11  ;;  %s5449_s11 = sld [smem:[#allocation9 + $0xe7]] }
 0x335   : > { %1948 = vrot.lane.b32.xlu1 %v1946_v24, %s4151_s1  ;;  %1940 = vrot.lane.b32.xlu0 %v1938_v29, %s4151_s1  ;;  %v2059_v29 = vmul.f32 %v2058_v60, %v5355_v3 }
 0x336   : > { %1932 = vrot.lane.b32.xlu2 %v1930_v5, %s4151_s1  ;;  %v2051_v5 = vmul.f32 %v2050_v30, %v5355_v3 }
 0x337   : > { %v1520_v23 = vpop.permute.xlu0 %1519  ;;  %v1528_v43 = vpop.permute.xlu1 %1527 }
 0x338   : > { %v5335_v28 = vpop.permute.xlu2 %1600  ;;  %v1530_v31 = vadd.f32 %v1528_v43, %v1506_v2  ;;  %v1522_v6 = vadd.f32 %v1520_v23, %v5286_v57  ;;  %v2043_v23 = vmul.f32 %v2042_v50, %v5355_v3  ;;  %v1666_v43 = vstv %s5384_s8  ;;  %s5455_s8 = sld [smem:[#allocation9 + $0xc3]] }
 0x33a   : > { %v1562_v42 = vadd.f32 %v1560_v62, %v1530_v31  ;;  %v1670_v62 = vstv %s5377_s7  ;;  %v1662_v31 = vstv %s5388_s19  ;;  %s3743_s7 = sld [smem:[#allocation9 + $0x119]] }
 0x33b   : > { %v1671_v24 = vmul.f32 %v1670_v62, %v5144_v32  ;;  %s5458_s19 = sld [smem:[#allocation9 + $0x11b]] }
 0x33c   : > { %v5344_v13 = vadd.f32 %v1586_v49, %v1562_v42  ;;  %v1667_v42 = vmul.f32 %v1666_v43, %v5144_v32 }
 0x33d   : > { %1972 = vrot.lane.b32.xlu1 %v1970_v55, %s4152_s28  ;;  %1964 = vrot.lane.b32.xlu0 %v1962_v56, %s4152_s28  ;;  %v2099_v55 = vstv %s5391_s20  ;;  %v5422_v56 = vld [vmem:[#allocation3 + $0x30] sm:$0xff]  ;;  %s5466_s20 = sld [smem:[#allocation9 + $0xf7]] }
 0x33e   : > { %1956 = vrot.lane.b32.xlu2 %v1954_v44, %s4152_s28 }
 0x33f   : > { %v1544_v9 = vpop.permute.xlu0 %1543  ;;  %v1552_v26 = vpop.permute.xlu1 %1551 }
 0x340   : > { %v5357_v20 = vpop.permute.xlu2 %1624  ;;  %v1554_v39 = vadd.f32 %v1552_v26, %v1522_v6  ;;  %v1546_v16 = vadd.f32 %v1544_v9, %v5309_v37  ;;  %v2018_v37 = vstv %s3726_s9  ;;  %v2091_v6 = vstv %s5397_s23  ;;  %s5437_s9 = sld [smem:[#allocation9 + $0xaf]] }
 0x341   : > { %v2019_v52 = vmul.f32 %v2018_v37, %v5355_v3  ;;  %v1663_v9 = vmul.f32 %v1662_v31, %v5144_v32  ;;  %v2092_v40 = vmul.f32 %v2091_v6, %v5422_v56  ;;  %s5468_s23 = sld [smem:[#allocation9 + $0xd3]] }
 0x342   : > { %v1583_v57 = vadd.f32 %v1582_v54, %v1554_v39  ;;  %v2100_v39 = vmul.f32 %v2099_v55, %v5422_v56 }
 0x343   : > { %v2180_v55 = vstv %s5466_s20  ;;  %s5534_s20 = sld [smem:[#allocation9 + $0x11f]] }
 0x344   : > { %v1603_v19 = vadd.f32 %v5335_v28, %v1583_v57  ;;  %v2083_v28 = vstv %s5399_s6  ;;  %s5483_s6 = sld [smem:[#allocation9 + $0xf8]] }
 0x345   : > { %2013 = vrot.lane.b32.xlu1 %v2011_v63, %s4151_s1  ;;  %2005 = vrot.lane.b32.xlu0 %v2003_v18, %s4151_s1  ;;  %v2084_v58 = vmul.f32 %v2083_v28, %v5422_v56 }
 0x346   : > { %1980 = vrot.lane.b32.xlu2 %v1978_v45, %s4152_s28  ;;  %v2123_v45 = vstv %s5416_s4  ;;  %s3753_s4 = sld [smem:[#allocation9 + $0xd4]] }
 0x347   : > { %v1568_v7 = vpop.permute.xlu0 %1567  ;;  %v1576_v38 = vpop.permute.xlu1 %1575 }
 0x348   : > { %v1570_v12 = vadd.f32 %v1568_v7, %v1538_v33  ;;  %v1649_v48 = vpop.permute.xlu2 %1648  ;;  %v1578_v8 = vadd.f32 %v1576_v38, %v1546_v16  ;;  %v2115_v7 = vstv %s5426_s30  ;;  %v2107_v38 = vstv %s3739_s29  ;;  %s5495_s30 = sld [smem:[#allocation9 + $0xa2]] }
 0x349   : > { %v2108_v35 = vmul.f32 %v2107_v38, %v5422_v56  ;;  %s5498_s29 = sld [smem:[#allocation9 + $0xd6]]  ;;  %v5518_v38 = vld [vmem:[#allocation3 + $0x32] sm:$0xff] }
 0x34a   : > { %v1595_v36 = vadd.f32 %v1594_v11, %v1578_v8  ;;  %v1591_v59 = vadd.f32 %v1590_v17, %v1570_v12  ;;  %v1675_v11 = vmul.f32 %v1674_v22, %v5144_v32  ;;  %v1744_v12 = vmul.f32 %v1743_v53, %v5170_v14 }
 0x34b   : > { %v2116_v8 = vmul.f32 %v2115_v7, %v5422_v56  ;;  %v2196_v22 = vstv %s3752_s22  ;;  %s5547_s22 = sld [smem:[#allocation9 + $0xa5]] }
 0x34c   : > { %v1627_v57 = vadd.f32 %v5357_v20, %v1595_v36  ;;  %v1755_v36 = vstv %s5441_s5  ;;  %s3755_s5 = sld [smem:[#allocation9 + $0x11c]] }
 0x34d   : > { %2037 = vrot.lane.b32.xlu1 %v2035_v41, %s4152_s28  ;;  %2029 = vrot.lane.b32.xlu0 %v2027_v46, %s4151_s1 }
 0x34e   : > { %2021 = vrot.lane.b32.xlu2 %v2019_v52, %s4151_s1  ;;  %v2164_v52 = vstv %s5437_s9  ;;  %s3760_s9 = sld [smem:[#allocation9 + $0xb2]] }
 0x34f   : > { %v1609_v4 = vpop.permute.xlu0 %1608  ;;  %v1617_v47 = vpop.permute.xlu1 %1616 }
 0x350   : > { %v5394_v15 = vpop.permute.xlu2 %1689  ;;  %v1619_v51 = vadd.f32 %v1617_v47, %v1591_v59  ;;  %v1611_v61 = vadd.f32 %v1609_v4, %v5344_v13  ;;  %v5461_v59 = vld [vmem:[#allocation3 + $0x31] sm:$0xff]  ;;  %v2139_v4 = vstv %s3743_s7  ;;  %v2131_v47 = vstv %s3742_s10  ;;  %s5507_s7 = sld [smem:[#allocation9 + $0x10e]] }
 0x351   : > { %v2165_v60 = vmul.f32 %v2164_v52, %v5461_v59  ;;  %v2140_v30 = vmul.f32 %v2139_v4, %v5422_v56  ;;  %v2132_v50 = vmul.f32 %v2131_v47, %v5422_v56  ;;  %v2181_v6 = vmul.f32 %v2180_v55, %v5461_v59  ;;  %s5512_s10 = sld [smem:[#allocation9 + $0xea]] }
 0x352   : > { %v1651_v2 = vadd.f32 %v1649_v48, %v1619_v51  ;;  %v2124_v48 = vmul.f32 %v2123_v45, %v5422_v56  ;;  %v1756_v51 = vmul.f32 %v1755_v36, %v5170_v14  ;;  %v2197_v53 = vmul.f32 %v2196_v22, %v5461_v59 }
 0x354   : > { %v5406_v21 = vadd.f32 %v1671_v24, %v1651_v2  ;;  %v1751_v2 = vstv %s5449_s11  ;;  %s5516_s11 = sld [smem:[#allocation9 + $0xb3]] }
 0x355   : > { %2061 = vrot.lane.b32.xlu1 %v2059_v29, %s4152_s28  ;;  %2053 = vrot.lane.b32.xlu0 %v2051_v5, %s4152_s28  ;;  %v1747_v29 = vstv %s5455_s8  ;;  %v1752_v31 = vmul.f32 %v1751_v2, %v5170_v14  ;;  %s5522_s8 = sld [smem:[#allocation9 + $0x11e]] }
 0x356   : > { %2045 = vrot.lane.b32.xlu2 %v2043_v23, %s4152_s28 }
 0x357   : > { %v1633_v34 = vpop.permute.xlu0 %1632  ;;  %v1641_v49 = vpop.permute.xlu1 %1640  ;;  %v1832_v52 = vstv %s5512_s10  ;;  %s3735_s10 = sld [smem:[#allocation9 + $0x117]] }
 0x358   : > { %v1635_v44 = vadd.f32 %v1633_v34, %v1603_v19  ;;  %v1714_v10 = vpop.permute.xlu2 %1713  ;;  %v1643_v13 = vadd.f32 %v1641_v49, %v1611_v61  ;;  %v2188_v19 = vstv %s5458_s19  ;;  %s3762_s19 = sld [smem:[#allocation9 + $0xfa]] }
 0x35a   : > { %v1668_v26 = vadd.f32 %v1667_v42, %v1643_v13  ;;  %v1664_v54 = vadd.f32 %v1663_v9, %v1635_v44  ;;  %v1748_v44 = vmul.f32 %v1747_v29, %v5170_v14  ;;  %v2189_v13 = vmul.f32 %v2188_v19, %v5461_v59 }
 0x35c   : > { %v1692_v23 = vadd.f32 %v5394_v15, %v1668_v26  ;;  %v1828_v26 = vstv %s3697_s27  ;;  %s3765_s27 = sld [smem:[#allocation9 + $0xd7]] }
 0x35d   : > { %2102 = vrot.lane.b32.xlu1 %v2100_v39, %s4151_s1  ;;  %2094 = vrot.lane.b32.xlu0 %v2092_v40, %s4151_s1  ;;  %v2212_v40 = vstv %s5483_s6  ;;  %s3766_s6 = sld [smem:[#allocation9 + $0xfb]] }
 0x35e   : > { %2086 = vrot.lane.b32.xlu2 %v2084_v58, %s4151_s1  ;;  %v2204_v58 = vstv %s3753_s4  ;;  %s5543_s4 = sld [smem:[#allocation9 + $0xc9]] }
 0x35f   : > { %v1657_v63 = vpop.permute.xlu0 %1656  ;;  %v1682_v18 = vpop.permute.xlu1 %1681  ;;  %v2205_v45 = vmul.f32 %v2204_v58, %v5461_v59  ;;  %v1905_v58 = vstv %s5547_s22  ;;  %s3757_s22 = sld [smem:[#allocation9 + $0xd5]] }
 0x360   : > { %v1659_v25 = vadd.f32 %v1657_v63, %v1627_v57  ;;  %v1738_v16 = vpop.permute.xlu2 %1737  ;;  %v1684_v33 = vadd.f32 %v1682_v18, %v1664_v54  ;;  %v1829_v63 = vmul.f32 %v1828_v26, %v5253_v1  ;;  %v2213_v18 = vmul.f32 %v2212_v40, %v5461_v59 }
 0x362   : > { %v1716_v0 = vadd.f32 %v1714_v10, %v1684_v33  ;;  %v1676_v20 = vadd.f32 %v1675_v11, %v1659_v25 }
 0x364   : > { %v5451_v17 = vadd.f32 %v1744_v12, %v1716_v0  ;;  %v1909_v40 = vstv %s5543_s4  ;;  %s3758_s4 = sld [smem:[#allocation9 + $0xf9]] }
 0x365   : > { %2126 = vrot.lane.b32.xlu1 %v2124_v48, %s4152_s28  ;;  %2118 = vrot.lane.b32.xlu0 %v2116_v8, %s4152_s28  ;;  %v2253_v48 = vstv %s5498_s29  ;;  %v2245_v8 = vstv %s3760_s9  ;;  %s3722_s29 = sld [smem:[#allocation9 + $0xf0]] }
 0x366   : > { %2110 = vrot.lane.b32.xlu2 %v2108_v35, %s4151_s1  ;;  %v2220_v35 = vstv %s3755_s5  ;;  %s3721_s9 = sld [smem:[#allocation9 + $0xcc]] }
 0x367   : > { %v1698_v32 = vpop.permute.xlu0 %1697  ;;  %v1706_v37 = vpop.permute.xlu1 %1705  ;;  %v2221_v36 = vmul.f32 %v2220_v35, %v5461_v59  ;;  %s3733_s5 = sld [smem:[#allocation9 + $0xcf]] }
 0x368   : > { %v5463_v41 = vpop.permute.xlu2 %1778  ;;  %v1708_v46 = vadd.f32 %v1706_v37, %v1676_v20  ;;  %v1700_v5 = vadd.f32 %v1698_v32, %v5406_v21  ;;  %v2172_v21 = vstv %s5468_s23  ;;  %v2254_v32 = vmul.f32 %v2253_v48, %v5518_v38  ;;  %s3710_s23 = sld [smem:[#allocation9 + $0xed]] }
 0x369   : > { %v2173_v9 = vmul.f32 %v2172_v21, %v5461_v59  ;;  %v2246_v37 = vmul.f32 %v2245_v8, %v5518_v38 }
 0x36a   : > { %v1740_v62 = vadd.f32 %v1738_v16, %v1708_v46  ;;  %v1824_v16 = vstv %s5495_s30  ;;  %v1836_v46 = vstv %s5507_s7  ;;  %s3720_s30 = sld [smem:[#allocation9 + $0xa8]] }
 0x36b   : > { %v1825_v20 = vmul.f32 %v1824_v16, %v5253_v1  ;;  %v1906_v16 = vmul.f32 %v1905_v58, %v5298_v27  ;;  %s3732_s7 = sld [smem:[#allocation9 + $0xab]]  ;;  %v2079_v58 = vstv %s3735_s10 }
 0x36c   : > { %v5475_v24 = vadd.f32 %v1756_v51, %v1740_v62  ;;  %v1837_v51 = vmul.f32 %v1836_v46, %v5253_v1  ;;  %s3782_s10 = sld [smem:[#allocation9 + $0x16a]] }
 0x36d   : > { %2167 = vrot.lane.b32.xlu1 %v2165_v60, %s4151_s1  ;;  %2142 = vrot.lane.b32.xlu0 %v2140_v30, %s4152_s28  ;;  %v2277_v30 = vstv %s5516_s11  ;;  %s3734_s11 = sld [smem:[#allocation9 + $0xf3]] }
 0x36e   : > { %2134 = vrot.lane.b32.xlu2 %v2132_v50, %s4152_s28 }
 0x36f   : > { %v1722_v43 = vpop.permute.xlu0 %1721  ;;  %v1730_v61 = vpop.permute.xlu1 %1729 }
 0x370   : > { %v1724_v34 = vadd.f32 %v1722_v43, %v1692_v23  ;;  %v1803_v42 = vpop.permute.xlu2 %1802  ;;  %v1732_v49 = vadd.f32 %v1730_v61, %v1700_v5  ;;  %v2269_v5 = vstv %s5522_s8  ;;  %v1833_v23 = vmul.f32 %v1832_v52, %v5253_v1  ;;  %s3746_s8 = sld [smem:[#allocation9 + $0xf6]] }
 0x371   : > { %v2270_v61 = vmul.f32 %v2269_v5, %v5518_v38  ;;  %v1986_v48 = vstv %s3720_s30  ;;  %v1990_v5 = vstv %s3721_s9  ;;  %s3776_s30 = sld [smem:[#allocation9 + $0x121]] }
 0x372   : > { %v1753_v10 = vadd.f32 %v1752_v31, %v1732_v49  ;;  %v1749_v15 = vadd.f32 %v1748_v44, %v1724_v34  ;;  %v1913_v49 = vstv %s3710_s23  ;;  %s3747_s23 = sld [smem:[#allocation9 + $0x11a]] }
 0x373   : > { %s3779_s9 = sld [smem:[#allocation9 + $0x18d]] }
 0x374   : > { %v1781_v47 = vadd.f32 %v5463_v41, %v1753_v10  ;;  %v2278_v41 = vmul.f32 %v2277_v30, %v5518_v38  ;;  %v2301_v10 = vstv %s5534_s20  ;;  %s3744_s20 = sld [smem:[#allocation9 + $0xae]] }
 0x375   : > { %2191 = vrot.lane.b32.xlu1 %v2189_v13, %s4151_s1  ;;  %2183 = vrot.lane.b32.xlu0 %v2181_v6, %s4151_s1  ;;  %v2285_v13 = vstv %s3765_s27  ;;  %s3759_s27 = sld [smem:[#allocation9 + $0x11d]] }
 0x376   : > { %2175 = vrot.lane.b32.xlu2 %v2173_v9, %s4151_s1  ;;  %v1914_v9 = vmul.f32 %v1913_v49, %v5298_v27  ;;  %v2286_v26 = vmul.f32 %v2285_v13, %v5518_v38 }
 0x377   : > { %v1763_v14 = vpop.permute.xlu0 %1762  ;;  %v1771_v28 = vpop.permute.xlu1 %1770 }
 0x378   : > { %v5500_v54 = vpop.permute.xlu2 %1843  ;;  %v1773_v39 = vadd.f32 %v1771_v28, %v1749_v15  ;;  %v1765_v33 = vadd.f32 %v1763_v14, %v5451_v17  ;;  %v2293_v15 = vstv %s3766_s6  ;;  %v2302_v14 = vmul.f32 %v2301_v10, %v5518_v38  ;;  %s3756_s6 = sld [smem:[#allocation9 + $0xb1]] }
 0x379   : > { %v2294_v28 = vmul.f32 %v2293_v15, %v5518_v38 }
 0x37a   : > { %v1805_v57 = vadd.f32 %v1803_v42, %v1773_v39 }
 0x37c   : > { %v1830_v25 = vadd.f32 %v1829_v63, %v1805_v57 }
 0x37d   : > { %2215 = vrot.lane.b32.xlu1 %v2213_v18, %s4152_s28  ;;  %2207 = vrot.lane.b32.xlu0 %v2205_v45, %s4152_s28 }
 0x37e   : > { %2199 = vrot.lane.b32.xlu2 %v2197_v53, %s4152_s28  ;;  %v1910_v53 = vmul.f32 %v1909_v40, %v5298_v27 }
 0x37f   : > { %v1787_v7 = vpop.permute.xlu0 %1786  ;;  %v1795_v11 = vpop.permute.xlu1 %1794 }
 0x380   : > { %v1868_v0 = vpop.permute.xlu2 %1867  ;;  %v1797_v12 = vadd.f32 %v1795_v11, %v1765_v33  ;;  %v1789_v4 = vadd.f32 %v1787_v7, %v5475_v24  ;;  %v2261_v24 = vstv %s3762_s19  ;;  %s3745_s19 = sld [smem:[#allocation9 + $0xd2]] }
 0x381   : > { %v2262_v19 = vmul.f32 %v2261_v24, %v5518_v38 }
 0x382   : > { %v1826_v17 = vadd.f32 %v1825_v20, %v1797_v12 }
 0x384   : > { %v1846_v22 = vadd.f32 %v5500_v54, %v1826_v17 }
 0x385   : > { %2256 = vrot.lane.b32.xlu1 %v2254_v32, %s4151_s1  ;;  %2248 = vrot.lane.b32.xlu0 %v2246_v37, %s4151_s1 }
 0x386   : > { %2223 = vrot.lane.b32.xlu2 %v2221_v36, %s4152_s28  ;;  %v1987_v36 = vmul.f32 %v1986_v48, %v5355_v3 }
 0x387   : > { %v1811_v62 = vpop.permute.xlu0 %1810  ;;  %v1819_v60 = vpop.permute.xlu1 %1818 }
 0x388   : > { %v1813_v50 = vadd.f32 %v1811_v62, %v1781_v47  ;;  %v1892_v2 = vpop.permute.xlu2 %1891  ;;  %v1821_v29 = vadd.f32 %v1819_v60, %v1789_v4 }
 0x38a   : > { %v1838_v43 = vadd.f32 %v1837_v51, %v1821_v29  ;;  %v1834_v31 = vadd.f32 %v1833_v23, %v1813_v50  ;;  %v1994_v29 = vstv %s3722_s29  ;;  %s3780_s29 = sld [smem:[#allocation9 + $0x122]] }
 0x38c   : > { %v1870_v34 = vadd.f32 %v1868_v0, %v1838_v43 }
 0x38d   : > { %2280 = vrot.lane.b32.xlu1 %v2278_v41, %s4152_s28  ;;  %2272 = vrot.lane.b32.xlu0 %v2270_v61, %s4151_s1  ;;  %v1991_v61 = vmul.f32 %v1990_v5, %v5355_v3 }
 0x38e   : > { %2264 = vrot.lane.b32.xlu2 %v2262_v19, %s4151_s1  ;;  %s3711_s1 = sld [smem:[#allocation9 + $0x111]] }
 0x38f   : > { %v1852_v1 = vpop.permute.xlu0 %1851  ;;  %v1860_v42 = vpop.permute.xlu1 %1859 }
 0x390   : > { %v1854_v55 = vadd.f32 %v1852_v1, %v1830_v25  ;;  %v1933_v44 = vpop.permute.xlu2 %1932  ;;  %v1862_v21 = vadd.f32 %v1860_v42, %v1834_v31  ;;  %v1995_v31 = vmul.f32 %v1994_v29, %v5355_v3 }
 0x392   : > { %v1894_v6 = vadd.f32 %v1892_v2, %v1862_v21 }
 0x394   : > { %v1915_v39 = vadd.f32 %v1914_v9, %v1894_v6  ;;  %v1917_v0 = vstv %s3711_s1  ;;  %v2067_v6 = vstv %s3732_s7  ;;  %s3777_s1 = sld [smem:[#allocation9 + $0x145]] }
 0x395   : > { %2304 = vrot.lane.b32.xlu1 %v2302_v14, %s4152_s28  ;;  %2296 = vrot.lane.b32.xlu0 %v2294_v28, %s4152_s28  ;;  %v1918_v17 = vmul.f32 %v1917_v0, %v5298_v27  ;;  %s3783_s7 = sld [smem:[#allocation9 + $0x18e]] }
 0x396   : > { %2288 = vrot.lane.b32.xlu2 %v2286_v26, %s4152_s28  ;;  %s3723_s28 = sld [smem:[#allocation9 + $0x114]]  ;;  %v2068_v26 = vmul.f32 %v2067_v6, %v5422_v56  ;;  %v2233_v6 = vstv %s3757_s22 }
 0x397   : > { %v1876_v57 = vpop.permute.xlu0 %1875  ;;  %v1884_v63 = vpop.permute.xlu1 %1883  ;;  %s3800_s22 = sld [smem:[#allocation9 + $0x127]] }
 0x398   : > { %v1878_v18 = vadd.f32 %v1876_v57, %v1846_v22  ;;  %v1957_v45 = vpop.permute.xlu2 %1956  ;;  %v1886_v25 = vadd.f32 %v1884_v63, %v1854_v55  ;;  %v2071_v55 = vstv %s3733_s5  ;;  %v2075_v22 = vstv %s3734_s11  ;;  %s3781_s5 = sld [smem:[#allocation9 + $0x146]] }
 0x399   : > { %v2072_v15 = vmul.f32 %v2071_v55, %v5422_v56  ;;  %v2241_v55 = vstv %s3759_s27  ;;  %s3788_s11 = sld [smem:[#allocation9 + $0x124]] }
 0x39a   : > { %v1911_v33 = vadd.f32 %v1910_v53, %v1886_v25  ;;  %v1907_v7 = vadd.f32 %v1906_v16, %v1878_v18  ;;  %v2080_v25 = vmul.f32 %v2079_v58, %v5422_v56  ;;  %v2234_v58 = vmul.f32 %v2233_v6, %v5518_v38  ;;  %s3792_s27 = sld [smem:[#allocation9 + $0x125]] }
 0x39c   : > { %v1935_v11 = vadd.f32 %v1933_v44, %v1911_v33  ;;  %v1998_v47 = vstv %s3723_s28  ;;  %v2076_v33 = vmul.f32 %v2075_v22, %v5422_v56  ;;  %s3778_s28 = sld [smem:[#allocation9 + $0x169]] }
 0x39d   : > { %v1999_v50 = vmul.f32 %v1998_v47, %v5355_v3 }
 0x39f   : > { %v1900_v20 = vpop.permute.xlu0 %1899  ;;  %v1925_v12 = vpop.permute.xlu1 %1924 }
 0x3a0   : > { %v1902_v8 = vadd.f32 %v1900_v20, %v1870_v34  ;;  %v1981_v54 = vpop.permute.xlu2 %1980  ;;  %v1927_v35 = vadd.f32 %v1925_v12, %v1907_v7  ;;  %v2156_v12 = vstv %s3746_s8  ;;  %s4154_s8 = smov 110  }
 0x3a2   : > { %v1959_v32 = vadd.f32 %v1957_v45, %v1927_v35  ;;  %v1919_v37 = vadd.f32 %v1918_v17, %v1902_v8  ;;  %v2157_v35 = vmul.f32 %v2156_v12, %v5461_v59 }
 0x3a4   : > { %v1988_v46 = vadd.f32 %v1987_v36, %v1959_v32  ;;  %v2152_v32 = vstv %s3745_s19  ;;  %s3790_s19 = sld [smem:[#allocation9 + $0x16c]] }
 0x3a5   : > { %v2153_v47 = vmul.f32 %v2152_v32, %v5461_v59 }
 0x3a7   : > { %v1941_v52 = vpop.permute.xlu0 %1940  ;;  %v1949_v4 = vpop.permute.xlu1 %1948 }
 0x3a8   : > { %v1943_v62 = vadd.f32 %v1941_v52, %v1915_v39  ;;  %v2022_v51 = vpop.permute.xlu2 %2021  ;;  %v1951_v60 = vadd.f32 %v1949_v4, %v1919_v37  ;;  %v2148_v37 = vstv %s3744_s20  ;;  %s3789_s20 = sld [smem:[#allocation9 + $0x148]] }
 0x3aa   : > { %v1983_v30 = vadd.f32 %v1981_v54, %v1951_v60 }
 0x3ac   : > { %v2000_v2 = vadd.f32 %v1999_v50, %v1983_v30 }
 0x3af   : > { %v1965_v27 = vpop.permute.xlu0 %1964  ;;  %v1973_v23 = vpop.permute.xlu1 %1972 }
 0x3b0   : > { %v1967_v24 = vadd.f32 %v1965_v27, %v1935_v11  ;;  %v2046_v43 = vpop.permute.xlu2 %2045  ;;  %v1975_v41 = vadd.f32 %v1973_v23, %v1943_v62  ;;  %v2229_v23 = vstv %s3756_s6  ;;  %s3793_s6 = sld [smem:[#allocation9 + $0x149]] }
 0x3b2   : > { %v1996_v19 = vadd.f32 %v1995_v31, %v1975_v41  ;;  %v1992_v34 = vadd.f32 %v1991_v61, %v1967_v24 }
 0x3b4   : > { %v2024_v1 = vadd.f32 %v2022_v51, %v1996_v19  ;;  %v2149_v51 = vmul.f32 %v2148_v37, %v5461_v59  ;;  %v2230_v19 = vmul.f32 %v2229_v23, %v5518_v38 }
 0x3b7   : > { %v2006_v42 = vpop.permute.xlu0 %2005  ;;  %v2014_v49 = vpop.permute.xlu1 %2013 }
 0x3b8   : > { %v2087_v44 = vpop.permute.xlu2 %2086  ;;  %v2016_v21 = vadd.f32 %v2014_v49, %v1992_v34  ;;  %v2008_v9 = vadd.f32 %v2006_v42, %v1988_v46 }
 0x3ba   : > { %v2048_v10 = vadd.f32 %v2046_v43, %v2016_v21 }
 0x3bc   : > { %v2073_v13 = vadd.f32 %v2072_v15, %v2048_v10  ;;  %v2242_v10 = vmul.f32 %v2241_v55, %v5518_v38  ;;  %v2467_v55 = vstv %s3790_s19  ;;  %s3812_s19 = sld [smem:[#allocation9 + $0x12a]] }
 0x3bf   : > { %v2030_v14 = vpop.permute.xlu0 %2029  ;;  %v2038_v28 = vpop.permute.xlu1 %2037 }
 0x3c0   : > { %v2111_v3 = vpop.permute.xlu2 %2110  ;;  %v2040_v39 = vadd.f32 %v2038_v28, %v2008_v9  ;;  %v2032_v57 = vadd.f32 %v2030_v14, %v2000_v2  ;;  %v2160_v2 = vstv %s3747_s23  ;;  %s3791_s23 = sld [smem:[#allocation9 + $0x190]] }
 0x3c1   : > { %v2161_v31 = vmul.f32 %v2160_v2, %v5461_v59 }
 0x3c2   : > { %v2069_v40 = vadd.f32 %v2068_v26, %v2040_v39 }
 0x3c4   : > { %v2089_v46 = vadd.f32 %v2087_v44, %v2069_v40 }
 0x3c7   : > { %v2054_v63 = vpop.permute.xlu0 %2053  ;;  %v2062_v18 = vpop.permute.xlu1 %2061 }
 0x3c8   : > { %v2056_v45 = vadd.f32 %v2054_v63, %v2024_v1  ;;  %v2135_v53 = vpop.permute.xlu2 %2134  ;;  %v2064_v16 = vadd.f32 %v2062_v18, %v2032_v57 }
 0x3ca   : > { %v2081_v7 = vadd.f32 %v2080_v25, %v2064_v16  ;;  %v2077_v11 = vadd.f32 %v2076_v33, %v2056_v45 }
 0x3cc   : > { %v2113_v29 = vadd.f32 %v2111_v3, %v2081_v7 }
 0x3cf   : > { %v2095_v0 = vpop.permute.xlu0 %2094  ;;  %v2103_v20 = vpop.permute.xlu1 %2102 }
 0x3d0   : > { %v2176_v48 = vpop.permute.xlu2 %2175  ;;  %v2105_v8 = vadd.f32 %v2103_v20, %v2077_v11  ;;  %v2097_v36 = vadd.f32 %v2095_v0, %v2073_v13  ;;  %v2237_v13 = vstv %s3758_s4  ;;  %s3794_s4 = sld [smem:[#allocation9 + $0x16d]] }
 0x3d1   : > { %v2238_v39 = vmul.f32 %v2237_v13, %v5518_v38 }
 0x3d2   : > { %v2137_v54 = vadd.f32 %v2135_v53, %v2105_v8 }
 0x3d4   : > { %v2158_v17 = vadd.f32 %v2157_v35, %v2137_v54 }
 0x3d7   : > { %v2119_v52 = vpop.permute.xlu0 %2118  ;;  %v2127_v56 = vpop.permute.xlu1 %2126 }
 0x3d8   : > { %v2121_v4 = vadd.f32 %v2119_v52, %v2089_v46  ;;  %v2129_v62 = vadd.f32 %v2127_v56, %v2097_v36  ;;  %v2200_v60 = vpop.permute.xlu2 %2199 }
 0x3da   : > { %v2154_v30 = vadd.f32 %v2153_v47, %v2129_v62  ;;  %v2150_v50 = vadd.f32 %v2149_v51, %v2121_v4  ;;  %v2378_v4 = vstv %s3777_s1  ;;  %v2370_v47 = vstv %s3776_s30  ;;  %s3795_s1 = sld [smem:[#allocation9 + $0x191]] }
 0x3db   : > { %v2386_v62 = vstv %s3778_s28  ;;  %s3801_s30 = sld [smem:[#allocation9 + $0x14b]] }
 0x3dc   : > { %v2178_v14 = vadd.f32 %v2176_v48, %v2154_v30  ;;  %s3803_s28 = sld [smem:[#allocation9 + $0x193]] }
 0x3df   : > { %v2143_v5 = vpop.permute.xlu0 %2142  ;;  %v2168_v27 = vpop.permute.xlu1 %2167 }
 0x3e0   : > { %v2145_v24 = vadd.f32 %v2143_v5, %v2113_v29  ;;  %v2170_v43 = vadd.f32 %v2168_v27, %v2150_v50  ;;  %v2224_v34 = vpop.permute.xlu2 %2223  ;;  %v2402_v29 = vstv %s3780_s29  ;;  %v2394_v5 = vstv %s3779_s9  ;;  %s3802_s29 = sld [smem:[#allocation9 + $0x16f]] }
 0x3e1   : > { %v2410_v27 = vstv %s3781_s5  ;;  %s3804_s9 = sld [smem:[#allocation9 + $0x128]] }
 0x3e2   : > { %v2202_v41 = vadd.f32 %v2200_v60, %v2170_v43  ;;  %v2162_v61 = vadd.f32 %v2161_v31, %v2145_v24  ;;  %s3806_s5 = sld [smem:[#allocation9 + $0x170]] }
 0x3e4   : > { %v2231_v1 = vadd.f32 %v2230_v19, %v2202_v41  ;;  %v2426_v41 = vstv %s3783_s7  ;;  %s3805_s7 = sld [smem:[#allocation9 + $0x14c]] }
 0x3e7   : > { %v2184_v42 = vpop.permute.xlu0 %2183  ;;  %v2192_v49 = vpop.permute.xlu1 %2191 }
 0x3e8   : > { %v2194_v44 = vadd.f32 %v2192_v49, %v2162_v61  ;;  %v2186_v9 = vadd.f32 %v2184_v42, %v2158_v17  ;;  %v2265_v59 = vpop.permute.xlu2 %2264  ;;  %v2418_v61 = vstv %s3782_s10  ;;  %s3807_s10 = sld [smem:[#allocation9 + $0x194]] }
 0x3ea   : > { %v2226_v21 = vadd.f32 %v2224_v34, %v2194_v44  ;;  %v2451_v34 = vstv %s3788_s11  ;;  %v2459_v44 = vstv %s3789_s20  ;;  %s3813_s11 = sld [smem:[#allocation9 + $0x14e]] }
 0x3eb   : > { %s3814_s20 = sld [smem:[#allocation9 + $0x172]] }
 0x3ec   : > { %v2243_v15 = vadd.f32 %v2242_v10, %v2226_v21  ;;  %v2475_v21 = vstv %s3791_s23  ;;  %s3816_s23 = sld [smem:[#allocation9 + $0x12b]] }
 0x3ef   : > { %v2208_v28 = vpop.permute.xlu0 %2207  ;;  %v2216_v3 = vpop.permute.xlu1 %2215 }
 0x3f0   : > { %v2210_v26 = vadd.f32 %v2208_v28, %v2178_v14  ;;  %v2218_v40 = vadd.f32 %v2216_v3, %v2186_v9  ;;  %v2289_v53 = vpop.permute.xlu2 %2288  ;;  %v2491_v9 = vstv %s3793_s6  ;;  %v2499_v14 = vstv %s3794_s4  ;;  %s3815_s6 = sld [smem:[#allocation9 + $0x196]] }
 0x3f1   : > { %s3819_s4 = sld [smem:[#allocation9 + $0x197]] }
 0x3f2   : > { %v2239_v22 = vadd.f32 %v2238_v39, %v2218_v40  ;;  %v2235_v57 = vadd.f32 %v2234_v58, %v2210_v26  ;;  %v2532_v40 = vstv %s3800_s22  ;;  %v2507_v58 = vstv %s3795_s1  ;;  %s3818_s22 = sld [smem:[#allocation9 + $0x173]] }
 0x3f3   : > { %s3824_s1 = sld [smem:[#allocation9 + $0x12d]] }
 0x3f4   : > { %v2267_v8 = vadd.f32 %v2265_v59, %v2239_v22  ;;  %v2483_v59 = vstv %s3792_s27  ;;  %v2540_v22 = vstv %s3801_s30  ;;  %s3817_s27 = sld [smem:[#allocation9 + $0x14f]] }
 0x3f5   : > { %s3774_s30 = sld [smem:[#allocation9 + $0x168]] }
 0x3f7   : > { %v2249_v63 = vpop.permute.xlu0 %2248  ;;  %v2257_v18 = vpop.permute.xlu1 %2256 }
 0x3f8   : > { %v2259_v45 = vadd.f32 %v2257_v18, %v2235_v57  ;;  %v2251_v33 = vadd.f32 %v2249_v63, %v2231_v1 }
 0x3fa   : > { %v2291_v25 = vadd.f32 %v2289_v53, %v2259_v45  ;;  %v2556_v45 = vstv %s3803_s28  ;;  %v2548_v53 = vstv %s3802_s29  ;;  %s3826_s28 = sld [smem:[#allocation9 + $0x175]] }
 0x3fb   : > { %s3825_s29 = sld [smem:[#allocation9 + $0x151]] }
 0x3fc   : > { %v2317_v16 = vmul.f32 0.3, %v2291_v25  ;;  %vm2316_vm0 = vcmp.gt.f32.partialorder %v2291_v25, 0.0 }
 0x3fe   : > { %v2318_v7 = vsel %vm2316_vm0, %v2291_v25, %v2317_v16  ;;  %v2564_v25 = vstv %s3804_s9  ;;  %s3827_s9 = sld [smem:[#allocation9 + $0x199]] }
 0x3ff   : > { %v2273_v11 = vpop.permute.xlu0 %2272  ;;  %2320 = vrot.lane.b32.xlu0 %v2318_v7, %s4146_s26  ;;  %v2281_v0 = vpop.permute.xlu1 %2280 }
 0x400   : > { %v2283_v20 = vadd.f32 %v2281_v0, %v2251_v33  ;;  %v2275_v38 = vadd.f32 %v2273_v11, %v2243_v15  ;;  %v2580_v11 = vstv %s3806_s5  ;;  %v2572_v0 = vstv %s3805_s7  ;;  %s3770_s5 = sld [smem:[#allocation10 + $0xa]] }
 0x401   : > { %s3829_s7 = sld [smem:[#allocation9 + $0x152]] }
 0x402   : > { %vm2308_vm1 = vcmp.gt.f32.partialorder %v2283_v20, 0.0  ;;  %v2309_v12 = vmul.f32 0.3, %v2283_v20 }
 0x404   : > { %v2310_v48 = vsel %vm2308_vm1, %v2283_v20, %v2309_v12  ;;  %v2588_v20 = vstv %s3807_s10  ;;  %s3828_s10 = sld [smem:[#allocation9 + $0x12e]] }
 0x405   : > { %2312 = vrot.lane.b32.xlu2 %v2310_v48, %s4146_s26 }
 0x407   : > { %v2297_v54 = vpop.permute.xlu0 %2296  ;;  %v2305_v35 = vpop.permute.xlu1 %2304 }
 0x408   : > { %v2299_v17 = vadd.f32 %v2297_v54, %v2267_v8  ;;  %v2307_v32 = vadd.f32 %v2305_v35, %v2275_v38  ;;  %v2621_v54 = vstv %s3813_s11  ;;  %v2613_v35 = vstv %s3812_s19  ;;  %s3830_s11 = sld [smem:[#allocation9 + $0x176]] }
 0x409   : > { %s3836_s19 = sld [smem:[#allocation9 + $0x130]] }
 0x40a   : > { %vm2324_vm2 = vcmp.gt.f32.partialorder %v2299_v17, 0.0  ;;  %v2325_v37 = vmul.f32 0.3, %v2299_v17  ;;  %vm2332_vm3 = vcmp.gt.f32.partialorder %v2307_v32, 0.0  ;;  %v2333_v36 = vmul.f32 0.3, %v2307_v32 }
 0x40c   : > { %v2326_v46 = vsel %vm2324_vm2, %v2299_v17, %v2325_v37  ;;  %v2334_v52 = vsel %vm2332_vm3, %v2307_v32, %v2333_v36  ;;  %v2629_v17 = vstv %s3814_s20  ;;  %s3831_s20 = sld [smem:[#allocation9 + $0x19a]] }
 0x40d   : > { %2328 = vrot.lane.b32.xlu1 %v2326_v46, %s4146_s26  ;;  %2336 = vrot.lane.b32.xlu2 %v2334_v52, %s4146_s26  ;;  %s4153_s26 = smov 119   ;;  %v2645_v46 = vstv %s3816_s23  ;;  %v2637_v52 = vstv %s3815_s6  ;;  %s3837_s23 = sld [smem:[#allocation9 + $0x154]] }
 0x40e   : > { %s3772_s6 = sld [smem:[#allocation9 + $0x120]] }
 0x45f   : > { %v2313_v56 = vpop.permute.xlu2 %2312 }
 0x460   : > { %2315 = vst.msk [vmem:[#allocation2 + $0x1] sm:$0xff] %vm296_vm5, %v2313_v56  ;;  %v2653_v56 = vstv %s3817_s27  ;;  %s3773_s27 = sld [smem:[#allocation9 + $0x144]] }
 0x467   : > { %v5585_v51 = vld [vmem:[#allocation2] sm:$0xff]  ;;  %v2337_v60 = vpop.permute.xlu2 %2336 }
 0x468   : > { %2339 = vst.msk [vmem:[#allocation2 + $0x31] sm:$0xff] %vm296_vm5, %v2337_v60  ;;  %v2379_v30 = vmul.f32 %v2378_v4, %v5585_v51  ;;  %v2371_v50 = vmul.f32 %v2370_v47, %v5585_v51  ;;  %v2387_v2 = vmul.f32 %v2386_v62, %v5585_v51  ;;  %v2403_v23 = vmul.f32 %v2402_v29, %v5585_v51  ;;  %v5601_v19 = vld [vmem:[#allocation2 + $0x1] sm:$0xff] }
 0x469   : > { %v2395_v24 = vmul.f32 %v2394_v5, %v5585_v51  ;;  %v2411_v31 = vmul.f32 %v2410_v27, %v5585_v51  ;;  %v2427_v1 = vmul.f32 %v2426_v41, %v5585_v51  ;;  %v2419_v42 = vmul.f32 %v2418_v61, %v5585_v51  ;;  %v5622_v39 = vld [vmem:[#allocation2 + $0x2] sm:$0xff] }
 0x46a   : > { %2381 = vrot.lane.b32.xlu1 %v2379_v30, %s4153_s26  ;;  %2373 = vrot.lane.b32.xlu0 %v2371_v50, %s4153_s26  ;;  %v2452_v49 = vmul.f32 %v2451_v34, %v5601_v19  ;;  %v2468_v15 = vmul.f32 %v2467_v55, %v5601_v19  ;;  %v2460_v13 = vmul.f32 %v2459_v44, %v5601_v19  ;;  %v2669_v60 = vstv %s3819_s4  ;;  %s3839_s4 = sld [smem:[#allocation9 + $0x19c]] }
 0x46b   : > { %2389 = vrot.lane.b32.xlu2 %v2387_v2, %s4153_s26  ;;  %v2476_v6 = vmul.f32 %v2475_v21, %v5601_v19  ;;  %v2492_v28 = vmul.f32 %v2491_v9, %v5601_v19  ;;  %v2484_v3 = vmul.f32 %v2483_v59, %v5601_v19  ;;  %v2500_v26 = vmul.f32 %v2499_v14, %v5601_v19 }
 0x46c   : > { %v2533_v57 = vmul.f32 %v2532_v40, %v5622_v39  ;;  %v2508_v63 = vmul.f32 %v2507_v58, %v5601_v19  ;;  %v2541_v18 = vmul.f32 %v2540_v22, %v5622_v39  ;;  %v2557_v16 = vmul.f32 %v2556_v45, %v5622_v39 }
 0x46d   : > { %v2549_v33 = vmul.f32 %v2548_v53, %v5622_v39  ;;  %v2565_v7 = vmul.f32 %v2564_v25, %v5622_v39  ;;  %v2581_v12 = vmul.f32 %v2580_v11, %v5622_v39  ;;  %v2573_v48 = vmul.f32 %v2572_v0, %v5622_v39 }
 0x46e   : > { %v2589_v38 = vmul.f32 %v2588_v20, %v5622_v39  ;;  %v2661_v30 = vstv %s3818_s22  ;;  %v2694_v2 = vstv %s3824_s1  ;;  %v2734_v44 = vstv %s3829_s7  ;;  %s3838_s22 = sld [smem:[#allocation9 + $0x178]] }
 0x46f   : > { %v2726_v21 = vstv %s3828_s10  ;;  %s3840_s1 = sld [smem:[#allocation9 + $0x131]] }
 0x470   : > { %v2799_v45 = vstv %s3839_s4  ;;  %s5697_s7 = sld [smem:[#allocation9 + $0x155]] }
 0x471   : > { %v2321_v43 = vpop.permute.xlu0 %2320  ;;  %s5699_s10 = sld [smem:[#allocation9 + $0x19d]] }
 0x472   : > { %2323 = vst.msk [vmem:[#allocation2 + $0x11] sm:$0xff] %vm296_vm5, %v2321_v43  ;;  %2405 = vrot.lane.b32.xlu1 %v2403_v23, %s4154_s8  ;;  %2397 = vrot.lane.b32.xlu0 %v2395_v24, %s4153_s26  ;;  %v2710_v23 = vstv %s3826_s28  ;;  %v2702_v24 = vstv %s3825_s29  ;;  %s3769_s28 = sld [smem:[#allocation10 + $0x9]] }
 0x473   : > { %2413 = vrot.lane.b32.xlu2 %v2411_v31, %s4154_s8  ;;  %v2362_v43 = vstv %s3774_s30  ;;  %v2718_v31 = vstv %s3827_s9  ;;  %s5681_s30 = sld [smem:[#allocation10 + $0x8]] }
 0x474   : > { %v2363_v34 = vmul.f32 %v2362_v43, %v5585_v51  ;;  %s5688_s29 = sld [smem:[#allocation9 + $0x18c]]  ;;  %v2791_v53 = vstv %s3838_s22 }
 0x475   : > { %s5691_s9 = sld [smem:[#allocation9 + $0x179]]  ;;  %v2807_v25 = vstv %s3840_s1 }
 0x476   : > { %s5736_s4 = sld [smem:[#allocation9 + $0x16b]] }
 0x477   : > { %s5742_s22 = sld [smem:[#allocation9 + $0x134]] }
 0x478   : > { %v2344_v20 = vstv %s3769_s28  ;;  %s3851_s1 = sld [smem:[#allocation9 + $0x19f]] }
 0x479   : > { %v5642_v8 = vld [vmem:[#allocation2 + $0x10] sm:$0xff]  ;;  %v2341_v0 = vstv %s5681_s30  ;;  %s3853_s30 = sld [smem:[#allocation9 + $0x158]] }
 0x47a   : > { %2429 = vrot.lane.b32.xlu1 %v2427_v1, %s4154_s8  ;;  %2421 = vrot.lane.b32.xlu0 %v2419_v42, %s4154_s8  ;;  %v2622_v32 = vmul.f32 %v2621_v54, %v5642_v8  ;;  %v2614_v37 = vmul.f32 %v2613_v35, %v5642_v8  ;;  %v2630_v36 = vmul.f32 %v2629_v17, %v5642_v8  ;;  %v5656_v50 = vld [vmem:[#allocation2 + $0x11] sm:$0xff]  ;;  %v2347_v42 = vstv %s3770_s5  ;;  %s5693_s5 = sld [smem:[#allocation9 + $0x147]] }
 0x47b   : > { %2454 = vrot.lane.b32.xlu2 %v2452_v49, %s4153_s26  ;;  %v2646_v4 = vmul.f32 %v2645_v46, %v5642_v8  ;;  %v2638_v47 = vmul.f32 %v2637_v52, %v5642_v8  ;;  %v2654_v62 = vmul.f32 %v2653_v56, %v5642_v8  ;;  %v2670_v29 = vmul.f32 %v2669_v60, %v5642_v8  ;;  %v5679_v59 = vld [vmem:[#allocation2 + $0x12] sm:$0xff]  ;;  %s5758_s28 = sld [smem:[#allocation9 + $0x1a0]] }
 0x47c   : > { %v2662_v5 = vmul.f32 %v2661_v30, %v5642_v8  ;;  %v2695_v27 = vmul.f32 %v2694_v2, %v5656_v50  ;;  %v2711_v41 = vmul.f32 %v2710_v23, %v5656_v50  ;;  %v2703_v61 = vmul.f32 %v2702_v24, %v5656_v50 }
 0x47d   : > { %v2719_v1 = vmul.f32 %v2718_v31, %v5656_v50  ;;  %v2364_v49 = vadd.f32 %v2363_v34, %v2347_v42  ;;  %v2792_v11 = vmul.f32 %v2791_v53, %v5679_v59  ;;  %v2366_v17 = vstv %s5688_s29  ;;  %s5762_s29 = sld [smem:[#allocation9 + $0x16e]] }
 0x47e   : > { %v2823_v52 = vstv %s5691_s9  ;;  %v2815_v56 = vstv %s5697_s7  ;;  %s3854_s9 = sld [smem:[#allocation9 + $0x17c]] }
 0x47f   : > { %v2329_v10 = vpop.permute.xlu1 %2328  ;;  %v2824_v30 = vmul.f32 %v2823_v52, %v5679_v59  ;;  %v2816_v2 = vmul.f32 %v2815_v56, %v5679_v59  ;;  %s5770_s7 = sld [smem:[#allocation9 + $0x14a]] }
 0x480   : > { %2331 = vst.msk [vmem:[#allocation2 + $0x21] sm:$0xff] %vm296_vm5, %v2329_v10  ;;  %vm3328_vm5 = vcmask 125952  }
 0x482   : > { %2470 = vrot.lane.b32.xlu1 %v2468_v15, %s4153_s26  ;;  %2462 = vrot.lane.b32.xlu0 %v2460_v13, %s4153_s26  ;;  %v2742_v15 = vstv %s3830_s11  ;;  %v2735_v13 = vmul.f32 %v2734_v44, %v5656_v50  ;;  %s5706_s11 = sld [smem:[#allocation10 + $0xb]] }
 0x483   : > { %2478 = vrot.lane.b32.xlu2 %v2476_v6, %s4153_s26  ;;  %v2727_v6 = vmul.f32 %v2726_v21, %v5656_v50  ;;  %v2743_v9 = vmul.f32 %v2742_v15, %v5656_v50 }
 0x485   : > { %v2520_v56 = vstv %s5770_s7  ;;  %s5843_s7 = sld [smem:[#allocation9 + $0x1a5]] }
 0x48a   : > { %2494 = vrot.lane.b32.xlu1 %v2492_v28, %s4154_s8  ;;  %2486 = vrot.lane.b32.xlu0 %v2484_v3, %s4154_s8  ;;  %v2775_v28 = vstv %s3836_s19  ;;  %v2750_v3 = vstv %s3831_s20  ;;  %s5709_s19 = sld [smem:[#allocation9 + $0x123]] }
 0x48b   : > { %2502 = vrot.lane.b32.xlu2 %v2500_v26, %s4154_s8  ;;  %v2783_v26 = vstv %s3837_s23  ;;  %v2776_v40 = vmul.f32 %v2775_v28, %v5679_v59  ;;  %v2751_v58 = vmul.f32 %v2750_v3, %v5656_v50  ;;  %s5715_s20 = sld [smem:[#allocation9 + $0x157]] }
 0x48c   : > { %v2784_v22 = vmul.f32 %v2783_v26, %v5679_v59  ;;  %s5722_s23 = sld [smem:[#allocation9 + $0x133]] }
 0x491   : > { %v2864_v42 = vstv %s5715_s20  ;;  %s5787_s20 = sld [smem:[#allocation9 + $0x1a2]] }
 0x492   : > { %2535 = vrot.lane.b32.xlu1 %v2533_v57, %s4153_s26  ;;  %2510 = vrot.lane.b32.xlu0 %v2508_v63, %s4154_s8  ;;  %v2354_v57 = vstv %s3772_s6  ;;  %v2358_v63 = vstv %s3773_s27  ;;  %s5725_s6 = sld [smem:[#allocation9 + $0x17b]] }
 0x493   : > { %2543 = vrot.lane.b32.xlu2 %v2541_v18, %s4153_s26  ;;  %s5732_s27 = sld [smem:[#allocation9 + $0x18f]] }
 0x49a   : > { %2559 = vrot.lane.b32.xlu1 %v2557_v16, %s4153_s26  ;;  %2551 = vrot.lane.b32.xlu0 %v2549_v33, %s4153_s26  ;;  %v2355_v16 = vmul.f32 %v2354_v57, %v5585_v51  ;;  %v2359_v33 = vmul.f32 %v2358_v63, %v5585_v51  ;;  %v2888_v63 = vstv %s5742_s22  ;;  %s5811_s22 = sld [smem:[#allocation9 + $0x17f]] }
 0x49b   : > { %2567 = vrot.lane.b32.xlu2 %v2565_v7, %s4154_s8  ;;  %v2800_v7 = vmul.f32 %v2799_v45, %v5679_v59  ;;  %v2896_v45 = vstv %s3853_s30  ;;  %s5825_s30 = sld [smem:[#allocation9 + $0x195]] }
 0x4a2   : > { %2583 = vrot.lane.b32.xlu1 %v2581_v12, %s4154_s8  ;;  %2575 = vrot.lane.b32.xlu0 %v2573_v48, %s4154_s8  ;;  %v2808_v12 = vmul.f32 %v2807_v25, %v5679_v59  ;;  %v2356_v48 = vadd.f32 %v2355_v16, %v2341_v0  ;;  %v2524_v0 = vstv %s5762_s29  ;;  %s3873_s29 = sld [smem:[#allocation9 + $0x15d]] }
 0x4a3   : > { %2591 = vrot.lane.b32.xlu2 %v2589_v38, %s4154_s8  ;;  %v2360_v38 = vadd.f32 %v2359_v33, %v2344_v20 }
 0x4aa   : > { %2624 = vrot.lane.b32.xlu1 %v2622_v32, %s4153_s26  ;;  %2616 = vrot.lane.b32.xlu0 %v2614_v37, %s4153_s26  ;;  %v2439_v32 = vstv %s5693_s5  ;;  %s3860_s5 = sld [smem:[#allocation9 + $0x136]] }
 0x4ab   : > { %2632 = vrot.lane.b32.xlu2 %v2630_v36, %s4153_s26  ;;  %v2440_v60 = vmul.f32 %v2439_v32, %v5601_v19 }
 0x4b2   : > { %2648 = vrot.lane.b32.xlu1 %v2646_v4, %s4154_s8  ;;  %2640 = vrot.lane.b32.xlu0 %v2638_v47, %s4153_s26  ;;  %v2831_v4 = vstv %s5699_s10  ;;  %s5774_s10 = sld [smem:[#allocation9 + $0x126]] }
 0x4b3   : > { %2656 = vrot.lane.b32.xlu2 %v2654_v62, %s4154_s8  ;;  %v2367_v62 = vmul.f32 %v2366_v17, %v5585_v51  ;;  %v2937_v17 = vstv %s3860_s5  ;;  %s5838_s5 = sld [smem:[#allocation9 + $0x14d]] }
 0x4ba   : > { %2672 = vrot.lane.b32.xlu1 %v2670_v29, %s4154_s8  ;;  %2664 = vrot.lane.b32.xlu0 %v2662_v5, %s4154_s8  ;;  %v2350_v29 = vstv %s5706_s11  ;;  %v2832_v5 = vmul.f32 %v2831_v4, %v5679_v59  ;;  %s5779_s11 = sld [smem:[#allocation9 + $0x17e]]  ;;  %v2516_v4 = vstv %s5774_s10 }
 0x4bb   : > { %2697 = vrot.lane.b32.xlu2 %v2695_v27, %s4153_s26  ;;  %v2435_v27 = vstv %s5709_s19  ;;  %v2368_v51 = vadd.f32 %v2367_v62, %v2350_v29  ;;  %s5783_s19 = sld [smem:[#allocation9 + $0x15a]] }
 0x4bc   : > { %v2436_v43 = vmul.f32 %v2435_v27, %v5601_v19  ;;  %s5850_s10 = sld [smem:[#allocation9 + $0x181]] }
 0x4c2   : > { %2713 = vrot.lane.b32.xlu1 %v2711_v41, %s4153_s26  ;;  %2705 = vrot.lane.b32.xlu0 %v2703_v61, %s4153_s26  ;;  %v5744_v41 = vld [vmem:[#allocation2 + $0x20] sm:$0xff] }
 0x4c3   : > { %2721 = vrot.lane.b32.xlu2 %v2719_v1, %s4153_s26  ;;  %v2865_v21 = vmul.f32 %v2864_v42, %v5744_v41  ;;  %v2889_v16 = vmul.f32 %v2888_v63, %v5744_v41 }
 0x4c5   : > { %v2390_v55 = vpop.permute.xlu2 %2389 }
 0x4c6   : > { %v5671_v10 = vadd.f32 %v2390_v55, %v2364_v49  ;;  %v2856_v49 = vstv %s5722_s23  ;;  %v2872_v55 = vstv %s5725_s6  ;;  %s5795_s23 = sld [smem:[#allocation9 + $0x192]] }
 0x4c7   : > { %v2857_v15 = vmul.f32 %v2856_v49, %v5744_v41  ;;  %s5800_s6 = sld [smem:[#allocation9 + $0x15b]] }
 0x4ca   : > { %2737 = vrot.lane.b32.xlu1 %v2735_v13, %s4154_s8  ;;  %2729 = vrot.lane.b32.xlu0 %v2727_v6, %s4154_s8  ;;  %v2873_v13 = vmul.f32 %v2872_v55, %v5744_v41  ;;  %v2447_v6 = vstv %s5732_s27  ;;  %s5804_s27 = sld [smem:[#allocation9 + $0x129]] }
 0x4cb   : > { %2745 = vrot.lane.b32.xlu2 %v2743_v9, %s4154_s8  ;;  %v2443_v9 = vstv %s5736_s4  ;;  %v2448_v3 = vmul.f32 %v2447_v6, %v5601_v19  ;;  %s5808_s4 = sld [smem:[#allocation9 + $0x137]] }
 0x4cc   : > { %v2528_v42 = vstv %s5795_s23  ;;  %s3877_s23 = sld [smem:[#allocation9 + $0x15e]] }
 0x4cd   : > { %v2414_v14 = vpop.permute.xlu2 %2413 }
 0x4d2   : > { %2778 = vrot.lane.b32.xlu1 %v2776_v40, %s4153_s26  ;;  %2753 = vrot.lane.b32.xlu0 %v2751_v58, %s4154_s8  ;;  %v2444_v40 = vmul.f32 %v2443_v9, %v5601_v19 }
 0x4d3   : > { %2786 = vrot.lane.b32.xlu2 %v2784_v22, %s4153_s26 }
 0x4d5   : > { %v5695_v18 = vpop.permute.xlu2 %2454 }
 0x4da   : > { %2802 = vrot.lane.b32.xlu1 %v2800_v7, %s4153_s26  ;;  %2794 = vrot.lane.b32.xlu0 %v2792_v11, %s4153_s26 }
 0x4db   : > { %2810 = vrot.lane.b32.xlu2 %v2808_v12, %s4154_s8 }
 0x4dc   : > { %v2374_v54 = vpop.permute.xlu0 %2373  ;;  %v2382_v35 = vpop.permute.xlu1 %2381 }
 0x4dd   : > { %v2376_v37 = vadd.f32 %v2374_v54, %v2356_v48  ;;  %v5718_v36 = vpop.permute.xlu2 %2478  ;;  %v2384_v46 = vadd.f32 %v2382_v35, %v2360_v38  ;;  %v2912_v38 = vstv %s5758_s28  ;;  %v2904_v54 = vstv %s3854_s9  ;;  %v5785_v35 = vld [vmem:[#allocation2 + $0x21] sm:$0xff]  ;;  %s5829_s28 = sld [smem:[#allocation9 + $0x1a3]] }
 0x4de   : > { %v2938_v52 = vmul.f32 %v2937_v17, %v5785_v35  ;;  %s5835_s9 = sld [smem:[#allocation9 + $0x171]]  ;;  %v2601_v17 = vstv %s5838_s5 }
 0x4df   : > { %v2416_v47 = vadd.f32 %v2414_v14, %v2384_v46  ;;  %v2905_v46 = vmul.f32 %v2904_v54, %v5744_v41  ;;  %s3889_s5 = sld [smem:[#allocation9 + $0x161]] }
 0x4e1   : > { %v2441_v23 = vadd.f32 %v2440_v60, %v2416_v47  ;;  %v2521_v60 = vmul.f32 %v2520_v56, %v5622_v39 }
 0x4e2   : > { %2826 = vrot.lane.b32.xlu1 %v2824_v30, %s4154_s8  ;;  %2818 = vrot.lane.b32.xlu0 %v2816_v2, %s4154_s8  ;;  %v2517_v2 = vmul.f32 %v2516_v4, %v5622_v39 }
 0x4e3   : > { %2834 = vrot.lane.b32.xlu2 %v2832_v5, %s4154_s8 }
 0x4e4   : > { %v2398_v24 = vpop.permute.xlu0 %2397  ;;  %v2406_v31 = vpop.permute.xlu1 %2405  ;;  %v2605_v54 = vstv %s5835_s9  ;;  %s5896_s9 = sld [smem:[#allocation9 + $0x1a8]] }
 0x4e5   : > { %v2400_v61 = vadd.f32 %v2398_v24, %v2368_v51  ;;  %v2503_v34 = vpop.permute.xlu2 %2502  ;;  %v2408_v1 = vadd.f32 %v2406_v31, %v2376_v37  ;;  %v2525_v37 = vmul.f32 %v2524_v0, %v5622_v39  ;;  %v2945_v51 = vstv %s5783_s19  ;;  %s5861_s19 = sld [smem:[#allocation9 + $0x182]] }
 0x4e6   : > { %v2961_v24 = vstv %s5787_s20  ;;  %s5865_s20 = sld [smem:[#allocation9 + $0x150]] }
 0x4e7   : > { %v2437_v44 = vadd.f32 %v2436_v43, %v2408_v1  ;;  %v2962_v1 = vmul.f32 %v2961_v24, %v5785_v35 }
 0x4e9   : > { %v2457_v14 = vadd.f32 %v5695_v18, %v2437_v44  ;;  %v2880_v18 = vstv %s3851_s1  ;;  %s5821_s1 = sld [smem:[#allocation9 + $0x139]] }
 0x4ea   : > { %2867 = vrot.lane.b32.xlu1 %v2865_v21, %s4153_s26  ;;  %2859 = vrot.lane.b32.xlu0 %v2857_v15, %s4153_s26  ;;  %v2881_v19 = vmul.f32 %v2880_v18, %v5744_v41  ;;  %v2529_v21 = vmul.f32 %v2528_v42, %v5622_v39  ;;  %v2597_v15 = vstv %s5804_s27  ;;  %s5874_s27 = sld [smem:[#allocation9 + $0x12c]]  ;;  %v3058_v42 = vstv %s3877_s23 }
 0x4eb   : > { %2875 = vrot.lane.b32.xlu2 %v2873_v13, %s4153_s26  ;;  %s5924_s23 = sld [smem:[#allocation9 + $0x12f]] }
 0x4ec   : > { %v2422_v28 = vpop.permute.xlu0 %2421  ;;  %v2430_v26 = vpop.permute.xlu1 %2429 }
 0x4ed   : > { %v2424_v58 = vadd.f32 %v2422_v28, %v5671_v10  ;;  %v5765_v22 = vpop.permute.xlu2 %2543  ;;  %v2432_v57 = vadd.f32 %v2430_v26, %v2400_v61  ;;  %v2897_v10 = vmul.f32 %v2896_v45, %v5744_v41  ;;  %v2969_v28 = vstv %s5808_s4  ;;  %s5877_s4 = sld [smem:[#allocation9 + $0x160]] }
 0x4ee   : > { %v2970_v39 = vmul.f32 %v2969_v28, %v5785_v35 }
 0x4ef   : > { %v2449_v53 = vadd.f32 %v2448_v3, %v2432_v57  ;;  %v2445_v25 = vadd.f32 %v2444_v40, %v2424_v58  ;;  %v2985_v3 = vstv %s5811_s22  ;;  %v2598_v58 = vmul.f32 %v2597_v15, %v5642_v8  ;;  %s3884_s22 = sld [smem:[#allocation9 + $0x13c]] }
 0x4f0   : > { %v2986_v57 = vmul.f32 %v2985_v3, %v5785_v35 }
 0x4f1   : > { %v2481_v33 = vadd.f32 %v5718_v36, %v2449_v53  ;;  %v2913_v36 = vmul.f32 %v2912_v38, %v5744_v41  ;;  %v2609_v53 = vstv %s5825_s30  ;;  %s5885_s30 = sld [smem:[#allocation9 + $0x198]] }
 0x4f2   : > { %2891 = vrot.lane.b32.xlu1 %v2889_v16, %s4154_s8  ;;  %2883 = vrot.lane.b32.xlu0 %v2881_v19, %s4153_s26 }
 0x4f3   : > { %2899 = vrot.lane.b32.xlu2 %v2897_v10, %s4154_s8  ;;  %v3107_v3 = vstv %s5877_s4  ;;  %s5935_s4 = sld [smem:[#allocation9 + $0x1ab]] }
 0x4f4   : > { %v2463_v7 = vpop.permute.xlu0 %2462  ;;  %v2471_v11 = vpop.permute.xlu1 %2470 }
 0x4f5   : > { %v2465_v20 = vadd.f32 %v2463_v7, %v2441_v23  ;;  %v2568_v12 = vpop.permute.xlu2 %2567  ;;  %v2473_v48 = vadd.f32 %v2471_v11, %v2445_v25  ;;  %v2953_v23 = vstv %s5779_s11  ;;  %v5846_v25 = vld [vmem:[#allocation2 + $0x22] sm:$0xff]  ;;  %v2993_v7 = vstv %s5829_s28  ;;  %s3876_s11 = sld [smem:[#allocation9 + $0x13a]] }
 0x4f6   : > { %v2954_v61 = vmul.f32 %v2953_v23, %v5785_v35  ;;  %v3026_v11 = vstv %s3873_s29  ;;  %v3059_v15 = vmul.f32 %v3058_v42, %v5846_v25  ;;  %s5890_s28 = sld [smem:[#allocation9 + $0x174]] }
 0x4f7   : > { %v2505_v32 = vadd.f32 %v2503_v34, %v2473_v48  ;;  %v2946_v34 = vmul.f32 %v2945_v51, %v5785_v35  ;;  %v2994_v48 = vmul.f32 %v2993_v7, %v5785_v35  ;;  %v3027_v38 = vmul.f32 %v3026_v11, %v5846_v25  ;;  %s5893_s29 = sld [smem:[#allocation9 + $0x13d]] }
 0x4f9   : > { %v2526_v47 = vadd.f32 %v2525_v37, %v2505_v32 }
 0x4fa   : > { %2915 = vrot.lane.b32.xlu1 %v2913_v36, %s4154_s8  ;;  %2907 = vrot.lane.b32.xlu0 %v2905_v46, %s4154_s8  ;;  %v2606_v36 = vmul.f32 %v2605_v54, %v5642_v8 }
 0x4fb   : > { %2940 = vrot.lane.b32.xlu2 %v2938_v52, %s4153_s26  ;;  %v2602_v52 = vmul.f32 %v2601_v17, %v5642_v8 }
 0x4fc   : > { %v2487_v62 = vpop.permute.xlu0 %2486  ;;  %v2495_v30 = vpop.permute.xlu1 %2494 }
 0x4fd   : > { %v2489_v29 = vadd.f32 %v2487_v62, %v2457_v14  ;;  %v2592_v5 = vpop.permute.xlu2 %2591  ;;  %v2497_v27 = vadd.f32 %v2495_v30, %v2465_v20  ;;  %v2977_v14 = vstv %s5800_s6  ;;  %v2610_v20 = vmul.f32 %v2609_v53, %v5642_v8  ;;  %s3879_s6 = sld [smem:[#allocation9 + $0x1a6]] }
 0x4fe   : > { %v3042_v62 = vstv %s5843_s7  ;;  %v3050_v30 = vstv %s3876_s11  ;;  %s5909_s7 = sld [smem:[#allocation9 + $0x1a9]] }
 0x4ff   : > { %v2522_v43 = vadd.f32 %v2521_v60, %v2497_v27  ;;  %v2518_v31 = vadd.f32 %v2517_v2, %v2489_v29  ;;  %v3034_v60 = vstv %s5850_s10  ;;  %v3051_v8 = vmul.f32 %v3050_v30, %v5846_v25  ;;  %s5913_s10 = sld [smem:[#allocation9 + $0x177]] }
 0x500   : > { %v3035_v27 = vmul.f32 %v3034_v60, %v5846_v25  ;;  %s3890_s11 = sld [smem:[#allocation9 + $0x185]] }
 0x501   : > { %v2546_v49 = vadd.f32 %v5765_v22, %v2522_v43  ;;  %v2978_v22 = vmul.f32 %v2977_v14, %v5785_v35  ;;  %v2682_v43 = vstv %s5865_s20  ;;  %s5920_s20 = sld [smem:[#allocation9 + $0x153]] }
 0x502   : > { %2956 = vrot.lane.b32.xlu1 %v2954_v61, %s4153_s26  ;;  %2948 = vrot.lane.b32.xlu0 %v2946_v34, %s4153_s26 }
 0x503   : > { %2964 = vrot.lane.b32.xlu2 %v2962_v1, %s4153_s26  ;;  %v3066_v1 = vstv %s5861_s19  ;;  %s3896_s19 = sld [smem:[#allocation9 + $0x13f]] }
 0x504   : > { %v2511_v55 = vpop.permute.xlu0 %2510  ;;  %v2536_v44 = vpop.permute.xlu1 %2535 }
 0x505   : > { %v2513_v13 = vadd.f32 %v2511_v55, %v2481_v33  ;;  %v2633_v6 = vpop.permute.xlu2 %2632  ;;  %v2538_v9 = vadd.f32 %v2536_v44, %v2518_v31  ;;  %v3018_v33 = vstv %s5821_s1  ;;  %s3886_s1 = sld [smem:[#allocation9 + $0x184]]  ;;  %v2683_v44 = vmul.f32 %v2682_v43, %v5656_v50 }
 0x507   : > { %v2570_v26 = vadd.f32 %v2568_v12, %v2538_v9  ;;  %v2530_v40 = vadd.f32 %v2529_v21, %v2513_v13  ;;  %v3019_v12 = vmul.f32 %v3018_v33, %v5846_v25  ;;  %v3067_v21 = vmul.f32 %v3066_v1, %v5846_v25 }
 0x508   : > { %v2678_v9 = vstv %s5874_s27  ;;  %v2686_v33 = vstv %s5890_s28  ;;  %s5929_s27 = sld [smem:[#allocation9 + $0x163]]  ;;  %v2759_v1 = vstv %s5924_s23 }
 0x509   : > { %v2599_v63 = vadd.f32 %v2598_v58, %v2570_v26  ;;  %v5898_v26 = vld [vmem:[#allocation2 + $0x30] sm:$0xff]  ;;  %v2687_v17 = vmul.f32 %v2686_v33, %v5656_v50  ;;  %s5956_s28 = sld [smem:[#allocation9 + $0x140]] }
 0x50a   : > { %2980 = vrot.lane.b32.xlu1 %v2978_v22, %s4154_s8  ;;  %2972 = vrot.lane.b32.xlu0 %v2970_v39, %s4154_s8  ;;  %v2679_v22 = vmul.f32 %v2678_v9, %v5656_v50  ;;  %v2760_v9 = vmul.f32 %v2759_v1, %v5679_v59  ;;  %s5994_s23 = sld [smem:[#allocation9 + $0x18a]] }
 0x50b   : > { %2988 = vrot.lane.b32.xlu2 %v2986_v57, %s4154_s8  ;;  %v3099_v57 = vstv %s3884_s22  ;;  %s5945_s22 = sld [smem:[#allocation9 + $0x19b]] }
 0x50c   : > { %v2552_v18 = vpop.permute.xlu0 %2551  ;;  %v2560_v45 = vpop.permute.xlu1 %2559  ;;  %v3100_v53 = vmul.f32 %v3099_v57, %v5898_v26 }
 0x50d   : > { %v2554_v16 = vadd.f32 %v2552_v18, %v2526_v47  ;;  %v2657_v19 = vpop.permute.xlu2 %2656  ;;  %v2562_v10 = vadd.f32 %v2560_v45, %v2530_v40  ;;  %v3108_v45 = vmul.f32 %v3107_v3, %v5898_v26 }
 0x50f   : > { %v2594_v0 = vadd.f32 %v2592_v5, %v2562_v10  ;;  %v3043_v5 = vmul.f32 %v3042_v62, %v5846_v25  ;;  %v2690_v10 = vstv %s5885_s30  ;;  %v2767_v62 = vstv %s5913_s10  ;;  %s5952_s30 = sld [smem:[#allocation9 + $0x132]] }
 0x510   : > { %v3212_v33 = vstv %s5956_s28  ;;  %s3909_s10 = sld [smem:[#allocation9 + $0x166]] }
 0x511   : > { %v2611_v32 = vadd.f32 %v2610_v20, %v2594_v0  ;;  %v3131_v0 = vstv %s5893_s29  ;;  %v3123_v20 = vstv %s5896_s9  ;;  %s3902_s29 = sld [smem:[#allocation9 + $0x188]]  ;;  %v2771_v57 = vstv %s5945_s22 }
 0x512   : > { %3021 = vrot.lane.b32.xlu1 %v3019_v12, %s4153_s26  ;;  %2996 = vrot.lane.b32.xlu0 %v2994_v48, %s4154_s8  ;;  %s5966_s9 = sld [smem:[#allocation9 + $0x142]] }
 0x513   : > { %3029 = vrot.lane.b32.xlu2 %v3027_v38, %s4153_s26  ;;  %v2691_v38 = vmul.f32 %v2690_v10, %v5656_v50  ;;  %s3913_s22 = sld [smem:[#allocation9 + $0x167]] }
 0x514   : > { %v2576_v37 = vpop.permute.xlu0 %2575  ;;  %v2584_v46 = vpop.permute.xlu1 %2583  ;;  %s3858_s28 = sld [smem:[#allocation9 + $0x17d]] }
 0x515   : > { %v2578_v56 = vadd.f32 %v2576_v37, %v2546_v49  ;;  %v2698_v4 = vpop.permute.xlu2 %2697  ;;  %v2586_v47 = vadd.f32 %v2584_v46, %v2554_v16  ;;  %v3074_v49 = vstv %s3879_s6  ;;  %v3132_v46 = vmul.f32 %v3131_v0, %v5898_v26  ;;  %s5927_s6 = sld [smem:[#allocation9 + $0x187]] }
 0x516   : > { %v3075_v13 = vmul.f32 %v3074_v49, %v5846_v25 }
 0x517   : > { %v2607_v2 = vadd.f32 %v2606_v36, %v2586_v47  ;;  %v2603_v29 = vadd.f32 %v2602_v52, %v2578_v56  ;;  %v3124_v52 = vmul.f32 %v3123_v20, %v5898_v26 }
 0x519   : > { %v2635_v23 = vadd.f32 %v2633_v6, %v2607_v2 }
 0x51a   : > { %3045 = vrot.lane.b32.xlu1 %v3043_v5, %s4153_s26  ;;  %3037 = vrot.lane.b32.xlu0 %v3035_v27, %s4153_s26  ;;  %v3147_v5 = vstv %s3890_s11  ;;  %v5933_v27 = vld [vmem:[#allocation2 + $0x31] sm:$0xff]  ;;  %s5980_s11 = sld [smem:[#allocation9 + $0x17a]] }
 0x51b   : > { %3053 = vrot.lane.b32.xlu2 %v3051_v8, %s4154_s8  ;;  %v3180_v8 = vstv %s3896_s19  ;;  %v3148_v43 = vmul.f32 %v3147_v5, %v5898_v26  ;;  %s5984_s19 = sld [smem:[#allocation9 + $0x156]] }
 0x51c   : > { %v2617_v51 = vpop.permute.xlu0 %2616  ;;  %v2625_v24 = vpop.permute.xlu1 %2624 }
 0x51d   : > { %v2619_v31 = vadd.f32 %v2617_v51, %v2599_v63  ;;  %v2722_v61 = vpop.permute.xlu2 %2721  ;;  %v2627_v34 = vadd.f32 %v2625_v24, %v2603_v29  ;;  %v3115_v63 = vstv %s3886_s1  ;;  %v3155_v29 = vstv %s5909_s7  ;;  %s5948_s1 = sld [smem:[#allocation9 + $0x164]] }
 0x51e   : > { %v3116_v16 = vmul.f32 %v3115_v63, %v5898_v26  ;;  %v2768_v51 = vmul.f32 %v2767_v62, %v5679_v59  ;;  %v3156_v24 = vmul.f32 %v3155_v29, %v5898_v26  ;;  %s5974_s7 = sld [smem:[#allocation9 + $0x1ac]] }
 0x51f   : > { %v2659_v55 = vadd.f32 %v2657_v19, %v2627_v34  ;;  %v2763_v34 = vstv %s5920_s20  ;;  %s5987_s20 = sld [smem:[#allocation9 + $0x1ae]] }
 0x520   : > { %v2848_v5 = vstv %s5980_s11  ;;  %s3882_s11 = sld [smem:[#allocation9 + $0x183]] }
 0x521   : > { %v2684_v6 = vadd.f32 %v2683_v44, %v2659_v55  ;;  %v3196_v55 = vstv %s5927_s6  ;;  %v3188_v44 = vstv %s5929_s27  ;;  %s3912_s6 = sld [smem:[#allocation9 + $0x143]] }
 0x522   : > { %3069 = vrot.lane.b32.xlu1 %v3067_v21, %s4154_s8  ;;  %3061 = vrot.lane.b32.xlu0 %v3059_v15, %s4154_s8  ;;  %s6005_s27 = sld [smem:[#allocation9 + $0x18b]] }
 0x523   : > { %3077 = vrot.lane.b32.xlu2 %v3075_v13, %s4154_s8  ;;  %v2764_v13 = vmul.f32 %v2763_v34, %v5679_v59 }
 0x524   : > { %v2641_v14 = vpop.permute.xlu0 %2640  ;;  %v2649_v28 = vpop.permute.xlu1 %2648 }
 0x525   : > { %v2643_v40 = vadd.f32 %v2641_v14, %v2611_v32  ;;  %v2746_v58 = vpop.permute.xlu2 %2745  ;;  %v2651_v39 = vadd.f32 %v2649_v28, %v2619_v31  ;;  %v3139_v32 = vstv %s3889_s5  ;;  %v3181_v31 = vmul.f32 %v3180_v8, %v5933_v27  ;;  %s5970_s5 = sld [smem:[#allocation9 + $0x19e]] }
 0x526   : > { %v3140_v56 = vmul.f32 %v3139_v32, %v5898_v26  ;;  %v3204_v14 = vstv %s5935_s4  ;;  %s3857_s4 = sld [smem:[#allocation9 + $0x159]] }
 0x527   : > { %v2680_v18 = vadd.f32 %v2679_v22, %v2651_v39  ;;  %v3205_v22 = vmul.f32 %v3204_v14, %v5933_v27 }
 0x529   : > { %v2700_v19 = vadd.f32 %v2698_v4, %v2680_v18 }
 0x52a   : > { %3110 = vrot.lane.b32.xlu1 %v3108_v45, %s4153_s26  ;;  %3102 = vrot.lane.b32.xlu0 %v3100_v53, %s4153_s26  ;;  %v3220_v45 = vstv %s5948_s1  ;;  %v2840_v53 = vstv %s5952_s30  ;;  %s3915_s1 = sld [smem:[#allocation9 + $0x1af]] }
 0x52b   : > { %3118 = vrot.lane.b32.xlu2 %v3116_v16, %s4153_s26  ;;  %s3856_s30 = sld [smem:[#allocation9 + $0x135]] }
 0x52c   : > { %v2665_v7 = vpop.permute.xlu0 %2664  ;;  %v2673_v11 = vpop.permute.xlu1 %2672 }
 0x52d   : > { %v2667_v12 = vadd.f32 %v2665_v7, %v2635_v23  ;;  %v2787_v48 = vpop.permute.xlu2 %2786  ;;  %v2675_v54 = vadd.f32 %v2673_v11, %v2643_v40  ;;  %v3197_v40 = vmul.f32 %v3196_v55, %v5933_v27  ;;  %v2772_v7 = vmul.f32 %v2771_v57, %v5679_v59 }
 0x52e   : > { %v3228_v11 = vstv %s3902_s29  ;;  %v3293_v55 = vstv %s3912_s6  ;;  %s3870_s29 = sld [smem:[#allocation9 + $0x180]] }
 0x52f   : > { %v2692_v37 = vadd.f32 %v2691_v38, %v2675_v54  ;;  %v2688_v36 = vadd.f32 %v2687_v17, %v2667_v12  ;;  %v2841_v12 = vmul.f32 %v2840_v53, %v5744_v41  ;;  %v3213_v38 = vmul.f32 %v3212_v33, %v5933_v27  ;;  %s3895_s6 = sld [smem:[#allocation9 + $0x1aa]] }
 0x530   : > { %v3229_v54 = vmul.f32 %v3228_v11, %v5933_v27  ;;  %v3317_v57 = vstv %s3915_s1  ;;  %s3904_s1 = sld [smem:[#allocation9 + $0x141]] }
 0x531   : > { %v2724_v4 = vadd.f32 %v2722_v61, %v2692_v37  ;;  %v2852_v37 = vstv %s5970_s5  ;;  %s3871_s5 = sld [smem:[#allocation9 + $0x1a4]] }
 0x532   : > { %3134 = vrot.lane.b32.xlu1 %v3132_v46, %s4154_s8  ;;  %3126 = vrot.lane.b32.xlu0 %v3124_v52, %s4153_s26 }
 0x533   : > { %3142 = vrot.lane.b32.xlu2 %v3140_v56, %s4154_s8 }
 0x534   : > { %v2706_v50 = vpop.permute.xlu0 %2705  ;;  %v2714_v47 = vpop.permute.xlu1 %2713 }
 0x535   : > { %v2708_v60 = vadd.f32 %v2706_v50, %v2684_v6  ;;  %v2811_v30 = vpop.permute.xlu2 %2810  ;;  %v2716_v2 = vadd.f32 %v2714_v47, %v2688_v36  ;;  %v5990_v36 = vld [vmem:[#allocation2 + $0x32] sm:$0xff]  ;;  %v3236_v50 = vstv %s5974_s7  ;;  %v3269_v47 = vstv %s3909_s10  ;;  %s3880_s7 = sld [smem:[#allocation9 + $0x13b]] }
 0x536   : > { %v3270_v29 = vmul.f32 %v3269_v47, %v5990_v36  ;;  %s3883_s10 = sld [smem:[#allocation9 + $0x1a7]] }
 0x537   : > { %v2748_v23 = vadd.f32 %v2746_v58, %v2716_v2  ;;  %v3189_v58 = vmul.f32 %v3188_v44, %v5933_v27  ;;  %v3237_v2 = vmul.f32 %v3236_v50, %v5933_v27 }
 0x539   : > { %v2769_v61 = vadd.f32 %v2768_v51, %v2748_v23  ;;  %v2844_v23 = vstv %s5984_s19  ;;  %s3881_s19 = sld [smem:[#allocation9 + $0x15f]] }
 0x53a   : > { %3158 = vrot.lane.b32.xlu1 %v3156_v24, %s4154_s8  ;;  %3150 = vrot.lane.b32.xlu0 %v3148_v43, %s4154_s8  ;;  %v2849_v24 = vmul.f32 %v2848_v5, %v5744_v41 }
 0x53b   : > { %3183 = vrot.lane.b32.xlu2 %v3181_v31, %s4153_s26  ;;  %v3285_v31 = vstv %s5987_s20  ;;  %s3893_s20 = sld [smem:[#allocation9 + $0x162]] }
 0x53c   : > { %v2730_v42 = vpop.permute.xlu0 %2729  ;;  %v2738_v49 = vpop.permute.xlu1 %2737 }
 0x53d   : > { %v2732_v21 = vadd.f32 %v2730_v42, %v2700_v19  ;;  %v2835_v15 = vpop.permute.xlu2 %2834  ;;  %v2740_v6 = vadd.f32 %v2738_v49, %v2708_v60  ;;  %v2853_v60 = vmul.f32 %v2852_v37, %v5744_v41  ;;  %v3277_v42 = vstv %s5994_s23  ;;  %s3892_s23 = sld [smem:[#allocation9 + $0x13e]] }
 0x53e   : > { %v2845_v49 = vmul.f32 %v2844_v23, %v5744_v41 }
 0x53f   : > { %v2765_v28 = vadd.f32 %v2764_v13, %v2740_v6  ;;  %v2761_v3 = vadd.f32 %v2760_v9, %v2732_v21  ;;  %v3278_v13 = vmul.f32 %v3277_v42, %v5990_v36  ;;  %v3294_v6 = vmul.f32 %v3293_v55, %v5990_v36 }
 0x541   : > { %v2789_v39 = vadd.f32 %v2787_v48, %v2765_v28  ;;  %v3221_v48 = vmul.f32 %v3220_v45, %v5933_v27  ;;  %v2925_v28 = vstv %s3857_s4  ;;  %s3906_s4 = sld [smem:[#allocation9 + $0x189]] }
 0x542   : > { %3199 = vrot.lane.b32.xlu1 %v3197_v40, %s4153_s26  ;;  %3191 = vrot.lane.b32.xlu0 %v3189_v58, %s4153_s26 }
 0x543   : > { %3207 = vrot.lane.b32.xlu2 %v3205_v22, %s4153_s26  ;;  %v3309_v22 = vstv %s6005_s27  ;;  %s3894_s27 = sld [smem:[#allocation9 + $0x186]] }
 0x544   : > { %v2754_v63 = vpop.permute.xlu0 %2753  ;;  %v2779_v18 = vpop.permute.xlu1 %2778  ;;  %v3310_v45 = vmul.f32 %v3309_v22, %v5990_v36 }
 0x545   : > { %v2756_v16 = vadd.f32 %v2754_v63, %v2724_v4  ;;  %v2876_v19 = vpop.permute.xlu2 %2875  ;;  %v2781_v10 = vadd.f32 %v2779_v18, %v2761_v3  ;;  %v3261_v4 = vstv %s5966_s9  ;;  %v2926_v18 = vmul.f32 %v2925_v28, %v5785_v35  ;;  %s3868_s9 = sld [smem:[#allocation9 + $0x138]] }
 0x547   : > { %v2813_v0 = vadd.f32 %v2811_v30, %v2781_v10  ;;  %v2773_v20 = vadd.f32 %v2772_v7, %v2756_v16  ;;  %v3262_v30 = vmul.f32 %v3261_v4, %v5990_v36  ;;  %v3318_v16 = vmul.f32 %v3317_v57, %v5990_v36 }
 0x548   : > { %v2921_v10 = vstv %s3856_s30  ;;  %s3907_s30 = sld [smem:[#allocation9 + $0x1ad]] }
 0x549   : > { %v2842_v59 = vadd.f32 %v2841_v12, %v2813_v0 }
 0x54a   : > { %3223 = vrot.lane.b32.xlu1 %v3221_v48, %s4154_s8  ;;  %3215 = vrot.lane.b32.xlu0 %v3213_v38, %s4154_s8 }
 0x54b   : > { %3231 = vrot.lane.b32.xlu2 %v3229_v54, %s4154_s8 }
 0x54c   : > { %v2795_v17 = vpop.permute.xlu0 %2794  ;;  %v2803_v32 = vpop.permute.xlu1 %2802 }
 0x54d   : > { %v2797_v46 = vadd.f32 %v2795_v17, %v2769_v61  ;;  %v2900_v52 = vpop.permute.xlu2 %2899  ;;  %v2805_v56 = vadd.f32 %v2803_v32, %v2773_v20  ;;  %v2922_v20 = vmul.f32 %v2921_v10, %v5785_v35 }
 0x54f   : > { %v2837_v62 = vadd.f32 %v2835_v15, %v2805_v56  ;;  %v3286_v15 = vmul.f32 %v3285_v31, %v5990_v36  ;;  %v3002_v31 = vstv %s3868_s9 }
 0x550   : > { %v3003_v55 = vmul.f32 %v3002_v31, %v5846_v25 }
 0x551   : > { %v2854_v8 = vadd.f32 %v2853_v60, %v2837_v62 }
 0x552   : > { %3264 = vrot.lane.b32.xlu1 %v3262_v30, %s4153_s26  ;;  %3239 = vrot.lane.b32.xlu0 %v3237_v2, %s4154_s8  ;;  %v3010_v2 = vstv %s3870_s29  ;;  %s3925_s29 = sshll.u32 %s4198_s16, 4  ;;  %s3349_s16 = scalar_lea.sflag [#allocation6], %s4277_s17 }
 0x553   : > { %3272 = vrot.lane.b32.xlu2 %v3270_v29, %s4153_s26 }
 0x554   : > { %v2819_v51 = vpop.permute.xlu0 %2818  ;;  %v2827_v43 = vpop.permute.xlu1 %2826 }
 0x555   : > { %v2821_v61 = vadd.f32 %v2819_v51, %v2789_v39  ;;  %v2941_v34 = vpop.permute.xlu2 %2940  ;;  %v2829_v1 = vadd.f32 %v2827_v43, %v2797_v46  ;;  %v3301_v39 = vstv %s3913_s22  ;;  %v3011_v51 = vmul.f32 %v3010_v2, %v5846_v25  ;;  %s3905_s22 = sld [smem:[#allocation9 + $0x165]] }
 0x556   : > { %v3302_v53 = vmul.f32 %v3301_v39, %v5990_v36 }
 0x557   : > { %v2850_v44 = vadd.f32 %v2849_v24, %v2829_v1  ;;  %v2846_v21 = vadd.f32 %v2845_v49, %v2821_v61 }
 0x559   : > { %v2878_v9 = vadd.f32 %v2876_v19, %v2850_v44 }
 0x55a   : > { %3288 = vrot.lane.b32.xlu1 %v3286_v15, %s4153_s26  ;;  %3280 = vrot.lane.b32.xlu0 %v3278_v13, %s4153_s26  ;;  %s3859_s26 = sld [smem:[#allocation9 + $0x1a1]]  ;;  %v3014_v13 = vstv %s3871_s5  ;;  %s3360_s5 = scalar_lea.hbm %s6085_s3, %s3925_s29 }
 0x55b   : > { %3296 = vrot.lane.b32.xlu2 %v3294_v6, %s4154_s8 }
 0x55c   : > { %v2860_v41 = vpop.permute.xlu0 %2859  ;;  %v2868_v14 = vpop.permute.xlu1 %2867 }
 0x55d   : > { %v2965_v3 = vpop.permute.xlu2 %2964  ;;  %v2862_v40 = vadd.f32 %v2860_v41, %v2842_v59  ;;  %v2870_v58 = vadd.f32 %v2868_v14, %v2846_v21  ;;  %v2929_v59 = vstv %s3858_s28  ;;  %v3083_v41 = vstv %s3880_s7 }
 0x55e   : > { %v2930_v4 = vmul.f32 %v2929_v59, %v5785_v35  ;;  %v3084_v39 = vmul.f32 %v3083_v41, %v5898_v26 }
 0x55f   : > { %v2902_v63 = vadd.f32 %v2900_v52, %v2870_v58 }
 0x560   : > { %v2933_v54 = vstv %s3859_s26  ;;  %s3473_s26 = sshll.u32 %s4277_s17, 4 }
 0x561   : > { %v2927_v19 = vadd.f32 %v2926_v18, %v2902_v63  ;;  %v2934_v52 = vmul.f32 %v2933_v54, %v5785_v35  ;;  %s217_s28 = scalar_lea.vmem [#allocation11], %s3473_s26 }
 0x562   : > { %3312 = vrot.lane.b32.xlu1 %v3310_v45, %s4154_s8  ;;  %3304 = vrot.lane.b32.xlu0 %v3302_v53, %s4154_s8  ;;  %v3095_v45 = vstv %s3883_s10  ;;  %s3361_s7 = sshll.u32 %s217_s28, 4  ;;  %s3363_s10 = sshll.u32 %s3360_s5, 4  ;;  %s3362_s7 = int_to_ptr.vmem [resolvable:$true] %s3361_s7  ;;  %s3364_s10 = int_to_ptr.hbm [resolvable:$true] %s3363_s10 }
 0x563   : > { %3320 = vrot.lane.b32.xlu2 %v3318_v16, %s4154_s8  ;;  %s3869_s8 = sld [smem:[#allocation9 + $0x15c]] }
 0x564   : > { %v2884_v33 = vpop.permute.xlu0 %2883  ;;  %v2892_v7 = vpop.permute.xlu1 %2891 }
 0x565   : > { %v2989_v11 = vpop.permute.xlu2 %2988  ;;  %v2886_v0 = vadd.f32 %v2884_v33, %v2854_v8  ;;  %v2894_v12 = vadd.f32 %v2892_v7, %v2862_v40  ;;  %v3091_v7 = vstv %s3882_s11  ;;  %s4080_s11 = sshra.s32 %s3364_s10, 4  ;;  %s4081_s11 = int_to_ptr.hbm [resolvable:$true] %s4080_s11 }
 0x566   : > { %p4087_p0 = scmp.lt.s32.totalorder %s4081_s11, %s6085_s3 }
 0x567   : > { %v2923_v48 = vadd.f32 %v2922_v20, %v2894_v12 }
 0x569   : > { %v2943_v38 = vadd.f32 %v2941_v34, %v2923_v48  ;;  %v3006_v43 = vstv %s3869_s8  ;;  %v3092_v48 = vmul.f32 %v3091_v7, %v5898_v26 }
 0x56a   : > { %v3007_v42 = vmul.f32 %v3006_v43, %v5846_v25 }
 0x56c   : > { %v2908_v17 = vpop.permute.xlu0 %2907  ;;  %v2916_v32 = vpop.permute.xlu1 %2915 }
 0x56d   : > { %v3030_v37 = vpop.permute.xlu2 %3029  ;;  %v2910_v46 = vadd.f32 %v2908_v17, %v2878_v9  ;;  %v2918_v56 = vadd.f32 %v2916_v32, %v2886_v0 }
 0x56f   : > { %v2935_v50 = vadd.f32 %v2934_v52, %v2918_v56  ;;  %v2931_v47 = vadd.f32 %v2930_v4, %v2910_v46  ;;  %v3168_v52 = vstv %s3893_s20 }
 0x571   : > { %v2967_v62 = vadd.f32 %v2965_v3, %v2935_v50  ;;  %v3015_v3 = vmul.f32 %v3014_v13, %v5846_v25  ;;  %v3169_v50 = vmul.f32 %v3168_v52, %v5933_v27  ;;  %v3253_v13 = vstv %s3906_s4 }
 0x572   : > { %v3254_v41 = vmul.f32 %v3253_v13, %v5990_v36 }
 0x574   : > { %v2949_v60 = vpop.permute.xlu0 %2948  ;;  %v2957_v30 = vpop.permute.xlu1 %2956 }
 0x575   : > { %v3054_v29 = vpop.permute.xlu2 %3053  ;;  %v2951_v5 = vadd.f32 %v2949_v60, %v2927_v19  ;;  %v2959_v8 = vadd.f32 %v2957_v30, %v2931_v47  ;;  %v3096_v19 = vmul.f32 %v3095_v45, %v5898_v26 }
 0x577   : > { %v2991_v23 = vadd.f32 %v2989_v11, %v2959_v8  ;;  %v3087_v11 = vstv %s3881_s19  ;;  %s4082_s19 = scalar_lea.hbm %s4081_s11, 16 }
 0x578   : > { %v3088_v54 = vmul.f32 %v3087_v11, %v5898_v26  ;;  %p4083_p4 = scmp.ne.s32.totalorder %s4081_s11, %s4082_s19 }
 0x579   : > { %v3012_v24 = vadd.f32 %v3011_v51, %v2991_v23  ;;  %v3176_v23 = vstv %s3895_s6  ;;  %v3172_v51 = vstv %s3894_s27  ;;  %s4086_s6 = scalar_lea.hbm %s6085_s3, 32 }
 0x57a   : > { %p4084_p6 = pnand %p4083_p4, %p4229_p11  ;;  %p4088_p7 = scmp.lt.s32.totalorder %s4086_s6, %s4082_s19 }
 0x57c   : > { %v2973_v61 = vpop.permute.xlu0 %2972  ;;  %v2981_v35 = vpop.permute.xlu1 %2980  ;;  %p4085_p13 = pneg %p4084_p6  ;;  %p4089_p5 = por %p4088_p7, %p4087_p0 }
 0x57d   : > { %v3078_v34 = vpop.permute.xlu2 %3077  ;;  %v2975_v1 = vadd.f32 %v2973_v61, %v2943_v38  ;;  %v2983_v49 = vadd.f32 %v2981_v35, %v2951_v5 }
 0x57e   : > { %p4090_p8 = pnand %p4089_p5, %p4085_p13 }
 0x57f   : > { %v3008_v44 = vadd.f32 %v3007_v42, %v2983_v49  ;;  %v3004_v21 = vadd.f32 %v3003_v55, %v2975_v1  ;;  %v3173_v42 = vmul.f32 %v3172_v51, %v5933_v27 }
 0x581   : > { %v3032_v15 = vadd.f32 %v3030_v37, %v3008_v44 }
 0x584   : > { %v2997_v6 = vpop.permute.xlu0 %2996  ;;  %v3022_v9 = vpop.permute.xlu1 %3021 }
 0x585   : > { %v2999_v14 = vadd.f32 %v2997_v6, %v2967_v62  ;;  %v3024_v28 = vadd.f32 %v3022_v9, %v3004_v21  ;;  %v3119_v40 = vpop.permute.xlu2 %3118  ;;  %v3164_v62 = vstv %s3892_s23 }
 0x586   : > { %v3165_v26 = vmul.f32 %v3164_v62, %v5933_v27 }
 0x587   : > { %v3056_v58 = vadd.f32 %v3054_v29, %v3024_v28  ;;  %v3016_v22 = vadd.f32 %v3015_v3, %v2999_v14  ;;  %v3249_v3 = vstv %s3905_s22 }
 0x589   : > { %v3085_v57 = vadd.f32 %v3084_v39, %v3056_v58 }
 0x58c   : > { %v3038_v63 = vpop.permute.xlu0 %3037  ;;  %v3046_v18 = vpop.permute.xlu1 %3045 }
 0x58d   : > { %v3048_v53 = vadd.f32 %v3046_v18, %v3016_v22  ;;  %v3143_v10 = vpop.permute.xlu2 %3142  ;;  %v3040_v25 = vadd.f32 %v3038_v63, %v3012_v24  ;;  %v3250_v63 = vmul.f32 %v3249_v3, %v5990_v36 }
 0x58f   : > { %v3080_v16 = vadd.f32 %v3078_v34, %v3048_v53  ;;  %v3177_v34 = vmul.f32 %v3176_v23, %v5933_v27 }
 0x591   : > { %v3097_v33 = vadd.f32 %v3096_v19, %v3080_v16  ;;  %v3257_v19 = vstv %s3907_s30 }
 0x594   : > { %v3062_v0 = vpop.permute.xlu0 %3061  ;;  %v3070_v20 = vpop.permute.xlu1 %3069 }
 0x595   : > { %v3064_v12 = vadd.f32 %v3062_v0, %v3032_v15  ;;  %v3072_v38 = vadd.f32 %v3070_v20, %v3040_v25  ;;  %v3184_v32 = vpop.permute.xlu2 %3183  ;;  %v3258_v20 = vmul.f32 %v3257_v19, %v5990_v36 }
 0x597   : > { %v3093_v59 = vadd.f32 %v3092_v48, %v3072_v38  ;;  %v3089_v17 = vadd.f32 %v3088_v54, %v3064_v12 }
 0x599   : > { %v3121_v43 = vadd.f32 %v3119_v40, %v3093_v59  ;;  %v3245_v40 = vstv %s3904_s1 }
 0x59a   : > { %v3246_v45 = vmul.f32 %v3245_v40, %v5990_v36 }
 0x59c   : > { %v3103_v37 = vpop.permute.xlu0 %3102  ;;  %v3111_v46 = vpop.permute.xlu1 %3110 }
 0x59d   : > { %v3113_v56 = vadd.f32 %v3111_v46, %v3089_v17  ;;  %v3105_v60 = vadd.f32 %v3103_v37, %v3085_v57  ;;  %v3208_v29 = vpop.permute.xlu2 %3207 }
 0x59f   : > { %v3145_v4 = vadd.f32 %v3143_v10, %v3113_v56 }
 0x5a1   : > { %v3170_v47 = vadd.f32 %v3169_v50, %v3145_v4 }
 0x5a4   : > { %v3127_v30 = vpop.permute.xlu0 %3126  ;;  %v3135_v2 = vpop.permute.xlu1 %3134 }
 0x5a5   : > { %v3137_v5 = vadd.f32 %v3135_v2, %v3105_v60  ;;  %v3129_v24 = vadd.f32 %v3127_v30, %v3097_v33  ;;  %v3232_v49 = vpop.permute.xlu2 %3231 }
 0x5a7   : > { %v3166_v8 = vadd.f32 %v3165_v26, %v3137_v5 }
 0x5a9   : > { %v3186_v22 = vadd.f32 %v3184_v32, %v3166_v8 }
 0x5ac   : > { %v3151_v31 = vpop.permute.xlu0 %3150  ;;  %v3159_v61 = vpop.permute.xlu1 %3158 }
 0x5ad   : > { %v3153_v35 = vadd.f32 %v3151_v31, %v3121_v43  ;;  %v3161_v1 = vadd.f32 %v3159_v61, %v3129_v24  ;;  %v3273_v14 = vpop.permute.xlu2 %3272 }
 0x5af   : > { %v3178_v55 = vadd.f32 %v3177_v34, %v3161_v1  ;;  %v3174_v44 = vadd.f32 %v3173_v42, %v3153_v35 }
 0x5b1   : > { %v3210_v33 = vadd.f32 %v3208_v29, %v3178_v55 }
 0x5b4   : > { %v3192_v21 = vpop.permute.xlu0 %3191  ;;  %v3200_v15 = vpop.permute.xlu1 %3199 }
 0x5b5   : > { %v3202_v6 = vadd.f32 %v3200_v15, %v3174_v44  ;;  %v3194_v58 = vadd.f32 %v3192_v21, %v3170_v47  ;;  %v3297_v10 = vpop.permute.xlu2 %3296 }
 0x5b7   : > { %v3234_v9 = vadd.f32 %v3232_v49, %v3202_v6 }
 0x5b9   : > { %v3255_v28 = vadd.f32 %v3254_v41, %v3234_v9 }
 0x5bc   : > { %v3216_v27 = vpop.permute.xlu0 %3215  ;;  %v3224_v39 = vpop.permute.xlu1 %3223 }
 0x5bd   : > { %v3218_v57 = vadd.f32 %v3216_v27, %v3186_v22  ;;  %v3226_v18 = vadd.f32 %v3224_v39, %v3194_v58  ;;  %v3321_v46 = vpop.permute.xlu2 %3320 }
 0x5bf   : > { %v3251_v53 = vadd.f32 %v3250_v63, %v3226_v18  ;;  %v3247_v16 = vadd.f32 %v3246_v45, %v3218_v57 }
 0x5c1   : > { %v3275_v50 = vadd.f32 %v3273_v14, %v3251_v53 }
 0x5c4   : > { %v3240_v7 = vpop.permute.xlu0 %3239  ;;  %v3265_v11 = vpop.permute.xlu1 %3264 }
 0x5c5   : > { %v3242_v25 = vadd.f32 %v3240_v7, %v3210_v33  ;;  %v3267_v0 = vadd.f32 %v3265_v11, %v3247_v16 }
 0x5c7   : > { %v3299_v12 = vadd.f32 %v3297_v10, %v3267_v0  ;;  %v3259_v48 = vadd.f32 %v3258_v20, %v3242_v25 }
 0x5c9   : > { %vm3324_vm4 = vcmp.gt.f32.partialorder %v3299_v12, 0.0  ;;  %v3325_v38 = vmul.f32 0.3, %v3299_v12 }
 0x5cb   : > { %v3326_v54 = vsel %vm3324_vm4, %v3299_v12, %v3325_v38 }
 0x5cc   : > { %v3327_v59 = vpack.c.bf16 %v3326_v54, %v3326_v54  ;;  %v3281_v17 = vpop.permute.xlu0 %3280  ;;  %v3289_v32 = vpop.permute.xlu1 %3288 }
 0x5cd   : > { %v3291_v37 = vadd.f32 %v3289_v32, %v3259_v48  ;;  %v3283_v56 = vadd.f32 %v3281_v17, %v3255_v28 }
 0x5ce   : > { %3329 = vst.msk [vmem:[%s217_s28] sm:$0xf] %vm3328_vm5, %v3327_v59 }
 0x5cf   : > { %v3323_v52 = vadd.f32 %v3321_v46, %v3291_v37 }
 0x5d1   : > { %vm3342_vm6 = vcmp.gt.f32.partialorder %v3323_v52, 0.0  ;;  %v3343_v36 = vmul.f32 0.3, %v3323_v52 }
 0x5d3   : > { %v3344_v4 = vsel %vm3342_vm6, %v3323_v52, %v3343_v36 }
 0x5d4   : > { %v3345_v47 = vpack.c.bf16 %v3344_v4, %v3344_v4  ;;  %v3305_v62 = vpop.permute.xlu0 %3304  ;;  %v3313_v60 = vpop.permute.xlu1 %3312 }
 0x5d5   : > { %v3307_v30 = vadd.f32 %v3305_v62, %v3275_v50  ;;  %v3315_v2 = vadd.f32 %v3313_v60, %v3283_v56 }
 0x5d6   : > { %3918 = vst.msk [vmem:[%s217_s28 + $0xc] sm:$0xf] %vm3328_vm5, %v3345_v47 }
 0x5d7   : > { %vm3330_vm7 = vcmp.gt.f32.partialorder %v3307_v30, 0.0  ;;  %v3331_v29 = vmul.f32 0.3, %v3307_v30  ;;  %vm3336_vm8 = vcmp.gt.f32.partialorder %v3315_v2, 0.0  ;;  %v3337_v26 = vmul.f32 0.3, %v3315_v2 }
 0x5d9   : > { %v3332_v5 = vsel %vm3330_vm7, %v3307_v30, %v3331_v29  ;;  %v3338_v8 = vsel %vm3336_vm8, %v3315_v2, %v3337_v26 }
 0x5da   : > { %v3333_v23 = vpack.c.bf16 %v3332_v5, %v3332_v5  ;;  %v3339_v51 = vpack.c.bf16 %v3338_v8, %v3338_v8 }
 0x5dc   : > { %3916 = vst.msk [vmem:[%s217_s28 + $0x4] sm:$0xf] %vm3328_vm5, %v3333_v23 }
 0x5dd   : > { %3917 = vst.msk [vmem:[%s217_s28 + $0x8] sm:$0xf] %vm3328_vm5, %v3339_v51 }
 0x5de   : > { %4093 = shalt.err (!%p4090_p8)
}
 0x5df   : > { %s4155_s17 = smov 64   ;;  %s4156_s22 = smov 4  }
 0x5e0   : > { %3936 = dma.vmem_to_hbm [thread:$0]  (%p4229_p11), %s3362_s7, 256, %s3364_s10, %s3349_s16, %s4155_s17, %s4155_s17, %s4156_s22  }
 0x5e1 PF: > { %s3378_s1 = sand.u32 1, %s4128_s12   ;;  %p6145_p9 = scmp.ge.s32.totalorder %s4140_s15, 2 }
 0x5e2   : > { %s3379_s30 = scalar_lea.sflag [#allocation6], %s3378_s1 }
 0x5e3   : > { %p3950_p10 = pnand %p6145_p9, %p4233_p12 }
 0x5e5   : > { %p3951_p1 = pneg %p3950_p10 }
 0x5e7   : > { %4123 = dma.done.wait (%p3951_p1), %s3379_s30, 256  }
 0x5e8   : > { %4125 = vsyncadd (%p3951_p1), %s3379_s30, 4294967040  ;;  %p18_p2 = scmp.ge.s32.totalorder %s4202_s18, 4   ;;  %s6146_s12 = smov %s4132_s13 }
 0x5e9   : > { %s6147_s13 = smov %s4136_s14  ;;  %s6148_s14 = smov %s4214_s21 }
 0x5ea   : > { %s6149_s15 = smov %s4202_s18  ;;  %20 = sbr.rel (!%p18_p2) target bundleno = 9 (0x9), region = 96 }
 0x5ef   :  { %3385 = vsyncpa [#allocation5], 1 }
 0x5f0   :  { %3387 = vsyncpa [#allocation5 + $0x1], 1 }
 0x5f1   :  { %3388 = vsyncpa [#allocation6], 1 }
 0x5f2   :  { %3390 = vsyncpa [#allocation6 + $0x1], 1 }
 0x5f3   :  { %3391 = vsyncpa [#allocation7], 1 }
 0x5f4   :  { %3393 = vsyncpa [#allocation7 + $0x1], 1 }
 0x5f5   :  { %3394 = vsyncpa [#allocation8], 1 }
 0x5f6   :  { %3396 = vsyncpa [#allocation8 + $0x1], 1 }

</bundles_post_ra>
